<compile_context>
chip_gen: v7x
topology: tpu7x:2x2x1
jax: 0.10.0
libtpu: 0.0.40
codegen_flags: <defaults>
</compile_context>

<pallas_src>
import functools
import math

import jax
import jax.numpy as jnp
from jax import lax
from jax.experimental import pallas as pl
from jax.experimental.pallas import tpu as pltpu


# ============================================================================
# small in-kernel helpers
# ============================================================================

def _layer_norm(v, ln_ref, eps):
    """v: (T, C) f32, ln_ref: (2, C) ref with rows [gamma, beta]."""
    g = ln_ref[0:1, :]
    b = ln_ref[1:2, :]
    mu = jnp.mean(v, axis=-1, keepdims=True)
    var = jnp.mean(jnp.square(v - mu), axis=-1, keepdims=True)
    return (v - mu) * jax.lax.rsqrt(var + eps) * g + b


# ============================================================================
# Pallas kernels
# ============================================================================

def _linear_kernel(x_ref, w_ref, b_ref, o_ref, *, activation):
    acc = jnp.dot(x_ref[...], w_ref[...], preferred_element_type=jnp.float32)
    acc = acc + b_ref[...]
    if activation == "relu":
        acc = jnp.maximum(acc, 0.0)
    o_ref[...] = acc.astype(o_ref.dtype)


def linear_pallas(x, w, b, activation=None):
    """y = x @ w + b (optional fused relu).  x:(M,K) w:(K,N) b:(1,N)."""
    M, K = x.shape
    N = w.shape[1]
    return pl.pallas_call(
        functools.partial(_linear_kernel, activation=activation),
        out_shape=jax.ShapeDtypeStruct((M, N), x.dtype),
        grid=(1,),
        in_specs=[
            pl.BlockSpec((M, K), lambda i: (0, 0)),
            pl.BlockSpec((K, N), lambda i: (0, 0)),
            pl.BlockSpec((1, N), lambda i: (0, 0)),
        ],
        out_specs=pl.BlockSpec((M, N), lambda i: (0, 0)),
    )(x, w, b)


# ---------------------------------------------------------------------------
# Fused feed-forward module: y = x + 0.5 * (LN(x) W1 -> swish -> W2), optional
# trailing block-LayerNorm fused in (used for the 2nd FFN of every block).
# ---------------------------------------------------------------------------

def _ffn_kernel(*refs, final_ln, eps):
    if final_ln:
        x_ref, ln_ref, w1_ref, b1_ref, w2_ref, b2_ref, ln2_ref, o_ref = refs
    else:
        x_ref, ln_ref, w1_ref, b1_ref, w2_ref, b2_ref, o_ref = refs
    x = x_ref[0].astype(jnp.float32)                       # (T, C)
    h = _layer_norm(x, ln_ref, eps)
    h = jnp.dot(h, w1_ref[...], preferred_element_type=jnp.float32) + b1_ref[...]
    h = h * jax.nn.sigmoid(h)                              # swish
    h = jnp.dot(h, w2_ref[...], preferred_element_type=jnp.float32) + b2_ref[...]
    y = x + 0.5 * h
    if final_ln:
        y = _layer_norm(y, ln2_ref, eps)
    o_ref[0] = y.astype(o_ref.dtype)


def ffn_pallas(x, p, final_ln_params=None, eps=1e-5):
    B, T, C = x.shape
    Fh = p['w1'].shape[1]
    inputs = [x, p['ln'], p['w1'], p['b1'], p['w2'], p['b2']]
    in_specs = [
        pl.BlockSpec((1, T, C), lambda b: (b, 0, 0)),
        pl.BlockSpec((2, C), lambda b: (0, 0)),
        pl.BlockSpec((C, Fh), lambda b: (0, 0)),
        pl.BlockSpec((1, Fh), lambda b: (0, 0)),
        pl.BlockSpec((Fh, C), lambda b: (0, 0)),
        pl.BlockSpec((1, C), lambda b: (0, 0)),
    ]
    final_ln = final_ln_params is not None
    if final_ln:
        inputs.append(final_ln_params)
        in_specs.append(pl.BlockSpec((2, C), lambda b: (0, 0)))
    return pl.pallas_call(
        functools.partial(_ffn_kernel, final_ln=final_ln, eps=eps),
        out_shape=jax.ShapeDtypeStruct((B, T, C), x.dtype),
        grid=(B,),
        in_specs=in_specs,
        out_specs=pl.BlockSpec((1, T, C), lambda b: (b, 0, 0)),
        compiler_params=pltpu.CompilerParams(dimension_semantics=("parallel",)),
    )(*inputs)


# ---------------------------------------------------------------------------
# Fused relative MHSA, kernel 1: LN + packed QKV projection + pos projection +
# per-head content / positional scores (+ V out).  Heads handled by channel
# masking (keeps all matmuls full 64-lane wide, no 16-wide layouts).
# ---------------------------------------------------------------------------

def _mhsa_qkv_kernel(x_ref, ln_ref, wqkv_ref, bqkv_ref, wpos_ref, pe_ref, uv_ref,
                     content_ref, pos_ref, v_ref, *, heads, d_head, eps):
    C = heads * d_head
    x = x_ref[0].astype(jnp.float32)                       # (T, C)
    h = _layer_norm(x, ln_ref, eps)
    qkv = jnp.dot(h, wqkv_ref[...], preferred_element_type=jnp.float32) + bqkv_ref[...]
    q = qkv[:, :C]
    k = qkv[:, C:2 * C]
    v = qkv[:, 2 * C:3 * C]
    posk = jnp.dot(pe_ref[...].astype(jnp.float32), wpos_ref[...],
                   preferred_element_type=jnp.float32)     # (T, C)
    qu = q + uv_ref[0:1, :]
    qv = q + uv_ref[1:2, :]
    lane = lax.broadcasted_iota(jnp.int32, (1, C), 1)
    dn = (((1,), (1,)), ((), ()))                          # contract channel dims
    for hh in range(heads):
        mask = ((lane >= hh * d_head) & (lane < (hh + 1) * d_head)).astype(jnp.float32)
        content_ref[0, hh, :, :] = lax.dot_general(
            qu * mask, k, dn, preferred_element_type=jnp.float32)
        pos_ref[0, hh, :, :] = lax.dot_general(
            qv * mask, posk, dn, preferred_element_type=jnp.float32)
    v_ref[0] = v.astype(v_ref.dtype)


# ---------------------------------------------------------------------------
# Fused relative MHSA, kernel 2: scale + softmax + PV + output projection +
# residual.  Softmax denominator uses the EUP approx reciprocal.
# ---------------------------------------------------------------------------

def _mhsa_av_kernel(score_ref, v_ref, x_ref, wo_ref, bo_ref, o_ref,
                    *, heads, d_head, scale):
    C = heads * d_head
    v = v_ref[0].astype(jnp.float32)                       # (T, C)
    lane = lax.broadcasted_iota(jnp.int32, (1, C), 1)
    ctx = jnp.zeros_like(v)
    for hh in range(heads):
        mask = ((lane >= hh * d_head) & (lane < (hh + 1) * d_head)).astype(jnp.float32)
        s = score_ref[0, hh, :, :].astype(jnp.float32) * scale   # (T, T)
        m = jnp.max(s, axis=-1, keepdims=True)
        p = jnp.exp(s - m)
        p = p * pl.reciprocal(jnp.sum(p, axis=-1, keepdims=True), approx=True)
        ctx = ctx + jnp.dot(p, v * mask, preferred_element_type=jnp.float32)
    out = jnp.dot(ctx, wo_ref[...], preferred_element_type=jnp.float32) + bo_ref[...]
    o_ref[0] = (x_ref[0].astype(jnp.float32) + out).astype(o_ref.dtype)


def relative_shift(ps):
    """Transformer-XL relative shift (tiny XLA glue between attention kernels)."""
    B, H, T1, T2 = ps.shape
    zeros = jnp.zeros((B, H, T1, 1), ps.dtype)
    padded = jnp.concatenate([zeros, ps], axis=-1)
    padded = padded.reshape(B, H, T2 + 1, T1)
    return padded[:, :, 1:].reshape(B, H, T1, T2)


def mhsa_pallas(x, p, heads, pe):
    B, T, C = x.shape
    d_head = C // heads
    content, pos, v = pl.pallas_call(
        functools.partial(_mhsa_qkv_kernel, heads=heads, d_head=d_head, eps=1e-5),
        out_shape=(jax.ShapeDtypeStruct((B, heads, T, T), jnp.float32),
                   jax.ShapeDtypeStruct((B, heads, T, T), jnp.float32),
                   jax.ShapeDtypeStruct((B, T, C), x.dtype)),
        grid=(B,),
        in_specs=[
            pl.BlockSpec((1, T, C), lambda b: (b, 0, 0)),
            pl.BlockSpec((2, C), lambda b: (0, 0)),
            pl.BlockSpec((C, 3 * C), lambda b: (0, 0)),
            pl.BlockSpec((1, 3 * C), lambda b: (0, 0)),
            pl.BlockSpec((C, C), lambda b: (0, 0)),
            pl.BlockSpec((T, C), lambda b: (0, 0)),
            pl.BlockSpec((2, C), lambda b: (0, 0)),
        ],
        out_specs=(pl.BlockSpec((1, heads, T, T), lambda b: (b, 0, 0, 0)),
                   pl.BlockSpec((1, heads, T, T), lambda b: (b, 0, 0, 0)),
                   pl.BlockSpec((1, T, C), lambda b: (b, 0, 0))),
        compiler_params=pltpu.CompilerParams(dimension_semantics=("parallel",)),
    )(x, p['ln'], p['wqkv'], p['bqkv'], p['wpos'], pe, p['uv'])

    # TODO(synk): the rel-shift pad/reshape stays as (tiny) XLA glue; an in-kernel
    #             gather/relayout has no robust Mosaic lowering at these shapes.
    score = content + relative_shift(pos)

    return pl.pallas_call(
        functools.partial(_mhsa_av_kernel, heads=heads, d_head=d_head,
                          scale=1.0 / math.sqrt(C)),
        out_shape=jax.ShapeDtypeStruct((B, T, C), x.dtype),
        grid=(B,),
        in_specs=[
            pl.BlockSpec((1, heads, T, T), lambda b: (b, 0, 0, 0)),
            pl.BlockSpec((1, T, C), lambda b: (b, 0, 0)),
            pl.BlockSpec((1, T, C), lambda b: (b, 0, 0)),
            pl.BlockSpec((C, C), lambda b: (0, 0)),
            pl.BlockSpec((1, C), lambda b: (0, 0)),
        ],
        out_specs=pl.BlockSpec((1, T, C), lambda b: (b, 0, 0)),
        compiler_params=pltpu.CompilerParams(dimension_semantics=("parallel",)),
    )(score, v, x, p['wo'], p['bo'])


# ---------------------------------------------------------------------------
# Fused convolution module: LN + pointwise(2x) + GLU + depthwise conv
# (expressed as constant shift-matrix matmuls -> no in-kernel padding) +
# BatchNorm(eval) + swish + pointwise + residual.
# ---------------------------------------------------------------------------

def _conv_module_kernel(x_ref, ln_ref, pw1w_ref, pw1b_ref, dw_ref, bn_ref,
                        pw2w_ref, pw2b_ref, o_ref, *, eps):
    x = x_ref[0].astype(jnp.float32)                       # (T, C)
    T, C = x.shape
    h = _layer_norm(x, ln_ref, eps)
    h1 = jnp.dot(h, pw1w_ref[...], preferred_element_type=jnp.float32) + pw1b_ref[...]
    xg = h1[:, :C] * jax.nn.sigmoid(h1[:, C:])             # GLU
    w_dw = dw_ref[...]                                     # (K, C)
    K = w_dw.shape[0]
    pad = (K - 1) // 2
    row = lax.broadcasted_iota(jnp.int32, (T, T), 0)
    col = lax.broadcasted_iota(jnp.int32, (T, T), 1)
    acc = jnp.zeros((T, C), jnp.float32)
    for k in range(K):                                     # static tap loop
        off = k - pad
        if abs(off) >= T:                                  # tap fully outside ('same' pad)
            continue
        shift = (col == row + off).astype(jnp.float32)     # constant shift matrix
        acc = acc + jnp.dot(shift, xg,
                            preferred_element_type=jnp.float32) * w_dw[k:k + 1, :]
    bn_g, bn_b = bn_ref[0:1, :], bn_ref[1:2, :]
    bn_rm, bn_rv = bn_ref[2:3, :], bn_ref[3:4, :]
    y = (acc - bn_rm) * jax.lax.rsqrt(bn_rv + 1e-5) * bn_g + bn_b
    y = y * jax.nn.sigmoid(y)                              # swish
    y = jnp.dot(y, pw2w_ref[...], preferred_element_type=jnp.float32) + pw2b_ref[...]
    o_ref[0] = (x + y).astype(o_ref.dtype)


def conv_module_pallas(x, p, eps=1e-5):
    B, T, C = x.shape
    K = p['dw_w'].shape[0]
    return pl.pallas_call(
        functools.partial(_conv_module_kernel, eps=eps),
        out_shape=jax.ShapeDtypeStruct((B, T, C), x.dtype),
        grid=(B,),
        in_specs=[
            pl.BlockSpec((1, T, C), lambda b: (b, 0, 0)),
            pl.BlockSpec((2, C), lambda b: (0, 0)),
            pl.BlockSpec((C, 2 * C), lambda b: (0, 0)),
            pl.BlockSpec((1, 2 * C), lambda b: (0, 0)),
            pl.BlockSpec((K, C), lambda b: (0, 0)),
            pl.BlockSpec((4, C), lambda b: (0, 0)),
            pl.BlockSpec((C, C), lambda b: (0, 0)),
            pl.BlockSpec((1, C), lambda b: (0, 0)),
        ],
        out_specs=pl.BlockSpec((1, T, C), lambda b: (b, 0, 0)),
        compiler_params=pltpu.CompilerParams(dimension_semantics=("parallel",)),
    )(x, p['ln'], p['pw1_w'], p['pw1_b'], p['dw_w'], p['bn'], p['pw2_w'], p['pw2_b'])


# ---------------------------------------------------------------------------
# Fused classification head: mean over time + Linear + ReLU + Linear.
# ---------------------------------------------------------------------------

def _head_kernel(h_ref, w1_ref, b1_ref, w2_ref, b2_ref, o_ref):
    h = h_ref[...].astype(jnp.float32)                     # (B, T, C)
    stats = jnp.mean(h, axis=1)                            # (B, C)
    z = jnp.dot(stats, w1_ref[...], preferred_element_type=jnp.float32) + b1_ref[...]
    z = jnp.maximum(z, 0.0)
    out = jnp.dot(z, w2_ref[...], preferred_element_type=jnp.float32) + b2_ref[...]
    o_ref[...] = out.astype(o_ref.dtype)


def head_pallas(h, w1, b1, w2, b2):
    B, T, C = h.shape
    N = w2.shape[1]
    return pl.pallas_call(
        _head_kernel,
        out_shape=jax.ShapeDtypeStruct((B, N), h.dtype),
        grid=(1,),
        in_specs=[
            pl.BlockSpec((B, T, C), lambda i: (0, 0, 0)),
            pl.BlockSpec((C, C), lambda i: (0, 0)),
            pl.BlockSpec((1, C), lambda i: (0, 0)),
            pl.BlockSpec((C, N), lambda i: (0, 0)),
            pl.BlockSpec((1, N), lambda i: (0, 0)),
        ],
        out_specs=pl.BlockSpec((B, N), lambda i: (0, 0)),
    )(h, w1, b1, w2, b2)


# ============================================================================
# Front-end glue (runs once, not per layer)
# ============================================================================

def conv2d_s2_relu_pallas(x, w, b):
    """Conv2d(k=3, s=2, p=0) + ReLU via im2col + fused Pallas matmul+ReLU.
    x: (B, Cin, H, W) NCHW, w: (Cout, Cin, 3, 3), b: (1, Cout)."""
    # TODO(synk): patch extraction stays as XLA strided slices; an in-kernel
    #             stride-2 gather would remove a few HBM intermediates.
    B, Cin, H, W = x.shape
    Cout = w.shape[0]
    Ho = (H - 3) // 2 + 1
    Wo = (W - 3) // 2 + 1
    patches = []
    for kh in range(3):
        for kw in range(3):
            patches.append(x[:, :, kh:kh + 2 * (Ho - 1) + 1:2,
                               kw:kw + 2 * (Wo - 1) + 1:2])
    p = jnp.stack(patches, axis=2)                          # (B, Cin, 9, Ho, Wo)
    p = p.transpose(0, 3, 4, 1, 2).reshape(B * Ho * Wo, Cin * 9)
    wm = w.reshape(Cout, Cin * 9).T                         # (Cin*9, Cout)
    out = linear_pallas(p, wm, b, activation="relu")
    return out.reshape(B, Ho, Wo, Cout).transpose(0, 3, 1, 2)


def sinusoidal_pe(length, d_model):
    position = jnp.arange(length, dtype=jnp.float32)[:, None]
    div_term = jnp.exp(jnp.arange(0, d_model, 2, dtype=jnp.float32) *
                       (-math.log(10000.0) / d_model))
    pe = jnp.zeros((length, d_model), jnp.float32)
    pe = pe.at[:, 0::2].set(jnp.sin(position * div_term))
    pe = pe.at[:, 1::2].set(jnp.cos(position * div_term))
    return pe


def conformer_block(x, p, heads, pe):
    x = ffn_pallas(x, p['ff1'])                         # x + 0.5*FF1(x)
    x = mhsa_pallas(x, p['mhsa'], heads, pe)            # x + MHSA(x)
    x = conv_module_pallas(x, p['conv'])                # x + Conv(x)
    x = ffn_pallas(x, p['ff2'], final_ln_params=p['ln'])  # LN(x + 0.5*FF2(x))
    return x


# ============================================================================
# Full Classifier forward
# ============================================================================

def classifier_forward(params, mels, config):
    B, L, _ = mels.shape
    d_model = config['d_model']
    heads = config['nhead']
    enc = 64

    # prenet: Linear(40 -> d_model)
    x = linear_pallas(mels.reshape(B * L, 40), params['prenet_w'],
                      params['prenet_b']).reshape(B, L, d_model)

    # Conv2dSubsampling: (B,1,L,d_model) NCHW, two conv(k3,s2)+ReLU
    h = x[:, None, :, :]
    h = conv2d_s2_relu_pallas(h, params['sub_w1'], params['sub_b1'])
    h = conv2d_s2_relu_pallas(h, params['sub_w2'], params['sub_b2'])
    _, Cc, T, F = h.shape
    h = h.transpose(0, 2, 1, 3).reshape(B, T, Cc * F)
    # input projection (dropout is identity at inference)
    h = linear_pallas(h.reshape(B * T, Cc * F), params['proj_w'],
                      params['proj_b']).reshape(B, T, enc)

    # positional encoding hoisted out of the layer loop (constant under jit)
    pe = sinusoidal_pe(T, enc)
    for lp in params['layers']:
        h = conformer_block(h, lp, heads, pe)

    # config['linear'] == 0 -> self.linear_layer branch skipped.
    # TODO(synk): `self.linear_layer` is never defined in the PyTorch __init__,
    #             so the config['linear'] > 0 branch cannot run.

    # mean pool + pred_layers fused in one kernel
    return head_pallas(h, params['pred_w1'], params['pred_b1'],
                       params['pred_w2'], params['pred_b2'])


# ============================================================================
# Deterministic parameter initialisation (shapes follow the PyTorch module,
# packed into kernel-friendly layouts: LN=(2,C)[g;b], BN=(4,C)[g;b;rm;rv],
# QKV weights packed (C,3C), u/v biases flattened head-major into (2,C)).
# ============================================================================

class KeyGen:
    def __init__(self, seed):
        self.key = jax.random.PRNGKey(seed)

    def __call__(self):
        self.key, sub = jax.random.split(self.key)
        return sub


def init_params(config, n_spks, seed=0):
    d_model = config['d_model']
    enc = 64
    heads = config['nhead']
    d_head = enc // heads
    ff = config['feedforward']
    keys = KeyGen(seed)

    def dense(fan_in, fan_out):
        bound = 1.0 / math.sqrt(fan_in)
        w = jax.random.uniform(keys(), (fan_in, fan_out), jnp.float32, -bound, bound)
        b = jax.random.uniform(keys(), (1, fan_out), jnp.float32, -bound, bound)
        return w, b

    def conv2d(cout, cin):
        bound = 1.0 / math.sqrt(cin * 9)
        w = jax.random.uniform(keys(), (cout, cin, 3, 3), jnp.float32, -bound, bound)
        b = jax.random.uniform(keys(), (1, cout), jnp.float32, -bound, bound)
        return w, b

    def ln(c):
        return jnp.concatenate([jnp.ones((1, c), jnp.float32),
                                jnp.zeros((1, c), jnp.float32)], axis=0)

    params = {}
    params['prenet_w'], params['prenet_b'] = dense(40, d_model)
    params['sub_w1'], params['sub_b1'] = conv2d(enc, 1)
    params['sub_w2'], params['sub_b2'] = conv2d(enc, enc)
    proj_in = enc * (((d_model - 1) // 2 - 1) // 2)
    params['proj_w'], params['proj_b'] = dense(proj_in, enc)

    layers = []
    for _ in range(config['num_layers']):
        lp = {}
        for name in ('ff1', 'ff2'):
            w1, b1 = dense(enc, enc * ff)
            w2, b2 = dense(enc * ff, enc)
            lp[name] = {'ln': ln(enc), 'w1': w1, 'b1': b1, 'w2': w2, 'b2': b2}

        wqkv, bqkv = dense(enc, 3 * enc)          # packed [Wq | Wk | Wv]
        wpos, _ = dense(enc, enc)                 # pos_proj has no bias
        wo, bo = dense(enc, enc)
        xav = math.sqrt(6.0 / (heads + d_head))
        uv = jax.random.uniform(keys(), (2, enc), jnp.float32, -xav, xav)
        lp['mhsa'] = {'ln': ln(enc), 'wqkv': wqkv, 'bqkv': bqkv, 'wpos': wpos,
                      'wo': wo, 'bo': bo, 'uv': uv}

        pw1_w, pw1_b = dense(enc, 2 * enc)
        dwb = 1.0 / math.sqrt(31)
        dw_w = jax.random.uniform(keys(), (31, enc), jnp.float32, -dwb, dwb)
        bn = jnp.concatenate([jnp.ones((1, enc)), jnp.zeros((1, enc)),
                              jnp.zeros((1, enc)), jnp.ones((1, enc))],
                             axis=0).astype(jnp.float32)
        pw2_w, pw2_b = dense(enc, enc)
        lp['conv'] = {'ln': ln(enc), 'pw1_w': pw1_w, 'pw1_b': pw1_b, 'dw_w': dw_w,
                      'bn': bn, 'pw2_w': pw2_w, 'pw2_b': pw2_b}

        lp['ln'] = ln(enc)
        layers.append(lp)
    params['layers'] = layers

    params['pred_w1'], params['pred_b1'] = dense(enc, enc)
    params['pred_w2'], params['pred_b2'] = dense(enc, n_spks)
    return params


# ============================================================================
# Main
# ============================================================================

if __name__ == "__main__":
    config = {'d_model': 80, 'dropout': 0.1, 'linear': 0,
              'num_layers': 2, 'nhead': 4, 'feedforward': 4}
    n_spks = 600

    params = init_params(config, n_spks, seed=0)

    key = jax.random.PRNGKey(0)
    mels = jax.random.normal(key, (2, 32, 40), jnp.float32)   # (B, length, 40)

    fwd = jax.jit(lambda p, m: classifier_forward(p, m, config))
    out = jax.block_until_ready(fwd(params, mels))

    assert out.shape == (2, n_spks), out.shape
    assert bool(jnp.all(jnp.isfinite(out)))
    print("KERNEL_OK")
</pallas_src>

<mosaic_0001>
module attributes {stable_mosaic.version = 11 : i64} {
  func.func @_linear_kernel(%arg0: i32, %arg1: memref<64x40xf32, #tpu.memory_space<vmem>>, %arg2: memref<40x80xf32, #tpu.memory_space<vmem>>, %arg3: memref<1x80xf32, #tpu.memory_space<vmem>>, %arg4: memref<64x80xf32, #tpu.memory_space<vmem>>) attributes {dimension_semantics = [#tpu.dimension_semantics<arbitrary>], iteration_bounds = array<i64: 1>, scalar_prefetch = 0 : i64, scratch_operands = 0 : i64, tpu.core_type = #tpu.core_type<tc>, window_params = [{pipeline_mode = #tpu.pipeline_mode<synchronous>, transform_indices = @transform_0, window_bounds = array<i64: 64, 40>}, {pipeline_mode = #tpu.pipeline_mode<synchronous>, transform_indices = @transform_1, window_bounds = array<i64: 40, 80>}, {pipeline_mode = #tpu.pipeline_mode<synchronous>, transform_indices = @transform_2, window_bounds = array<i64: 1, 80>}, {pipeline_mode = #tpu.pipeline_mode<synchronous>, transform_indices = @transform_3, window_bounds = array<i64: 64, 80>}]} {
    %c0 = arith.constant 0 : index
    %c0_0 = arith.constant 0 : index
    %0 = vector.load %arg1[%c0, %c0_0] : memref<64x40xf32, #tpu.memory_space<vmem>>, vector<64x40xf32>
    %c0_1 = arith.constant 0 : index
    %c0_2 = arith.constant 0 : index
    %1 = vector.load %arg2[%c0_1, %c0_2] : memref<40x80xf32, #tpu.memory_space<vmem>>, vector<40x80xf32>
    %cst = arith.constant dense<0.000000e+00> : vector<64x80xf32>
    %2 = tpu.matmul %0, %1, %cst {dimension_numbers = #tpu.dot_dimension_numbers<[1], [0], [0], [1], [0, 0, 1, 1], [], []>} : vector<64x40xf32>, vector<40x80xf32>, vector<64x80xf32> -> vector<64x80xf32>
    %c0_3 = arith.constant 0 : index
    %c0_4 = arith.constant 0 : index
    %3 = vector.load %arg3[%c0_3, %c0_4] : memref<1x80xf32, #tpu.memory_space<vmem>>, vector<1x80xf32>
    %4 = vector.broadcast %3 : vector<1x80xf32> to vector<64x80xf32>
    %5 = arith.addf %2, %4 : vector<64x80xf32>
    %c0_5 = arith.constant 0 : index
    %c0_6 = arith.constant 0 : index
    %6 = vector.load %arg4[%c0_5, %c0_6] : memref<64x80xf32, #tpu.memory_space<vmem>>, vector<64x80xf32>
    tpu.vector_store %arg4[%c0_5, %c0_6], %5 {strides = array<i32>} : memref<64x80xf32, #tpu.memory_space<vmem>>, vector<64x80xf32>,
    return
  }
  func.func @transform_0(%arg0: i32) -> (i32, i32) {
    %c0_i32 = arith.constant 0 : i32
    %c0_i32_0 = arith.constant 0 : i32
    %c0_i32_1 = arith.constant 0 : i32
    return %c0_i32, %c0_i32_0 : i32, i32
  }
  func.func @transform_1(%arg0: i32) -> (i32, i32) {
    %c0_i32 = arith.constant 0 : i32
    %c0_i32_0 = arith.constant 0 : i32
    %c0_i32_1 = arith.constant 0 : i32
    return %c0_i32, %c0_i32_0 : i32, i32
  }
  func.func @transform_2(%arg0: i32) -> (i32, i32) {
    %c0_i32 = arith.constant 0 : i32
    %c0_i32_0 = arith.constant 0 : i32
    %c0_i32_1 = arith.constant 0 : i32
    return %c0_i32, %c0_i32_0 : i32, i32
  }
  func.func @transform_3(%arg0: i32) -> (i32, i32) {
    %c0_i32 = arith.constant 0 : i32
    %c0_i32_0 = arith.constant 0 : i32
    %c0_i32_1 = arith.constant 0 : i32
    return %c0_i32, %c0_i32_0 : i32, i32
  }
}

module attributes {stable_mosaic.version = 11 : i64} {
  func.func @_linear_kernel(%arg0: i32, %arg1: memref<1170x9xf32, #tpu.memory_space<vmem>>, %arg2: memref<9x64xf32, #tpu.memory_space<vmem>>, %arg3: memref<1x64xf32, #tpu.memory_space<vmem>>, %arg4: memref<1170x64xf32, #tpu.memory_space<vmem>>) attributes {dimension_semantics = [#tpu.dimension_semantics<arbitrary>], iteration_bounds = array<i64: 1>, scalar_prefetch = 0 : i64, scratch_operands = 0 : i64, tpu.core_type = #tpu.core_type<tc>, window_params = [{pipeline_mode = #tpu.pipeline_mode<synchronous>, transform_indices = @transform_0, window_bounds = array<i64: 1170, 9>}, {pipeline_mode = #tpu.pipeline_mode<synchronous>, transform_indices = @transform_1, window_bounds = array<i64: 9, 64>}, {pipeline_mode = #tpu.pipeline_mode<synchronous>, transform_indices = @transform_2, window_bounds = array<i64: 1, 64>}, {pipeline_mode = #tpu.pipeline_mode<synchronous>, transform_indices = @transform_3, window_bounds = array<i64: 1170, 64>}]} {
    %c0 = arith.constant 0 : index
    %c0_0 = arith.constant 0 : index
    %0 = vector.load %arg1[%c0, %c0_0] : memref<1170x9xf32, #tpu.memory_space<vmem>>, vector<1170x9xf32>
    %c0_1 = arith.constant 0 : index
    %c0_2 = arith.constant 0 : index
    %1 = vector.load %arg2[%c0_1, %c0_2] : memref<9x64xf32, #tpu.memory_space<vmem>>, vector<9x64xf32>
    %cst = arith.constant dense<0.000000e+00> : vector<1170x64xf32>
    %2 = tpu.matmul %0, %1, %cst {dimension_numbers = #tpu.dot_dimension_numbers<[1], [0], [0], [1], [0, 0, 1, 1], [], []>} : vector<1170x9xf32>, vector<9x64xf32>, vector<1170x64xf32> -> vector<1170x64xf32>
    %c0_3 = arith.constant 0 : index
    %c0_4 = arith.constant 0 : index
    %3 = vector.load %arg3[%c0_3, %c0_4] : memref<1x64xf32, #tpu.memory_space<vmem>>, vector<1x64xf32>
    %4 = vector.broadcast %3 : vector<1x64xf32> to vector<1170x64xf32>
    %5 = arith.addf %2, %4 : vector<1170x64xf32>
    %cst_5 = arith.constant 0.000000e+00 : f32
    %6 = vector.broadcast %cst_5 : f32 to vector<1170x64xf32>
    %7 = arith.maximumf %5, %6 : vector<1170x64xf32>
    %c0_6 = arith.constant 0 : index
    %c0_7 = arith.constant 0 : index
    %8 = vector.load %arg4[%c0_6, %c0_7] : memref<1170x64xf32, #tpu.memory_space<vmem>>, vector<1170x64xf32>
    tpu.vector_store %arg4[%c0_6, %c0_7], %7 {strides = array<i32>} : memref<1170x64xf32, #tpu.memory_space<vmem>>, vector<1170x64xf32>,
    return
  }
  func.func @transform_0(%arg0: i32) -> (i32, i32) {
    %c0_i32 = arith.constant 0 : i32
    %c0_i32_0 = arith.constant 0 : i32
    %c0_i32_1 = arith.constant 0 : i32
    return %c0_i32, %c0_i32_0 : i32, i32
  }
  func.func @transform_1(%arg0: i32) -> (i32, i32) {
    %c0_i32 = arith.constant 0 : i32
    %c0_i32_0 = arith.constant 0 : i32
    %c0_i32_1 = arith.constant 0 : i32
    return %c0_i32, %c0_i32_0 : i32, i32
  }
  func.func @transform_2(%arg0: i32) -> (i32, i32) {
    %c0_i32 = arith.constant 0 : i32
    %c0_i32_0 = arith.constant 0 : i32
    %c0_i32_1 = arith.constant 0 : i32
    return %c0_i32, %c0_i32_0 : i32, i32
  }
  func.func @transform_3(%arg0: i32) -> (i32, i32) {
    %c0_i32 = arith.constant 0 : i32
    %c0_i32_0 = arith.constant 0 : i32
    %c0_i32_1 = arith.constant 0 : i32
    return %c0_i32, %c0_i32_0 : i32, i32
  }
}

module attributes {stable_mosaic.version = 11 : i64} {
  func.func @_linear_kernel(%arg0: i32, %arg1: memref<266x576xf32, #tpu.memory_space<vmem>>, %arg2: memref<576x64xf32, #tpu.memory_space<vmem>>, %arg3: memref<1x64xf32, #tpu.memory_space<vmem>>, %arg4: memref<266x64xf32, #tpu.memory_space<vmem>>) attributes {dimension_semantics = [#tpu.dimension_semantics<arbitrary>], iteration_bounds = array<i64: 1>, scalar_prefetch = 0 : i64, scratch_operands = 0 : i64, tpu.core_type = #tpu.core_type<tc>, window_params = [{pipeline_mode = #tpu.pipeline_mode<synchronous>, transform_indices = @transform_0, window_bounds = array<i64: 266, 576>}, {pipeline_mode = #tpu.pipeline_mode<synchronous>, transform_indices = @transform_1, window_bounds = array<i64: 576, 64>}, {pipeline_mode = #tpu.pipeline_mode<synchronous>, transform_indices = @transform_2, window_bounds = array<i64: 1, 64>}, {pipeline_mode = #tpu.pipeline_mode<synchronous>, transform_indices = @transform_3, window_bounds = array<i64: 266, 64>}]} {
    %c0 = arith.constant 0 : index
    %c0_0 = arith.constant 0 : index
    %0 = vector.load %arg1[%c0, %c0_0] : memref<266x576xf32, #tpu.memory_space<vmem>>, vector<266x576xf32>
    %c0_1 = arith.constant 0 : index
    %c0_2 = arith.constant 0 : index
    %1 = vector.load %arg2[%c0_1, %c0_2] : memref<576x64xf32, #tpu.memory_space<vmem>>, vector<576x64xf32>
    %cst = arith.constant dense<0.000000e+00> : vector<266x64xf32>
    %2 = tpu.matmul %0, %1, %cst {dimension_numbers = #tpu.dot_dimension_numbers<[1], [0], [0], [1], [0, 0, 1, 1], [], []>} : vector<266x576xf32>, vector<576x64xf32>, vector<266x64xf32> -> vector<266x64xf32>
    %c0_3 = arith.constant 0 : index
    %c0_4 = arith.constant 0 : index
    %3 = vector.load %arg3[%c0_3, %c0_4] : memref<1x64xf32, #tpu.memory_space<vmem>>, vector<1x64xf32>
    %4 = vector.broadcast %3 : vector<1x64xf32> to vector<266x64xf32>
    %5 = arith.addf %2, %4 : vector<266x64xf32>
    %cst_5 = arith.constant 0.000000e+00 : f32
    %6 = vector.broadcast %cst_5 : f32 to vector<266x64xf32>
    %7 = arith.maximumf %5, %6 : vector<266x64xf32>
    %c0_6 = arith.constant 0 : index
    %c0_7 = arith.constant 0 : index
    %8 = vector.load %arg4[%c0_6, %c0_7] : memref<266x64xf32, #tpu.memory_space<vmem>>, vector<266x64xf32>
    tpu.vector_store %arg4[%c0_6, %c0_7], %7 {strides = array<i32>} : memref<266x64xf32, #tpu.memory_space<vmem>>, vector<266x64xf32>,
    return
  }
  func.func @transform_0(%arg0: i32) -> (i32, i32) {
    %c0_i32 = arith.constant 0 : i32
    %c0_i32_0 = arith.constant 0 : i32
    %c0_i32_1 = arith.constant 0 : i32
    return %c0_i32, %c0_i32_0 : i32, i32
  }
  func.func @transform_1(%arg0: i32) -> (i32, i32) {
    %c0_i32 = arith.constant 0 : i32
    %c0_i32_0 = arith.constant 0 : i32
    %c0_i32_1 = arith.constant 0 : i32
    return %c0_i32, %c0_i32_0 : i32, i32
  }
  func.func @transform_2(%arg0: i32) -> (i32, i32) {
    %c0_i32 = arith.constant 0 : i32
    %c0_i32_0 = arith.constant 0 : i32
    %c0_i32_1 = arith.constant 0 : i32
    return %c0_i32, %c0_i32_0 : i32, i32
  }
  func.func @transform_3(%arg0: i32) -> (i32, i32) {
    %c0_i32 = arith.constant 0 : i32
    %c0_i32_0 = arith.constant 0 : i32
    %c0_i32_1 = arith.constant 0 : i32
    return %c0_i32, %c0_i32_0 : i32, i32
  }
}

module attributes {stable_mosaic.version = 11 : i64} {
  func.func @_linear_kernel(%arg0: i32, %arg1: memref<14x1216xf32, #tpu.memory_space<vmem>>, %arg2: memref<1216x64xf32, #tpu.memory_space<vmem>>, %arg3: memref<1x64xf32, #tpu.memory_space<vmem>>, %arg4: memref<14x64xf32, #tpu.memory_space<vmem>>) attributes {dimension_semantics = [#tpu.dimension_semantics<arbitrary>], iteration_bounds = array<i64: 1>, scalar_prefetch = 0 : i64, scratch_operands = 0 : i64, tpu.core_type = #tpu.core_type<tc>, window_params = [{pipeline_mode = #tpu.pipeline_mode<synchronous>, transform_indices = @transform_0, window_bounds = array<i64: 14, 1216>}, {pipeline_mode = #tpu.pipeline_mode<synchronous>, transform_indices = @transform_1, window_bounds = array<i64: 1216, 64>}, {pipeline_mode = #tpu.pipeline_mode<synchronous>, transform_indices = @transform_2, window_bounds = array<i64: 1, 64>}, {pipeline_mode = #tpu.pipeline_mode<synchronous>, transform_indices = @transform_3, window_bounds = array<i64: 14, 64>}]} {
    %c0 = arith.constant 0 : index
    %c0_0 = arith.constant 0 : index
    %0 = vector.load %arg1[%c0, %c0_0] : memref<14x1216xf32, #tpu.memory_space<vmem>>, vector<14x1216xf32>
    %c0_1 = arith.constant 0 : index
    %c0_2 = arith.constant 0 : index
    %1 = vector.load %arg2[%c0_1, %c0_2] : memref<1216x64xf32, #tpu.memory_space<vmem>>, vector<1216x64xf32>
    %cst = arith.constant dense<0.000000e+00> : vector<14x64xf32>
    %2 = tpu.matmul %0, %1, %cst {dimension_numbers = #tpu.dot_dimension_numbers<[1], [0], [0], [1], [0, 0, 1, 1], [], []>} : vector<14x1216xf32>, vector<1216x64xf32>, vector<14x64xf32> -> vector<14x64xf32>
    %c0_3 = arith.constant 0 : index
    %c0_4 = arith.constant 0 : index
    %3 = vector.load %arg3[%c0_3, %c0_4] : memref<1x64xf32, #tpu.memory_space<vmem>>, vector<1x64xf32>
    %4 = vector.broadcast %3 : vector<1x64xf32> to vector<14x64xf32>
    %5 = arith.addf %2, %4 : vector<14x64xf32>
    %c0_5 = arith.constant 0 : index
    %c0_6 = arith.constant 0 : index
    %6 = vector.load %arg4[%c0_5, %c0_6] : memref<14x64xf32, #tpu.memory_space<vmem>>, vector<14x64xf32>
    tpu.vector_store %arg4[%c0_5, %c0_6], %5 {strides = array<i32>} : memref<14x64xf32, #tpu.memory_space<vmem>>, vector<14x64xf32>,
    return
  }
  func.func @transform_0(%arg0: i32) -> (i32, i32) {
    %c0_i32 = arith.constant 0 : i32
    %c0_i32_0 = arith.constant 0 : i32
    %c0_i32_1 = arith.constant 0 : i32
    return %c0_i32, %c0_i32_0 : i32, i32
  }
  func.func @transform_1(%arg0: i32) -> (i32, i32) {
    %c0_i32 = arith.constant 0 : i32
    %c0_i32_0 = arith.constant 0 : i32
    %c0_i32_1 = arith.constant 0 : i32
    return %c0_i32, %c0_i32_0 : i32, i32
  }
  func.func @transform_2(%arg0: i32) -> (i32, i32) {
    %c0_i32 = arith.constant 0 : i32
    %c0_i32_0 = arith.constant 0 : i32
    %c0_i32_1 = arith.constant 0 : i32
    return %c0_i32, %c0_i32_0 : i32, i32
  }
  func.func @transform_3(%arg0: i32) -> (i32, i32) {
    %c0_i32 = arith.constant 0 : i32
    %c0_i32_0 = arith.constant 0 : i32
    %c0_i32_1 = arith.constant 0 : i32
    return %c0_i32, %c0_i32_0 : i32, i32
  }
}

module attributes {stable_mosaic.version = 11 : i64} {
  func.func @_ffn_kernel(%arg0: i32, %arg1: memref<1x7x64xf32, #tpu.memory_space<vmem>>, %arg2: memref<2x64xf32, #tpu.memory_space<vmem>>, %arg3: memref<64x256xf32, #tpu.memory_space<vmem>>, %arg4: memref<1x256xf32, #tpu.memory_space<vmem>>, %arg5: memref<256x64xf32, #tpu.memory_space<vmem>>, %arg6: memref<1x64xf32, #tpu.memory_space<vmem>>, %arg7: memref<1x7x64xf32, #tpu.memory_space<vmem>>) attributes {dimension_semantics = [#tpu.dimension_semantics<parallel>], iteration_bounds = array<i64: 2>, scalar_prefetch = 0 : i64, scratch_operands = 0 : i64, tpu.core_type = #tpu.core_type<tc>, window_params = [{transform_indices = @transform_0, window_bounds = array<i64: 1, 7, 64>}, {pipeline_mode = #tpu.pipeline_mode<synchronous>, transform_indices = @transform_1, window_bounds = array<i64: 2, 64>}, {pipeline_mode = #tpu.pipeline_mode<synchronous>, transform_indices = @transform_2, window_bounds = array<i64: 64, 256>}, {pipeline_mode = #tpu.pipeline_mode<synchronous>, transform_indices = @transform_3, window_bounds = array<i64: 1, 256>}, {pipeline_mode = #tpu.pipeline_mode<synchronous>, transform_indices = @transform_4, window_bounds = array<i64: 256, 64>}, {pipeline_mode = #tpu.pipeline_mode<synchronous>, transform_indices = @transform_5, window_bounds = array<i64: 1, 64>}, {transform_indices = @transform_6, window_bounds = array<i64: 1, 7, 64>}]} {
    %c0 = arith.constant 0 : index
    %c0_0 = arith.constant 0 : index
    %c0_1 = arith.constant 0 : index
    %0 = vector.load %arg1[%c0, %c0_0, %c0_1] : memref<1x7x64xf32, #tpu.memory_space<vmem>>, vector<1x7x64xf32>
    %1 = vector.shape_cast %0 : vector<1x7x64xf32> to vector<7x64xf32>
    %c0_2 = arith.constant 0 : index
    %c0_3 = arith.constant 0 : index
    %2 = vector.load %arg2[%c0_2, %c0_3] : memref<2x64xf32, #tpu.memory_space<vmem>>, vector<1x64xf32>
    %c1 = arith.constant 1 : index
    %c0_4 = arith.constant 0 : index
    %3 = vector.load %arg2[%c1, %c0_4] : memref<2x64xf32, #tpu.memory_space<vmem>>, vector<1x64xf32>
    %cst = arith.constant dense<0.000000e+00> : vector<7xf32>
    %4 = vector.multi_reduction <add>, %1, %cst [1] : vector<7x64xf32> to vector<7xf32>
    %5 = vector.shape_cast %4 : vector<7xf32> to vector<7x1xf32>
    %cst_5 = arith.constant 6.400000e+01 : f32
    %6 = vector.broadcast %cst_5 : f32 to vector<7x1xf32>
    %7 = arith.divf %5, %6 : vector<7x1xf32>
    %8 = vector.broadcast %7 : vector<7x1xf32> to vector<7x64xf32>
    %9 = arith.subf %1, %8 : vector<7x64xf32>
    %10 = arith.mulf %9, %9 : vector<7x64xf32>
    %cst_6 = arith.constant dense<0.000000e+00> : vector<7xf32>
    %11 = vector.multi_reduction <add>, %10, %cst_6 [1] : vector<7x64xf32> to vector<7xf32>
    %12 = vector.shape_cast %11 : vector<7xf32> to vector<7x1xf32>
    %cst_7 = arith.constant 6.400000e+01 : f32
    %13 = vector.broadcast %cst_7 : f32 to vector<7x1xf32>
    %14 = arith.divf %12, %13 : vector<7x1xf32>
    %15 = vector.broadcast %7 : vector<7x1xf32> to vector<7x64xf32>
    %16 = arith.subf %1, %15 : vector<7x64xf32>
    %cst_8 = arith.constant 9.99999974E-6 : f32
    %17 = vector.broadcast %cst_8 : f32 to vector<7x1xf32>
    %18 = arith.addf %14, %17 : vector<7x1xf32>
    %19 = math.rsqrt %18 : vector<7x1xf32>
    %20 = vector.broadcast %19 : vector<7x1xf32> to vector<7x64xf32>
    %21 = arith.mulf %16, %20 : vector<7x64xf32>
    %22 = vector.broadcast %2 : vector<1x64xf32> to vector<7x64xf32>
    %23 = arith.mulf %21, %22 : vector<7x64xf32>
    %24 = vector.broadcast %3 : vector<1x64xf32> to vector<7x64xf32>
    %25 = arith.addf %23, %24 : vector<7x64xf32>
    %c0_9 = arith.constant 0 : index
    %c0_10 = arith.constant 0 : index
    %26 = vector.load %arg3[%c0_9, %c0_10] : memref<64x256xf32, #tpu.memory_space<vmem>>, vector<64x256xf32>
    %cst_11 = arith.constant dense<0.000000e+00> : vector<7x256xf32>
    %27 = tpu.matmul %25, %26, %cst_11 {dimension_numbers = #tpu.dot_dimension_numbers<[1], [0], [0], [1], [0, 0, 1, 1], [], []>} : vector<7x64xf32>, vector<64x256xf32>, vector<7x256xf32> -> vector<7x256xf32>
    %c0_12 = arith.constant 0 : index
    %c0_13 = arith.constant 0 : index
    %28 = vector.load %arg4[%c0_12, %c0_13] : memref<1x256xf32, #tpu.memory_space<vmem>>, vector<1x256xf32>
    %29 = vector.broadcast %28 : vector<1x256xf32> to vector<7x256xf32>
    %30 = arith.addf %27, %29 : vector<7x256xf32>
    %31 = arith.negf %30 : vector<7x256xf32>
    %32 = math.exp %31 : vector<7x256xf32>
    %cst_14 = arith.constant 1.000000e+00 : f32
    %33 = vector.broadcast %cst_14 : f32 to vector<7x256xf32>
    %34 = arith.addf %33, %32 : vector<7x256xf32>
    %35 = arith.divf %33, %34 : vector<7x256xf32>
    %36 = arith.mulf %30, %35 : vector<7x256xf32>
    %c0_15 = arith.constant 0 : index
    %c0_16 = arith.constant 0 : index
    %37 = vector.load %arg5[%c0_15, %c0_16] : memref<256x64xf32, #tpu.memory_space<vmem>>, vector<256x64xf32>
    %cst_17 = arith.constant dense<0.000000e+00> : vector<7x64xf32>
    %38 = tpu.matmul %36, %37, %cst_17 {dimension_numbers = #tpu.dot_dimension_numbers<[1], [0], [0], [1], [0, 0, 1, 1], [], []>} : vector<7x256xf32>, vector<256x64xf32>, vector<7x64xf32> -> vector<7x64xf32>
    %c0_18 = arith.constant 0 : index
    %c0_19 = arith.constant 0 : index
    %39 = vector.load %arg6[%c0_18, %c0_19] : memref<1x64xf32, #tpu.memory_space<vmem>>, vector<1x64xf32>
    %40 = vector.broadcast %39 : vector<1x64xf32> to vector<7x64xf32>
    %41 = arith.addf %38, %40 : vector<7x64xf32>
    %cst_20 = arith.constant 5.000000e-01 : f32
    %42 = vector.broadcast %cst_20 : f32 to vector<7x64xf32>
    %43 = arith.mulf %42, %41 : vector<7x64xf32>
    %44 = arith.addf %1, %43 : vector<7x64xf32>
    %c0_21 = arith.constant 0 : index
    %c0_22 = arith.constant 0 : index
    %c0_23 = arith.constant 0 : index
    %45 = vector.load %arg7[%c0_21, %c0_22, %c0_23] : memref<1x7x64xf32, #tpu.memory_space<vmem>>, vector<1x7x64xf32>
    %46 = vector.shape_cast %45 : vector<1x7x64xf32> to vector<7x64xf32>
    %47 = vector.shape_cast %44 : vector<7x64xf32> to vector<1x7x64xf32>
    tpu.vector_store %arg7[%c0_21, %c0_22, %c0_23], %47 {strides = array<i32>} : memref<1x7x64xf32, #tpu.memory_space<vmem>>, vector<1x7x64xf32>,
    return
  }
  func.func @transform_0(%arg0: i32) -> (i32, i32, i32) {
    %c0_i32 = arith.constant 0 : i32
    %c0_i32_0 = arith.constant 0 : i32
    %c0_i32_1 = arith.constant 0 : i32
    return %arg0, %c0_i32, %c0_i32_0 : i32, i32, i32
  }
  func.func @transform_1(%arg0: i32) -> (i32, i32) {
    %c0_i32 = arith.constant 0 : i32
    %c0_i32_0 = arith.constant 0 : i32
    %c0_i32_1 = arith.constant 0 : i32
    return %c0_i32, %c0_i32_0 : i32, i32
  }
  func.func @transform_2(%arg0: i32) -> (i32, i32) {
    %c0_i32 = arith.constant 0 : i32
    %c0_i32_0 = arith.constant 0 : i32
    %c0_i32_1 = arith.constant 0 : i32
    return %c0_i32, %c0_i32_0 : i32, i32
  }
  func.func @transform_3(%arg0: i32) -> (i32, i32) {
    %c0_i32 = arith.constant 0 : i32
    %c0_i32_0 = arith.constant 0 : i32
    %c0_i32_1 = arith.constant 0 : i32
    return %c0_i32, %c0_i32_0 : i32, i32
  }
  func.func @transform_4(%arg0: i32) -> (i32, i32) {
    %c0_i32 = arith.constant 0 : i32
    %c0_i32_0 = arith.constant 0 : i32
    %c0_i32_1 = arith.constant 0 : i32
    return %c0_i32, %c0_i32_0 : i32, i32
  }
  func.func @transform_5(%arg0: i32) -> (i32, i32) {
    %c0_i32 = arith.constant 0 : i32
    %c0_i32_0 = arith.constant 0 : i32
    %c0_i32_1 = arith.constant 0 : i32
    return %c0_i32, %c0_i32_0 : i32, i32
  }
  func.func @transform_6(%arg0: i32) -> (i32, i32, i32) {
    %c0_i32 = arith.constant 0 : i32
    %c0_i32_0 = arith.constant 0 : i32
    %c0_i32_1 = arith.constant 0 : i32
    return %arg0, %c0_i32, %c0_i32_0 : i32, i32, i32
  }
}

module attributes {stable_mosaic.version = 11 : i64} {
  func.func @_mhsa_qkv_kernel(%arg0: i32, %arg1: memref<1x7x64xf32, #tpu.memory_space<vmem>>, %arg2: memref<2x64xf32, #tpu.memory_space<vmem>>, %arg3: memref<64x192xf32, #tpu.memory_space<vmem>>, %arg4: memref<1x192xf32, #tpu.memory_space<vmem>>, %arg5: memref<64x64xf32, #tpu.memory_space<vmem>>, %arg6: memref<7x64xf32, #tpu.memory_space<vmem>>, %arg7: memref<2x64xf32, #tpu.memory_space<vmem>>, %arg8: memref<1x4x7x7xf32, #tpu.memory_space<vmem>>, %arg9: memref<1x4x7x7xf32, #tpu.memory_space<vmem>>, %arg10: memref<1x7x64xf32, #tpu.memory_space<vmem>>) attributes {dimension_semantics = [#tpu.dimension_semantics<parallel>], iteration_bounds = array<i64: 2>, scalar_prefetch = 0 : i64, scratch_operands = 0 : i64, tpu.core_type = #tpu.core_type<tc>, window_params = [{transform_indices = @transform_0, window_bounds = array<i64: 1, 7, 64>}, {pipeline_mode = #tpu.pipeline_mode<synchronous>, transform_indices = @transform_1, window_bounds = array<i64: 2, 64>}, {pipeline_mode = #tpu.pipeline_mode<synchronous>, transform_indices = @transform_2, window_bounds = array<i64: 64, 192>}, {pipeline_mode = #tpu.pipeline_mode<synchronous>, transform_indices = @transform_3, window_bounds = array<i64: 1, 192>}, {pipeline_mode = #tpu.pipeline_mode<synchronous>, transform_indices = @transform_4, window_bounds = array<i64: 64, 64>}, {pipeline_mode = #tpu.pipeline_mode<synchronous>, transform_indices = @transform_5, window_bounds = array<i64: 7, 64>}, {pipeline_mode = #tpu.pipeline_mode<synchronous>, transform_indices = @transform_6, window_bounds = array<i64: 2, 64>}, {transform_indices = @transform_7, window_bounds = array<i64: 1, 4, 7, 7>}, {transform_indices = @transform_8, window_bounds = array<i64: 1, 4, 7, 7>}, {transform_indices = @transform_9, window_bounds = array<i64: 1, 7, 64>}]} {
    %c0 = arith.constant 0 : index
    %c0_0 = arith.constant 0 : index
    %c0_1 = arith.constant 0 : index
    %0 = vector.load %arg1[%c0, %c0_0, %c0_1] : memref<1x7x64xf32, #tpu.memory_space<vmem>>, vector<1x7x64xf32>
    %1 = vector.shape_cast %0 : vector<1x7x64xf32> to vector<7x64xf32>
    %c0_2 = arith.constant 0 : index
    %c0_3 = arith.constant 0 : index
    %2 = vector.load %arg2[%c0_2, %c0_3] : memref<2x64xf32, #tpu.memory_space<vmem>>, vector<1x64xf32>
    %c1 = arith.constant 1 : index
    %c0_4 = arith.constant 0 : index
    %3 = vector.load %arg2[%c1, %c0_4] : memref<2x64xf32, #tpu.memory_space<vmem>>, vector<1x64xf32>
    %cst = arith.constant dense<0.000000e+00> : vector<7xf32>
    %4 = vector.multi_reduction <add>, %1, %cst [1] : vector<7x64xf32> to vector<7xf32>
    %5 = vector.shape_cast %4 : vector<7xf32> to vector<7x1xf32>
    %cst_5 = arith.constant 6.400000e+01 : f32
    %6 = vector.broadcast %cst_5 : f32 to vector<7x1xf32>
    %7 = arith.divf %5, %6 : vector<7x1xf32>
    %8 = vector.broadcast %7 : vector<7x1xf32> to vector<7x64xf32>
    %9 = arith.subf %1, %8 : vector<7x64xf32>
    %10 = arith.mulf %9, %9 : vector<7x64xf32>
    %cst_6 = arith.constant dense<0.000000e+00> : vector<7xf32>
    %11 = vector.multi_reduction <add>, %10, %cst_6 [1] : vector<7x64xf32> to vector<7xf32>
    %12 = vector.shape_cast %11 : vector<7xf32> to vector<7x1xf32>
    %cst_7 = arith.constant 6.400000e+01 : f32
    %13 = vector.broadcast %cst_7 : f32 to vector<7x1xf32>
    %14 = arith.divf %12, %13 : vector<7x1xf32>
    %15 = vector.broadcast %7 : vector<7x1xf32> to vector<7x64xf32>
    %16 = arith.subf %1, %15 : vector<7x64xf32>
    %cst_8 = arith.constant 9.99999974E-6 : f32
    %17 = vector.broadcast %cst_8 : f32 to vector<7x1xf32>
    %18 = arith.addf %14, %17 : vector<7x1xf32>
    %19 = math.rsqrt %18 : vector<7x1xf32>
    %20 = vector.broadcast %19 : vector<7x1xf32> to vector<7x64xf32>
    %21 = arith.mulf %16, %20 : vector<7x64xf32>
    %22 = vector.broadcast %2 : vector<1x64xf32> to vector<7x64xf32>
    %23 = arith.mulf %21, %22 : vector<7x64xf32>
    %24 = vector.broadcast %3 : vector<1x64xf32> to vector<7x64xf32>
    %25 = arith.addf %23, %24 : vector<7x64xf32>
    %c0_9 = arith.constant 0 : index
    %c0_10 = arith.constant 0 : index
    %26 = vector.load %arg3[%c0_9, %c0_10] : memref<64x192xf32, #tpu.memory_space<vmem>>, vector<64x192xf32>
    %cst_11 = arith.constant dense<0.000000e+00> : vector<7x192xf32>
    %27 = tpu.matmul %25, %26, %cst_11 {dimension_numbers = #tpu.dot_dimension_numbers<[1], [0], [0], [1], [0, 0, 1, 1], [], []>} : vector<7x64xf32>, vector<64x192xf32>, vector<7x192xf32> -> vector<7x192xf32>
    %c0_12 = arith.constant 0 : index
    %c0_13 = arith.constant 0 : index
    %28 = vector.load %arg4[%c0_12, %c0_13] : memref<1x192xf32, #tpu.memory_space<vmem>>, vector<1x192xf32>
    %29 = vector.broadcast %28 : vector<1x192xf32> to vector<7x192xf32>
    %30 = arith.addf %27, %29 : vector<7x192xf32>
    %31 = vector.extract_strided_slice %30 {offsets = [0, 0], sizes = [7, 64], strides = [1, 1]} : vector<7x192xf32> to vector<7x64xf32>
    %32 = vector.extract_strided_slice %30 {offsets = [0, 64], sizes = [7, 64], strides = [1, 1]} : vector<7x192xf32> to vector<7x64xf32>
    %33 = vector.extract_strided_slice %30 {offsets = [0, 128], sizes = [7, 64], strides = [1, 1]} : vector<7x192xf32> to vector<7x64xf32>
    %c0_14 = arith.constant 0 : index
    %c0_15 = arith.constant 0 : index
    %34 = vector.load %arg6[%c0_14, %c0_15] : memref<7x64xf32, #tpu.memory_space<vmem>>, vector<7x64xf32>
    %c0_16 = arith.constant 0 : index
    %c0_17 = arith.constant 0 : index
    %35 = vector.load %arg5[%c0_16, %c0_17] : memref<64x64xf32, #tpu.memory_space<vmem>>, vector<64x64xf32>
    %cst_18 = arith.constant dense<0.000000e+00> : vector<7x64xf32>
    %36 = tpu.matmul %34, %35, %cst_18 {dimension_numbers = #tpu.dot_dimension_numbers<[1], [0], [0], [1], [0, 0, 1, 1], [], []>} : vector<7x64xf32>, vector<64x64xf32>, vector<7x64xf32> -> vector<7x64xf32>
    %c0_19 = arith.constant 0 : index
    %c0_20 = arith.constant 0 : index
    %37 = vector.load %arg7[%c0_19, %c0_20] : memref<2x64xf32, #tpu.memory_space<vmem>>, vector<1x64xf32>
    %38 = vector.broadcast %37 : vector<1x64xf32> to vector<7x64xf32>
    %39 = arith.addf %31, %38 : vector<7x64xf32>
    %c1_21 = arith.constant 1 : index
    %c0_22 = arith.constant 0 : index
    %40 = vector.load %arg7[%c1_21, %c0_22] : memref<2x64xf32, #tpu.memory_space<vmem>>, vector<1x64xf32>
    %41 = vector.broadcast %40 : vector<1x64xf32> to vector<7x64xf32>
    %42 = arith.addf %31, %41 : vector<7x64xf32>
    %43 = tpu.iota {dimensions = array<i32: 1>} : vector<1x64xi32>
    %c0_i32 = arith.constant 0 : i32
    %44 = vector.broadcast %c0_i32 : i32 to vector<1x64xi32>
    %45 = arith.cmpi sge, %43, %44 : vector<1x64xi32>
    %c16_i32 = arith.constant 16 : i32
    %46 = vector.broadcast %c16_i32 : i32 to vector<1x64xi32>
    %47 = arith.cmpi slt, %43, %46 : vector<1x64xi32>
    %48 = arith.andi %45, %47 : vector<1x64xi1>
    %49 = arith.extui %48 : vector<1x64xi1> to vector<1x64xi32>
    %50 = arith.sitofp %49 : vector<1x64xi32> to vector<1x64xf32>
    %51 = vector.broadcast %50 : vector<1x64xf32> to vector<7x64xf32>
    %52 = arith.mulf %39, %51 : vector<7x64xf32>
    %cst_23 = arith.constant dense<0.000000e+00> : vector<7x7xf32>
    %53 = tpu.matmul %52, %32, %cst_23 {dimension_numbers = #tpu.dot_dimension_numbers<[1], [1], [0], [0], [0, 0, 1, 0], [], []>} : vector<7x64xf32>, vector<7x64xf32>, vector<7x7xf32> -> vector<7x7xf32>
    %c0_24 = arith.constant 0 : index
    %c0_25 = arith.constant 0 : index
    %c0_26 = arith.constant 0 : index
    %c0_27 = arith.constant 0 : index
    %54 = vector.load %arg8[%c0_24, %c0_25, %c0_26, %c0_27] : memref<1x4x7x7xf32, #tpu.memory_space<vmem>>, vector<1x1x7x7xf32>
    %55 = vector.shape_cast %54 : vector<1x1x7x7xf32> to vector<7x7xf32>
    %56 = vector.shape_cast %53 : vector<7x7xf32> to vector<1x1x7x7xf32>
    tpu.vector_store %arg8[%c0_24, %c0_25, %c0_26, %c0_27], %56 {strides = array<i32>} : memref<1x4x7x7xf32, #tpu.memory_space<vmem>>, vector<1x1x7x7xf32>,
    %57 = vector.broadcast %50 : vector<1x64xf32> to vector<7x64xf32>
    %58 = arith.mulf %42, %57 : vector<7x64xf32>
    %cst_28 = arith.constant dense<0.000000e+00> : vector<7x7xf32>
    %59 = tpu.matmul %58, %36, %cst_28 {dimension_numbers = #tpu.dot_dimension_numbers<[1], [1], [0], [0], [0, 0, 1, 0], [], []>} : vector<7x64xf32>, vector<7x64xf32>, vector<7x7xf32> -> vector<7x7xf32>
    %c0_29 = arith.constant 0 : index
    %c0_30 = arith.constant 0 : index
    %c0_31 = arith.constant 0 : index
    %c0_32 = arith.constant 0 : index
    %60 = vector.load %arg9[%c0_29, %c0_30, %c0_31, %c0_32] : memref<1x4x7x7xf32, #tpu.memory_space<vmem>>, vector<1x1x7x7xf32>
    %61 = vector.shape_cast %60 : vector<1x1x7x7xf32> to vector<7x7xf32>
    %62 = vector.shape_cast %59 : vector<7x7xf32> to vector<1x1x7x7xf32>
    tpu.vector_store %arg9[%c0_29, %c0_30, %c0_31, %c0_32], %62 {strides = array<i32>} : memref<1x4x7x7xf32, #tpu.memory_space<vmem>>, vector<1x1x7x7xf32>,
    %c16_i32_33 = arith.constant 16 : i32
    %63 = vector.broadcast %c16_i32_33 : i32 to vector<1x64xi32>
    %64 = arith.cmpi sge, %43, %63 : vector<1x64xi32>
    %c32_i32 = arith.constant 32 : i32
    %65 = vector.broadcast %c32_i32 : i32 to vector<1x64xi32>
    %66 = arith.cmpi slt, %43, %65 : vector<1x64xi32>
    %67 = arith.andi %64, %66 : vector<1x64xi1>
    %68 = arith.extui %67 : vector<1x64xi1> to vector<1x64xi32>
    %69 = arith.sitofp %68 : vector<1x64xi32> to vector<1x64xf32>
    %70 = vector.broadcast %69 : vector<1x64xf32> to vector<7x64xf32>
    %71 = arith.mulf %39, %70 : vector<7x64xf32>
    %cst_34 = arith.constant dense<0.000000e+00> : vector<7x7xf32>
    %72 = tpu.matmul %71, %32, %cst_34 {dimension_numbers = #tpu.dot_dimension_numbers<[1], [1], [0], [0], [0, 0, 1, 0], [], []>} : vector<7x64xf32>, vector<7x64xf32>, vector<7x7xf32> -> vector<7x7xf32>
    %c0_35 = arith.constant 0 : index
    %c1_36 = arith.constant 1 : index
    %c0_37 = arith.constant 0 : index
    %c0_38 = arith.constant 0 : index
    %73 = vector.load %arg8[%c0_35, %c1_36, %c0_37, %c0_38] : memref<1x4x7x7xf32, #tpu.memory_space<vmem>>, vector<1x1x7x7xf32>
    %74 = vector.shape_cast %73 : vector<1x1x7x7xf32> to vector<7x7xf32>
    %75 = vector.shape_cast %72 : vector<7x7xf32> to vector<1x1x7x7xf32>
    tpu.vector_store %arg8[%c0_35, %c1_36, %c0_37, %c0_38], %75 {strides = array<i32>} : memref<1x4x7x7xf32, #tpu.memory_space<vmem>>, vector<1x1x7x7xf32>,
    %76 = vector.broadcast %69 : vector<1x64xf32> to vector<7x64xf32>
    %77 = arith.mulf %42, %76 : vector<7x64xf32>
    %cst_39 = arith.constant dense<0.000000e+00> : vector<7x7xf32>
    %78 = tpu.matmul %77, %36, %cst_39 {dimension_numbers = #tpu.dot_dimension_numbers<[1], [1], [0], [0], [0, 0, 1, 0], [], []>} : vector<7x64xf32>, vector<7x64xf32>, vector<7x7xf32> -> vector<7x7xf32>
    %c0_40 = arith.constant 0 : index
    %c1_41 = arith.constant 1 : index
    %c0_42 = arith.constant 0 : index
    %c0_43 = arith.constant 0 : index
    %79 = vector.load %arg9[%c0_40, %c1_41, %c0_42, %c0_43] : memref<1x4x7x7xf32, #tpu.memory_space<vmem>>, vector<1x1x7x7xf32>
    %80 = vector.shape_cast %79 : vector<1x1x7x7xf32> to vector<7x7xf32>
    %81 = vector.shape_cast %78 : vector<7x7xf32> to vector<1x1x7x7xf32>
    tpu.vector_store %arg9[%c0_40, %c1_41, %c0_42, %c0_43], %81 {strides = array<i32>} : memref<1x4x7x7xf32, #tpu.memory_space<vmem>>, vector<1x1x7x7xf32>,
    %c32_i32_44 = arith.constant 32 : i32
    %82 = vector.broadcast %c32_i32_44 : i32 to vector<1x64xi32>
    %83 = arith.cmpi sge, %43, %82 : vector<1x64xi32>
    %c48_i32 = arith.constant 48 : i32
    %84 = vector.broadcast %c48_i32 : i32 to vector<1x64xi32>
    %85 = arith.cmpi slt, %43, %84 : vector<1x64xi32>
    %86 = arith.andi %83, %85 : vector<1x64xi1>
    %87 = arith.extui %86 : vector<1x64xi1> to vector<1x64xi32>
    %88 = arith.sitofp %87 : vector<1x64xi32> to vector<1x64xf32>
    %89 = vector.broadcast %88 : vector<1x64xf32> to vector<7x64xf32>
    %90 = arith.mulf %39, %89 : vector<7x64xf32>
    %cst_45 = arith.constant dense<0.000000e+00> : vector<7x7xf32>
    %91 = tpu.matmul %90, %32, %cst_45 {dimension_numbers = #tpu.dot_dimension_numbers<[1], [1], [0], [0], [0, 0, 1, 0], [], []>} : vector<7x64xf32>, vector<7x64xf32>, vector<7x7xf32> -> vector<7x7xf32>
    %c0_46 = arith.constant 0 : index
    %c2 = arith.constant 2 : index
    %c0_47 = arith.constant 0 : index
    %c0_48 = arith.constant 0 : index
    %92 = vector.load %arg8[%c0_46, %c2, %c0_47, %c0_48] : memref<1x4x7x7xf32, #tpu.memory_space<vmem>>, vector<1x1x7x7xf32>
    %93 = vector.shape_cast %92 : vector<1x1x7x7xf32> to vector<7x7xf32>
    %94 = vector.shape_cast %91 : vector<7x7xf32> to vector<1x1x7x7xf32>
    tpu.vector_store %arg8[%c0_46, %c2, %c0_47, %c0_48], %94 {strides = array<i32>} : memref<1x4x7x7xf32, #tpu.memory_space<vmem>>, vector<1x1x7x7xf32>,
    %95 = vector.broadcast %88 : vector<1x64xf32> to vector<7x64xf32>
    %96 = arith.mulf %42, %95 : vector<7x64xf32>
    %cst_49 = arith.constant dense<0.000000e+00> : vector<7x7xf32>
    %97 = tpu.matmul %96, %36, %cst_49 {dimension_numbers = #tpu.dot_dimension_numbers<[1], [1], [0], [0], [0, 0, 1, 0], [], []>} : vector<7x64xf32>, vector<7x64xf32>, vector<7x7xf32> -> vector<7x7xf32>
    %c0_50 = arith.constant 0 : index
    %c2_51 = arith.constant 2 : index
    %c0_52 = arith.constant 0 : index
    %c0_53 = arith.constant 0 : index
    %98 = vector.load %arg9[%c0_50, %c2_51, %c0_52, %c0_53] : memref<1x4x7x7xf32, #tpu.memory_space<vmem>>, vector<1x1x7x7xf32>
    %99 = vector.shape_cast %98 : vector<1x1x7x7xf32> to vector<7x7xf32>
    %100 = vector.shape_cast %97 : vector<7x7xf32> to vector<1x1x7x7xf32>
    tpu.vector_store %arg9[%c0_50, %c2_51, %c0_52, %c0_53], %100 {strides = array<i32>} : memref<1x4x7x7xf32, #tpu.memory_space<vmem>>, vector<1x1x7x7xf32>,
    %c48_i32_54 = arith.constant 48 : i32
    %101 = vector.broadcast %c48_i32_54 : i32 to vector<1x64xi32>
    %102 = arith.cmpi sge, %43, %101 : vector<1x64xi32>
    %c64_i32 = arith.constant 64 : i32
    %103 = vector.broadcast %c64_i32 : i32 to vector<1x64xi32>
    %104 = arith.cmpi slt, %43, %103 : vector<1x64xi32>
    %105 = arith.andi %102, %104 : vector<1x64xi1>
    %106 = arith.extui %105 : vector<1x64xi1> to vector<1x64xi32>
    %107 = arith.sitofp %106 : vector<1x64xi32> to vector<1x64xf32>
    %108 = vector.broadcast %107 : vector<1x64xf32> to vector<7x64xf32>
    %109 = arith.mulf %39, %108 : vector<7x64xf32>
    %cst_55 = arith.constant dense<0.000000e+00> : vector<7x7xf32>
    %110 = tpu.matmul %109, %32, %cst_55 {dimension_numbers = #tpu.dot_dimension_numbers<[1], [1], [0], [0], [0, 0, 1, 0], [], []>} : vector<7x64xf32>, vector<7x64xf32>, vector<7x7xf32> -> vector<7x7xf32>
    %c0_56 = arith.constant 0 : index
    %c3 = arith.constant 3 : index
    %c0_57 = arith.constant 0 : index
    %c0_58 = arith.constant 0 : index
    %111 = vector.load %arg8[%c0_56, %c3, %c0_57, %c0_58] : memref<1x4x7x7xf32, #tpu.memory_space<vmem>>, vector<1x1x7x7xf32>
    %112 = vector.shape_cast %111 : vector<1x1x7x7xf32> to vector<7x7xf32>
    %113 = vector.shape_cast %110 : vector<7x7xf32> to vector<1x1x7x7xf32>
    tpu.vector_store %arg8[%c0_56, %c3, %c0_57, %c0_58], %113 {strides = array<i32>} : memref<1x4x7x7xf32, #tpu.memory_space<vmem>>, vector<1x1x7x7xf32>,
    %114 = vector.broadcast %107 : vector<1x64xf32> to vector<7x64xf32>
    %115 = arith.mulf %42, %114 : vector<7x64xf32>
    %cst_59 = arith.constant dense<0.000000e+00> : vector<7x7xf32>
    %116 = tpu.matmul %115, %36, %cst_59 {dimension_numbers = #tpu.dot_dimension_numbers<[1], [1], [0], [0], [0, 0, 1, 0], [], []>} : vector<7x64xf32>, vector<7x64xf32>, vector<7x7xf32> -> vector<7x7xf32>
    %c0_60 = arith.constant 0 : index
    %c3_61 = arith.constant 3 : index
    %c0_62 = arith.constant 0 : index
    %c0_63 = arith.constant 0 : index
    %117 = vector.load %arg9[%c0_60, %c3_61, %c0_62, %c0_63] : memref<1x4x7x7xf32, #tpu.memory_space<vmem>>, vector<1x1x7x7xf32>
    %118 = vector.shape_cast %117 : vector<1x1x7x7xf32> to vector<7x7xf32>
    %119 = vector.shape_cast %116 : vector<7x7xf32> to vector<1x1x7x7xf32>
    tpu.vector_store %arg9[%c0_60, %c3_61, %c0_62, %c0_63], %119 {strides = array<i32>} : memref<1x4x7x7xf32, #tpu.memory_space<vmem>>, vector<1x1x7x7xf32>,
    %c0_64 = arith.constant 0 : index
    %c0_65 = arith.constant 0 : index
    %c0_66 = arith.constant 0 : index
    %120 = vector.load %arg10[%c0_64, %c0_65, %c0_66] : memref<1x7x64xf32, #tpu.memory_space<vmem>>, vector<1x7x64xf32>
    %121 = vector.shape_cast %120 : vector<1x7x64xf32> to vector<7x64xf32>
    %122 = vector.shape_cast %33 : vector<7x64xf32> to vector<1x7x64xf32>
    tpu.vector_store %arg10[%c0_64, %c0_65, %c0_66], %122 {strides = array<i32>} : memref<1x7x64xf32, #tpu.memory_space<vmem>>, vector<1x7x64xf32>,
    return
  }
  func.func @transform_0(%arg0: i32) -> (i32, i32, i32) {
    %c0_i32 = arith.constant 0 : i32
    %c0_i32_0 = arith.constant 0 : i32
    %c0_i32_1 = arith.constant 0 : i32
    return %arg0, %c0_i32, %c0_i32_0 : i32, i32, i32
  }
  func.func @transform_1(%arg0: i32) -> (i32, i32) {
    %c0_i32 = arith.constant 0 : i32
    %c0_i32_0 = arith.constant 0 : i32
    %c0_i32_1 = arith.constant 0 : i32
    return %c0_i32, %c0_i32_0 : i32, i32
  }
  func.func @transform_2(%arg0: i32) -> (i32, i32) {
    %c0_i32 = arith.constant 0 : i32
    %c0_i32_0 = arith.constant 0 : i32
    %c0_i32_1 = arith.constant 0 : i32
    return %c0_i32, %c0_i32_0 : i32, i32
  }
  func.func @transform_3(%arg0: i32) -> (i32, i32) {
    %c0_i32 = arith.constant 0 : i32
    %c0_i32_0 = arith.constant 0 : i32
    %c0_i32_1 = arith.constant 0 : i32
    return %c0_i32, %c0_i32_0 : i32, i32
  }
  func.func @transform_4(%arg0: i32) -> (i32, i32) {
    %c0_i32 = arith.constant 0 : i32
    %c0_i32_0 = arith.constant 0 : i32
    %c0_i32_1 = arith.constant 0 : i32
    return %c0_i32, %c0_i32_0 : i32, i32
  }
  func.func @transform_5(%arg0: i32) -> (i32, i32) {
    %c0_i32 = arith.constant 0 : i32
    %c0_i32_0 = arith.constant 0 : i32
    %c0_i32_1 = arith.constant 0 : i32
    return %c0_i32, %c0_i32_0 : i32, i32
  }
  func.func @transform_6(%arg0: i32) -> (i32, i32) {
    %c0_i32 = arith.constant 0 : i32
    %c0_i32_0 = arith.constant 0 : i32
    %c0_i32_1 = arith.constant 0 : i32
    return %c0_i32, %c0_i32_0 : i32, i32
  }
  func.func @transform_7(%arg0: i32) -> (i32, i32, i32, i32) {
    %c0_i32 = arith.constant 0 : i32
    %c0_i32_0 = arith.constant 0 : i32
    %c0_i32_1 = arith.constant 0 : i32
    %c0_i32_2 = arith.constant 0 : i32
    return %arg0, %c0_i32, %c0_i32_0, %c0_i32_1 : i32, i32, i32, i32
  }
  func.func @transform_8(%arg0: i32) -> (i32, i32, i32, i32) {
    %c0_i32 = arith.constant 0 : i32
    %c0_i32_0 = arith.constant 0 : i32
    %c0_i32_1 = arith.constant 0 : i32
    %c0_i32_2 = arith.constant 0 : i32
    return %arg0, %c0_i32, %c0_i32_0, %c0_i32_1 : i32, i32, i32, i32
  }
  func.func @transform_9(%arg0: i32) -> (i32, i32, i32) {
    %c0_i32 = arith.constant 0 : i32
    %c0_i32_0 = arith.constant 0 : i32
    %c0_i32_1 = arith.constant 0 : i32
    return %arg0, %c0_i32, %c0_i32_0 : i32, i32, i32
  }
}

module attributes {stable_mosaic.version = 11 : i64} {
  func.func @_mhsa_av_kernel(%arg0: i32, %arg1: memref<1x4x7x7xf32, #tpu.memory_space<vmem>>, %arg2: memref<1x7x64xf32, #tpu.memory_space<vmem>>, %arg3: memref<1x7x64xf32, #tpu.memory_space<vmem>>, %arg4: memref<64x64xf32, #tpu.memory_space<vmem>>, %arg5: memref<1x64xf32, #tpu.memory_space<vmem>>, %arg6: memref<1x7x64xf32, #tpu.memory_space<vmem>>) attributes {dimension_semantics = [#tpu.dimension_semantics<parallel>], iteration_bounds = array<i64: 2>, scalar_prefetch = 0 : i64, scratch_operands = 0 : i64, tpu.core_type = #tpu.core_type<tc>, window_params = [{transform_indices = @transform_0, window_bounds = array<i64: 1, 4, 7, 7>}, {transform_indices = @transform_1, window_bounds = array<i64: 1, 7, 64>}, {transform_indices = @transform_2, window_bounds = array<i64: 1, 7, 64>}, {pipeline_mode = #tpu.pipeline_mode<synchronous>, transform_indices = @transform_3, window_bounds = array<i64: 64, 64>}, {pipeline_mode = #tpu.pipeline_mode<synchronous>, transform_indices = @transform_4, window_bounds = array<i64: 1, 64>}, {transform_indices = @transform_5, window_bounds = array<i64: 1, 7, 64>}]} {
    %c0 = arith.constant 0 : index
    %c0_0 = arith.constant 0 : index
    %c0_1 = arith.constant 0 : index
    %0 = vector.load %arg2[%c0, %c0_0, %c0_1] : memref<1x7x64xf32, #tpu.memory_space<vmem>>, vector<1x7x64xf32>
    %1 = vector.shape_cast %0 : vector<1x7x64xf32> to vector<7x64xf32>
    %2 = tpu.iota {dimensions = array<i32: 1>} : vector<1x64xi32>
    %cst = arith.constant 0.000000e+00 : f32
    %3 = vector.broadcast %cst : f32 to vector<7x64xf32>
    %c0_i32 = arith.constant 0 : i32
    %4 = vector.broadcast %c0_i32 : i32 to vector<1x64xi32>
    %5 = arith.cmpi sge, %2, %4 : vector<1x64xi32>
    %c16_i32 = arith.constant 16 : i32
    %6 = vector.broadcast %c16_i32 : i32 to vector<1x64xi32>
    %7 = arith.cmpi slt, %2, %6 : vector<1x64xi32>
    %8 = arith.andi %5, %7 : vector<1x64xi1>
    %9 = arith.extui %8 : vector<1x64xi1> to vector<1x64xi32>
    %10 = arith.sitofp %9 : vector<1x64xi32> to vector<1x64xf32>
    %c0_2 = arith.constant 0 : index
    %c0_3 = arith.constant 0 : index
    %c0_4 = arith.constant 0 : index
    %c0_5 = arith.constant 0 : index
    %11 = vector.load %arg1[%c0_2, %c0_3, %c0_4, %c0_5] : memref<1x4x7x7xf32, #tpu.memory_space<vmem>>, vector<1x1x7x7xf32>
    %12 = vector.shape_cast %11 : vector<1x1x7x7xf32> to vector<7x7xf32>
    %cst_6 = arith.constant 1.250000e-01 : f32
    %13 = vector.broadcast %cst_6 : f32 to vector<7x7xf32>
    %14 = arith.mulf %12, %13 : vector<7x7xf32>
    %cst_7 = arith.constant dense<0xFF800000> : vector<7xf32>
    %15 = vector.multi_reduction <maximumf>, %14, %cst_7 [1] : vector<7x7xf32> to vector<7xf32>
    %16 = vector.shape_cast %15 : vector<7xf32> to vector<7x1xf32>
    %17 = vector.broadcast %16 : vector<7x1xf32> to vector<7x7xf32>
    %18 = arith.subf %14, %17 : vector<7x7xf32>
    %19 = math.exp %18 : vector<7x7xf32>
    %cst_8 = arith.constant dense<0.000000e+00> : vector<7xf32>
    %20 = vector.multi_reduction <add>, %19, %cst_8 [1] : vector<7x7xf32> to vector<7xf32>
    %21 = vector.shape_cast %20 : vector<7xf32> to vector<7x1xf32>
    %22 = tpu.reciprocal %21 {approx = true} : vector<7x1xf32> -> vector<7x1xf32>
    %23 = vector.broadcast %22 : vector<7x1xf32> to vector<7x7xf32>
    %24 = arith.mulf %19, %23 : vector<7x7xf32>
    %25 = vector.broadcast %10 : vector<1x64xf32> to vector<7x64xf32>
    %26 = arith.mulf %1, %25 : vector<7x64xf32>
    %cst_9 = arith.constant dense<0.000000e+00> : vector<7x64xf32>
    %27 = tpu.matmul %24, %26, %cst_9 {dimension_numbers = #tpu.dot_dimension_numbers<[1], [0], [0], [1], [0, 0, 1, 1], [], []>} : vector<7x7xf32>, vector<7x64xf32>, vector<7x64xf32> -> vector<7x64xf32>
    %28 = arith.addf %3, %27 : vector<7x64xf32>
    %c16_i32_10 = arith.constant 16 : i32
    %29 = vector.broadcast %c16_i32_10 : i32 to vector<1x64xi32>
    %30 = arith.cmpi sge, %2, %29 : vector<1x64xi32>
    %c32_i32 = arith.constant 32 : i32
    %31 = vector.broadcast %c32_i32 : i32 to vector<1x64xi32>
    %32 = arith.cmpi slt, %2, %31 : vector<1x64xi32>
    %33 = arith.andi %30, %32 : vector<1x64xi1>
    %34 = arith.extui %33 : vector<1x64xi1> to vector<1x64xi32>
    %35 = arith.sitofp %34 : vector<1x64xi32> to vector<1x64xf32>
    %c0_11 = arith.constant 0 : index
    %c1 = arith.constant 1 : index
    %c0_12 = arith.constant 0 : index
    %c0_13 = arith.constant 0 : index
    %36 = vector.load %arg1[%c0_11, %c1, %c0_12, %c0_13] : memref<1x4x7x7xf32, #tpu.memory_space<vmem>>, vector<1x1x7x7xf32>
    %37 = vector.shape_cast %36 : vector<1x1x7x7xf32> to vector<7x7xf32>
    %cst_14 = arith.constant 1.250000e-01 : f32
    %38 = vector.broadcast %cst_14 : f32 to vector<7x7xf32>
    %39 = arith.mulf %37, %38 : vector<7x7xf32>
    %cst_15 = arith.constant dense<0xFF800000> : vector<7xf32>
    %40 = vector.multi_reduction <maximumf>, %39, %cst_15 [1] : vector<7x7xf32> to vector<7xf32>
    %41 = vector.shape_cast %40 : vector<7xf32> to vector<7x1xf32>
    %42 = vector.broadcast %41 : vector<7x1xf32> to vector<7x7xf32>
    %43 = arith.subf %39, %42 : vector<7x7xf32>
    %44 = math.exp %43 : vector<7x7xf32>
    %cst_16 = arith.constant dense<0.000000e+00> : vector<7xf32>
    %45 = vector.multi_reduction <add>, %44, %cst_16 [1] : vector<7x7xf32> to vector<7xf32>
    %46 = vector.shape_cast %45 : vector<7xf32> to vector<7x1xf32>
    %47 = tpu.reciprocal %46 {approx = true} : vector<7x1xf32> -> vector<7x1xf32>
    %48 = vector.broadcast %47 : vector<7x1xf32> to vector<7x7xf32>
    %49 = arith.mulf %44, %48 : vector<7x7xf32>
    %50 = vector.broadcast %35 : vector<1x64xf32> to vector<7x64xf32>
    %51 = arith.mulf %1, %50 : vector<7x64xf32>
    %cst_17 = arith.constant dense<0.000000e+00> : vector<7x64xf32>
    %52 = tpu.matmul %49, %51, %cst_17 {dimension_numbers = #tpu.dot_dimension_numbers<[1], [0], [0], [1], [0, 0, 1, 1], [], []>} : vector<7x7xf32>, vector<7x64xf32>, vector<7x64xf32> -> vector<7x64xf32>
    %53 = arith.addf %28, %52 : vector<7x64xf32>
    %c32_i32_18 = arith.constant 32 : i32
    %54 = vector.broadcast %c32_i32_18 : i32 to vector<1x64xi32>
    %55 = arith.cmpi sge, %2, %54 : vector<1x64xi32>
    %c48_i32 = arith.constant 48 : i32
    %56 = vector.broadcast %c48_i32 : i32 to vector<1x64xi32>
    %57 = arith.cmpi slt, %2, %56 : vector<1x64xi32>
    %58 = arith.andi %55, %57 : vector<1x64xi1>
    %59 = arith.extui %58 : vector<1x64xi1> to vector<1x64xi32>
    %60 = arith.sitofp %59 : vector<1x64xi32> to vector<1x64xf32>
    %c0_19 = arith.constant 0 : index
    %c2 = arith.constant 2 : index
    %c0_20 = arith.constant 0 : index
    %c0_21 = arith.constant 0 : index
    %61 = vector.load %arg1[%c0_19, %c2, %c0_20, %c0_21] : memref<1x4x7x7xf32, #tpu.memory_space<vmem>>, vector<1x1x7x7xf32>
    %62 = vector.shape_cast %61 : vector<1x1x7x7xf32> to vector<7x7xf32>
    %cst_22 = arith.constant 1.250000e-01 : f32
    %63 = vector.broadcast %cst_22 : f32 to vector<7x7xf32>
    %64 = arith.mulf %62, %63 : vector<7x7xf32>
    %cst_23 = arith.constant dense<0xFF800000> : vector<7xf32>
    %65 = vector.multi_reduction <maximumf>, %64, %cst_23 [1] : vector<7x7xf32> to vector<7xf32>
    %66 = vector.shape_cast %65 : vector<7xf32> to vector<7x1xf32>
    %67 = vector.broadcast %66 : vector<7x1xf32> to vector<7x7xf32>
    %68 = arith.subf %64, %67 : vector<7x7xf32>
    %69 = math.exp %68 : vector<7x7xf32>
    %cst_24 = arith.constant dense<0.000000e+00> : vector<7xf32>
    %70 = vector.multi_reduction <add>, %69, %cst_24 [1] : vector<7x7xf32> to vector<7xf32>
    %71 = vector.shape_cast %70 : vector<7xf32> to vector<7x1xf32>
    %72 = tpu.reciprocal %71 {approx = true} : vector<7x1xf32> -> vector<7x1xf32>
    %73 = vector.broadcast %72 : vector<7x1xf32> to vector<7x7xf32>
    %74 = arith.mulf %69, %73 : vector<7x7xf32>
    %75 = vector.broadcast %60 : vector<1x64xf32> to vector<7x64xf32>
    %76 = arith.mulf %1, %75 : vector<7x64xf32>
    %cst_25 = arith.constant dense<0.000000e+00> : vector<7x64xf32>
    %77 = tpu.matmul %74, %76, %cst_25 {dimension_numbers = #tpu.dot_dimension_numbers<[1], [0], [0], [1], [0, 0, 1, 1], [], []>} : vector<7x7xf32>, vector<7x64xf32>, vector<7x64xf32> -> vector<7x64xf32>
    %78 = arith.addf %53, %77 : vector<7x64xf32>
    %c48_i32_26 = arith.constant 48 : i32
    %79 = vector.broadcast %c48_i32_26 : i32 to vector<1x64xi32>
    %80 = arith.cmpi sge, %2, %79 : vector<1x64xi32>
    %c64_i32 = arith.constant 64 : i32
    %81 = vector.broadcast %c64_i32 : i32 to vector<1x64xi32>
    %82 = arith.cmpi slt, %2, %81 : vector<1x64xi32>
    %83 = arith.andi %80, %82 : vector<1x64xi1>
    %84 = arith.extui %83 : vector<1x64xi1> to vector<1x64xi32>
    %85 = arith.sitofp %84 : vector<1x64xi32> to vector<1x64xf32>
    %c0_27 = arith.constant 0 : index
    %c3 = arith.constant 3 : index
    %c0_28 = arith.constant 0 : index
    %c0_29 = arith.constant 0 : index
    %86 = vector.load %arg1[%c0_27, %c3, %c0_28, %c0_29] : memref<1x4x7x7xf32, #tpu.memory_space<vmem>>, vector<1x1x7x7xf32>
    %87 = vector.shape_cast %86 : vector<1x1x7x7xf32> to vector<7x7xf32>
    %cst_30 = arith.constant 1.250000e-01 : f32
    %88 = vector.broadcast %cst_30 : f32 to vector<7x7xf32>
    %89 = arith.mulf %87, %88 : vector<7x7xf32>
    %cst_31 = arith.constant dense<0xFF800000> : vector<7xf32>
    %90 = vector.multi_reduction <maximumf>, %89, %cst_31 [1] : vector<7x7xf32> to vector<7xf32>
    %91 = vector.shape_cast %90 : vector<7xf32> to vector<7x1xf32>
    %92 = vector.broadcast %91 : vector<7x1xf32> to vector<7x7xf32>
    %93 = arith.subf %89, %92 : vector<7x7xf32>
    %94 = math.exp %93 : vector<7x7xf32>
    %cst_32 = arith.constant dense<0.000000e+00> : vector<7xf32>
    %95 = vector.multi_reduction <add>, %94, %cst_32 [1] : vector<7x7xf32> to vector<7xf32>
    %96 = vector.shape_cast %95 : vector<7xf32> to vector<7x1xf32>
    %97 = tpu.reciprocal %96 {approx = true} : vector<7x1xf32> -> vector<7x1xf32>
    %98 = vector.broadcast %97 : vector<7x1xf32> to vector<7x7xf32>
    %99 = arith.mulf %94, %98 : vector<7x7xf32>
    %100 = vector.broadcast %85 : vector<1x64xf32> to vector<7x64xf32>
    %101 = arith.mulf %1, %100 : vector<7x64xf32>
    %cst_33 = arith.constant dense<0.000000e+00> : vector<7x64xf32>
    %102 = tpu.matmul %99, %101, %cst_33 {dimension_numbers = #tpu.dot_dimension_numbers<[1], [0], [0], [1], [0, 0, 1, 1], [], []>} : vector<7x7xf32>, vector<7x64xf32>, vector<7x64xf32> -> vector<7x64xf32>
    %103 = arith.addf %78, %102 : vector<7x64xf32>
    %c0_34 = arith.constant 0 : index
    %c0_35 = arith.constant 0 : index
    %104 = vector.load %arg4[%c0_34, %c0_35] : memref<64x64xf32, #tpu.memory_space<vmem>>, vector<64x64xf32>
    %cst_36 = arith.constant dense<0.000000e+00> : vector<7x64xf32>
    %105 = tpu.matmul %103, %104, %cst_36 {dimension_numbers = #tpu.dot_dimension_numbers<[1], [0], [0], [1], [0, 0, 1, 1], [], []>} : vector<7x64xf32>, vector<64x64xf32>, vector<7x64xf32> -> vector<7x64xf32>
    %c0_37 = arith.constant 0 : index
    %c0_38 = arith.constant 0 : index
    %106 = vector.load %arg5[%c0_37, %c0_38] : memref<1x64xf32, #tpu.memory_space<vmem>>, vector<1x64xf32>
    %107 = vector.broadcast %106 : vector<1x64xf32> to vector<7x64xf32>
    %108 = arith.addf %105, %107 : vector<7x64xf32>
    %c0_39 = arith.constant 0 : index
    %c0_40 = arith.constant 0 : index
    %c0_41 = arith.constant 0 : index
    %109 = vector.load %arg3[%c0_39, %c0_40, %c0_41] : memref<1x7x64xf32, #tpu.memory_space<vmem>>, vector<1x7x64xf32>
    %110 = vector.shape_cast %109 : vector<1x7x64xf32> to vector<7x64xf32>
    %111 = arith.addf %110, %108 : vector<7x64xf32>
    %c0_42 = arith.constant 0 : index
    %c0_43 = arith.constant 0 : index
    %c0_44 = arith.constant 0 : index
    %112 = vector.load %arg6[%c0_42, %c0_43, %c0_44] : memref<1x7x64xf32, #tpu.memory_space<vmem>>, vector<1x7x64xf32>
    %113 = vector.shape_cast %112 : vector<1x7x64xf32> to vector<7x64xf32>
    %114 = vector.shape_cast %111 : vector<7x64xf32> to vector<1x7x64xf32>
    tpu.vector_store %arg6[%c0_42, %c0_43, %c0_44], %114 {strides = array<i32>} : memref<1x7x64xf32, #tpu.memory_space<vmem>>, vector<1x7x64xf32>,
    return
  }
  func.func @transform_0(%arg0: i32) -> (i32, i32, i32, i32) {
    %c0_i32 = arith.constant 0 : i32
    %c0_i32_0 = arith.constant 0 : i32
    %c0_i32_1 = arith.constant 0 : i32
    %c0_i32_2 = arith.constant 0 : i32
    return %arg0, %c0_i32, %c0_i32_0, %c0_i32_1 : i32, i32, i32, i32
  }
  func.func @transform_1(%arg0: i32) -> (i32, i32, i32) {
    %c0_i32 = arith.constant 0 : i32
    %c0_i32_0 = arith.constant 0 : i32
    %c0_i32_1 = arith.constant 0 : i32
    return %arg0, %c0_i32, %c0_i32_0 : i32, i32, i32
  }
  func.func @transform_2(%arg0: i32) -> (i32, i32, i32) {
    %c0_i32 = arith.constant 0 : i32
    %c0_i32_0 = arith.constant 0 : i32
    %c0_i32_1 = arith.constant 0 : i32
    return %arg0, %c0_i32, %c0_i32_0 : i32, i32, i32
  }
  func.func @transform_3(%arg0: i32) -> (i32, i32) {
    %c0_i32 = arith.constant 0 : i32
    %c0_i32_0 = arith.constant 0 : i32
    %c0_i32_1 = arith.constant 0 : i32
    return %c0_i32, %c0_i32_0 : i32, i32
  }
  func.func @transform_4(%arg0: i32) -> (i32, i32) {
    %c0_i32 = arith.constant 0 : i32
    %c0_i32_0 = arith.constant 0 : i32
    %c0_i32_1 = arith.constant 0 : i32
    return %c0_i32, %c0_i32_0 : i32, i32
  }
  func.func @transform_5(%arg0: i32) -> (i32, i32, i32) {
    %c0_i32 = arith.constant 0 : i32
    %c0_i32_0 = arith.constant 0 : i32
    %c0_i32_1 = arith.constant 0 : i32
    return %arg0, %c0_i32, %c0_i32_0 : i32, i32, i32
  }
}

module attributes {stable_mosaic.version = 11 : i64} {
  func.func @_conv_module_kernel(%arg0: i32, %arg1: memref<1x7x64xf32, #tpu.memory_space<vmem>>, %arg2: memref<2x64xf32, #tpu.memory_space<vmem>>, %arg3: memref<64x128xf32, #tpu.memory_space<vmem>>, %arg4: memref<1x128xf32, #tpu.memory_space<vmem>>, %arg5: memref<31x64xf32, #tpu.memory_space<vmem>>, %arg6: memref<4x64xf32, #tpu.memory_space<vmem>>, %arg7: memref<64x64xf32, #tpu.memory_space<vmem>>, %arg8: memref<1x64xf32, #tpu.memory_space<vmem>>, %arg9: memref<1x7x64xf32, #tpu.memory_space<vmem>>) attributes {dimension_semantics = [#tpu.dimension_semantics<parallel>], iteration_bounds = array<i64: 2>, scalar_prefetch = 0 : i64, scratch_operands = 0 : i64, tpu.core_type = #tpu.core_type<tc>, window_params = [{transform_indices = @transform_0, window_bounds = array<i64: 1, 7, 64>}, {pipeline_mode = #tpu.pipeline_mode<synchronous>, transform_indices = @transform_1, window_bounds = array<i64: 2, 64>}, {pipeline_mode = #tpu.pipeline_mode<synchronous>, transform_indices = @transform_2, window_bounds = array<i64: 64, 128>}, {pipeline_mode = #tpu.pipeline_mode<synchronous>, transform_indices = @transform_3, window_bounds = array<i64: 1, 128>}, {pipeline_mode = #tpu.pipeline_mode<synchronous>, transform_indices = @transform_4, window_bounds = array<i64: 31, 64>}, {pipeline_mode = #tpu.pipeline_mode<synchronous>, transform_indices = @transform_5, window_bounds = array<i64: 4, 64>}, {pipeline_mode = #tpu.pipeline_mode<synchronous>, transform_indices = @transform_6, window_bounds = array<i64: 64, 64>}, {pipeline_mode = #tpu.pipeline_mode<synchronous>, transform_indices = @transform_7, window_bounds = array<i64: 1, 64>}, {transform_indices = @transform_8, window_bounds = array<i64: 1, 7, 64>}]} {
    %c0 = arith.constant 0 : index
    %c0_0 = arith.constant 0 : index
    %c0_1 = arith.constant 0 : index
    %0 = vector.load %arg1[%c0, %c0_0, %c0_1] : memref<1x7x64xf32, #tpu.memory_space<vmem>>, vector<1x7x64xf32>
    %1 = vector.shape_cast %0 : vector<1x7x64xf32> to vector<7x64xf32>
    %c0_2 = arith.constant 0 : index
    %c0_3 = arith.constant 0 : index
    %2 = vector.load %arg2[%c0_2, %c0_3] : memref<2x64xf32, #tpu.memory_space<vmem>>, vector<1x64xf32>
    %c1 = arith.constant 1 : index
    %c0_4 = arith.constant 0 : index
    %3 = vector.load %arg2[%c1, %c0_4] : memref<2x64xf32, #tpu.memory_space<vmem>>, vector<1x64xf32>
    %cst = arith.constant dense<0.000000e+00> : vector<7xf32>
    %4 = vector.multi_reduction <add>, %1, %cst [1] : vector<7x64xf32> to vector<7xf32>
    %5 = vector.shape_cast %4 : vector<7xf32> to vector<7x1xf32>
    %cst_5 = arith.constant 6.400000e+01 : f32
    %6 = vector.broadcast %cst_5 : f32 to vector<7x1xf32>
    %7 = arith.divf %5, %6 : vector<7x1xf32>
    %8 = vector.broadcast %7 : vector<7x1xf32> to vector<7x64xf32>
    %9 = arith.subf %1, %8 : vector<7x64xf32>
    %10 = arith.mulf %9, %9 : vector<7x64xf32>
    %cst_6 = arith.constant dense<0.000000e+00> : vector<7xf32>
    %11 = vector.multi_reduction <add>, %10, %cst_6 [1] : vector<7x64xf32> to vector<7xf32>
    %12 = vector.shape_cast %11 : vector<7xf32> to vector<7x1xf32>
    %cst_7 = arith.constant 6.400000e+01 : f32
    %13 = vector.broadcast %cst_7 : f32 to vector<7x1xf32>
    %14 = arith.divf %12, %13 : vector<7x1xf32>
    %15 = vector.broadcast %7 : vector<7x1xf32> to vector<7x64xf32>
    %16 = arith.subf %1, %15 : vector<7x64xf32>
    %cst_8 = arith.constant 9.99999974E-6 : f32
    %17 = vector.broadcast %cst_8 : f32 to vector<7x1xf32>
    %18 = arith.addf %14, %17 : vector<7x1xf32>
    %19 = math.rsqrt %18 : vector<7x1xf32>
    %20 = vector.broadcast %19 : vector<7x1xf32> to vector<7x64xf32>
    %21 = arith.mulf %16, %20 : vector<7x64xf32>
    %22 = vector.broadcast %2 : vector<1x64xf32> to vector<7x64xf32>
    %23 = arith.mulf %21, %22 : vector<7x64xf32>
    %24 = vector.broadcast %3 : vector<1x64xf32> to vector<7x64xf32>
    %25 = arith.addf %23, %24 : vector<7x64xf32>
    %c0_9 = arith.constant 0 : index
    %c0_10 = arith.constant 0 : index
    %26 = vector.load %arg3[%c0_9, %c0_10] : memref<64x128xf32, #tpu.memory_space<vmem>>, vector<64x128xf32>
    %cst_11 = arith.constant dense<0.000000e+00> : vector<7x128xf32>
    %27 = tpu.matmul %25, %26, %cst_11 {dimension_numbers = #tpu.dot_dimension_numbers<[1], [0], [0], [1], [0, 0, 1, 1], [], []>} : vector<7x64xf32>, vector<64x128xf32>, vector<7x128xf32> -> vector<7x128xf32>
    %c0_12 = arith.constant 0 : index
    %c0_13 = arith.constant 0 : index
    %28 = vector.load %arg4[%c0_12, %c0_13] : memref<1x128xf32, #tpu.memory_space<vmem>>, vector<1x128xf32>
    %29 = vector.broadcast %28 : vector<1x128xf32> to vector<7x128xf32>
    %30 = arith.addf %27, %29 : vector<7x128xf32>
    %31 = vector.extract_strided_slice %30 {offsets = [0, 0], sizes = [7, 64], strides = [1, 1]} : vector<7x128xf32> to vector<7x64xf32>
    %32 = vector.extract_strided_slice %30 {offsets = [0, 64], sizes = [7, 64], strides = [1, 1]} : vector<7x128xf32> to vector<7x64xf32>
    %33 = arith.negf %32 : vector<7x64xf32>
    %34 = math.exp %33 : vector<7x64xf32>
    %cst_14 = arith.constant 1.000000e+00 : f32
    %35 = vector.broadcast %cst_14 : f32 to vector<7x64xf32>
    %36 = arith.addf %35, %34 : vector<7x64xf32>
    %37 = arith.divf %35, %36 : vector<7x64xf32>
    %38 = arith.mulf %31, %37 : vector<7x64xf32>
    %c0_15 = arith.constant 0 : index
    %c0_16 = arith.constant 0 : index
    %39 = vector.load %arg5[%c0_15, %c0_16] : memref<31x64xf32, #tpu.memory_space<vmem>>, vector<31x64xf32>
    %40 = tpu.iota {dimensions = array<i32: 0>} : vector<7x7xi32>
    %41 = tpu.iota {dimensions = array<i32: 1>} : vector<7x7xi32>
    %cst_17 = arith.constant 0.000000e+00 : f32
    %42 = vector.broadcast %cst_17 : f32 to vector<7x64xf32>
    %c-6_i32 = arith.constant -6 : i32
    %43 = vector.broadcast %c-6_i32 : i32 to vector<7x7xi32>
    %44 = arith.addi %40, %43 : vector<7x7xi32>
    %45 = arith.cmpi eq, %41, %44 : vector<7x7xi32>
    %46 = arith.extui %45 : vector<7x7xi1> to vector<7x7xi32>
    %47 = arith.sitofp %46 : vector<7x7xi32> to vector<7x7xf32>
    %cst_18 = arith.constant dense<0.000000e+00> : vector<7x64xf32>
    %48 = tpu.matmul %47, %38, %cst_18 {dimension_numbers = #tpu.dot_dimension_numbers<[1], [0], [0], [1], [0, 0, 1, 1], [], []>} : vector<7x7xf32>, vector<7x64xf32>, vector<7x64xf32> -> vector<7x64xf32>
    %49 = vector.extract_strided_slice %39 {offsets = [9, 0], sizes = [1, 64], strides = [1, 1]} : vector<31x64xf32> to vector<1x64xf32>
    %50 = vector.broadcast %49 : vector<1x64xf32> to vector<7x64xf32>
    %51 = arith.mulf %48, %50 : vector<7x64xf32>
    %52 = arith.addf %42, %51 : vector<7x64xf32>
    %c-5_i32 = arith.constant -5 : i32
    %53 = vector.broadcast %c-5_i32 : i32 to vector<7x7xi32>
    %54 = arith.addi %40, %53 : vector<7x7xi32>
    %55 = arith.cmpi eq, %41, %54 : vector<7x7xi32>
    %56 = arith.extui %55 : vector<7x7xi1> to vector<7x7xi32>
    %57 = arith.sitofp %56 : vector<7x7xi32> to vector<7x7xf32>
    %cst_19 = arith.constant dense<0.000000e+00> : vector<7x64xf32>
    %58 = tpu.matmul %57, %38, %cst_19 {dimension_numbers = #tpu.dot_dimension_numbers<[1], [0], [0], [1], [0, 0, 1, 1], [], []>} : vector<7x7xf32>, vector<7x64xf32>, vector<7x64xf32> -> vector<7x64xf32>
    %59 = vector.extract_strided_slice %39 {offsets = [10, 0], sizes = [1, 64], strides = [1, 1]} : vector<31x64xf32> to vector<1x64xf32>
    %60 = vector.broadcast %59 : vector<1x64xf32> to vector<7x64xf32>
    %61 = arith.mulf %58, %60 : vector<7x64xf32>
    %62 = arith.addf %52, %61 : vector<7x64xf32>
    %c-4_i32 = arith.constant -4 : i32
    %63 = vector.broadcast %c-4_i32 : i32 to vector<7x7xi32>
    %64 = arith.addi %40, %63 : vector<7x7xi32>
    %65 = arith.cmpi eq, %41, %64 : vector<7x7xi32>
    %66 = arith.extui %65 : vector<7x7xi1> to vector<7x7xi32>
    %67 = arith.sitofp %66 : vector<7x7xi32> to vector<7x7xf32>
    %cst_20 = arith.constant dense<0.000000e+00> : vector<7x64xf32>
    %68 = tpu.matmul %67, %38, %cst_20 {dimension_numbers = #tpu.dot_dimension_numbers<[1], [0], [0], [1], [0, 0, 1, 1], [], []>} : vector<7x7xf32>, vector<7x64xf32>, vector<7x64xf32> -> vector<7x64xf32>
    %69 = vector.extract_strided_slice %39 {offsets = [11, 0], sizes = [1, 64], strides = [1, 1]} : vector<31x64xf32> to vector<1x64xf32>
    %70 = vector.broadcast %69 : vector<1x64xf32> to vector<7x64xf32>
    %71 = arith.mulf %68, %70 : vector<7x64xf32>
    %72 = arith.addf %62, %71 : vector<7x64xf32>
    %c-3_i32 = arith.constant -3 : i32
    %73 = vector.broadcast %c-3_i32 : i32 to vector<7x7xi32>
    %74 = arith.addi %40, %73 : vector<7x7xi32>
    %75 = arith.cmpi eq, %41, %74 : vector<7x7xi32>
    %76 = arith.extui %75 : vector<7x7xi1> to vector<7x7xi32>
    %77 = arith.sitofp %76 : vector<7x7xi32> to vector<7x7xf32>
    %cst_21 = arith.constant dense<0.000000e+00> : vector<7x64xf32>
    %78 = tpu.matmul %77, %38, %cst_21 {dimension_numbers = #tpu.dot_dimension_numbers<[1], [0], [0], [1], [0, 0, 1, 1], [], []>} : vector<7x7xf32>, vector<7x64xf32>, vector<7x64xf32> -> vector<7x64xf32>
    %79 = vector.extract_strided_slice %39 {offsets = [12, 0], sizes = [1, 64], strides = [1, 1]} : vector<31x64xf32> to vector<1x64xf32>
    %80 = vector.broadcast %79 : vector<1x64xf32> to vector<7x64xf32>
    %81 = arith.mulf %78, %80 : vector<7x64xf32>
    %82 = arith.addf %72, %81 : vector<7x64xf32>
    %c-2_i32 = arith.constant -2 : i32
    %83 = vector.broadcast %c-2_i32 : i32 to vector<7x7xi32>
    %84 = arith.addi %40, %83 : vector<7x7xi32>
    %85 = arith.cmpi eq, %41, %84 : vector<7x7xi32>
    %86 = arith.extui %85 : vector<7x7xi1> to vector<7x7xi32>
    %87 = arith.sitofp %86 : vector<7x7xi32> to vector<7x7xf32>
    %cst_22 = arith.constant dense<0.000000e+00> : vector<7x64xf32>
    %88 = tpu.matmul %87, %38, %cst_22 {dimension_numbers = #tpu.dot_dimension_numbers<[1], [0], [0], [1], [0, 0, 1, 1], [], []>} : vector<7x7xf32>, vector<7x64xf32>, vector<7x64xf32> -> vector<7x64xf32>
    %89 = vector.extract_strided_slice %39 {offsets = [13, 0], sizes = [1, 64], strides = [1, 1]} : vector<31x64xf32> to vector<1x64xf32>
    %90 = vector.broadcast %89 : vector<1x64xf32> to vector<7x64xf32>
    %91 = arith.mulf %88, %90 : vector<7x64xf32>
    %92 = arith.addf %82, %91 : vector<7x64xf32>
    %c-1_i32 = arith.constant -1 : i32
    %93 = vector.broadcast %c-1_i32 : i32 to vector<7x7xi32>
    %94 = arith.addi %40, %93 : vector<7x7xi32>
    %95 = arith.cmpi eq, %41, %94 : vector<7x7xi32>
    %96 = arith.extui %95 : vector<7x7xi1> to vector<7x7xi32>
    %97 = arith.sitofp %96 : vector<7x7xi32> to vector<7x7xf32>
    %cst_23 = arith.constant dense<0.000000e+00> : vector<7x64xf32>
    %98 = tpu.matmul %97, %38, %cst_23 {dimension_numbers = #tpu.dot_dimension_numbers<[1], [0], [0], [1], [0, 0, 1, 1], [], []>} : vector<7x7xf32>, vector<7x64xf32>, vector<7x64xf32> -> vector<7x64xf32>
    %99 = vector.extract_strided_slice %39 {offsets = [14, 0], sizes = [1, 64], strides = [1, 1]} : vector<31x64xf32> to vector<1x64xf32>
    %100 = vector.broadcast %99 : vector<1x64xf32> to vector<7x64xf32>
    %101 = arith.mulf %98, %100 : vector<7x64xf32>
    %102 = arith.addf %92, %101 : vector<7x64xf32>
    %c0_i32 = arith.constant 0 : i32
    %103 = vector.broadcast %c0_i32 : i32 to vector<7x7xi32>
    %104 = arith.addi %40, %103 : vector<7x7xi32>
    %105 = arith.cmpi eq, %41, %104 : vector<7x7xi32>
    %106 = arith.extui %105 : vector<7x7xi1> to vector<7x7xi32>
    %107 = arith.sitofp %106 : vector<7x7xi32> to vector<7x7xf32>
    %cst_24 = arith.constant dense<0.000000e+00> : vector<7x64xf32>
    %108 = tpu.matmul %107, %38, %cst_24 {dimension_numbers = #tpu.dot_dimension_numbers<[1], [0], [0], [1], [0, 0, 1, 1], [], []>} : vector<7x7xf32>, vector<7x64xf32>, vector<7x64xf32> -> vector<7x64xf32>
    %109 = vector.extract_strided_slice %39 {offsets = [15, 0], sizes = [1, 64], strides = [1, 1]} : vector<31x64xf32> to vector<1x64xf32>
    %110 = vector.broadcast %109 : vector<1x64xf32> to vector<7x64xf32>
    %111 = arith.mulf %108, %110 : vector<7x64xf32>
    %112 = arith.addf %102, %111 : vector<7x64xf32>
    %c1_i32 = arith.constant 1 : i32
    %113 = vector.broadcast %c1_i32 : i32 to vector<7x7xi32>
    %114 = arith.addi %40, %113 : vector<7x7xi32>
    %115 = arith.cmpi eq, %41, %114 : vector<7x7xi32>
    %116 = arith.extui %115 : vector<7x7xi1> to vector<7x7xi32>
    %117 = arith.sitofp %116 : vector<7x7xi32> to vector<7x7xf32>
    %cst_25 = arith.constant dense<0.000000e+00> : vector<7x64xf32>
    %118 = tpu.matmul %117, %38, %cst_25 {dimension_numbers = #tpu.dot_dimension_numbers<[1], [0], [0], [1], [0, 0, 1, 1], [], []>} : vector<7x7xf32>, vector<7x64xf32>, vector<7x64xf32> -> vector<7x64xf32>
    %119 = vector.extract_strided_slice %39 {offsets = [16, 0], sizes = [1, 64], strides = [1, 1]} : vector<31x64xf32> to vector<1x64xf32>
    %120 = vector.broadcast %119 : vector<1x64xf32> to vector<7x64xf32>
    %121 = arith.mulf %118, %120 : vector<7x64xf32>
    %122 = arith.addf %112, %121 : vector<7x64xf32>
    %c2_i32 = arith.constant 2 : i32
    %123 = vector.broadcast %c2_i32 : i32 to vector<7x7xi32>
    %124 = arith.addi %40, %123 : vector<7x7xi32>
    %125 = arith.cmpi eq, %41, %124 : vector<7x7xi32>
    %126 = arith.extui %125 : vector<7x7xi1> to vector<7x7xi32>
    %127 = arith.sitofp %126 : vector<7x7xi32> to vector<7x7xf32>
    %cst_26 = arith.constant dense<0.000000e+00> : vector<7x64xf32>
    %128 = tpu.matmul %127, %38, %cst_26 {dimension_numbers = #tpu.dot_dimension_numbers<[1], [0], [0], [1], [0, 0, 1, 1], [], []>} : vector<7x7xf32>, vector<7x64xf32>, vector<7x64xf32> -> vector<7x64xf32>
    %129 = vector.extract_strided_slice %39 {offsets = [17, 0], sizes = [1, 64], strides = [1, 1]} : vector<31x64xf32> to vector<1x64xf32>
    %130 = vector.broadcast %129 : vector<1x64xf32> to vector<7x64xf32>
    %131 = arith.mulf %128, %130 : vector<7x64xf32>
    %132 = arith.addf %122, %131 : vector<7x64xf32>
    %c3_i32 = arith.constant 3 : i32
    %133 = vector.broadcast %c3_i32 : i32 to vector<7x7xi32>
    %134 = arith.addi %40, %133 : vector<7x7xi32>
    %135 = arith.cmpi eq, %41, %134 : vector<7x7xi32>
    %136 = arith.extui %135 : vector<7x7xi1> to vector<7x7xi32>
    %137 = arith.sitofp %136 : vector<7x7xi32> to vector<7x7xf32>
    %cst_27 = arith.constant dense<0.000000e+00> : vector<7x64xf32>
    %138 = tpu.matmul %137, %38, %cst_27 {dimension_numbers = #tpu.dot_dimension_numbers<[1], [0], [0], [1], [0, 0, 1, 1], [], []>} : vector<7x7xf32>, vector<7x64xf32>, vector<7x64xf32> -> vector<7x64xf32>
    %139 = vector.extract_strided_slice %39 {offsets = [18, 0], sizes = [1, 64], strides = [1, 1]} : vector<31x64xf32> to vector<1x64xf32>
    %140 = vector.broadcast %139 : vector<1x64xf32> to vector<7x64xf32>
    %141 = arith.mulf %138, %140 : vector<7x64xf32>
    %142 = arith.addf %132, %141 : vector<7x64xf32>
    %c4_i32 = arith.constant 4 : i32
    %143 = vector.broadcast %c4_i32 : i32 to vector<7x7xi32>
    %144 = arith.addi %40, %143 : vector<7x7xi32>
    %145 = arith.cmpi eq, %41, %144 : vector<7x7xi32>
    %146 = arith.extui %145 : vector<7x7xi1> to vector<7x7xi32>
    %147 = arith.sitofp %146 : vector<7x7xi32> to vector<7x7xf32>
    %cst_28 = arith.constant dense<0.000000e+00> : vector<7x64xf32>
    %148 = tpu.matmul %147, %38, %cst_28 {dimension_numbers = #tpu.dot_dimension_numbers<[1], [0], [0], [1], [0, 0, 1, 1], [], []>} : vector<7x7xf32>, vector<7x64xf32>, vector<7x64xf32> -> vector<7x64xf32>
    %149 = vector.extract_strided_slice %39 {offsets = [19, 0], sizes = [1, 64], strides = [1, 1]} : vector<31x64xf32> to vector<1x64xf32>
    %150 = vector.broadcast %149 : vector<1x64xf32> to vector<7x64xf32>
    %151 = arith.mulf %148, %150 : vector<7x64xf32>
    %152 = arith.addf %142, %151 : vector<7x64xf32>
    %c5_i32 = arith.constant 5 : i32
    %153 = vector.broadcast %c5_i32 : i32 to vector<7x7xi32>
    %154 = arith.addi %40, %153 : vector<7x7xi32>
    %155 = arith.cmpi eq, %41, %154 : vector<7x7xi32>
    %156 = arith.extui %155 : vector<7x7xi1> to vector<7x7xi32>
    %157 = arith.sitofp %156 : vector<7x7xi32> to vector<7x7xf32>
    %cst_29 = arith.constant dense<0.000000e+00> : vector<7x64xf32>
    %158 = tpu.matmul %157, %38, %cst_29 {dimension_numbers = #tpu.dot_dimension_numbers<[1], [0], [0], [1], [0, 0, 1, 1], [], []>} : vector<7x7xf32>, vector<7x64xf32>, vector<7x64xf32> -> vector<7x64xf32>
    %159 = vector.extract_strided_slice %39 {offsets = [20, 0], sizes = [1, 64], strides = [1, 1]} : vector<31x64xf32> to vector<1x64xf32>
    %160 = vector.broadcast %159 : vector<1x64xf32> to vector<7x64xf32>
    %161 = arith.mulf %158, %160 : vector<7x64xf32>
    %162 = arith.addf %152, %161 : vector<7x64xf32>
    %c6_i32 = arith.constant 6 : i32
    %163 = vector.broadcast %c6_i32 : i32 to vector<7x7xi32>
    %164 = arith.addi %40, %163 : vector<7x7xi32>
    %165 = arith.cmpi eq, %41, %164 : vector<7x7xi32>
    %166 = arith.extui %165 : vector<7x7xi1> to vector<7x7xi32>
    %167 = arith.sitofp %166 : vector<7x7xi32> to vector<7x7xf32>
    %cst_30 = arith.constant dense<0.000000e+00> : vector<7x64xf32>
    %168 = tpu.matmul %167, %38, %cst_30 {dimension_numbers = #tpu.dot_dimension_numbers<[1], [0], [0], [1], [0, 0, 1, 1], [], []>} : vector<7x7xf32>, vector<7x64xf32>, vector<7x64xf32> -> vector<7x64xf32>
    %169 = vector.extract_strided_slice %39 {offsets = [21, 0], sizes = [1, 64], strides = [1, 1]} : vector<31x64xf32> to vector<1x64xf32>
    %170 = vector.broadcast %169 : vector<1x64xf32> to vector<7x64xf32>
    %171 = arith.mulf %168, %170 : vector<7x64xf32>
    %172 = arith.addf %162, %171 : vector<7x64xf32>
    %c0_31 = arith.constant 0 : index
    %c0_32 = arith.constant 0 : index
    %173 = vector.load %arg6[%c0_31, %c0_32] : memref<4x64xf32, #tpu.memory_space<vmem>>, vector<1x64xf32>
    %c1_33 = arith.constant 1 : index
    %c0_34 = arith.constant 0 : index
    %174 = vector.load %arg6[%c1_33, %c0_34] : memref<4x64xf32, #tpu.memory_space<vmem>>, vector<1x64xf32>
    %c2 = arith.constant 2 : index
    %c0_35 = arith.constant 0 : index
    %175 = vector.load %arg6[%c2, %c0_35] : memref<4x64xf32, #tpu.memory_space<vmem>>, vector<1x64xf32>
    %c3 = arith.constant 3 : index
    %c0_36 = arith.constant 0 : index
    %176 = vector.load %arg6[%c3, %c0_36] : memref<4x64xf32, #tpu.memory_space<vmem>>, vector<1x64xf32>
    %177 = vector.broadcast %175 : vector<1x64xf32> to vector<7x64xf32>
    %178 = arith.subf %172, %177 : vector<7x64xf32>
    %cst_37 = arith.constant 9.99999974E-6 : f32
    %179 = vector.broadcast %cst_37 : f32 to vector<1x64xf32>
    %180 = arith.addf %176, %179 : vector<1x64xf32>
    %181 = math.rsqrt %180 : vector<1x64xf32>
    %182 = vector.broadcast %181 : vector<1x64xf32> to vector<7x64xf32>
    %183 = arith.mulf %178, %182 : vector<7x64xf32>
    %184 = vector.broadcast %173 : vector<1x64xf32> to vector<7x64xf32>
    %185 = arith.mulf %183, %184 : vector<7x64xf32>
    %186 = vector.broadcast %174 : vector<1x64xf32> to vector<7x64xf32>
    %187 = arith.addf %185, %186 : vector<7x64xf32>
    %188 = arith.negf %187 : vector<7x64xf32>
    %189 = math.exp %188 : vector<7x64xf32>
    %cst_38 = arith.constant 1.000000e+00 : f32
    %190 = vector.broadcast %cst_38 : f32 to vector<7x64xf32>
    %191 = arith.addf %190, %189 : vector<7x64xf32>
    %192 = arith.divf %190, %191 : vector<7x64xf32>
    %193 = arith.mulf %187, %192 : vector<7x64xf32>
    %c0_39 = arith.constant 0 : index
    %c0_40 = arith.constant 0 : index
    %194 = vector.load %arg7[%c0_39, %c0_40] : memref<64x64xf32, #tpu.memory_space<vmem>>, vector<64x64xf32>
    %cst_41 = arith.constant dense<0.000000e+00> : vector<7x64xf32>
    %195 = tpu.matmul %193, %194, %cst_41 {dimension_numbers = #tpu.dot_dimension_numbers<[1], [0], [0], [1], [0, 0, 1, 1], [], []>} : vector<7x64xf32>, vector<64x64xf32>, vector<7x64xf32> -> vector<7x64xf32>
    %c0_42 = arith.constant 0 : index
    %c0_43 = arith.constant 0 : index
    %196 = vector.load %arg8[%c0_42, %c0_43] : memref<1x64xf32, #tpu.memory_space<vmem>>, vector<1x64xf32>
    %197 = vector.broadcast %196 : vector<1x64xf32> to vector<7x64xf32>
    %198 = arith.addf %195, %197 : vector<7x64xf32>
    %199 = arith.addf %1, %198 : vector<7x64xf32>
    %c0_44 = arith.constant 0 : index
    %c0_45 = arith.constant 0 : index
    %c0_46 = arith.constant 0 : index
    %200 = vector.load %arg9[%c0_44, %c0_45, %c0_46] : memref<1x7x64xf32, #tpu.memory_space<vmem>>, vector<1x7x64xf32>
    %201 = vector.shape_cast %200 : vector<1x7x64xf32> to vector<7x64xf32>
    %202 = vector.shape_cast %199 : vector<7x64xf32> to vector<1x7x64xf32>
    tpu.vector_store %arg9[%c0_44, %c0_45, %c0_46], %202 {strides = array<i32>} : memref<1x7x64xf32, #tpu.memory_space<vmem>>, vector<1x7x64xf32>,
    return
  }
  func.func @transform_0(%arg0: i32) -> (i32, i32, i32) {
    %c0_i32 = arith.constant 0 : i32
    %c0_i32_0 = arith.constant 0 : i32
    %c0_i32_1 = arith.constant 0 : i32
    return %arg0, %c0_i32, %c0_i32_0 : i32, i32, i32
  }
  func.func @transform_1(%arg0: i32) -> (i32, i32) {
    %c0_i32 = arith.constant 0 : i32
    %c0_i32_0 = arith.constant 0 : i32
    %c0_i32_1 = arith.constant 0 : i32
    return %c0_i32, %c0_i32_0 : i32, i32
  }
  func.func @transform_2(%arg0: i32) -> (i32, i32) {
    %c0_i32 = arith.constant 0 : i32
    %c0_i32_0 = arith.constant 0 : i32
    %c0_i32_1 = arith.constant 0 : i32
    return %c0_i32, %c0_i32_0 : i32, i32
  }
  func.func @transform_3(%arg0: i32) -> (i32, i32) {
    %c0_i32 = arith.constant 0 : i32
    %c0_i32_0 = arith.constant 0 : i32
    %c0_i32_1 = arith.constant 0 : i32
    return %c0_i32, %c0_i32_0 : i32, i32
  }
  func.func @transform_4(%arg0: i32) -> (i32, i32) {
    %c0_i32 = arith.constant 0 : i32
    %c0_i32_0 = arith.constant 0 : i32
    %c0_i32_1 = arith.constant 0 : i32
    return %c0_i32, %c0_i32_0 : i32, i32
  }
  func.func @transform_5(%arg0: i32) -> (i32, i32) {
    %c0_i32 = arith.constant 0 : i32
    %c0_i32_0 = arith.constant 0 : i32
    %c0_i32_1 = arith.constant 0 : i32
    return %c0_i32, %c0_i32_0 : i32, i32
  }
  func.func @transform_6(%arg0: i32) -> (i32, i32) {
    %c0_i32 = arith.constant 0 : i32
    %c0_i32_0 = arith.constant 0 : i32
    %c0_i32_1 = arith.constant 0 : i32
    return %c0_i32, %c0_i32_0 : i32, i32
  }
  func.func @transform_7(%arg0: i32) -> (i32, i32) {
    %c0_i32 = arith.constant 0 : i32
    %c0_i32_0 = arith.constant 0 : i32
    %c0_i32_1 = arith.constant 0 : i32
    return %c0_i32, %c0_i32_0 : i32, i32
  }
  func.func @transform_8(%arg0: i32) -> (i32, i32, i32) {
    %c0_i32 = arith.constant 0 : i32
    %c0_i32_0 = arith.constant 0 : i32
    %c0_i32_1 = arith.constant 0 : i32
    return %arg0, %c0_i32, %c0_i32_0 : i32, i32, i32
  }
}

module attributes {stable_mosaic.version = 11 : i64} {
  func.func @_ffn_kernel(%arg0: i32, %arg1: memref<1x7x64xf32, #tpu.memory_space<vmem>>, %arg2: memref<2x64xf32, #tpu.memory_space<vmem>>, %arg3: memref<64x256xf32, #tpu.memory_space<vmem>>, %arg4: memref<1x256xf32, #tpu.memory_space<vmem>>, %arg5: memref<256x64xf32, #tpu.memory_space<vmem>>, %arg6: memref<1x64xf32, #tpu.memory_space<vmem>>, %arg7: memref<2x64xf32, #tpu.memory_space<vmem>>, %arg8: memref<1x7x64xf32, #tpu.memory_space<vmem>>) attributes {dimension_semantics = [#tpu.dimension_semantics<parallel>], iteration_bounds = array<i64: 2>, scalar_prefetch = 0 : i64, scratch_operands = 0 : i64, tpu.core_type = #tpu.core_type<tc>, window_params = [{transform_indices = @transform_0, window_bounds = array<i64: 1, 7, 64>}, {pipeline_mode = #tpu.pipeline_mode<synchronous>, transform_indices = @transform_1, window_bounds = array<i64: 2, 64>}, {pipeline_mode = #tpu.pipeline_mode<synchronous>, transform_indices = @transform_2, window_bounds = array<i64: 64, 256>}, {pipeline_mode = #tpu.pipeline_mode<synchronous>, transform_indices = @transform_3, window_bounds = array<i64: 1, 256>}, {pipeline_mode = #tpu.pipeline_mode<synchronous>, transform_indices = @transform_4, window_bounds = array<i64: 256, 64>}, {pipeline_mode = #tpu.pipeline_mode<synchronous>, transform_indices = @transform_5, window_bounds = array<i64: 1, 64>}, {pipeline_mode = #tpu.pipeline_mode<synchronous>, transform_indices = @transform_6, window_bounds = array<i64: 2, 64>}, {transform_indices = @transform_7, window_bounds = array<i64: 1, 7, 64>}]} {
    %c0 = arith.constant 0 : index
    %c0_0 = arith.constant 0 : index
    %c0_1 = arith.constant 0 : index
    %0 = vector.load %arg1[%c0, %c0_0, %c0_1] : memref<1x7x64xf32, #tpu.memory_space<vmem>>, vector<1x7x64xf32>
    %1 = vector.shape_cast %0 : vector<1x7x64xf32> to vector<7x64xf32>
    %c0_2 = arith.constant 0 : index
    %c0_3 = arith.constant 0 : index
    %2 = vector.load %arg2[%c0_2, %c0_3] : memref<2x64xf32, #tpu.memory_space<vmem>>, vector<1x64xf32>
    %c1 = arith.constant 1 : index
    %c0_4 = arith.constant 0 : index
    %3 = vector.load %arg2[%c1, %c0_4] : memref<2x64xf32, #tpu.memory_space<vmem>>, vector<1x64xf32>
    %cst = arith.constant dense<0.000000e+00> : vector<7xf32>
    %4 = vector.multi_reduction <add>, %1, %cst [1] : vector<7x64xf32> to vector<7xf32>
    %5 = vector.shape_cast %4 : vector<7xf32> to vector<7x1xf32>
    %cst_5 = arith.constant 6.400000e+01 : f32
    %6 = vector.broadcast %cst_5 : f32 to vector<7x1xf32>
    %7 = arith.divf %5, %6 : vector<7x1xf32>
    %8 = vector.broadcast %7 : vector<7x1xf32> to vector<7x64xf32>
    %9 = arith.subf %1, %8 : vector<7x64xf32>
    %10 = arith.mulf %9, %9 : vector<7x64xf32>
    %cst_6 = arith.constant dense<0.000000e+00> : vector<7xf32>
    %11 = vector.multi_reduction <add>, %10, %cst_6 [1] : vector<7x64xf32> to vector<7xf32>
    %12 = vector.shape_cast %11 : vector<7xf32> to vector<7x1xf32>
    %cst_7 = arith.constant 6.400000e+01 : f32
    %13 = vector.broadcast %cst_7 : f32 to vector<7x1xf32>
    %14 = arith.divf %12, %13 : vector<7x1xf32>
    %15 = vector.broadcast %7 : vector<7x1xf32> to vector<7x64xf32>
    %16 = arith.subf %1, %15 : vector<7x64xf32>
    %cst_8 = arith.constant 9.99999974E-6 : f32
    %17 = vector.broadcast %cst_8 : f32 to vector<7x1xf32>
    %18 = arith.addf %14, %17 : vector<7x1xf32>
    %19 = math.rsqrt %18 : vector<7x1xf32>
    %20 = vector.broadcast %19 : vector<7x1xf32> to vector<7x64xf32>
    %21 = arith.mulf %16, %20 : vector<7x64xf32>
    %22 = vector.broadcast %2 : vector<1x64xf32> to vector<7x64xf32>
    %23 = arith.mulf %21, %22 : vector<7x64xf32>
    %24 = vector.broadcast %3 : vector<1x64xf32> to vector<7x64xf32>
    %25 = arith.addf %23, %24 : vector<7x64xf32>
    %c0_9 = arith.constant 0 : index
    %c0_10 = arith.constant 0 : index
    %26 = vector.load %arg3[%c0_9, %c0_10] : memref<64x256xf32, #tpu.memory_space<vmem>>, vector<64x256xf32>
    %cst_11 = arith.constant dense<0.000000e+00> : vector<7x256xf32>
    %27 = tpu.matmul %25, %26, %cst_11 {dimension_numbers = #tpu.dot_dimension_numbers<[1], [0], [0], [1], [0, 0, 1, 1], [], []>} : vector<7x64xf32>, vector<64x256xf32>, vector<7x256xf32> -> vector<7x256xf32>
    %c0_12 = arith.constant 0 : index
    %c0_13 = arith.constant 0 : index
    %28 = vector.load %arg4[%c0_12, %c0_13] : memref<1x256xf32, #tpu.memory_space<vmem>>, vector<1x256xf32>
    %29 = vector.broadcast %28 : vector<1x256xf32> to vector<7x256xf32>
    %30 = arith.addf %27, %29 : vector<7x256xf32>
    %31 = arith.negf %30 : vector<7x256xf32>
    %32 = math.exp %31 : vector<7x256xf32>
    %cst_14 = arith.constant 1.000000e+00 : f32
    %33 = vector.broadcast %cst_14 : f32 to vector<7x256xf32>
    %34 = arith.addf %33, %32 : vector<7x256xf32>
    %35 = arith.divf %33, %34 : vector<7x256xf32>
    %36 = arith.mulf %30, %35 : vector<7x256xf32>
    %c0_15 = arith.constant 0 : index
    %c0_16 = arith.constant 0 : index
    %37 = vector.load %arg5[%c0_15, %c0_16] : memref<256x64xf32, #tpu.memory_space<vmem>>, vector<256x64xf32>
    %cst_17 = arith.constant dense<0.000000e+00> : vector<7x64xf32>
    %38 = tpu.matmul %36, %37, %cst_17 {dimension_numbers = #tpu.dot_dimension_numbers<[1], [0], [0], [1], [0, 0, 1, 1], [], []>} : vector<7x256xf32>, vector<256x64xf32>, vector<7x64xf32> -> vector<7x64xf32>
    %c0_18 = arith.constant 0 : index
    %c0_19 = arith.constant 0 : index
    %39 = vector.load %arg6[%c0_18, %c0_19] : memref<1x64xf32, #tpu.memory_space<vmem>>, vector<1x64xf32>
    %40 = vector.broadcast %39 : vector<1x64xf32> to vector<7x64xf32>
    %41 = arith.addf %38, %40 : vector<7x64xf32>
    %cst_20 = arith.constant 5.000000e-01 : f32
    %42 = vector.broadcast %cst_20 : f32 to vector<7x64xf32>
    %43 = arith.mulf %42, %41 : vector<7x64xf32>
    %44 = arith.addf %1, %43 : vector<7x64xf32>
    %c0_21 = arith.constant 0 : index
    %c0_22 = arith.constant 0 : index
    %45 = vector.load %arg7[%c0_21, %c0_22] : memref<2x64xf32, #tpu.memory_space<vmem>>, vector<1x64xf32>
    %c1_23 = arith.constant 1 : index
    %c0_24 = arith.constant 0 : index
    %46 = vector.load %arg7[%c1_23, %c0_24] : memref<2x64xf32, #tpu.memory_space<vmem>>, vector<1x64xf32>
    %cst_25 = arith.constant dense<0.000000e+00> : vector<7xf32>
    %47 = vector.multi_reduction <add>, %44, %cst_25 [1] : vector<7x64xf32> to vector<7xf32>
    %48 = vector.shape_cast %47 : vector<7xf32> to vector<7x1xf32>
    %cst_26 = arith.constant 6.400000e+01 : f32
    %49 = vector.broadcast %cst_26 : f32 to vector<7x1xf32>
    %50 = arith.divf %48, %49 : vector<7x1xf32>
    %51 = vector.broadcast %50 : vector<7x1xf32> to vector<7x64xf32>
    %52 = arith.subf %44, %51 : vector<7x64xf32>
    %53 = arith.mulf %52, %52 : vector<7x64xf32>
    %cst_27 = arith.constant dense<0.000000e+00> : vector<7xf32>
    %54 = vector.multi_reduction <add>, %53, %cst_27 [1] : vector<7x64xf32> to vector<7xf32>
    %55 = vector.shape_cast %54 : vector<7xf32> to vector<7x1xf32>
    %cst_28 = arith.constant 6.400000e+01 : f32
    %56 = vector.broadcast %cst_28 : f32 to vector<7x1xf32>
    %57 = arith.divf %55, %56 : vector<7x1xf32>
    %58 = vector.broadcast %50 : vector<7x1xf32> to vector<7x64xf32>
    %59 = arith.subf %44, %58 : vector<7x64xf32>
    %cst_29 = arith.constant 9.99999974E-6 : f32
    %60 = vector.broadcast %cst_29 : f32 to vector<7x1xf32>
    %61 = arith.addf %57, %60 : vector<7x1xf32>
    %62 = math.rsqrt %61 : vector<7x1xf32>
    %63 = vector.broadcast %62 : vector<7x1xf32> to vector<7x64xf32>
    %64 = arith.mulf %59, %63 : vector<7x64xf32>
    %65 = vector.broadcast %45 : vector<1x64xf32> to vector<7x64xf32>
    %66 = arith.mulf %64, %65 : vector<7x64xf32>
    %67 = vector.broadcast %46 : vector<1x64xf32> to vector<7x64xf32>
    %68 = arith.addf %66, %67 : vector<7x64xf32>
    %c0_30 = arith.constant 0 : index
    %c0_31 = arith.constant 0 : index
    %c0_32 = arith.constant 0 : index
    %69 = vector.load %arg8[%c0_30, %c0_31, %c0_32] : memref<1x7x64xf32, #tpu.memory_space<vmem>>, vector<1x7x64xf32>
    %70 = vector.shape_cast %69 : vector<1x7x64xf32> to vector<7x64xf32>
    %71 = vector.shape_cast %68 : vector<7x64xf32> to vector<1x7x64xf32>
    tpu.vector_store %arg8[%c0_30, %c0_31, %c0_32], %71 {strides = array<i32>} : memref<1x7x64xf32, #tpu.memory_space<vmem>>, vector<1x7x64xf32>,
    return
  }
  func.func @transform_0(%arg0: i32) -> (i32, i32, i32) {
    %c0_i32 = arith.constant 0 : i32
    %c0_i32_0 = arith.constant 0 : i32
    %c0_i32_1 = arith.constant 0 : i32
    return %arg0, %c0_i32, %c0_i32_0 : i32, i32, i32
  }
  func.func @transform_1(%arg0: i32) -> (i32, i32) {
    %c0_i32 = arith.constant 0 : i32
    %c0_i32_0 = arith.constant 0 : i32
    %c0_i32_1 = arith.constant 0 : i32
    return %c0_i32, %c0_i32_0 : i32, i32
  }
  func.func @transform_2(%arg0: i32) -> (i32, i32) {
    %c0_i32 = arith.constant 0 : i32
    %c0_i32_0 = arith.constant 0 : i32
    %c0_i32_1 = arith.constant 0 : i32
    return %c0_i32, %c0_i32_0 : i32, i32
  }
  func.func @transform_3(%arg0: i32) -> (i32, i32) {
    %c0_i32 = arith.constant 0 : i32
    %c0_i32_0 = arith.constant 0 : i32
    %c0_i32_1 = arith.constant 0 : i32
    return %c0_i32, %c0_i32_0 : i32, i32
  }
  func.func @transform_4(%arg0: i32) -> (i32, i32) {
    %c0_i32 = arith.constant 0 : i32
    %c0_i32_0 = arith.constant 0 : i32
    %c0_i32_1 = arith.constant 0 : i32
    return %c0_i32, %c0_i32_0 : i32, i32
  }
  func.func @transform_5(%arg0: i32) -> (i32, i32) {
    %c0_i32 = arith.constant 0 : i32
    %c0_i32_0 = arith.constant 0 : i32
    %c0_i32_1 = arith.constant 0 : i32
    return %c0_i32, %c0_i32_0 : i32, i32
  }
  func.func @transform_6(%arg0: i32) -> (i32, i32) {
    %c0_i32 = arith.constant 0 : i32
    %c0_i32_0 = arith.constant 0 : i32
    %c0_i32_1 = arith.constant 0 : i32
    return %c0_i32, %c0_i32_0 : i32, i32
  }
  func.func @transform_7(%arg0: i32) -> (i32, i32, i32) {
    %c0_i32 = arith.constant 0 : i32
    %c0_i32_0 = arith.constant 0 : i32
    %c0_i32_1 = arith.constant 0 : i32
    return %arg0, %c0_i32, %c0_i32_0 : i32, i32, i32
  }
}

module attributes {stable_mosaic.version = 11 : i64} {
  func.func @_mhsa_av_kernel(%arg0: i32, %arg1: memref<1x4x7x7xf32, #tpu.memory_space<vmem>>, %arg2: memref<1x7x64xf32, #tpu.memory_space<vmem>>, %arg3: memref<1x7x64xf32, #tpu.memory_space<vmem>>, %arg4: memref<64x64xf32, #tpu.memory_space<vmem>>, %arg5: memref<1x64xf32, #tpu.memory_space<vmem>>, %arg6: memref<1x7x64xf32, #tpu.memory_space<vmem>>) attributes {dimension_semantics = [#tpu.dimension_semantics<parallel>], iteration_bounds = array<i64: 2>, scalar_prefetch = 0 : i64, scratch_operands = 0 : i64, tpu.core_type = #tpu.core_type<tc>, window_params = [{transform_indices = @transform_0, window_bounds = array<i64: 1, 4, 7, 7>}, {transform_indices = @transform_1, window_bounds = array<i64: 1, 7, 64>}, {transform_indices = @transform_2, window_bounds = array<i64: 1, 7, 64>}, {pipeline_mode = #tpu.pipeline_mode<synchronous>, transform_indices = @transform_3, window_bounds = array<i64: 64, 64>}, {pipeline_mode = #tpu.pipeline_mode<synchronous>, transform_indices = @transform_4, window_bounds = array<i64: 1, 64>}, {transform_indices = @transform_5, window_bounds = array<i64: 1, 7, 64>}]} {
    %c0 = arith.constant 0 : index
    %c0_0 = arith.constant 0 : index
    %c0_1 = arith.constant 0 : index
    %0 = vector.load %arg2[%c0, %c0_0, %c0_1] : memref<1x7x64xf32, #tpu.memory_space<vmem>>, vector<1x7x64xf32>
    %1 = vector.shape_cast %0 : vector<1x7x64xf32> to vector<7x64xf32>
    %2 = tpu.iota {dimensions = array<i32: 1>} : vector<1x64xi32>
    %cst = arith.constant 0.000000e+00 : f32
    %3 = vector.broadcast %cst : f32 to vector<7x64xf32>
    %c0_i32 = arith.constant 0 : i32
    %4 = vector.broadcast %c0_i32 : i32 to vector<1x64xi32>
    %5 = arith.cmpi sge, %2, %4 : vector<1x64xi32>
    %c16_i32 = arith.constant 16 : i32
    %6 = vector.broadcast %c16_i32 : i32 to vector<1x64xi32>
    %7 = arith.cmpi slt, %2, %6 : vector<1x64xi32>
    %8 = arith.andi %5, %7 : vector<1x64xi1>
    %9 = arith.extui %8 : vector<1x64xi1> to vector<1x64xi32>
    %10 = arith.sitofp %9 : vector<1x64xi32> to vector<1x64xf32>
    %c0_2 = arith.constant 0 : index
    %c0_3 = arith.constant 0 : index
    %c0_4 = arith.constant 0 : index
    %c0_5 = arith.constant 0 : index
    %11 = vector.load %arg1[%c0_2, %c0_3, %c0_4, %c0_5] : memref<1x4x7x7xf32, #tpu.memory_space<vmem>>, vector<1x1x7x7xf32>
    %12 = vector.shape_cast %11 : vector<1x1x7x7xf32> to vector<7x7xf32>
    %cst_6 = arith.constant 1.250000e-01 : f32
    %13 = vector.broadcast %cst_6 : f32 to vector<7x7xf32>
    %14 = arith.mulf %12, %13 : vector<7x7xf32>
    %cst_7 = arith.constant dense<0xFF800000> : vector<7xf32>
    %15 = vector.multi_reduction <maximumf>, %14, %cst_7 [1] : vector<7x7xf32> to vector<7xf32>
    %16 = vector.shape_cast %15 : vector<7xf32> to vector<7x1xf32>
    %17 = vector.broadcast %16 : vector<7x1xf32> to vector<7x7xf32>
    %18 = arith.subf %14, %17 : vector<7x7xf32>
    %19 = math.exp %18 : vector<7x7xf32>
    %cst_8 = arith.constant dense<0.000000e+00> : vector<7xf32>
    %20 = vector.multi_reduction <add>, %19, %cst_8 [1] : vector<7x7xf32> to vector<7xf32>
    %21 = vector.shape_cast %20 : vector<7xf32> to vector<7x1xf32>
    %22 = tpu.reciprocal %21 {approx = true} : vector<7x1xf32> -> vector<7x1xf32>
    %23 = vector.broadcast %22 : vector<7x1xf32> to vector<7x7xf32>
    %24 = arith.mulf %19, %23 : vector<7x7xf32>
    %25 = vector.broadcast %10 : vector<1x64xf32> to vector<7x64xf32>
    %26 = arith.mulf %1, %25 : vector<7x64xf32>
    %cst_9 = arith.constant dense<0.000000e+00> : vector<7x64xf32>
    %27 = tpu.matmul %24, %26, %cst_9 {dimension_numbers = #tpu.dot_dimension_numbers<[1], [0], [0], [1], [0, 0, 1, 1], [], []>} : vector<7x7xf32>, vector<7x64xf32>, vector<7x64xf32> -> vector<7x64xf32>
    %28 = arith.addf %3, %27 : vector<7x64xf32>
    %c16_i32_10 = arith.constant 16 : i32
    %29 = vector.broadcast %c16_i32_10 : i32 to vector<1x64xi32>
    %30 = arith.cmpi sge, %2, %29 : vector<1x64xi32>
    %c32_i32 = arith.constant 32 : i32
    %31 = vector.broadcast %c32_i32 : i32 to vector<1x64xi32>
    %32 = arith.cmpi slt, %2, %31 : vector<1x64xi32>
    %33 = arith.andi %30, %32 : vector<1x64xi1>
    %34 = arith.extui %33 : vector<1x64xi1> to vector<1x64xi32>
    %35 = arith.sitofp %34 : vector<1x64xi32> to vector<1x64xf32>
    %c0_11 = arith.constant 0 : index
    %c1 = arith.constant 1 : index
    %c0_12 = arith.constant 0 : index
    %c0_13 = arith.constant 0 : index
    %36 = vector.load %arg1[%c0_11, %c1, %c0_12, %c0_13] : memref<1x4x7x7xf32, #tpu.memory_space<vmem>>, vector<1x1x7x7xf32>
    %37 = vector.shape_cast %36 : vector<1x1x7x7xf32> to vector<7x7xf32>
    %cst_14 = arith.constant 1.250000e-01 : f32
    %38 = vector.broadcast %cst_14 : f32 to vector<7x7xf32>
    %39 = arith.mulf %37, %38 : vector<7x7xf32>
    %cst_15 = arith.constant dense<0xFF800000> : vector<7xf32>
    %40 = vector.multi_reduction <maximumf>, %39, %cst_15 [1] : vector<7x7xf32> to vector<7xf32>
    %41 = vector.shape_cast %40 : vector<7xf32> to vector<7x1xf32>
    %42 = vector.broadcast %41 : vector<7x1xf32> to vector<7x7xf32>
    %43 = arith.subf %39, %42 : vector<7x7xf32>
    %44 = math.exp %43 : vector<7x7xf32>
    %cst_16 = arith.constant dense<0.000000e+00> : vector<7xf32>
    %45 = vector.multi_reduction <add>, %44, %cst_16 [1] : vector<7x7xf32> to vector<7xf32>
    %46 = vector.shape_cast %45 : vector<7xf32> to vector<7x1xf32>
    %47 = tpu.reciprocal %46 {approx = true} : vector<7x1xf32> -> vector<7x1xf32>
    %48 = vector.broadcast %47 : vector<7x1xf32> to vector<7x7xf32>
    %49 = arith.mulf %44, %48 : vector<7x7xf32>
    %50 = vector.broadcast %35 : vector<1x64xf32> to vector<7x64xf32>
    %51 = arith.mulf %1, %50 : vector<7x64xf32>
    %cst_17 = arith.constant dense<0.000000e+00> : vector<7x64xf32>
    %52 = tpu.matmul %49, %51, %cst_17 {dimension_numbers = #tpu.dot_dimension_numbers<[1], [0], [0], [1], [0, 0, 1, 1], [], []>} : vector<7x7xf32>, vector<7x64xf32>, vector<7x64xf32> -> vector<7x64xf32>
    %53 = arith.addf %28, %52 : vector<7x64xf32>
    %c32_i32_18 = arith.constant 32 : i32
    %54 = vector.broadcast %c32_i32_18 : i32 to vector<1x64xi32>
    %55 = arith.cmpi sge, %2, %54 : vector<1x64xi32>
    %c48_i32 = arith.constant 48 : i32
    %56 = vector.broadcast %c48_i32 : i32 to vector<1x64xi32>
    %57 = arith.cmpi slt, %2, %56 : vector<1x64xi32>
    %58 = arith.andi %55, %57 : vector<1x64xi1>
    %59 = arith.extui %58 : vector<1x64xi1> to vector<1x64xi32>
    %60 = arith.sitofp %59 : vector<1x64xi32> to vector<1x64xf32>
    %c0_19 = arith.constant 0 : index
    %c2 = arith.constant 2 : index
    %c0_20 = arith.constant 0 : index
    %c0_21 = arith.constant 0 : index
    %61 = vector.load %arg1[%c0_19, %c2, %c0_20, %c0_21] : memref<1x4x7x7xf32, #tpu.memory_space<vmem>>, vector<1x1x7x7xf32>
    %62 = vector.shape_cast %61 : vector<1x1x7x7xf32> to vector<7x7xf32>
    %cst_22 = arith.constant 1.250000e-01 : f32
    %63 = vector.broadcast %cst_22 : f32 to vector<7x7xf32>
    %64 = arith.mulf %62, %63 : vector<7x7xf32>
    %cst_23 = arith.constant dense<0xFF800000> : vector<7xf32>
    %65 = vector.multi_reduction <maximumf>, %64, %cst_23 [1] : vector<7x7xf32> to vector<7xf32>
    %66 = vector.shape_cast %65 : vector<7xf32> to vector<7x1xf32>
    %67 = vector.broadcast %66 : vector<7x1xf32> to vector<7x7xf32>
    %68 = arith.subf %64, %67 : vector<7x7xf32>
    %69 = math.exp %68 : vector<7x7xf32>
    %cst_24 = arith.constant dense<0.000000e+00> : vector<7xf32>
    %70 = vector.multi_reduction <add>, %69, %cst_24 [1] : vector<7x7xf32> to vector<7xf32>
    %71 = vector.shape_cast %70 : vector<7xf32> to vector<7x1xf32>
    %72 = tpu.reciprocal %71 {approx = true} : vector<7x1xf32> -> vector<7x1xf32>
    %73 = vector.broadcast %72 : vector<7x1xf32> to vector<7x7xf32>
    %74 = arith.mulf %69, %73 : vector<7x7xf32>
    %75 = vector.broadcast %60 : vector<1x64xf32> to vector<7x64xf32>
    %76 = arith.mulf %1, %75 : vector<7x64xf32>
    %cst_25 = arith.constant dense<0.000000e+00> : vector<7x64xf32>
    %77 = tpu.matmul %74, %76, %cst_25 {dimension_numbers = #tpu.dot_dimension_numbers<[1], [0], [0], [1], [0, 0, 1, 1], [], []>} : vector<7x7xf32>, vector<7x64xf32>, vector<7x64xf32> -> vector<7x64xf32>
    %78 = arith.addf %53, %77 : vector<7x64xf32>
    %c48_i32_26 = arith.constant 48 : i32
    %79 = vector.broadcast %c48_i32_26 : i32 to vector<1x64xi32>
    %80 = arith.cmpi sge, %2, %79 : vector<1x64xi32>
    %c64_i32 = arith.constant 64 : i32
    %81 = vector.broadcast %c64_i32 : i32 to vector<1x64xi32>
    %82 = arith.cmpi slt, %2, %81 : vector<1x64xi32>
    %83 = arith.andi %80, %82 : vector<1x64xi1>
    %84 = arith.extui %83 : vector<1x64xi1> to vector<1x64xi32>
    %85 = arith.sitofp %84 : vector<1x64xi32> to vector<1x64xf32>
    %c0_27 = arith.constant 0 : index
    %c3 = arith.constant 3 : index
    %c0_28 = arith.constant 0 : index
    %c0_29 = arith.constant 0 : index
    %86 = vector.load %arg1[%c0_27, %c3, %c0_28, %c0_29] : memref<1x4x7x7xf32, #tpu.memory_space<vmem>>, vector<1x1x7x7xf32>
    %87 = vector.shape_cast %86 : vector<1x1x7x7xf32> to vector<7x7xf32>
    %cst_30 = arith.constant 1.250000e-01 : f32
    %88 = vector.broadcast %cst_30 : f32 to vector<7x7xf32>
    %89 = arith.mulf %87, %88 : vector<7x7xf32>
    %cst_31 = arith.constant dense<0xFF800000> : vector<7xf32>
    %90 = vector.multi_reduction <maximumf>, %89, %cst_31 [1] : vector<7x7xf32> to vector<7xf32>
    %91 = vector.shape_cast %90 : vector<7xf32> to vector<7x1xf32>
    %92 = vector.broadcast %91 : vector<7x1xf32> to vector<7x7xf32>
    %93 = arith.subf %89, %92 : vector<7x7xf32>
    %94 = math.exp %93 : vector<7x7xf32>
    %cst_32 = arith.constant dense<0.000000e+00> : vector<7xf32>
    %95 = vector.multi_reduction <add>, %94, %cst_32 [1] : vector<7x7xf32> to vector<7xf32>
    %96 = vector.shape_cast %95 : vector<7xf32> to vector<7x1xf32>
    %97 = tpu.reciprocal %96 {approx = true} : vector<7x1xf32> -> vector<7x1xf32>
    %98 = vector.broadcast %97 : vector<7x1xf32> to vector<7x7xf32>
    %99 = arith.mulf %94, %98 : vector<7x7xf32>
    %100 = vector.broadcast %85 : vector<1x64xf32> to vector<7x64xf32>
    %101 = arith.mulf %1, %100 : vector<7x64xf32>
    %cst_33 = arith.constant dense<0.000000e+00> : vector<7x64xf32>
    %102 = tpu.matmul %99, %101, %cst_33 {dimension_numbers = #tpu.dot_dimension_numbers<[1], [0], [0], [1], [0, 0, 1, 1], [], []>} : vector<7x7xf32>, vector<7x64xf32>, vector<7x64xf32> -> vector<7x64xf32>
    %103 = arith.addf %78, %102 : vector<7x64xf32>
    %c0_34 = arith.constant 0 : index
    %c0_35 = arith.constant 0 : index
    %104 = vector.load %arg4[%c0_34, %c0_35] : memref<64x64xf32, #tpu.memory_space<vmem>>, vector<64x64xf32>
    %cst_36 = arith.constant dense<0.000000e+00> : vector<7x64xf32>
    %105 = tpu.matmul %103, %104, %cst_36 {dimension_numbers = #tpu.dot_dimension_numbers<[1], [0], [0], [1], [0, 0, 1, 1], [], []>} : vector<7x64xf32>, vector<64x64xf32>, vector<7x64xf32> -> vector<7x64xf32>
    %c0_37 = arith.constant 0 : index
    %c0_38 = arith.constant 0 : index
    %106 = vector.load %arg5[%c0_37, %c0_38] : memref<1x64xf32, #tpu.memory_space<vmem>>, vector<1x64xf32>
    %107 = vector.broadcast %106 : vector<1x64xf32> to vector<7x64xf32>
    %108 = arith.addf %105, %107 : vector<7x64xf32>
    %c0_39 = arith.constant 0 : index
    %c0_40 = arith.constant 0 : index
    %c0_41 = arith.constant 0 : index
    %109 = vector.load %arg3[%c0_39, %c0_40, %c0_41] : memref<1x7x64xf32, #tpu.memory_space<vmem>>, vector<1x7x64xf32>
    %110 = vector.shape_cast %109 : vector<1x7x64xf32> to vector<7x64xf32>
    %111 = arith.addf %110, %108 : vector<7x64xf32>
    %c0_42 = arith.constant 0 : index
    %c0_43 = arith.constant 0 : index
    %c0_44 = arith.constant 0 : index
    %112 = vector.load %arg6[%c0_42, %c0_43, %c0_44] : memref<1x7x64xf32, #tpu.memory_space<vmem>>, vector<1x7x64xf32>
    %113 = vector.shape_cast %112 : vector<1x7x64xf32> to vector<7x64xf32>
    %114 = vector.shape_cast %111 : vector<7x64xf32> to vector<1x7x64xf32>
    tpu.vector_store %arg6[%c0_42, %c0_43, %c0_44], %114 {strides = array<i32>} : memref<1x7x64xf32, #tpu.memory_space<vmem>>, vector<1x7x64xf32>,
    return
  }
  func.func @transform_0(%arg0: i32) -> (i32, i32, i32, i32) {
    %c0_i32 = arith.constant 0 : i32
    %c0_i32_0 = arith.constant 0 : i32
    %c0_i32_1 = arith.constant 0 : i32
    %c0_i32_2 = arith.constant 0 : i32
    return %arg0, %c0_i32, %c0_i32_0, %c0_i32_1 : i32, i32, i32, i32
  }
  func.func @transform_1(%arg0: i32) -> (i32, i32, i32) {
    %c0_i32 = arith.constant 0 : i32
    %c0_i32_0 = arith.constant 0 : i32
    %c0_i32_1 = arith.constant 0 : i32
    return %arg0, %c0_i32, %c0_i32_0 : i32, i32, i32
  }
  func.func @transform_2(%arg0: i32) -> (i32, i32, i32) {
    %c0_i32 = arith.constant 0 : i32
    %c0_i32_0 = arith.constant 0 : i32
    %c0_i32_1 = arith.constant 0 : i32
    return %arg0, %c0_i32, %c0_i32_0 : i32, i32, i32
  }
  func.func @transform_3(%arg0: i32) -> (i32, i32) {
    %c0_i32 = arith.constant 0 : i32
    %c0_i32_0 = arith.constant 0 : i32
    %c0_i32_1 = arith.constant 0 : i32
    return %c0_i32, %c0_i32_0 : i32, i32
  }
  func.func @transform_4(%arg0: i32) -> (i32, i32) {
    %c0_i32 = arith.constant 0 : i32
    %c0_i32_0 = arith.constant 0 : i32
    %c0_i32_1 = arith.constant 0 : i32
    return %c0_i32, %c0_i32_0 : i32, i32
  }
  func.func @transform_5(%arg0: i32) -> (i32, i32, i32) {
    %c0_i32 = arith.constant 0 : i32
    %c0_i32_0 = arith.constant 0 : i32
    %c0_i32_1 = arith.constant 0 : i32
    return %arg0, %c0_i32, %c0_i32_0 : i32, i32, i32
  }
}

module attributes {stable_mosaic.version = 11 : i64} {
  func.func @_conv_module_kernel(%arg0: i32, %arg1: memref<1x7x64xf32, #tpu.memory_space<vmem>>, %arg2: memref<2x64xf32, #tpu.memory_space<vmem>>, %arg3: memref<64x128xf32, #tpu.memory_space<vmem>>, %arg4: memref<1x128xf32, #tpu.memory_space<vmem>>, %arg5: memref<31x64xf32, #tpu.memory_space<vmem>>, %arg6: memref<4x64xf32, #tpu.memory_space<vmem>>, %arg7: memref<64x64xf32, #tpu.memory_space<vmem>>, %arg8: memref<1x64xf32, #tpu.memory_space<vmem>>, %arg9: memref<1x7x64xf32, #tpu.memory_space<vmem>>) attributes {dimension_semantics = [#tpu.dimension_semantics<parallel>], iteration_bounds = array<i64: 2>, scalar_prefetch = 0 : i64, scratch_operands = 0 : i64, tpu.core_type = #tpu.core_type<tc>, window_params = [{transform_indices = @transform_0, window_bounds = array<i64: 1, 7, 64>}, {pipeline_mode = #tpu.pipeline_mode<synchronous>, transform_indices = @transform_1, window_bounds = array<i64: 2, 64>}, {pipeline_mode = #tpu.pipeline_mode<synchronous>, transform_indices = @transform_2, window_bounds = array<i64: 64, 128>}, {pipeline_mode = #tpu.pipeline_mode<synchronous>, transform_indices = @transform_3, window_bounds = array<i64: 1, 128>}, {pipeline_mode = #tpu.pipeline_mode<synchronous>, transform_indices = @transform_4, window_bounds = array<i64: 31, 64>}, {pipeline_mode = #tpu.pipeline_mode<synchronous>, transform_indices = @transform_5, window_bounds = array<i64: 4, 64>}, {pipeline_mode = #tpu.pipeline_mode<synchronous>, transform_indices = @transform_6, window_bounds = array<i64: 64, 64>}, {pipeline_mode = #tpu.pipeline_mode<synchronous>, transform_indices = @transform_7, window_bounds = array<i64: 1, 64>}, {transform_indices = @transform_8, window_bounds = array<i64: 1, 7, 64>}]} {
    %c0 = arith.constant 0 : index
    %c0_0 = arith.constant 0 : index
    %c0_1 = arith.constant 0 : index
    %0 = vector.load %arg1[%c0, %c0_0, %c0_1] : memref<1x7x64xf32, #tpu.memory_space<vmem>>, vector<1x7x64xf32>
    %1 = vector.shape_cast %0 : vector<1x7x64xf32> to vector<7x64xf32>
    %c0_2 = arith.constant 0 : index
    %c0_3 = arith.constant 0 : index
    %2 = vector.load %arg2[%c0_2, %c0_3] : memref<2x64xf32, #tpu.memory_space<vmem>>, vector<1x64xf32>
    %c1 = arith.constant 1 : index
    %c0_4 = arith.constant 0 : index
    %3 = vector.load %arg2[%c1, %c0_4] : memref<2x64xf32, #tpu.memory_space<vmem>>, vector<1x64xf32>
    %cst = arith.constant dense<0.000000e+00> : vector<7xf32>
    %4 = vector.multi_reduction <add>, %1, %cst [1] : vector<7x64xf32> to vector<7xf32>
    %5 = vector.shape_cast %4 : vector<7xf32> to vector<7x1xf32>
    %cst_5 = arith.constant 6.400000e+01 : f32
    %6 = vector.broadcast %cst_5 : f32 to vector<7x1xf32>
    %7 = arith.divf %5, %6 : vector<7x1xf32>
    %8 = vector.broadcast %7 : vector<7x1xf32> to vector<7x64xf32>
    %9 = arith.subf %1, %8 : vector<7x64xf32>
    %10 = arith.mulf %9, %9 : vector<7x64xf32>
    %cst_6 = arith.constant dense<0.000000e+00> : vector<7xf32>
    %11 = vector.multi_reduction <add>, %10, %cst_6 [1] : vector<7x64xf32> to vector<7xf32>
    %12 = vector.shape_cast %11 : vector<7xf32> to vector<7x1xf32>
    %cst_7 = arith.constant 6.400000e+01 : f32
    %13 = vector.broadcast %cst_7 : f32 to vector<7x1xf32>
    %14 = arith.divf %12, %13 : vector<7x1xf32>
    %15 = vector.broadcast %7 : vector<7x1xf32> to vector<7x64xf32>
    %16 = arith.subf %1, %15 : vector<7x64xf32>
    %cst_8 = arith.constant 9.99999974E-6 : f32
    %17 = vector.broadcast %cst_8 : f32 to vector<7x1xf32>
    %18 = arith.addf %14, %17 : vector<7x1xf32>
    %19 = math.rsqrt %18 : vector<7x1xf32>
    %20 = vector.broadcast %19 : vector<7x1xf32> to vector<7x64xf32>
    %21 = arith.mulf %16, %20 : vector<7x64xf32>
    %22 = vector.broadcast %2 : vector<1x64xf32> to vector<7x64xf32>
    %23 = arith.mulf %21, %22 : vector<7x64xf32>
    %24 = vector.broadcast %3 : vector<1x64xf32> to vector<7x64xf32>
    %25 = arith.addf %23, %24 : vector<7x64xf32>
    %c0_9 = arith.constant 0 : index
    %c0_10 = arith.constant 0 : index
    %26 = vector.load %arg3[%c0_9, %c0_10] : memref<64x128xf32, #tpu.memory_space<vmem>>, vector<64x128xf32>
    %cst_11 = arith.constant dense<0.000000e+00> : vector<7x128xf32>
    %27 = tpu.matmul %25, %26, %cst_11 {dimension_numbers = #tpu.dot_dimension_numbers<[1], [0], [0], [1], [0, 0, 1, 1], [], []>} : vector<7x64xf32>, vector<64x128xf32>, vector<7x128xf32> -> vector<7x128xf32>
    %c0_12 = arith.constant 0 : index
    %c0_13 = arith.constant 0 : index
    %28 = vector.load %arg4[%c0_12, %c0_13] : memref<1x128xf32, #tpu.memory_space<vmem>>, vector<1x128xf32>
    %29 = vector.broadcast %28 : vector<1x128xf32> to vector<7x128xf32>
    %30 = arith.addf %27, %29 : vector<7x128xf32>
    %31 = vector.extract_strided_slice %30 {offsets = [0, 0], sizes = [7, 64], strides = [1, 1]} : vector<7x128xf32> to vector<7x64xf32>
    %32 = vector.extract_strided_slice %30 {offsets = [0, 64], sizes = [7, 64], strides = [1, 1]} : vector<7x128xf32> to vector<7x64xf32>
    %33 = arith.negf %32 : vector<7x64xf32>
    %34 = math.exp %33 : vector<7x64xf32>
    %cst_14 = arith.constant 1.000000e+00 : f32
    %35 = vector.broadcast %cst_14 : f32 to vector<7x64xf32>
    %36 = arith.addf %35, %34 : vector<7x64xf32>
    %37 = arith.divf %35, %36 : vector<7x64xf32>
    %38 = arith.mulf %31, %37 : vector<7x64xf32>
    %c0_15 = arith.constant 0 : index
    %c0_16 = arith.constant 0 : index
    %39 = vector.load %arg5[%c0_15, %c0_16] : memref<31x64xf32, #tpu.memory_space<vmem>>, vector<31x64xf32>
    %40 = tpu.iota {dimensions = array<i32: 0>} : vector<7x7xi32>
    %41 = tpu.iota {dimensions = array<i32: 1>} : vector<7x7xi32>
    %cst_17 = arith.constant 0.000000e+00 : f32
    %42 = vector.broadcast %cst_17 : f32 to vector<7x64xf32>
    %c-6_i32 = arith.constant -6 : i32
    %43 = vector.broadcast %c-6_i32 : i32 to vector<7x7xi32>
    %44 = arith.addi %40, %43 : vector<7x7xi32>
    %45 = arith.cmpi eq, %41, %44 : vector<7x7xi32>
    %46 = arith.extui %45 : vector<7x7xi1> to vector<7x7xi32>
    %47 = arith.sitofp %46 : vector<7x7xi32> to vector<7x7xf32>
    %cst_18 = arith.constant dense<0.000000e+00> : vector<7x64xf32>
    %48 = tpu.matmul %47, %38, %cst_18 {dimension_numbers = #tpu.dot_dimension_numbers<[1], [0], [0], [1], [0, 0, 1, 1], [], []>} : vector<7x7xf32>, vector<7x64xf32>, vector<7x64xf32> -> vector<7x64xf32>
    %49 = vector.extract_strided_slice %39 {offsets = [9, 0], sizes = [1, 64], strides = [1, 1]} : vector<31x64xf32> to vector<1x64xf32>
    %50 = vector.broadcast %49 : vector<1x64xf32> to vector<7x64xf32>
    %51 = arith.mulf %48, %50 : vector<7x64xf32>
    %52 = arith.addf %42, %51 : vector<7x64xf32>
    %c-5_i32 = arith.constant -5 : i32
    %53 = vector.broadcast %c-5_i32 : i32 to vector<7x7xi32>
    %54 = arith.addi %40, %53 : vector<7x7xi32>
    %55 = arith.cmpi eq, %41, %54 : vector<7x7xi32>
    %56 = arith.extui %55 : vector<7x7xi1> to vector<7x7xi32>
    %57 = arith.sitofp %56 : vector<7x7xi32> to vector<7x7xf32>
    %cst_19 = arith.constant dense<0.000000e+00> : vector<7x64xf32>
    %58 = tpu.matmul %57, %38, %cst_19 {dimension_numbers = #tpu.dot_dimension_numbers<[1], [0], [0], [1], [0, 0, 1, 1], [], []>} : vector<7x7xf32>, vector<7x64xf32>, vector<7x64xf32> -> vector<7x64xf32>
    %59 = vector.extract_strided_slice %39 {offsets = [10, 0], sizes = [1, 64], strides = [1, 1]} : vector<31x64xf32> to vector<1x64xf32>
    %60 = vector.broadcast %59 : vector<1x64xf32> to vector<7x64xf32>
    %61 = arith.mulf %58, %60 : vector<7x64xf32>
    %62 = arith.addf %52, %61 : vector<7x64xf32>
    %c-4_i32 = arith.constant -4 : i32
    %63 = vector.broadcast %c-4_i32 : i32 to vector<7x7xi32>
    %64 = arith.addi %40, %63 : vector<7x7xi32>
    %65 = arith.cmpi eq, %41, %64 : vector<7x7xi32>
    %66 = arith.extui %65 : vector<7x7xi1> to vector<7x7xi32>
    %67 = arith.sitofp %66 : vector<7x7xi32> to vector<7x7xf32>
    %cst_20 = arith.constant dense<0.000000e+00> : vector<7x64xf32>
    %68 = tpu.matmul %67, %38, %cst_20 {dimension_numbers = #tpu.dot_dimension_numbers<[1], [0], [0], [1], [0, 0, 1, 1], [], []>} : vector<7x7xf32>, vector<7x64xf32>, vector<7x64xf32> -> vector<7x64xf32>
    %69 = vector.extract_strided_slice %39 {offsets = [11, 0], sizes = [1, 64], strides = [1, 1]} : vector<31x64xf32> to vector<1x64xf32>
    %70 = vector.broadcast %69 : vector<1x64xf32> to vector<7x64xf32>
    %71 = arith.mulf %68, %70 : vector<7x64xf32>
    %72 = arith.addf %62, %71 : vector<7x64xf32>
    %c-3_i32 = arith.constant -3 : i32
    %73 = vector.broadcast %c-3_i32 : i32 to vector<7x7xi32>
    %74 = arith.addi %40, %73 : vector<7x7xi32>
    %75 = arith.cmpi eq, %41, %74 : vector<7x7xi32>
    %76 = arith.extui %75 : vector<7x7xi1> to vector<7x7xi32>
    %77 = arith.sitofp %76 : vector<7x7xi32> to vector<7x7xf32>
    %cst_21 = arith.constant dense<0.000000e+00> : vector<7x64xf32>
    %78 = tpu.matmul %77, %38, %cst_21 {dimension_numbers = #tpu.dot_dimension_numbers<[1], [0], [0], [1], [0, 0, 1, 1], [], []>} : vector<7x7xf32>, vector<7x64xf32>, vector<7x64xf32> -> vector<7x64xf32>
    %79 = vector.extract_strided_slice %39 {offsets = [12, 0], sizes = [1, 64], strides = [1, 1]} : vector<31x64xf32> to vector<1x64xf32>
    %80 = vector.broadcast %79 : vector<1x64xf32> to vector<7x64xf32>
    %81 = arith.mulf %78, %80 : vector<7x64xf32>
    %82 = arith.addf %72, %81 : vector<7x64xf32>
    %c-2_i32 = arith.constant -2 : i32
    %83 = vector.broadcast %c-2_i32 : i32 to vector<7x7xi32>
    %84 = arith.addi %40, %83 : vector<7x7xi32>
    %85 = arith.cmpi eq, %41, %84 : vector<7x7xi32>
    %86 = arith.extui %85 : vector<7x7xi1> to vector<7x7xi32>
    %87 = arith.sitofp %86 : vector<7x7xi32> to vector<7x7xf32>
    %cst_22 = arith.constant dense<0.000000e+00> : vector<7x64xf32>
    %88 = tpu.matmul %87, %38, %cst_22 {dimension_numbers = #tpu.dot_dimension_numbers<[1], [0], [0], [1], [0, 0, 1, 1], [], []>} : vector<7x7xf32>, vector<7x64xf32>, vector<7x64xf32> -> vector<7x64xf32>
    %89 = vector.extract_strided_slice %39 {offsets = [13, 0], sizes = [1, 64], strides = [1, 1]} : vector<31x64xf32> to vector<1x64xf32>
    %90 = vector.broadcast %89 : vector<1x64xf32> to vector<7x64xf32>
    %91 = arith.mulf %88, %90 : vector<7x64xf32>
    %92 = arith.addf %82, %91 : vector<7x64xf32>
    %c-1_i32 = arith.constant -1 : i32
    %93 = vector.broadcast %c-1_i32 : i32 to vector<7x7xi32>
    %94 = arith.addi %40, %93 : vector<7x7xi32>
    %95 = arith.cmpi eq, %41, %94 : vector<7x7xi32>
    %96 = arith.extui %95 : vector<7x7xi1> to vector<7x7xi32>
    %97 = arith.sitofp %96 : vector<7x7xi32> to vector<7x7xf32>
    %cst_23 = arith.constant dense<0.000000e+00> : vector<7x64xf32>
    %98 = tpu.matmul %97, %38, %cst_23 {dimension_numbers = #tpu.dot_dimension_numbers<[1], [0], [0], [1], [0, 0, 1, 1], [], []>} : vector<7x7xf32>, vector<7x64xf32>, vector<7x64xf32> -> vector<7x64xf32>
    %99 = vector.extract_strided_slice %39 {offsets = [14, 0], sizes = [1, 64], strides = [1, 1]} : vector<31x64xf32> to vector<1x64xf32>
    %100 = vector.broadcast %99 : vector<1x64xf32> to vector<7x64xf32>
    %101 = arith.mulf %98, %100 : vector<7x64xf32>
    %102 = arith.addf %92, %101 : vector<7x64xf32>
    %c0_i32 = arith.constant 0 : i32
    %103 = vector.broadcast %c0_i32 : i32 to vector<7x7xi32>
    %104 = arith.addi %40, %103 : vector<7x7xi32>
    %105 = arith.cmpi eq, %41, %104 : vector<7x7xi32>
    %106 = arith.extui %105 : vector<7x7xi1> to vector<7x7xi32>
    %107 = arith.sitofp %106 : vector<7x7xi32> to vector<7x7xf32>
    %cst_24 = arith.constant dense<0.000000e+00> : vector<7x64xf32>
    %108 = tpu.matmul %107, %38, %cst_24 {dimension_numbers = #tpu.dot_dimension_numbers<[1], [0], [0], [1], [0, 0, 1, 1], [], []>} : vector<7x7xf32>, vector<7x64xf32>, vector<7x64xf32> -> vector<7x64xf32>
    %109 = vector.extract_strided_slice %39 {offsets = [15, 0], sizes = [1, 64], strides = [1, 1]} : vector<31x64xf32> to vector<1x64xf32>
    %110 = vector.broadcast %109 : vector<1x64xf32> to vector<7x64xf32>
    %111 = arith.mulf %108, %110 : vector<7x64xf32>
    %112 = arith.addf %102, %111 : vector<7x64xf32>
    %c1_i32 = arith.constant 1 : i32
    %113 = vector.broadcast %c1_i32 : i32 to vector<7x7xi32>
    %114 = arith.addi %40, %113 : vector<7x7xi32>
    %115 = arith.cmpi eq, %41, %114 : vector<7x7xi32>
    %116 = arith.extui %115 : vector<7x7xi1> to vector<7x7xi32>
    %117 = arith.sitofp %116 : vector<7x7xi32> to vector<7x7xf32>
    %cst_25 = arith.constant dense<0.000000e+00> : vector<7x64xf32>
    %118 = tpu.matmul %117, %38, %cst_25 {dimension_numbers = #tpu.dot_dimension_numbers<[1], [0], [0], [1], [0, 0, 1, 1], [], []>} : vector<7x7xf32>, vector<7x64xf32>, vector<7x64xf32> -> vector<7x64xf32>
    %119 = vector.extract_strided_slice %39 {offsets = [16, 0], sizes = [1, 64], strides = [1, 1]} : vector<31x64xf32> to vector<1x64xf32>
    %120 = vector.broadcast %119 : vector<1x64xf32> to vector<7x64xf32>
    %121 = arith.mulf %118, %120 : vector<7x64xf32>
    %122 = arith.addf %112, %121 : vector<7x64xf32>
    %c2_i32 = arith.constant 2 : i32
    %123 = vector.broadcast %c2_i32 : i32 to vector<7x7xi32>
    %124 = arith.addi %40, %123 : vector<7x7xi32>
    %125 = arith.cmpi eq, %41, %124 : vector<7x7xi32>
    %126 = arith.extui %125 : vector<7x7xi1> to vector<7x7xi32>
    %127 = arith.sitofp %126 : vector<7x7xi32> to vector<7x7xf32>
    %cst_26 = arith.constant dense<0.000000e+00> : vector<7x64xf32>
    %128 = tpu.matmul %127, %38, %cst_26 {dimension_numbers = #tpu.dot_dimension_numbers<[1], [0], [0], [1], [0, 0, 1, 1], [], []>} : vector<7x7xf32>, vector<7x64xf32>, vector<7x64xf32> -> vector<7x64xf32>
    %129 = vector.extract_strided_slice %39 {offsets = [17, 0], sizes = [1, 64], strides = [1, 1]} : vector<31x64xf32> to vector<1x64xf32>
    %130 = vector.broadcast %129 : vector<1x64xf32> to vector<7x64xf32>
    %131 = arith.mulf %128, %130 : vector<7x64xf32>
    %132 = arith.addf %122, %131 : vector<7x64xf32>
    %c3_i32 = arith.constant 3 : i32
    %133 = vector.broadcast %c3_i32 : i32 to vector<7x7xi32>
    %134 = arith.addi %40, %133 : vector<7x7xi32>
    %135 = arith.cmpi eq, %41, %134 : vector<7x7xi32>
    %136 = arith.extui %135 : vector<7x7xi1> to vector<7x7xi32>
    %137 = arith.sitofp %136 : vector<7x7xi32> to vector<7x7xf32>
    %cst_27 = arith.constant dense<0.000000e+00> : vector<7x64xf32>
    %138 = tpu.matmul %137, %38, %cst_27 {dimension_numbers = #tpu.dot_dimension_numbers<[1], [0], [0], [1], [0, 0, 1, 1], [], []>} : vector<7x7xf32>, vector<7x64xf32>, vector<7x64xf32> -> vector<7x64xf32>
    %139 = vector.extract_strided_slice %39 {offsets = [18, 0], sizes = [1, 64], strides = [1, 1]} : vector<31x64xf32> to vector<1x64xf32>
    %140 = vector.broadcast %139 : vector<1x64xf32> to vector<7x64xf32>
    %141 = arith.mulf %138, %140 : vector<7x64xf32>
    %142 = arith.addf %132, %141 : vector<7x64xf32>
    %c4_i32 = arith.constant 4 : i32
    %143 = vector.broadcast %c4_i32 : i32 to vector<7x7xi32>
    %144 = arith.addi %40, %143 : vector<7x7xi32>
    %145 = arith.cmpi eq, %41, %144 : vector<7x7xi32>
    %146 = arith.extui %145 : vector<7x7xi1> to vector<7x7xi32>
    %147 = arith.sitofp %146 : vector<7x7xi32> to vector<7x7xf32>
    %cst_28 = arith.constant dense<0.000000e+00> : vector<7x64xf32>
    %148 = tpu.matmul %147, %38, %cst_28 {dimension_numbers = #tpu.dot_dimension_numbers<[1], [0], [0], [1], [0, 0, 1, 1], [], []>} : vector<7x7xf32>, vector<7x64xf32>, vector<7x64xf32> -> vector<7x64xf32>
    %149 = vector.extract_strided_slice %39 {offsets = [19, 0], sizes = [1, 64], strides = [1, 1]} : vector<31x64xf32> to vector<1x64xf32>
    %150 = vector.broadcast %149 : vector<1x64xf32> to vector<7x64xf32>
    %151 = arith.mulf %148, %150 : vector<7x64xf32>
    %152 = arith.addf %142, %151 : vector<7x64xf32>
    %c5_i32 = arith.constant 5 : i32
    %153 = vector.broadcast %c5_i32 : i32 to vector<7x7xi32>
    %154 = arith.addi %40, %153 : vector<7x7xi32>
    %155 = arith.cmpi eq, %41, %154 : vector<7x7xi32>
    %156 = arith.extui %155 : vector<7x7xi1> to vector<7x7xi32>
    %157 = arith.sitofp %156 : vector<7x7xi32> to vector<7x7xf32>
    %cst_29 = arith.constant dense<0.000000e+00> : vector<7x64xf32>
    %158 = tpu.matmul %157, %38, %cst_29 {dimension_numbers = #tpu.dot_dimension_numbers<[1], [0], [0], [1], [0, 0, 1, 1], [], []>} : vector<7x7xf32>, vector<7x64xf32>, vector<7x64xf32> -> vector<7x64xf32>
    %159 = vector.extract_strided_slice %39 {offsets = [20, 0], sizes = [1, 64], strides = [1, 1]} : vector<31x64xf32> to vector<1x64xf32>
    %160 = vector.broadcast %159 : vector<1x64xf32> to vector<7x64xf32>
    %161 = arith.mulf %158, %160 : vector<7x64xf32>
    %162 = arith.addf %152, %161 : vector<7x64xf32>
    %c6_i32 = arith.constant 6 : i32
    %163 = vector.broadcast %c6_i32 : i32 to vector<7x7xi32>
    %164 = arith.addi %40, %163 : vector<7x7xi32>
    %165 = arith.cmpi eq, %41, %164 : vector<7x7xi32>
    %166 = arith.extui %165 : vector<7x7xi1> to vector<7x7xi32>
    %167 = arith.sitofp %166 : vector<7x7xi32> to vector<7x7xf32>
    %cst_30 = arith.constant dense<0.000000e+00> : vector<7x64xf32>
    %168 = tpu.matmul %167, %38, %cst_30 {dimension_numbers = #tpu.dot_dimension_numbers<[1], [0], [0], [1], [0, 0, 1, 1], [], []>} : vector<7x7xf32>, vector<7x64xf32>, vector<7x64xf32> -> vector<7x64xf32>
    %169 = vector.extract_strided_slice %39 {offsets = [21, 0], sizes = [1, 64], strides = [1, 1]} : vector<31x64xf32> to vector<1x64xf32>
    %170 = vector.broadcast %169 : vector<1x64xf32> to vector<7x64xf32>
    %171 = arith.mulf %168, %170 : vector<7x64xf32>
    %172 = arith.addf %162, %171 : vector<7x64xf32>
    %c0_31 = arith.constant 0 : index
    %c0_32 = arith.constant 0 : index
    %173 = vector.load %arg6[%c0_31, %c0_32] : memref<4x64xf32, #tpu.memory_space<vmem>>, vector<1x64xf32>
    %c1_33 = arith.constant 1 : index
    %c0_34 = arith.constant 0 : index
    %174 = vector.load %arg6[%c1_33, %c0_34] : memref<4x64xf32, #tpu.memory_space<vmem>>, vector<1x64xf32>
    %c2 = arith.constant 2 : index
    %c0_35 = arith.constant 0 : index
    %175 = vector.load %arg6[%c2, %c0_35] : memref<4x64xf32, #tpu.memory_space<vmem>>, vector<1x64xf32>
    %c3 = arith.constant 3 : index
    %c0_36 = arith.constant 0 : index
    %176 = vector.load %arg6[%c3, %c0_36] : memref<4x64xf32, #tpu.memory_space<vmem>>, vector<1x64xf32>
    %177 = vector.broadcast %175 : vector<1x64xf32> to vector<7x64xf32>
    %178 = arith.subf %172, %177 : vector<7x64xf32>
    %cst_37 = arith.constant 9.99999974E-6 : f32
    %179 = vector.broadcast %cst_37 : f32 to vector<1x64xf32>
    %180 = arith.addf %176, %179 : vector<1x64xf32>
    %181 = math.rsqrt %180 : vector<1x64xf32>
    %182 = vector.broadcast %181 : vector<1x64xf32> to vector<7x64xf32>
    %183 = arith.mulf %178, %182 : vector<7x64xf32>
    %184 = vector.broadcast %173 : vector<1x64xf32> to vector<7x64xf32>
    %185 = arith.mulf %183, %184 : vector<7x64xf32>
    %186 = vector.broadcast %174 : vector<1x64xf32> to vector<7x64xf32>
    %187 = arith.addf %185, %186 : vector<7x64xf32>
    %188 = arith.negf %187 : vector<7x64xf32>
    %189 = math.exp %188 : vector<7x64xf32>
    %cst_38 = arith.constant 1.000000e+00 : f32
    %190 = vector.broadcast %cst_38 : f32 to vector<7x64xf32>
    %191 = arith.addf %190, %189 : vector<7x64xf32>
    %192 = arith.divf %190, %191 : vector<7x64xf32>
    %193 = arith.mulf %187, %192 : vector<7x64xf32>
    %c0_39 = arith.constant 0 : index
    %c0_40 = arith.constant 0 : index
    %194 = vector.load %arg7[%c0_39, %c0_40] : memref<64x64xf32, #tpu.memory_space<vmem>>, vector<64x64xf32>
    %cst_41 = arith.constant dense<0.000000e+00> : vector<7x64xf32>
    %195 = tpu.matmul %193, %194, %cst_41 {dimension_numbers = #tpu.dot_dimension_numbers<[1], [0], [0], [1], [0, 0, 1, 1], [], []>} : vector<7x64xf32>, vector<64x64xf32>, vector<7x64xf32> -> vector<7x64xf32>
    %c0_42 = arith.constant 0 : index
    %c0_43 = arith.constant 0 : index
    %196 = vector.load %arg8[%c0_42, %c0_43] : memref<1x64xf32, #tpu.memory_space<vmem>>, vector<1x64xf32>
    %197 = vector.broadcast %196 : vector<1x64xf32> to vector<7x64xf32>
    %198 = arith.addf %195, %197 : vector<7x64xf32>
    %199 = arith.addf %1, %198 : vector<7x64xf32>
    %c0_44 = arith.constant 0 : index
    %c0_45 = arith.constant 0 : index
    %c0_46 = arith.constant 0 : index
    %200 = vector.load %arg9[%c0_44, %c0_45, %c0_46] : memref<1x7x64xf32, #tpu.memory_space<vmem>>, vector<1x7x64xf32>
    %201 = vector.shape_cast %200 : vector<1x7x64xf32> to vector<7x64xf32>
    %202 = vector.shape_cast %199 : vector<7x64xf32> to vector<1x7x64xf32>
    tpu.vector_store %arg9[%c0_44, %c0_45, %c0_46], %202 {strides = array<i32>} : memref<1x7x64xf32, #tpu.memory_space<vmem>>, vector<1x7x64xf32>,
    return
  }
  func.func @transform_0(%arg0: i32) -> (i32, i32, i32) {
    %c0_i32 = arith.constant 0 : i32
    %c0_i32_0 = arith.constant 0 : i32
    %c0_i32_1 = arith.constant 0 : i32
    return %arg0, %c0_i32, %c0_i32_0 : i32, i32, i32
  }
  func.func @transform_1(%arg0: i32) -> (i32, i32) {
    %c0_i32 = arith.constant 0 : i32
    %c0_i32_0 = arith.constant 0 : i32
    %c0_i32_1 = arith.constant 0 : i32
    return %c0_i32, %c0_i32_0 : i32, i32
  }
  func.func @transform_2(%arg0: i32) -> (i32, i32) {
    %c0_i32 = arith.constant 0 : i32
    %c0_i32_0 = arith.constant 0 : i32
    %c0_i32_1 = arith.constant 0 : i32
    return %c0_i32, %c0_i32_0 : i32, i32
  }
  func.func @transform_3(%arg0: i32) -> (i32, i32) {
    %c0_i32 = arith.constant 0 : i32
    %c0_i32_0 = arith.constant 0 : i32
    %c0_i32_1 = arith.constant 0 : i32
    return %c0_i32, %c0_i32_0 : i32, i32
  }
  func.func @transform_4(%arg0: i32) -> (i32, i32) {
    %c0_i32 = arith.constant 0 : i32
    %c0_i32_0 = arith.constant 0 : i32
    %c0_i32_1 = arith.constant 0 : i32
    return %c0_i32, %c0_i32_0 : i32, i32
  }
  func.func @transform_5(%arg0: i32) -> (i32, i32) {
    %c0_i32 = arith.constant 0 : i32
    %c0_i32_0 = arith.constant 0 : i32
    %c0_i32_1 = arith.constant 0 : i32
    return %c0_i32, %c0_i32_0 : i32, i32
  }
  func.func @transform_6(%arg0: i32) -> (i32, i32) {
    %c0_i32 = arith.constant 0 : i32
    %c0_i32_0 = arith.constant 0 : i32
    %c0_i32_1 = arith.constant 0 : i32
    return %c0_i32, %c0_i32_0 : i32, i32
  }
  func.func @transform_7(%arg0: i32) -> (i32, i32) {
    %c0_i32 = arith.constant 0 : i32
    %c0_i32_0 = arith.constant 0 : i32
    %c0_i32_1 = arith.constant 0 : i32
    return %c0_i32, %c0_i32_0 : i32, i32
  }
  func.func @transform_8(%arg0: i32) -> (i32, i32, i32) {
    %c0_i32 = arith.constant 0 : i32
    %c0_i32_0 = arith.constant 0 : i32
    %c0_i32_1 = arith.constant 0 : i32
    return %arg0, %c0_i32, %c0_i32_0 : i32, i32, i32
  }
}

module attributes {stable_mosaic.version = 11 : i64} {
  func.func @_ffn_kernel(%arg0: i32, %arg1: memref<1x7x64xf32, #tpu.memory_space<vmem>>, %arg2: memref<2x64xf32, #tpu.memory_space<vmem>>, %arg3: memref<64x256xf32, #tpu.memory_space<vmem>>, %arg4: memref<1x256xf32, #tpu.memory_space<vmem>>, %arg5: memref<256x64xf32, #tpu.memory_space<vmem>>, %arg6: memref<1x64xf32, #tpu.memory_space<vmem>>, %arg7: memref<2x64xf32, #tpu.memory_space<vmem>>, %arg8: memref<1x7x64xf32, #tpu.memory_space<vmem>>) attributes {dimension_semantics = [#tpu.dimension_semantics<parallel>], iteration_bounds = array<i64: 2>, scalar_prefetch = 0 : i64, scratch_operands = 0 : i64, tpu.core_type = #tpu.core_type<tc>, window_params = [{transform_indices = @transform_0, window_bounds = array<i64: 1, 7, 64>}, {pipeline_mode = #tpu.pipeline_mode<synchronous>, transform_indices = @transform_1, window_bounds = array<i64: 2, 64>}, {pipeline_mode = #tpu.pipeline_mode<synchronous>, transform_indices = @transform_2, window_bounds = array<i64: 64, 256>}, {pipeline_mode = #tpu.pipeline_mode<synchronous>, transform_indices = @transform_3, window_bounds = array<i64: 1, 256>}, {pipeline_mode = #tpu.pipeline_mode<synchronous>, transform_indices = @transform_4, window_bounds = array<i64: 256, 64>}, {pipeline_mode = #tpu.pipeline_mode<synchronous>, transform_indices = @transform_5, window_bounds = array<i64: 1, 64>}, {pipeline_mode = #tpu.pipeline_mode<synchronous>, transform_indices = @transform_6, window_bounds = array<i64: 2, 64>}, {transform_indices = @transform_7, window_bounds = array<i64: 1, 7, 64>}]} {
    %c0 = arith.constant 0 : index
    %c0_0 = arith.constant 0 : index
    %c0_1 = arith.constant 0 : index
    %0 = vector.load %arg1[%c0, %c0_0, %c0_1] : memref<1x7x64xf32, #tpu.memory_space<vmem>>, vector<1x7x64xf32>
    %1 = vector.shape_cast %0 : vector<1x7x64xf32> to vector<7x64xf32>
    %c0_2 = arith.constant 0 : index
    %c0_3 = arith.constant 0 : index
    %2 = vector.load %arg2[%c0_2, %c0_3] : memref<2x64xf32, #tpu.memory_space<vmem>>, vector<1x64xf32>
    %c1 = arith.constant 1 : index
    %c0_4 = arith.constant 0 : index
    %3 = vector.load %arg2[%c1, %c0_4] : memref<2x64xf32, #tpu.memory_space<vmem>>, vector<1x64xf32>
    %cst = arith.constant dense<0.000000e+00> : vector<7xf32>
    %4 = vector.multi_reduction <add>, %1, %cst [1] : vector<7x64xf32> to vector<7xf32>
    %5 = vector.shape_cast %4 : vector<7xf32> to vector<7x1xf32>
    %cst_5 = arith.constant 6.400000e+01 : f32
    %6 = vector.broadcast %cst_5 : f32 to vector<7x1xf32>
    %7 = arith.divf %5, %6 : vector<7x1xf32>
    %8 = vector.broadcast %7 : vector<7x1xf32> to vector<7x64xf32>
    %9 = arith.subf %1, %8 : vector<7x64xf32>
    %10 = arith.mulf %9, %9 : vector<7x64xf32>
    %cst_6 = arith.constant dense<0.000000e+00> : vector<7xf32>
    %11 = vector.multi_reduction <add>, %10, %cst_6 [1] : vector<7x64xf32> to vector<7xf32>
    %12 = vector.shape_cast %11 : vector<7xf32> to vector<7x1xf32>
    %cst_7 = arith.constant 6.400000e+01 : f32
    %13 = vector.broadcast %cst_7 : f32 to vector<7x1xf32>
    %14 = arith.divf %12, %13 : vector<7x1xf32>
    %15 = vector.broadcast %7 : vector<7x1xf32> to vector<7x64xf32>
    %16 = arith.subf %1, %15 : vector<7x64xf32>
    %cst_8 = arith.constant 9.99999974E-6 : f32
    %17 = vector.broadcast %cst_8 : f32 to vector<7x1xf32>
    %18 = arith.addf %14, %17 : vector<7x1xf32>
    %19 = math.rsqrt %18 : vector<7x1xf32>
    %20 = vector.broadcast %19 : vector<7x1xf32> to vector<7x64xf32>
    %21 = arith.mulf %16, %20 : vector<7x64xf32>
    %22 = vector.broadcast %2 : vector<1x64xf32> to vector<7x64xf32>
    %23 = arith.mulf %21, %22 : vector<7x64xf32>
    %24 = vector.broadcast %3 : vector<1x64xf32> to vector<7x64xf32>
    %25 = arith.addf %23, %24 : vector<7x64xf32>
    %c0_9 = arith.constant 0 : index
    %c0_10 = arith.constant 0 : index
    %26 = vector.load %arg3[%c0_9, %c0_10] : memref<64x256xf32, #tpu.memory_space<vmem>>, vector<64x256xf32>
    %cst_11 = arith.constant dense<0.000000e+00> : vector<7x256xf32>
    %27 = tpu.matmul %25, %26, %cst_11 {dimension_numbers = #tpu.dot_dimension_numbers<[1], [0], [0], [1], [0, 0, 1, 1], [], []>} : vector<7x64xf32>, vector<64x256xf32>, vector<7x256xf32> -> vector<7x256xf32>
    %c0_12 = arith.constant 0 : index
    %c0_13 = arith.constant 0 : index
    %28 = vector.load %arg4[%c0_12, %c0_13] : memref<1x256xf32, #tpu.memory_space<vmem>>, vector<1x256xf32>
    %29 = vector.broadcast %28 : vector<1x256xf32> to vector<7x256xf32>
    %30 = arith.addf %27, %29 : vector<7x256xf32>
    %31 = arith.negf %30 : vector<7x256xf32>
    %32 = math.exp %31 : vector<7x256xf32>
    %cst_14 = arith.constant 1.000000e+00 : f32
    %33 = vector.broadcast %cst_14 : f32 to vector<7x256xf32>
    %34 = arith.addf %33, %32 : vector<7x256xf32>
    %35 = arith.divf %33, %34 : vector<7x256xf32>
    %36 = arith.mulf %30, %35 : vector<7x256xf32>
    %c0_15 = arith.constant 0 : index
    %c0_16 = arith.constant 0 : index
    %37 = vector.load %arg5[%c0_15, %c0_16] : memref<256x64xf32, #tpu.memory_space<vmem>>, vector<256x64xf32>
    %cst_17 = arith.constant dense<0.000000e+00> : vector<7x64xf32>
    %38 = tpu.matmul %36, %37, %cst_17 {dimension_numbers = #tpu.dot_dimension_numbers<[1], [0], [0], [1], [0, 0, 1, 1], [], []>} : vector<7x256xf32>, vector<256x64xf32>, vector<7x64xf32> -> vector<7x64xf32>
    %c0_18 = arith.constant 0 : index
    %c0_19 = arith.constant 0 : index
    %39 = vector.load %arg6[%c0_18, %c0_19] : memref<1x64xf32, #tpu.memory_space<vmem>>, vector<1x64xf32>
    %40 = vector.broadcast %39 : vector<1x64xf32> to vector<7x64xf32>
    %41 = arith.addf %38, %40 : vector<7x64xf32>
    %cst_20 = arith.constant 5.000000e-01 : f32
    %42 = vector.broadcast %cst_20 : f32 to vector<7x64xf32>
    %43 = arith.mulf %42, %41 : vector<7x64xf32>
    %44 = arith.addf %1, %43 : vector<7x64xf32>
    %c0_21 = arith.constant 0 : index
    %c0_22 = arith.constant 0 : index
    %45 = vector.load %arg7[%c0_21, %c0_22] : memref<2x64xf32, #tpu.memory_space<vmem>>, vector<1x64xf32>
    %c1_23 = arith.constant 1 : index
    %c0_24 = arith.constant 0 : index
    %46 = vector.load %arg7[%c1_23, %c0_24] : memref<2x64xf32, #tpu.memory_space<vmem>>, vector<1x64xf32>
    %cst_25 = arith.constant dense<0.000000e+00> : vector<7xf32>
    %47 = vector.multi_reduction <add>, %44, %cst_25 [1] : vector<7x64xf32> to vector<7xf32>
    %48 = vector.shape_cast %47 : vector<7xf32> to vector<7x1xf32>
    %cst_26 = arith.constant 6.400000e+01 : f32
    %49 = vector.broadcast %cst_26 : f32 to vector<7x1xf32>
    %50 = arith.divf %48, %49 : vector<7x1xf32>
    %51 = vector.broadcast %50 : vector<7x1xf32> to vector<7x64xf32>
    %52 = arith.subf %44, %51 : vector<7x64xf32>
    %53 = arith.mulf %52, %52 : vector<7x64xf32>
    %cst_27 = arith.constant dense<0.000000e+00> : vector<7xf32>
    %54 = vector.multi_reduction <add>, %53, %cst_27 [1] : vector<7x64xf32> to vector<7xf32>
    %55 = vector.shape_cast %54 : vector<7xf32> to vector<7x1xf32>
    %cst_28 = arith.constant 6.400000e+01 : f32
    %56 = vector.broadcast %cst_28 : f32 to vector<7x1xf32>
    %57 = arith.divf %55, %56 : vector<7x1xf32>
    %58 = vector.broadcast %50 : vector<7x1xf32> to vector<7x64xf32>
    %59 = arith.subf %44, %58 : vector<7x64xf32>
    %cst_29 = arith.constant 9.99999974E-6 : f32
    %60 = vector.broadcast %cst_29 : f32 to vector<7x1xf32>
    %61 = arith.addf %57, %60 : vector<7x1xf32>
    %62 = math.rsqrt %61 : vector<7x1xf32>
    %63 = vector.broadcast %62 : vector<7x1xf32> to vector<7x64xf32>
    %64 = arith.mulf %59, %63 : vector<7x64xf32>
    %65 = vector.broadcast %45 : vector<1x64xf32> to vector<7x64xf32>
    %66 = arith.mulf %64, %65 : vector<7x64xf32>
    %67 = vector.broadcast %46 : vector<1x64xf32> to vector<7x64xf32>
    %68 = arith.addf %66, %67 : vector<7x64xf32>
    %c0_30 = arith.constant 0 : index
    %c0_31 = arith.constant 0 : index
    %c0_32 = arith.constant 0 : index
    %69 = vector.load %arg8[%c0_30, %c0_31, %c0_32] : memref<1x7x64xf32, #tpu.memory_space<vmem>>, vector<1x7x64xf32>
    %70 = vector.shape_cast %69 : vector<1x7x64xf32> to vector<7x64xf32>
    %71 = vector.shape_cast %68 : vector<7x64xf32> to vector<1x7x64xf32>
    tpu.vector_store %arg8[%c0_30, %c0_31, %c0_32], %71 {strides = array<i32>} : memref<1x7x64xf32, #tpu.memory_space<vmem>>, vector<1x7x64xf32>,
    return
  }
  func.func @transform_0(%arg0: i32) -> (i32, i32, i32) {
    %c0_i32 = arith.constant 0 : i32
    %c0_i32_0 = arith.constant 0 : i32
    %c0_i32_1 = arith.constant 0 : i32
    return %arg0, %c0_i32, %c0_i32_0 : i32, i32, i32
  }
  func.func @transform_1(%arg0: i32) -> (i32, i32) {
    %c0_i32 = arith.constant 0 : i32
    %c0_i32_0 = arith.constant 0 : i32
    %c0_i32_1 = arith.constant 0 : i32
    return %c0_i32, %c0_i32_0 : i32, i32
  }
  func.func @transform_2(%arg0: i32) -> (i32, i32) {
    %c0_i32 = arith.constant 0 : i32
    %c0_i32_0 = arith.constant 0 : i32
    %c0_i32_1 = arith.constant 0 : i32
    return %c0_i32, %c0_i32_0 : i32, i32
  }
  func.func @transform_3(%arg0: i32) -> (i32, i32) {
    %c0_i32 = arith.constant 0 : i32
    %c0_i32_0 = arith.constant 0 : i32
    %c0_i32_1 = arith.constant 0 : i32
    return %c0_i32, %c0_i32_0 : i32, i32
  }
  func.func @transform_4(%arg0: i32) -> (i32, i32) {
    %c0_i32 = arith.constant 0 : i32
    %c0_i32_0 = arith.constant 0 : i32
    %c0_i32_1 = arith.constant 0 : i32
    return %c0_i32, %c0_i32_0 : i32, i32
  }
  func.func @transform_5(%arg0: i32) -> (i32, i32) {
    %c0_i32 = arith.constant 0 : i32
    %c0_i32_0 = arith.constant 0 : i32
    %c0_i32_1 = arith.constant 0 : i32
    return %c0_i32, %c0_i32_0 : i32, i32
  }
  func.func @transform_6(%arg0: i32) -> (i32, i32) {
    %c0_i32 = arith.constant 0 : i32
    %c0_i32_0 = arith.constant 0 : i32
    %c0_i32_1 = arith.constant 0 : i32
    return %c0_i32, %c0_i32_0 : i32, i32
  }
  func.func @transform_7(%arg0: i32) -> (i32, i32, i32) {
    %c0_i32 = arith.constant 0 : i32
    %c0_i32_0 = arith.constant 0 : i32
    %c0_i32_1 = arith.constant 0 : i32
    return %arg0, %c0_i32, %c0_i32_0 : i32, i32, i32
  }
}

module attributes {stable_mosaic.version = 11 : i64} {
  func.func @_head_kernel(%arg0: i32, %arg1: memref<2x7x64xf32, #tpu.memory_space<vmem>>, %arg2: memref<64x64xf32, #tpu.memory_space<vmem>>, %arg3: memref<1x64xf32, #tpu.memory_space<vmem>>, %arg4: memref<64x600xf32, #tpu.memory_space<vmem>>, %arg5: memref<1x600xf32, #tpu.memory_space<vmem>>, %arg6: memref<2x600xf32, #tpu.memory_space<vmem>>) attributes {dimension_semantics = [#tpu.dimension_semantics<arbitrary>], iteration_bounds = array<i64: 1>, scalar_prefetch = 0 : i64, scratch_operands = 0 : i64, tpu.core_type = #tpu.core_type<tc>, window_params = [{pipeline_mode = #tpu.pipeline_mode<synchronous>, transform_indices = @transform_0, window_bounds = array<i64: 2, 7, 64>}, {pipeline_mode = #tpu.pipeline_mode<synchronous>, transform_indices = @transform_1, window_bounds = array<i64: 64, 64>}, {pipeline_mode = #tpu.pipeline_mode<synchronous>, transform_indices = @transform_2, window_bounds = array<i64: 1, 64>}, {pipeline_mode = #tpu.pipeline_mode<synchronous>, transform_indices = @transform_3, window_bounds = array<i64: 64, 600>}, {pipeline_mode = #tpu.pipeline_mode<synchronous>, transform_indices = @transform_4, window_bounds = array<i64: 1, 600>}, {pipeline_mode = #tpu.pipeline_mode<synchronous>, transform_indices = @transform_5, window_bounds = array<i64: 2, 600>}]} {
    %c0 = arith.constant 0 : index
    %c0_0 = arith.constant 0 : index
    %c0_1 = arith.constant 0 : index
    %0 = vector.load %arg1[%c0, %c0_0, %c0_1] : memref<2x7x64xf32, #tpu.memory_space<vmem>>, vector<2x7x64xf32>
    %cst = arith.constant dense<0.000000e+00> : vector<2x64xf32>
    %1 = vector.multi_reduction <add>, %0, %cst [1] : vector<2x7x64xf32> to vector<2x64xf32>
    %cst_2 = arith.constant 7.000000e+00 : f32
    %2 = vector.broadcast %cst_2 : f32 to vector<2x64xf32>
    %3 = arith.divf %1, %2 : vector<2x64xf32>
    %c0_3 = arith.constant 0 : index
    %c0_4 = arith.constant 0 : index
    %4 = vector.load %arg2[%c0_3, %c0_4] : memref<64x64xf32, #tpu.memory_space<vmem>>, vector<64x64xf32>
    %cst_5 = arith.constant dense<0.000000e+00> : vector<2x64xf32>
    %5 = tpu.matmul %3, %4, %cst_5 {dimension_numbers = #tpu.dot_dimension_numbers<[1], [0], [0], [1], [0, 0, 1, 1], [], []>} : vector<2x64xf32>, vector<64x64xf32>, vector<2x64xf32> -> vector<2x64xf32>
    %c0_6 = arith.constant 0 : index
    %c0_7 = arith.constant 0 : index
    %6 = vector.load %arg3[%c0_6, %c0_7] : memref<1x64xf32, #tpu.memory_space<vmem>>, vector<1x64xf32>
    %7 = vector.broadcast %6 : vector<1x64xf32> to vector<2x64xf32>
    %8 = arith.addf %5, %7 : vector<2x64xf32>
    %cst_8 = arith.constant 0.000000e+00 : f32
    %9 = vector.broadcast %cst_8 : f32 to vector<2x64xf32>
    %10 = arith.maximumf %8, %9 : vector<2x64xf32>
    %c0_9 = arith.constant 0 : index
    %c0_10 = arith.constant 0 : index
    %11 = vector.load %arg4[%c0_9, %c0_10] : memref<64x600xf32, #tpu.memory_space<vmem>>, vector<64x600xf32>
    %cst_11 = arith.constant dense<0.000000e+00> : vector<2x600xf32>
    %12 = tpu.matmul %10, %11, %cst_11 {dimension_numbers = #tpu.dot_dimension_numbers<[1], [0], [0], [1], [0, 0, 1, 1], [], []>} : vector<2x64xf32>, vector<64x600xf32>, vector<2x600xf32> -> vector<2x600xf32>
    %c0_12 = arith.constant 0 : index
    %c0_13 = arith.constant 0 : index
    %13 = vector.load %arg5[%c0_12, %c0_13] : memref<1x600xf32, #tpu.memory_space<vmem>>, vector<1x600xf32>
    %14 = vector.broadcast %13 : vector<1x600xf32> to vector<2x600xf32>
    %15 = arith.addf %12, %14 : vector<2x600xf32>
    %c0_14 = arith.constant 0 : index
    %c0_15 = arith.constant 0 : index
    %16 = vector.load %arg6[%c0_14, %c0_15] : memref<2x600xf32, #tpu.memory_space<vmem>>, vector<2x600xf32>
    tpu.vector_store %arg6[%c0_14, %c0_15], %15 {strides = array<i32>} : memref<2x600xf32, #tpu.memory_space<vmem>>, vector<2x600xf32>,
    return
  }
  func.func @transform_0(%arg0: i32) -> (i32, i32, i32) {
    %c0_i32 = arith.constant 0 : i32
    %c0_i32_0 = arith.constant 0 : i32
    %c0_i32_1 = arith.constant 0 : i32
    %c0_i32_2 = arith.constant 0 : i32
    return %c0_i32, %c0_i32_0, %c0_i32_1 : i32, i32, i32
  }
  func.func @transform_1(%arg0: i32) -> (i32, i32) {
    %c0_i32 = arith.constant 0 : i32
    %c0_i32_0 = arith.constant 0 : i32
    %c0_i32_1 = arith.constant 0 : i32
    return %c0_i32, %c0_i32_0 : i32, i32
  }
  func.func @transform_2(%arg0: i32) -> (i32, i32) {
    %c0_i32 = arith.constant 0 : i32
    %c0_i32_0 = arith.constant 0 : i32
    %c0_i32_1 = arith.constant 0 : i32
    return %c0_i32, %c0_i32_0 : i32, i32
  }
  func.func @transform_3(%arg0: i32) -> (i32, i32) {
    %c0_i32 = arith.constant 0 : i32
    %c0_i32_0 = arith.constant 0 : i32
    %c0_i32_1 = arith.constant 0 : i32
    return %c0_i32, %c0_i32_0 : i32, i32
  }
  func.func @transform_4(%arg0: i32) -> (i32, i32) {
    %c0_i32 = arith.constant 0 : i32
    %c0_i32_0 = arith.constant 0 : i32
    %c0_i32_1 = arith.constant 0 : i32
    return %c0_i32, %c0_i32_0 : i32, i32
  }
  func.func @transform_5(%arg0: i32) -> (i32, i32) {
    %c0_i32 = arith.constant 0 : i32
    %c0_i32_0 = arith.constant 0 : i32
    %c0_i32_1 = arith.constant 0 : i32
    return %c0_i32, %c0_i32_0 : i32, i32
  }
}

</mosaic_0001>

<bundles_post_ra>
// kernel: _lambda_.15
= control target key start
LH: loop header
LB: loop body
LE: loop exit
PB: predicated region body
PF: predicated region fallthrough
CT: control target
= control target key end

     0   :  { %8 = vsyncpa [#allocation3], 0  ;;  %s459_s0 = inlined_call_operand.hbm [shape: f32[64,40], index: 0, kind: input, shape index: {}]   ;;  %s460_s1 = inlined_call_operand.hbm [shape: f32[40,80], index: 1, kind: input, shape index: {}]   ;;  %s461_s2 = inlined_call_operand.hbm [shape: f32[1,80], index: 2, kind: input, shape index: {}]   ;;  %s462_s3 = inlined_call_operand.vmem [shape: f32[64,80], index: 3, kind: output, shape index: {}]  }
   0x1   :  { %9 = vsyncpa [#allocation5], 0  ;;  %s351_s12 = smov [#allocation4]   ;;  %s352_s14 = smov [#allocation2]  }
   0x2   :  { %s27_s13 = sshll.u32 %s351_s12, 4  ;;  %s15_s15 = sshll.u32 %s352_s14, 4  ;;  %s28_s13 = int_to_ptr.vmem [resolvable:$true] %s27_s13  ;;  %s376_s15 = int_to_ptr.vmem [resolvable:$true] %s15_s15 }
   0x3   :  { %s281_s18 = scalar_lea.hbm %s460_s1, 640 }
   0x4   :  { %p282_p0 = scmp.ne.s32.totalorder %s460_s1, %s281_s18  ;;  %p285_p1 = scmp.lt.u32.totalorder %s281_s18, %s460_s1 }
   0x6   :  { %p287_p2 = pnand %p285_p1, %p282_p0 }
   0x8   :  { %290 = shalt.err (!%p287_p2)
}
   0x9   :  { %s291_s23 = scalar_lea.vmem %s28_s13, 640  ;;  %p296_p4 = scmp.lt.s32.totalorder %s28_s13, %s28_s13 }
   0xa   :  { %p292_p3 = scmp.ne.s32.totalorder %s28_s13, %s291_s23  ;;  %p297_p5 = scmp.lt.s32.totalorder %s291_s23, %s291_s23 }
   0xc   :  { %p298_p6 = por %p297_p5, %p296_p4 }
   0xe   :  { %p299_p7 = pnand %p298_p6, %p292_p3 }
  0x10   :  { %302 = shalt.err (!%p299_p7)
}
  0x11   :  { %s353_s24 = smov 128   ;;  %s354_s25 = smov 8  }
  0x12   :  { %33 = dma.hbm_to_vmem [thread:$0]  %s460_s1, 640, %s28_s13, [#allocation5], %s353_s24, %s353_s24, %s354_s25  }
  0x13   :  { %s303_s30 = scalar_lea.hbm %s459_s0, 1024 }
  0x14   :  { %p304_p8 = scmp.ne.s32.totalorder %s459_s0, %s303_s30  ;;  %p307_p9 = scmp.lt.u32.totalorder %s303_s30, %s459_s0 }
  0x16   :  { %p309_p10 = pnand %p307_p9, %p304_p8 }
  0x18   :  { %312 = shalt.err (!%p309_p10)
}
  0x19   :  { %s313_s8 = scalar_lea.vmem %s376_s15, 1024  ;;  %p318_p12 = scmp.lt.s32.totalorder %s376_s15, %s376_s15 }
  0x1a   :  { %p314_p11 = scmp.ne.s32.totalorder %s376_s15, %s313_s8  ;;  %p319_p13 = scmp.lt.s32.totalorder %s313_s8, %s313_s8 }
  0x1c   :  { %p320_p0 = por %p319_p13, %p318_p12 }
  0x1e   :  { %p321_p1 = pnand %p320_p0, %p314_p11 }
  0x20   :  { %324 = shalt.err (!%p321_p1)
}
  0x21   :  { %21 = dma.hbm_to_vmem [thread:$0]  %s459_s0, 1024, %s376_s15, [#allocation3], %s353_s24, %s353_s24, %s354_s25  }
  0x22   :  { %s355_s10 = smov [#allocation6]   ;;  %s325_s14 = scalar_lea.hbm %s461_s2, 16 }
  0x23   :  { %s40_s11 = sshll.u32 %s355_s10, 4  ;;  %p326_p2 = scmp.ne.s32.totalorder %s461_s2, %s325_s14  ;;  %s41_s11 = int_to_ptr.vmem [resolvable:$true] %s40_s11 }
  0x24   :  { %p329_p3 = scmp.lt.u32.totalorder %s325_s14, %s461_s2 }
  0x26   :  { %p331_p4 = pnand %p329_p3, %p326_p2 }
  0x28   :  { %334 = shalt.err (!%p331_p4)
}
  0x29   :  { %s335_s20 = scalar_lea.vmem %s41_s11, 16  ;;  %s339_s0 = scalar_lea.vmem %s41_s11, 32 }
  0x2a   :  { %p336_p5 = scmp.ne.s32.totalorder %s41_s11, %s335_s20  ;;  %p340_p6 = scmp.lt.s32.totalorder %s41_s11, %s41_s11 }
  0x2b   :  { %p341_p7 = scmp.lt.s32.totalorder %s339_s0, %s335_s20 }
  0x2d   :  { %p342_p8 = por %p341_p7, %p340_p6 }
  0x2f   :  { %p343_p9 = pnand %p342_p8, %p336_p5 }
  0x31   :  { %346 = shalt.err (!%p343_p9)
}
  0x32   :  { %43 = dma.hbm_to_vmem [thread:$0]  %s461_s2, 16, %s41_s11, [#allocation5]  }
  0x33   :  { %347 = dma.done.wait [#allocation3], 1024  }
  0x34   :  { %348 = vsyncadd [#allocation3], 4294966272 }
  0x35   :  { %349 = dma.done.wait [#allocation5], 656  }
  0x36   :  { %350 = vsyncadd [#allocation5], 4294966640  ;;  %vm73_vm0 = vcmask 326656   ;;  %v61_v0 = vld [vmem:[#allocation4] sm:$0xff]  ;;  %v62_v1 = vld [vmem:[#allocation4 + $0x8] sm:$0xff]  ;;  %vm203_vm1 = vcmask 654336  }
  0x37   :  { %v63_v2 = vld [vmem:[#allocation4 + $0x10] sm:$0xff]  ;;  %v262_v3 = vpack.c.bf16 %v62_v1, %v61_v0  ;;  %v64_v4 = vld [vmem:[#allocation4 + $0x18] sm:$0xff]  ;;  %v53_v5 = vld [vmem:[#allocation2] sm:$0xff] }
  0x38   :  { %v266_v6 = vpack.c.bf16 %v64_v4, %v63_v2  ;;  %250 = vmatprep.mubr.msk.f32.mxu0 %vm73_vm0, %v53_v5  ;;  %v57_v7 = vld [vmem:[#allocation2 + $0x20] sm:$0xff]  ;;  %v54_v9 = vld [vmem:[#allocation2 + $0x8] sm:$0xff]  ;;  %v55_v11 = vld [vmem:[#allocation2 + $0x10] sm:$0xff] }
  0x39   :  { %263 = vmatprep.subr.bf16.mxu0 %v262_v3  ;;  %270 = vmatprep.subr.bf16.mxu1 %v262_v3  ;;  %v65_v8 = vld [vmem:[#allocation4 + $0x20] sm:$0xff]  ;;  %v58_v10 = vld [vmem:[#allocation2 + $0x28] sm:$0xff]  ;;  %v59_v12 = vld [vmem:[#allocation2 + $0x30] sm:$0xff] }
  0x3a   :  { %265 = vmatpush3.bf16.msra.mxu0 %v262_v3  ;;  %273 = vmatpush3.bf16.msra.mxu1 %v262_v3  ;;  %v56_v13 = vld [vmem:[#allocation2 + $0x18] sm:$0xff]  ;;  %v218_v15 = vld [vmem:[#allocation6] ss:$0 sm:$0xff] }
  0x3b   :  { %267 = vmatprep.subr.bf16.mxu0 %v266_v6  ;;  %271 = vmatprep.subr.bf16.mxu1 %v266_v6  ;;  %v60_v14 = vld [vmem:[#allocation2 + $0x38] sm:$0xff] }
  0x3c   :  { %256 = vmatprep.mubr.msk.f32.mxu1 %vm73_vm0, %v57_v7 }
  0x3e   :  { %269 = vmatpush3.bf16.msra.mxu0 %v266_v6  ;;  %274 = vmatpush3.bf16.msra.mxu1 %v266_v6 }
  0x3f   :  { %248 = vmatprep.subr.mxu0 %v65_v8  ;;  %272 = vmatprep.subr.mxu1 %v65_v8 }
  0x42   :  { %249 = vmatpush3.msra.mxu0 %v65_v8  ;;  %275 = vmatpush3.msra.mxu1 %v65_v8 }
  0x43   :  { %251 = vmatmul.mubr.msk.f32.vlgmr.msra.gmra.mrb[0].mxu0 %vm73_vm0, %v54_v9  ;;  %257 = vmatmul.mubr.msk.f32.vlgmr.msra.gmra.mrb[0].mxu1 %vm73_vm0, %v58_v10 }
  0x44   :  { %253 = vmatprep.mubr.msk.f32.mxu0 %vm73_vm0, %v55_v11  ;;  %259 = vmatprep.mubr.msk.f32.mxu1 %vm73_vm0, %v59_v12 }
  0x47   :  { %254 = vmatmul.mubr.msk.f32.gmra.mrb[2].mxu0 %vm73_vm0, %v56_v13  ;;  %260 = vmatmul.mubr.msk.f32.gmra.mrb[2].mxu1 %vm73_vm0, %v60_v14 }
 0x116   :  { %v252_v16 = vpop.f32.mrb[0].mxu0  ;;  %v258_v17 = vpop.f32.mrb[0].mxu1 }
 0x117   :  { %v170_v18 = vadd.f32 %v252_v16, %v218_v15  ;;  %v190_v19 = vadd.f32 %v258_v17, %v218_v15  ;;  %v164_v20 = vpop.f32.mrb[1].mxu0  ;;  %v184_v21 = vpop.f32.mrb[1].mxu1 }
 0x118   :  { %v165_v22 = vadd.f32 %v218_v15, %v164_v20  ;;  %v185_v23 = vadd.f32 %v218_v15, %v184_v21 }
 0x119   :  { %205 = vst.msk [vmem:[%s462_s3 + $0x8] sm:$0xff] %vm203_vm1, %v170_v18  ;;  %209 = vst.msk [vmem:[%s462_s3 + $0x28] sm:$0xff] %vm203_vm1, %v190_v19 }
 0x11a   :  { %204 = vst.msk [vmem:[%s462_s3] sm:$0xff] %vm203_vm1, %v165_v22  ;;  %208 = vst.msk [vmem:[%s462_s3 + $0x20] sm:$0xff] %vm203_vm1, %v185_v23  ;;  %v255_v24 = vpop.f32.mrb[2].mxu0  ;;  %v261_v25 = vpop.f32.mrb[2].mxu1 }
 0x11b   :  { %v180_v26 = vadd.f32 %v255_v24, %v218_v15  ;;  %v200_v27 = vadd.f32 %v261_v25, %v218_v15  ;;  %v174_v28 = vpop.f32.mrb[3].mxu0  ;;  %v194_v29 = vpop.f32.mrb[3].mxu1 }
 0x11c   :  { %v175_v30 = vadd.f32 %v218_v15, %v174_v28  ;;  %v195_v31 = vadd.f32 %v218_v15, %v194_v29 }
 0x11d   :  { %207 = vst.msk [vmem:[%s462_s3 + $0x18] sm:$0xff] %vm203_vm1, %v180_v26  ;;  %211 = vst.msk [vmem:[%s462_s3 + $0x38] sm:$0xff] %vm203_vm1, %v200_v27 }
 0x11e   :  { %206 = vst.msk [vmem:[%s462_s3 + $0x10] sm:$0xff] %vm203_vm1, %v175_v30  ;;  %210 = vst.msk [vmem:[%s462_s3 + $0x30] sm:$0xff] %vm203_vm1, %v195_v31 }
 0x11f   :  { %216 = vsyncpa [#allocation3], 1 }
 0x120   :  { %217 = vsyncpa [#allocation5], 1 }

// kernel: _lambda_.16
= control target key start
LH: loop header
LB: loop body
LE: loop exit
PB: predicated region body
PF: predicated region fallthrough
CT: control target
= control target key end

     0   :  { %vm612_vm0 = vcmask 1040384   ;;  %v2470_v0 = vmov 0.0|0.0   ;;  %vm2471_vm1 = vmmov 1   ;;  %vm2472_vm3 = vmmov 0   ;;  %s4126_s1 = inlined_call_operand.vmem [shape: f32[9,64], index: 1, kind: input, shape index: {}]   ;;  %s4127_s0 = inlined_call_operand.vmem [shape: f32[1170,9], index: 0, kind: input, shape index: {}]   ;;  %s4128_s2 = inlined_call_operand.vmem [shape: f32[1,64], index: 2, kind: input, shape index: {}]   ;;  %s4129_s3 = inlined_call_operand.vmem [shape: f32[1170,64], index: 3, kind: output, shape index: {}]  }
   0x1   :  { %2459 = vmatprep.subr.bf16.mxu0 %v2470_v0  ;;  %v161_v1 = vld [vmem:[%s4126_s1] sm:$0xff]  ;;  %v162_v2 = vld [vmem:[%s4126_s1 + $0x8] sm:$0x1]  ;;  %vm2461_vm2 = vmpackc.low %vm612_vm0, %vm2471_vm1  ;;  %2463 = vmatprep.subr.bf16.mxu1 %v2470_v0  ;;  %v2473_v4 = vmov 0.0   ;;  %vm170_vm4 = vcmask 72704   ;;  %vm1563_vm5 = vcmask 523264  }
   0x2   :  { %v2460_v3 = vpack.c.bf16 %v162_v2, %v161_v1  ;;  %2018 = vmatprep.mubr.msk.f32.mxu0 %vm2472_vm3, %v2473_v4  ;;  %2240 = vmatprep.mubr.msk.f32.mxu1 %vm2472_vm3, %v2473_v4  ;;  %v14_v5 = vld [vmem:[%s4127_s0] sm:$0xff]  ;;  %v88_v6 = vld [vmem:[%s4127_s0 + $0x250] sm:$0xff]  ;;  %v15_v7 = vld [vmem:[%s4127_s0 + $0x8] sm:$0xff]  ;;  %vm1710_vm6 = vcmask 517120  }
   0x3   :  { %v89_v8 = vld [vmem:[%s4127_s0 + $0x258] sm:$0xff]  ;;  %v16_v9 = vld [vmem:[%s4127_s0 + $0x10] sm:$0xff]  ;;  %v90_v10 = vld [vmem:[%s4127_s0 + $0x260] sm:$0xff] }
   0x4   :  { %2462 = vmatpush3.bf16.msk.msra.mxu0 %vm2461_vm2, %v2460_v3  ;;  %2464 = vmatpush3.bf16.msk.msra.mxu1 %vm2461_vm2, %v2460_v3  ;;  %v17_v11 = vld [vmem:[%s4127_s0 + $0x18] sm:$0xff]  ;;  %v91_v12 = vld [vmem:[%s4127_s0 + $0x268] sm:$0xff]  ;;  %v18_v13 = vld [vmem:[%s4127_s0 + $0x20] sm:$0xff] }
   0x5   :  { %v92_v14 = vld [vmem:[%s4127_s0 + $0x270] sm:$0xff]  ;;  %v19_v15 = vld [vmem:[%s4127_s0 + $0x28] sm:$0xff]  ;;  %v93_v16 = vld [vmem:[%s4127_s0 + $0x278] sm:$0xff] }
   0x6   :  { %v20_v17 = vld [vmem:[%s4127_s0 + $0x30] sm:$0xff]  ;;  %v94_v18 = vld [vmem:[%s4127_s0 + $0x280] sm:$0xff]  ;;  %v21_v19 = vld [vmem:[%s4127_s0 + $0x38] sm:$0xff] }
   0x7   :  { %2019 = vmatmul.mubr.msk.f32.vlgmr.msra.gmra.mrb[0].mxu0 %vm170_vm4, %v14_v5  ;;  %2241 = vmatmul.mubr.msk.f32.vlgmr.msra.gmra.mrb[0].mxu1 %vm170_vm4, %v88_v6  ;;  %v95_v20 = vld [vmem:[%s4127_s0 + $0x288] sm:$0xff]  ;;  %v22_v21 = vld [vmem:[%s4127_s0 + $0x40] sm:$0xff]  ;;  %v96_v22 = vld [vmem:[%s4127_s0 + $0x290] sm:$0xff] }
   0x8   :  { %2021 = vmatprep.mubr.msk.f32.mxu0 %vm2472_vm3, %v2473_v4  ;;  %2243 = vmatprep.mubr.msk.f32.mxu1 %vm2472_vm3, %v2473_v4  ;;  %v23_v23 = vld [vmem:[%s4127_s0 + $0x48] sm:$0xff]  ;;  %v97_v24 = vld [vmem:[%s4127_s0 + $0x298] sm:$0xff]  ;;  %v24_v25 = vld [vmem:[%s4127_s0 + $0x50] sm:$0xff] }
   0x9   :  { %v98_v26 = vld [vmem:[%s4127_s0 + $0x2a0] sm:$0xff]  ;;  %v25_v27 = vld [vmem:[%s4127_s0 + $0x58] sm:$0xff]  ;;  %v99_v28 = vld [vmem:[%s4127_s0 + $0x2a8] sm:$0xff] }
   0xa   :  { %v26_v29 = vld [vmem:[%s4127_s0 + $0x60] sm:$0xff]  ;;  %v100_v30 = vld [vmem:[%s4127_s0 + $0x2b0] sm:$0xff]  ;;  %v27_v31 = vld [vmem:[%s4127_s0 + $0x68] sm:$0xff] }
   0xb   :  { %2022 = vmatmul.mubr.msk.f32.gmra.mrb[2].mxu0 %vm170_vm4, %v15_v7  ;;  %2244 = vmatmul.mubr.msk.f32.gmra.mrb[2].mxu1 %vm170_vm4, %v89_v8  ;;  %v101_v32 = vld [vmem:[%s4127_s0 + $0x2b8] sm:$0xff]  ;;  %v28_v33 = vld [vmem:[%s4127_s0 + $0x70] sm:$0xff]  ;;  %v102_v34 = vld [vmem:[%s4127_s0 + $0x2c0] sm:$0xff] }
   0xc   :  { %2024 = vmatprep.mubr.msk.f32.mxu0 %vm2472_vm3, %v2473_v4  ;;  %2246 = vmatprep.mubr.msk.f32.mxu1 %vm2472_vm3, %v2473_v4  ;;  %v29_v35 = vld [vmem:[%s4127_s0 + $0x78] sm:$0xff]  ;;  %v103_v36 = vld [vmem:[%s4127_s0 + $0x2c8] sm:$0xff]  ;;  %v30_v37 = vld [vmem:[%s4127_s0 + $0x80] sm:$0xff] }
   0xd   :  { %v104_v38 = vld [vmem:[%s4127_s0 + $0x2d0] sm:$0xff]  ;;  %v31_v39 = vld [vmem:[%s4127_s0 + $0x88] sm:$0xff]  ;;  %v105_v40 = vld [vmem:[%s4127_s0 + $0x2d8] sm:$0xff] }
   0xe   :  { %v32_v41 = vld [vmem:[%s4127_s0 + $0x90] sm:$0xff]  ;;  %v106_v42 = vld [vmem:[%s4127_s0 + $0x2e0] sm:$0xff]  ;;  %v33_v43 = vld [vmem:[%s4127_s0 + $0x98] sm:$0xff] }
   0xf   :  { %2025 = vmatmul.mubr.msk.f32.gmra.mrb[4].mxu0 %vm170_vm4, %v16_v9  ;;  %2247 = vmatmul.mubr.msk.f32.gmra.mrb[4].mxu1 %vm170_vm4, %v90_v10  ;;  %v107_v44 = vld [vmem:[%s4127_s0 + $0x2e8] sm:$0xff]  ;;  %v34_v45 = vld [vmem:[%s4127_s0 + $0xa0] sm:$0xff]  ;;  %v108_v46 = vld [vmem:[%s4127_s0 + $0x2f0] sm:$0xff] }
  0x10   :  { %2027 = vmatprep.mubr.msk.f32.mxu0 %vm2472_vm3, %v2473_v4  ;;  %2249 = vmatprep.mubr.msk.f32.mxu1 %vm2472_vm3, %v2473_v4  ;;  %v35_v47 = vld [vmem:[%s4127_s0 + $0xa8] sm:$0xff]  ;;  %v109_v48 = vld [vmem:[%s4127_s0 + $0x2f8] sm:$0xff]  ;;  %v36_v49 = vld [vmem:[%s4127_s0 + $0xb0] sm:$0xff] }
  0x11   :  { %v110_v50 = vld [vmem:[%s4127_s0 + $0x300] sm:$0xff]  ;;  %v37_v51 = vld [vmem:[%s4127_s0 + $0xb8] sm:$0xff]  ;;  %v111_v52 = vld [vmem:[%s4127_s0 + $0x308] sm:$0xff] }
  0x12   :  { %v38_v53 = vld [vmem:[%s4127_s0 + $0xc0] sm:$0xff]  ;;  %v112_v54 = vld [vmem:[%s4127_s0 + $0x310] sm:$0xff]  ;;  %v39_v55 = vld [vmem:[%s4127_s0 + $0xc8] sm:$0xff] }
  0x13   :  { %2028 = vmatmul.mubr.msk.f32.gmra.mrb[6].mxu0 %vm170_vm4, %v17_v11  ;;  %2250 = vmatmul.mubr.msk.f32.gmra.mrb[6].mxu1 %vm170_vm4, %v91_v12  ;;  %v113_v56 = vld [vmem:[%s4127_s0 + $0x318] sm:$0xff]  ;;  %v40_v57 = vld [vmem:[%s4127_s0 + $0xd0] sm:$0xff]  ;;  %v114_v58 = vld [vmem:[%s4127_s0 + $0x320] sm:$0xff] }
  0x14   :  { %2030 = vmatprep.mubr.msk.f32.mxu0 %vm2472_vm3, %v2473_v4  ;;  %2252 = vmatprep.mubr.msk.f32.mxu1 %vm2472_vm3, %v2473_v4  ;;  %v41_v59 = vld [vmem:[%s4127_s0 + $0xd8] sm:$0xff]  ;;  %v115_v60 = vld [vmem:[%s4127_s0 + $0x328] sm:$0xff]  ;;  %v42_v61 = vld [vmem:[%s4127_s0 + $0xe0] sm:$0xff] }
  0x15   :  { %v116_v62 = vld [vmem:[%s4127_s0 + $0x330] sm:$0xff]  ;;  %v43_v63 = vld [vmem:[%s4127_s0 + $0xe8] sm:$0xff]  ;;  %v117_v0 = vld [vmem:[%s4127_s0 + $0x338] sm:$0xff] }
  0x16   :  { %v44_v1 = vld [vmem:[%s4127_s0 + $0xf0] sm:$0xff]  ;;  %v118_v2 = vld [vmem:[%s4127_s0 + $0x340] sm:$0xff]  ;;  %v45_v3 = vld [vmem:[%s4127_s0 + $0xf8] sm:$0xff] }
  0x17   :  { %2031 = vmatmul.mubr.msk.f32.gmra.mrb[8].mxu0 %vm170_vm4, %v18_v13  ;;  %2253 = vmatmul.mubr.msk.f32.gmra.mrb[8].mxu1 %vm170_vm4, %v92_v14  ;;  %v119_v5 = vld [vmem:[%s4127_s0 + $0x348] sm:$0xff]  ;;  %v46_v6 = vld [vmem:[%s4127_s0 + $0x100] sm:$0xff]  ;;  %v120_v7 = vld [vmem:[%s4127_s0 + $0x350] sm:$0xff] }
  0x18   :  { %2033 = vmatprep.mubr.msk.f32.mxu0 %vm2472_vm3, %v2473_v4  ;;  %2255 = vmatprep.mubr.msk.f32.mxu1 %vm2472_vm3, %v2473_v4  ;;  %v47_v8 = vld [vmem:[%s4127_s0 + $0x108] sm:$0xff]  ;;  %v121_v9 = vld [vmem:[%s4127_s0 + $0x358] sm:$0xff]  ;;  %v48_v10 = vld [vmem:[%s4127_s0 + $0x110] sm:$0xff] }
  0x19   :  { %v122_v11 = vld [vmem:[%s4127_s0 + $0x360] sm:$0xff]  ;;  %v49_v12 = vld [vmem:[%s4127_s0 + $0x118] sm:$0xff]  ;;  %v123_v13 = vld [vmem:[%s4127_s0 + $0x368] sm:$0xff] }
  0x1a   :  { %v50_v14 = vld [vmem:[%s4127_s0 + $0x120] sm:$0xff] }
  0x1b   :  { %2034 = vmatmul.mubr.msk.f32.gmra.mrb[10].mxu0 %vm170_vm4, %v19_v15  ;;  %2256 = vmatmul.mubr.msk.f32.gmra.mrb[10].mxu1 %vm170_vm4, %v93_v16  ;;  %v124_v15 = vld [vmem:[%s4127_s0 + $0x370] sm:$0xff]  ;;  %v51_v16 = vld [vmem:[%s4127_s0 + $0x128] sm:$0xff] }
  0x1c   :  { %2036 = vmatprep.mubr.msk.f32.mxu0 %vm2472_vm3, %v2473_v4  ;;  %2258 = vmatprep.mubr.msk.f32.mxu1 %vm2472_vm3, %v2473_v4 }
  0x1f   :  { %2037 = vmatmul.mubr.msk.f32.gmra.mrb[12].mxu0 %vm170_vm4, %v20_v17  ;;  %2259 = vmatmul.mubr.msk.f32.gmra.mrb[12].mxu1 %vm170_vm4, %v94_v18  ;;  %v125_v17 = vld [vmem:[%s4127_s0 + $0x378] sm:$0xff]  ;;  %v52_v18 = vld [vmem:[%s4127_s0 + $0x130] sm:$0xff] }
  0x20   :  { %2039 = vmatprep.mubr.msk.f32.mxu0 %vm2472_vm3, %v2473_v4  ;;  %2261 = vmatprep.mubr.msk.f32.mxu1 %vm2472_vm3, %v2473_v4 }
  0x23   :  { %2040 = vmatmul.mubr.msk.f32.gmra.mrb[14].mxu0 %vm170_vm4, %v21_v19  ;;  %2262 = vmatmul.mubr.msk.f32.gmra.mrb[14].mxu1 %vm170_vm4, %v95_v20  ;;  %v126_v19 = vld [vmem:[%s4127_s0 + $0x380] sm:$0xff]  ;;  %v53_v20 = vld [vmem:[%s4127_s0 + $0x138] sm:$0xff] }
  0x24   :  { %2042 = vmatprep.mubr.msk.f32.mxu0 %vm2472_vm3, %v2473_v4  ;;  %2264 = vmatprep.mubr.msk.f32.mxu1 %vm2472_vm3, %v2473_v4 }
  0x27   :  { %2043 = vmatmul.mubr.msk.f32.gmra.mrb[16].mxu0 %vm170_vm4, %v22_v21  ;;  %2265 = vmatmul.mubr.msk.f32.gmra.mrb[16].mxu1 %vm170_vm4, %v96_v22  ;;  %v127_v21 = vld [vmem:[%s4127_s0 + $0x388] sm:$0xff]  ;;  %v54_v22 = vld [vmem:[%s4127_s0 + $0x140] sm:$0xff] }
  0x28   :  { %2045 = vmatprep.mubr.msk.f32.mxu0 %vm2472_vm3, %v2473_v4  ;;  %2267 = vmatprep.mubr.msk.f32.mxu1 %vm2472_vm3, %v2473_v4 }
  0x2b   :  { %2046 = vmatmul.mubr.msk.f32.gmra.mrb[18].mxu0 %vm170_vm4, %v23_v23  ;;  %2268 = vmatmul.mubr.msk.f32.gmra.mrb[18].mxu1 %vm170_vm4, %v97_v24  ;;  %v128_v23 = vld [vmem:[%s4127_s0 + $0x390] sm:$0xff]  ;;  %v55_v24 = vld [vmem:[%s4127_s0 + $0x148] sm:$0xff] }
  0x2c   :  { %2048 = vmatprep.mubr.msk.f32.mxu0 %vm2472_vm3, %v2473_v4  ;;  %2270 = vmatprep.mubr.msk.f32.mxu1 %vm2472_vm3, %v2473_v4 }
  0x2f   :  { %2049 = vmatmul.mubr.msk.f32.gmra.mrb[20].mxu0 %vm170_vm4, %v24_v25  ;;  %2271 = vmatmul.mubr.msk.f32.gmra.mrb[20].mxu1 %vm170_vm4, %v98_v26  ;;  %v129_v25 = vld [vmem:[%s4127_s0 + $0x398] sm:$0xff]  ;;  %v56_v26 = vld [vmem:[%s4127_s0 + $0x150] sm:$0xff] }
  0x30   :  { %2051 = vmatprep.mubr.msk.f32.mxu0 %vm2472_vm3, %v2473_v4  ;;  %2273 = vmatprep.mubr.msk.f32.mxu1 %vm2472_vm3, %v2473_v4 }
  0x33   :  { %2052 = vmatmul.mubr.msk.f32.gmra.mrb[22].mxu0 %vm170_vm4, %v25_v27  ;;  %2274 = vmatmul.mubr.msk.f32.gmra.mrb[22].mxu1 %vm170_vm4, %v99_v28  ;;  %v130_v27 = vld [vmem:[%s4127_s0 + $0x3a0] sm:$0xff]  ;;  %v57_v28 = vld [vmem:[%s4127_s0 + $0x158] sm:$0xff] }
  0x34   :  { %2054 = vmatprep.mubr.msk.f32.mxu0 %vm2472_vm3, %v2473_v4  ;;  %2276 = vmatprep.mubr.msk.f32.mxu1 %vm2472_vm3, %v2473_v4 }
  0x37   :  { %2055 = vmatmul.mubr.msk.f32.gmra.mrb[24].mxu0 %vm170_vm4, %v26_v29  ;;  %2277 = vmatmul.mubr.msk.f32.gmra.mrb[24].mxu1 %vm170_vm4, %v100_v30  ;;  %v131_v29 = vld [vmem:[%s4127_s0 + $0x3a8] sm:$0xff]  ;;  %v58_v30 = vld [vmem:[%s4127_s0 + $0x160] sm:$0xff] }
  0x38   :  { %2057 = vmatprep.mubr.msk.f32.mxu0 %vm2472_vm3, %v2473_v4  ;;  %2279 = vmatprep.mubr.msk.f32.mxu1 %vm2472_vm3, %v2473_v4 }
  0x3b   :  { %2058 = vmatmul.mubr.msk.f32.gmra.mrb[26].mxu0 %vm170_vm4, %v27_v31  ;;  %2280 = vmatmul.mubr.msk.f32.gmra.mrb[26].mxu1 %vm170_vm4, %v101_v32  ;;  %v132_v31 = vld [vmem:[%s4127_s0 + $0x3b0] sm:$0xff]  ;;  %v59_v32 = vld [vmem:[%s4127_s0 + $0x168] sm:$0xff] }
  0x3c   :  { %2060 = vmatprep.mubr.msk.f32.mxu0 %vm2472_vm3, %v2473_v4  ;;  %2282 = vmatprep.mubr.msk.f32.mxu1 %vm2472_vm3, %v2473_v4 }
  0x3f   :  { %2061 = vmatmul.mubr.msk.f32.gmra.mrb[28].mxu0 %vm170_vm4, %v28_v33  ;;  %2283 = vmatmul.mubr.msk.f32.gmra.mrb[28].mxu1 %vm170_vm4, %v102_v34  ;;  %v133_v33 = vld [vmem:[%s4127_s0 + $0x3b8] sm:$0xff]  ;;  %v60_v34 = vld [vmem:[%s4127_s0 + $0x170] sm:$0xff] }
  0x40   :  { %2063 = vmatprep.mubr.msk.f32.mxu0 %vm2472_vm3, %v2473_v4  ;;  %2285 = vmatprep.mubr.msk.f32.mxu1 %vm2472_vm3, %v2473_v4 }
  0x43   :  { %2064 = vmatmul.mubr.msk.f32.gmra.mrb[30].mxu0 %vm170_vm4, %v29_v35  ;;  %2286 = vmatmul.mubr.msk.f32.gmra.mrb[30].mxu1 %vm170_vm4, %v103_v36  ;;  %v134_v35 = vld [vmem:[%s4127_s0 + $0x3c0] sm:$0xff]  ;;  %v61_v36 = vld [vmem:[%s4127_s0 + $0x178] sm:$0xff] }
  0x44   :  { %2066 = vmatprep.mubr.msk.f32.mxu0 %vm2472_vm3, %v2473_v4  ;;  %2288 = vmatprep.mubr.msk.f32.mxu1 %vm2472_vm3, %v2473_v4 }
  0x47   :  { %2067 = vmatmul.mubr.msk.f32.gmra.mrb[32].mxu0 %vm170_vm4, %v30_v37  ;;  %2289 = vmatmul.mubr.msk.f32.gmra.mrb[32].mxu1 %vm170_vm4, %v104_v38  ;;  %v135_v37 = vld [vmem:[%s4127_s0 + $0x3c8] sm:$0xff]  ;;  %v62_v38 = vld [vmem:[%s4127_s0 + $0x180] sm:$0xff] }
  0x48   :  { %2069 = vmatprep.mubr.msk.f32.mxu0 %vm2472_vm3, %v2473_v4  ;;  %2291 = vmatprep.mubr.msk.f32.mxu1 %vm2472_vm3, %v2473_v4 }
  0x4b   :  { %2070 = vmatmul.mubr.msk.f32.gmra.mrb[34].mxu0 %vm170_vm4, %v31_v39  ;;  %2292 = vmatmul.mubr.msk.f32.gmra.mrb[34].mxu1 %vm170_vm4, %v105_v40  ;;  %v136_v39 = vld [vmem:[%s4127_s0 + $0x3d0] sm:$0xff]  ;;  %v63_v40 = vld [vmem:[%s4127_s0 + $0x188] sm:$0xff] }
  0x4c   :  { %2072 = vmatprep.mubr.msk.f32.mxu0 %vm2472_vm3, %v2473_v4  ;;  %2294 = vmatprep.mubr.msk.f32.mxu1 %vm2472_vm3, %v2473_v4 }
  0x4f   :  { %2073 = vmatmul.mubr.msk.f32.gmra.mrb[36].mxu0 %vm170_vm4, %v32_v41  ;;  %2295 = vmatmul.mubr.msk.f32.gmra.mrb[36].mxu1 %vm170_vm4, %v106_v42  ;;  %v137_v41 = vld [vmem:[%s4127_s0 + $0x3d8] sm:$0xff]  ;;  %v64_v42 = vld [vmem:[%s4127_s0 + $0x190] sm:$0xff] }
  0x50   :  { %2075 = vmatprep.mubr.msk.f32.mxu0 %vm2472_vm3, %v2473_v4  ;;  %2297 = vmatprep.mubr.msk.f32.mxu1 %vm2472_vm3, %v2473_v4 }
  0x53   :  { %2076 = vmatmul.mubr.msk.f32.gmra.mrb[38].mxu0 %vm170_vm4, %v33_v43  ;;  %2298 = vmatmul.mubr.msk.f32.gmra.mrb[38].mxu1 %vm170_vm4, %v107_v44  ;;  %v138_v43 = vld [vmem:[%s4127_s0 + $0x3e0] sm:$0xff]  ;;  %v65_v44 = vld [vmem:[%s4127_s0 + $0x198] sm:$0xff] }
  0x54   :  { %2078 = vmatprep.mubr.msk.f32.mxu0 %vm2472_vm3, %v2473_v4  ;;  %2300 = vmatprep.mubr.msk.f32.mxu1 %vm2472_vm3, %v2473_v4 }
  0x57   :  { %2079 = vmatmul.mubr.msk.f32.gmra.mrb[40].mxu0 %vm170_vm4, %v34_v45  ;;  %2301 = vmatmul.mubr.msk.f32.gmra.mrb[40].mxu1 %vm170_vm4, %v108_v46  ;;  %v139_v45 = vld [vmem:[%s4127_s0 + $0x3e8] sm:$0xff]  ;;  %v66_v46 = vld [vmem:[%s4127_s0 + $0x1a0] sm:$0xff] }
  0x58   :  { %2081 = vmatprep.mubr.msk.f32.mxu0 %vm2472_vm3, %v2473_v4  ;;  %2303 = vmatprep.mubr.msk.f32.mxu1 %vm2472_vm3, %v2473_v4 }
  0x5b   :  { %2082 = vmatmul.mubr.msk.f32.gmra.mrb[42].mxu0 %vm170_vm4, %v35_v47  ;;  %2304 = vmatmul.mubr.msk.f32.gmra.mrb[42].mxu1 %vm170_vm4, %v109_v48  ;;  %v140_v47 = vld [vmem:[%s4127_s0 + $0x3f0] sm:$0xff]  ;;  %v3139_v48 = vld [vmem:[%s4128_s2] ss:$0 sm:$0xff] }
  0x5c   :  { %2084 = vmatprep.mubr.msk.f32.mxu0 %vm2472_vm3, %v2473_v4  ;;  %2306 = vmatprep.mubr.msk.f32.mxu1 %vm2472_vm3, %v2473_v4 }
  0x5f   :  { %2085 = vmatmul.mubr.msk.f32.gmra.mrb[44].mxu0 %vm170_vm4, %v36_v49  ;;  %2307 = vmatmul.mubr.msk.f32.gmra.mrb[44].mxu1 %vm170_vm4, %v110_v50  ;;  %v67_v49 = vld [vmem:[%s4127_s0 + $0x1a8] sm:$0xff]  ;;  %v141_v50 = vld [vmem:[%s4127_s0 + $0x3f8] sm:$0xff] }
  0x60   :  { %2087 = vmatprep.mubr.msk.f32.mxu0 %vm2472_vm3, %v2473_v4  ;;  %2309 = vmatprep.mubr.msk.f32.mxu1 %vm2472_vm3, %v2473_v4 }
  0x63   :  { %2088 = vmatmul.mubr.msk.f32.gmra.mrb[46].mxu0 %vm170_vm4, %v37_v51  ;;  %2310 = vmatmul.mubr.msk.f32.gmra.mrb[46].mxu1 %vm170_vm4, %v111_v52 }
  0x64   :  { %2090 = vmatprep.mubr.msk.f32.mxu0 %vm2472_vm3, %v2473_v4  ;;  %2312 = vmatprep.mubr.msk.f32.mxu1 %vm2472_vm3, %v2473_v4 }
  0x67   :  { %2091 = vmatmul.mubr.msk.f32.gmra.mrb[48].mxu0 %vm170_vm4, %v38_v53  ;;  %2313 = vmatmul.mubr.msk.f32.gmra.mrb[48].mxu1 %vm170_vm4, %v112_v54 }
  0x68   :  { %2093 = vmatprep.mubr.msk.f32.mxu0 %vm2472_vm3, %v2473_v4  ;;  %2315 = vmatprep.mubr.msk.f32.mxu1 %vm2472_vm3, %v2473_v4 }
  0x6b   :  { %2094 = vmatmul.mubr.msk.f32.gmra.mrb[50].mxu0 %vm170_vm4, %v39_v55  ;;  %2316 = vmatmul.mubr.msk.f32.gmra.mrb[50].mxu1 %vm170_vm4, %v113_v56 }
  0x6c   :  { %2096 = vmatprep.mubr.msk.f32.mxu0 %vm2472_vm3, %v2473_v4  ;;  %2318 = vmatprep.mubr.msk.f32.mxu1 %vm2472_vm3, %v2473_v4 }
  0x6f   :  { %2097 = vmatmul.mubr.msk.f32.gmra.mrb[52].mxu0 %vm170_vm4, %v40_v57  ;;  %2319 = vmatmul.mubr.msk.f32.gmra.mrb[52].mxu1 %vm170_vm4, %v114_v58  ;;  %v68_v57 = vld [vmem:[%s4127_s0 + $0x1b0] sm:$0xff]  ;;  %v142_v58 = vld [vmem:[%s4127_s0 + $0x400] sm:$0xff] }
  0x70   :  { %2099 = vmatprep.mubr.msk.f32.mxu0 %vm2472_vm3, %v2473_v4  ;;  %2321 = vmatprep.mubr.msk.f32.mxu1 %vm2472_vm3, %v2473_v4 }
  0x73   :  { %2100 = vmatmul.mubr.msk.f32.gmra.mrb[54].mxu0 %vm170_vm4, %v41_v59  ;;  %2322 = vmatmul.mubr.msk.f32.gmra.mrb[54].mxu1 %vm170_vm4, %v115_v60 }
  0x74   :  { %2102 = vmatprep.mubr.msk.f32.mxu0 %vm2472_vm3, %v2473_v4  ;;  %2324 = vmatprep.mubr.msk.f32.mxu1 %vm2472_vm3, %v2473_v4 }
  0x77   :  { %2103 = vmatmul.mubr.msk.f32.gmra.mrb[56].mxu0 %vm170_vm4, %v42_v61  ;;  %2325 = vmatmul.mubr.msk.f32.gmra.mrb[56].mxu1 %vm170_vm4, %v116_v62 }
  0x78   :  { %2105 = vmatprep.mubr.msk.f32.mxu0 %vm2472_vm3, %v2473_v4  ;;  %2327 = vmatprep.mubr.msk.f32.mxu1 %vm2472_vm3, %v2473_v4 }
  0x7b   :  { %2106 = vmatmul.mubr.msk.f32.gmra.mrb[58].mxu0 %vm170_vm4, %v43_v63  ;;  %2328 = vmatmul.mubr.msk.f32.gmra.mrb[58].mxu1 %vm170_vm4, %v117_v0 }
  0x7c   :  { %2108 = vmatprep.mubr.msk.f32.mxu0 %vm2472_vm3, %v2473_v4  ;;  %2330 = vmatprep.mubr.msk.f32.mxu1 %vm2472_vm3, %v2473_v4 }
  0x7f   :  { %2109 = vmatmul.mubr.msk.f32.gmra.mrb[60].mxu0 %vm170_vm4, %v44_v1  ;;  %2331 = vmatmul.mubr.msk.f32.gmra.mrb[60].mxu1 %vm170_vm4, %v118_v2 }
  0x80   :  { %2111 = vmatprep.mubr.msk.f32.mxu0 %vm2472_vm3, %v2473_v4  ;;  %2333 = vmatprep.mubr.msk.f32.mxu1 %vm2472_vm3, %v2473_v4 }
  0x83   :  { %2112 = vmatmul.mubr.msk.f32.gmra.mrb[62].mxu0 %vm170_vm4, %v45_v3  ;;  %2334 = vmatmul.mubr.msk.f32.gmra.mrb[62].mxu1 %vm170_vm4, %v119_v5  ;;  %v69_v3 = vld [vmem:[%s4127_s0 + $0x1b8] sm:$0xff]  ;;  %v143_v5 = vld [vmem:[%s4127_s0 + $0x408] sm:$0xff] }
  0x84   :  { %2114 = vmatprep.mubr.msk.f32.mxu0 %vm2472_vm3, %v2473_v4  ;;  %2336 = vmatprep.mubr.msk.f32.mxu1 %vm2472_vm3, %v2473_v4 }
  0x87   :  { %2115 = vmatmul.mubr.msk.f32.gmra.mrb[64].mxu0 %vm170_vm4, %v46_v6  ;;  %2337 = vmatmul.mubr.msk.f32.gmra.mrb[64].mxu1 %vm170_vm4, %v120_v7 }
  0x88   :  { %2117 = vmatprep.mubr.msk.f32.mxu0 %vm2472_vm3, %v2473_v4  ;;  %2339 = vmatprep.mubr.msk.f32.mxu1 %vm2472_vm3, %v2473_v4 }
  0x8b   :  { %2118 = vmatmul.mubr.msk.f32.gmra.mrb[66].mxu0 %vm170_vm4, %v47_v8  ;;  %2340 = vmatmul.mubr.msk.f32.gmra.mrb[66].mxu1 %vm170_vm4, %v121_v9 }
  0x8c   :  { %2120 = vmatprep.mubr.msk.f32.mxu0 %vm2472_vm3, %v2473_v4  ;;  %2342 = vmatprep.mubr.msk.f32.mxu1 %vm2472_vm3, %v2473_v4 }
  0x8f   :  { %2121 = vmatmul.mubr.msk.f32.gmra.mrb[68].mxu0 %vm170_vm4, %v48_v10  ;;  %2343 = vmatmul.mubr.msk.f32.gmra.mrb[68].mxu1 %vm170_vm4, %v122_v11 }
  0x90   :  { %2123 = vmatprep.mubr.msk.f32.mxu0 %vm2472_vm3, %v2473_v4  ;;  %2345 = vmatprep.mubr.msk.f32.mxu1 %vm2472_vm3, %v2473_v4 }
  0x93   :  { %2124 = vmatmul.mubr.msk.f32.gmra.mrb[70].mxu0 %vm170_vm4, %v49_v12  ;;  %2346 = vmatmul.mubr.msk.f32.gmra.mrb[70].mxu1 %vm170_vm4, %v123_v13 }
  0x94   :  { %2126 = vmatprep.mubr.msk.f32.mxu0 %vm2472_vm3, %v2473_v4  ;;  %2348 = vmatprep.mubr.msk.f32.mxu1 %vm2472_vm3, %v2473_v4 }
  0x97   :  { %2127 = vmatmul.mubr.msk.f32.gmra.mrb[72].mxu0 %vm170_vm4, %v50_v14  ;;  %2349 = vmatmul.mubr.msk.f32.gmra.mrb[72].mxu1 %vm170_vm4, %v124_v15  ;;  %v70_v14 = vld [vmem:[%s4127_s0 + $0x1c0] sm:$0xff]  ;;  %v144_v15 = vld [vmem:[%s4127_s0 + $0x410] sm:$0xff] }
  0x98   :  { %2129 = vmatprep.mubr.msk.f32.mxu0 %vm2472_vm3, %v2473_v4  ;;  %2351 = vmatprep.mubr.msk.f32.mxu1 %vm2472_vm3, %v2473_v4 }
  0x9b   :  { %2130 = vmatmul.mubr.msk.f32.gmra.mrb[74].mxu0 %vm170_vm4, %v51_v16  ;;  %2352 = vmatmul.mubr.msk.f32.gmra.mrb[74].mxu1 %vm170_vm4, %v125_v17 }
  0x9c   :  { %2132 = vmatprep.mubr.msk.f32.mxu0 %vm2472_vm3, %v2473_v4  ;;  %2354 = vmatprep.mubr.msk.f32.mxu1 %vm2472_vm3, %v2473_v4 }
  0x9f   :  { %2133 = vmatmul.mubr.msk.f32.gmra.mrb[76].mxu0 %vm170_vm4, %v52_v18  ;;  %2355 = vmatmul.mubr.msk.f32.gmra.mrb[76].mxu1 %vm170_vm4, %v126_v19 }
  0xa0   :  { %2135 = vmatprep.mubr.msk.f32.mxu0 %vm2472_vm3, %v2473_v4  ;;  %2357 = vmatprep.mubr.msk.f32.mxu1 %vm2472_vm3, %v2473_v4 }
  0xa3   :  { %2136 = vmatmul.mubr.msk.f32.gmra.mrb[78].mxu0 %vm170_vm4, %v53_v20  ;;  %2358 = vmatmul.mubr.msk.f32.gmra.mrb[78].mxu1 %vm170_vm4, %v127_v21 }
  0xa4   :  { %2138 = vmatprep.mubr.msk.f32.mxu0 %vm2472_vm3, %v2473_v4  ;;  %2360 = vmatprep.mubr.msk.f32.mxu1 %vm2472_vm3, %v2473_v4 }
  0xa7   :  { %2139 = vmatmul.mubr.msk.f32.gmra.mrb[80].mxu0 %vm170_vm4, %v54_v22  ;;  %2361 = vmatmul.mubr.msk.f32.gmra.mrb[80].mxu1 %vm170_vm4, %v128_v23 }
  0xa8   :  { %2141 = vmatprep.mubr.msk.f32.mxu0 %vm2472_vm3, %v2473_v4  ;;  %2363 = vmatprep.mubr.msk.f32.mxu1 %vm2472_vm3, %v2473_v4 }
  0xab   :  { %2142 = vmatmul.mubr.msk.f32.gmra.mrb[82].mxu0 %vm170_vm4, %v55_v24  ;;  %2364 = vmatmul.mubr.msk.f32.gmra.mrb[82].mxu1 %vm170_vm4, %v129_v25  ;;  %v71_v24 = vld [vmem:[%s4127_s0 + $0x1c8] sm:$0xff]  ;;  %v145_v25 = vld [vmem:[%s4127_s0 + $0x418] sm:$0xff] }
  0xac   :  { %2144 = vmatprep.mubr.msk.f32.mxu0 %vm2472_vm3, %v2473_v4  ;;  %2366 = vmatprep.mubr.msk.f32.mxu1 %vm2472_vm3, %v2473_v4 }
  0xaf   :  { %2145 = vmatmul.mubr.msk.f32.gmra.mrb[84].mxu0 %vm170_vm4, %v56_v26  ;;  %2367 = vmatmul.mubr.msk.f32.gmra.mrb[84].mxu1 %vm170_vm4, %v130_v27 }
  0xb0   :  { %2147 = vmatprep.mubr.msk.f32.mxu0 %vm2472_vm3, %v2473_v4  ;;  %2369 = vmatprep.mubr.msk.f32.mxu1 %vm2472_vm3, %v2473_v4 }
  0xb3   :  { %2148 = vmatmul.mubr.msk.f32.gmra.mrb[86].mxu0 %vm170_vm4, %v57_v28  ;;  %2370 = vmatmul.mubr.msk.f32.gmra.mrb[86].mxu1 %vm170_vm4, %v131_v29 }
  0xb4   :  { %2150 = vmatprep.mubr.msk.f32.mxu0 %vm2472_vm3, %v2473_v4  ;;  %2372 = vmatprep.mubr.msk.f32.mxu1 %vm2472_vm3, %v2473_v4 }
  0xb7   :  { %2151 = vmatmul.mubr.msk.f32.gmra.mrb[88].mxu0 %vm170_vm4, %v58_v30  ;;  %2373 = vmatmul.mubr.msk.f32.gmra.mrb[88].mxu1 %vm170_vm4, %v132_v31 }
  0xb8   :  { %2153 = vmatprep.mubr.msk.f32.mxu0 %vm2472_vm3, %v2473_v4  ;;  %2375 = vmatprep.mubr.msk.f32.mxu1 %vm2472_vm3, %v2473_v4 }
  0xbb   :  { %2154 = vmatmul.mubr.msk.f32.gmra.mrb[90].mxu0 %vm170_vm4, %v59_v32  ;;  %2376 = vmatmul.mubr.msk.f32.gmra.mrb[90].mxu1 %vm170_vm4, %v133_v33 }
  0xbc   :  { %2156 = vmatprep.mubr.msk.f32.mxu0 %vm2472_vm3, %v2473_v4  ;;  %2378 = vmatprep.mubr.msk.f32.mxu1 %vm2472_vm3, %v2473_v4 }
  0xbf   :  { %2157 = vmatmul.mubr.msk.f32.gmra.mrb[92].mxu0 %vm170_vm4, %v60_v34  ;;  %2379 = vmatmul.mubr.msk.f32.gmra.mrb[92].mxu1 %vm170_vm4, %v134_v35  ;;  %v72_v34 = vld [vmem:[%s4127_s0 + $0x1d0] sm:$0xff]  ;;  %v146_v35 = vld [vmem:[%s4127_s0 + $0x420] sm:$0xff] }
  0xc0   :  { %2159 = vmatprep.mubr.msk.f32.mxu0 %vm2472_vm3, %v2473_v4  ;;  %2381 = vmatprep.mubr.msk.f32.mxu1 %vm2472_vm3, %v2473_v4 }
  0xc3   :  { %2160 = vmatmul.mubr.msk.f32.gmra.mrb[94].mxu0 %vm170_vm4, %v61_v36  ;;  %2382 = vmatmul.mubr.msk.f32.gmra.mrb[94].mxu1 %vm170_vm4, %v135_v37 }
  0xc4   :  { %2162 = vmatprep.mubr.msk.f32.mxu0 %vm2472_vm3, %v2473_v4  ;;  %2384 = vmatprep.mubr.msk.f32.mxu1 %vm2472_vm3, %v2473_v4 }
  0xc7   :  { %2163 = vmatmul.mubr.msk.f32.gmra.mrb[96].mxu0 %vm170_vm4, %v62_v38  ;;  %2385 = vmatmul.mubr.msk.f32.gmra.mrb[96].mxu1 %vm170_vm4, %v136_v39 }
  0xc8   :  { %2165 = vmatprep.mubr.msk.f32.mxu0 %vm2472_vm3, %v2473_v4  ;;  %2387 = vmatprep.mubr.msk.f32.mxu1 %vm2472_vm3, %v2473_v4 }
  0xcb   :  { %2166 = vmatmul.mubr.msk.f32.gmra.mrb[98].mxu0 %vm170_vm4, %v63_v40  ;;  %2388 = vmatmul.mubr.msk.f32.gmra.mrb[98].mxu1 %vm170_vm4, %v137_v41 }
  0xcc   :  { %2168 = vmatprep.mubr.msk.f32.mxu0 %vm2472_vm3, %v2473_v4  ;;  %2390 = vmatprep.mubr.msk.f32.mxu1 %vm2472_vm3, %v2473_v4 }
  0xcf   :  { %2169 = vmatmul.mubr.msk.f32.gmra.mrb[100].mxu0 %vm170_vm4, %v64_v42  ;;  %2391 = vmatmul.mubr.msk.f32.gmra.mrb[100].mxu1 %vm170_vm4, %v138_v43 }
  0xd0   :  { %2171 = vmatprep.mubr.msk.f32.mxu0 %vm2472_vm3, %v2473_v4  ;;  %2393 = vmatprep.mubr.msk.f32.mxu1 %vm2472_vm3, %v2473_v4 }
  0xd3   :  { %2172 = vmatmul.mubr.msk.f32.gmra.mrb[102].mxu0 %vm170_vm4, %v65_v44  ;;  %2394 = vmatmul.mubr.msk.f32.gmra.mrb[102].mxu1 %vm170_vm4, %v139_v45  ;;  %v73_v44 = vld [vmem:[%s4127_s0 + $0x1d8] sm:$0xff]  ;;  %v147_v45 = vld [vmem:[%s4127_s0 + $0x428] sm:$0xff] }
  0xd4   :  { %2174 = vmatprep.mubr.msk.f32.mxu0 %vm2472_vm3, %v2473_v4  ;;  %2396 = vmatprep.mubr.msk.f32.mxu1 %vm2472_vm3, %v2473_v4 }
  0xd7   :  { %2175 = vmatmul.mubr.msk.f32.gmra.mrb[104].mxu0 %vm170_vm4, %v66_v46  ;;  %2397 = vmatmul.mubr.msk.f32.gmra.mrb[104].mxu1 %vm170_vm4, %v140_v47 }
  0xd8   :  { %2177 = vmatprep.mubr.msk.f32.mxu0 %vm2472_vm3, %v2473_v4  ;;  %2399 = vmatprep.mubr.msk.f32.mxu1 %vm2472_vm3, %v2473_v4 }
  0xda   :  { %v682_v51 = vpop.f32.mrb[0].mxu0  ;;  %v1052_v52 = vpop.f32.mrb[0].mxu1 }
  0xdb   :  { %v683_v53 = vadd.f32 %v3139_v48, %v682_v51  ;;  %v2020_v54 = vpop.f32.mrb[1].mxu0  ;;  %2178 = vmatmul.mubr.msk.f32.gmra.mrb[106].mxu0 %vm170_vm4, %v67_v49  ;;  %v1053_v55 = vadd.f32 %v3139_v48, %v1052_v52  ;;  %v2242_v56 = vpop.f32.mrb[1].mxu1  ;;  %2400 = vmatmul.mubr.msk.f32.gmra.mrb[106].mxu1 %vm170_vm4, %v141_v50 }
  0xdc   :  { %2180 = vmatprep.mubr.msk.f32.mxu0 %vm2472_vm3, %v2473_v4  ;;  %2402 = vmatprep.mubr.msk.f32.mxu1 %vm2472_vm3, %v2473_v4  ;;  %v148_v56 = vld [vmem:[%s4127_s0 + $0x430] sm:$0xff] }
  0xdd   :  { %v1416_v59 = vmax.f32 %v683_v53, 0.0  ;;  %v1490_v60 = vmax.f32 %v1053_v55, 0.0  ;;  %v74_v55 = vld [vmem:[%s4127_s0 + $0x1e0] sm:$0xff] }
  0xde   :  { %v687_v61 = vpop.f32.mrb[2].mxu0  ;;  %v1057_v62 = vpop.f32.mrb[2].mxu1 }
  0xdf   :  { %1564 = vst.msk [vmem:[%s4129_s3] sm:$0xff] %vm1563_vm5, %v1416_v59  ;;  %1638 = vst.msk [vmem:[%s4129_s3 + $0x250] sm:$0xff] %vm1563_vm5, %v1490_v60  ;;  %v688_v63 = vadd.f32 %v3139_v48, %v687_v61  ;;  %v2023_v0 = vpop.f32.mrb[3].mxu0  ;;  %2181 = vmatmul.mubr.msk.f32.gmra.mrb[108].mxu0 %vm170_vm4, %v68_v57  ;;  %v1058_v1 = vadd.f32 %v3139_v48, %v1057_v62  ;;  %v2245_v2 = vpop.f32.mrb[3].mxu1  ;;  %2403 = vmatmul.mubr.msk.f32.gmra.mrb[108].mxu1 %vm170_vm4, %v142_v58 }
  0xe0   :  { %2183 = vmatprep.mubr.msk.f32.mxu0 %vm2472_vm3, %v2473_v4  ;;  %2405 = vmatprep.mubr.msk.f32.mxu1 %vm2472_vm3, %v2473_v4  ;;  %v149_v2 = vld [vmem:[%s4127_s0 + $0x438] sm:$0xff] }
  0xe1   :  { %v1417_v6 = vmax.f32 %v688_v63, 0.0  ;;  %v1491_v7 = vmax.f32 %v1058_v1, 0.0  ;;  %v75_v1 = vld [vmem:[%s4127_s0 + $0x1e8] sm:$0xff] }
  0xe2   :  { %v692_v8 = vpop.f32.mrb[4].mxu0  ;;  %v1062_v9 = vpop.f32.mrb[4].mxu1 }
  0xe3   :  { %1565 = vst.msk [vmem:[%s4129_s3 + $0x8] sm:$0xff] %vm1563_vm5, %v1417_v6  ;;  %1639 = vst.msk [vmem:[%s4129_s3 + $0x258] sm:$0xff] %vm1563_vm5, %v1491_v7  ;;  %v693_v10 = vadd.f32 %v3139_v48, %v692_v8  ;;  %v2026_v11 = vpop.f32.mrb[5].mxu0  ;;  %2184 = vmatmul.mubr.msk.f32.gmra.mrb[110].mxu0 %vm170_vm4, %v69_v3  ;;  %v1063_v12 = vadd.f32 %v3139_v48, %v1062_v9  ;;  %v2248_v13 = vpop.f32.mrb[5].mxu1  ;;  %2406 = vmatmul.mubr.msk.f32.gmra.mrb[110].mxu1 %vm170_vm4, %v143_v5 }
  0xe4   :  { %2186 = vmatprep.mubr.msk.f32.mxu0 %vm2472_vm3, %v2473_v4  ;;  %2408 = vmatprep.mubr.msk.f32.mxu1 %vm2472_vm3, %v2473_v4  ;;  %v150_v13 = vld [vmem:[%s4127_s0 + $0x440] sm:$0xff] }
  0xe5   :  { %v1418_v16 = vmax.f32 %v693_v10, 0.0  ;;  %v1492_v17 = vmax.f32 %v1063_v12, 0.0  ;;  %v76_v12 = vld [vmem:[%s4127_s0 + $0x1f0] sm:$0xff] }
  0xe6   :  { %v697_v18 = vpop.f32.mrb[6].mxu0  ;;  %v1067_v19 = vpop.f32.mrb[6].mxu1 }
  0xe7   :  { %1566 = vst.msk [vmem:[%s4129_s3 + $0x10] sm:$0xff] %vm1563_vm5, %v1418_v16  ;;  %1640 = vst.msk [vmem:[%s4129_s3 + $0x260] sm:$0xff] %vm1563_vm5, %v1492_v17  ;;  %v698_v20 = vadd.f32 %v3139_v48, %v697_v18  ;;  %v2029_v21 = vpop.f32.mrb[7].mxu0  ;;  %2187 = vmatmul.mubr.msk.f32.gmra.mrb[112].mxu0 %vm170_vm4, %v70_v14  ;;  %v1068_v22 = vadd.f32 %v3139_v48, %v1067_v19  ;;  %v2251_v23 = vpop.f32.mrb[7].mxu1  ;;  %2409 = vmatmul.mubr.msk.f32.gmra.mrb[112].mxu1 %vm170_vm4, %v144_v15 }
  0xe8   :  { %2189 = vmatprep.mubr.msk.f32.mxu0 %vm2472_vm3, %v2473_v4  ;;  %2411 = vmatprep.mubr.msk.f32.mxu1 %vm2472_vm3, %v2473_v4  ;;  %v151_v23 = vld [vmem:[%s4127_s0 + $0x448] sm:$0xff] }
  0xe9   :  { %v1419_v26 = vmax.f32 %v698_v20, 0.0  ;;  %v1493_v27 = vmax.f32 %v1068_v22, 0.0  ;;  %v77_v22 = vld [vmem:[%s4127_s0 + $0x1f8] sm:$0xff] }
  0xea   :  { %v702_v28 = vpop.f32.mrb[8].mxu0  ;;  %v1072_v29 = vpop.f32.mrb[8].mxu1 }
  0xeb   :  { %1567 = vst.msk [vmem:[%s4129_s3 + $0x18] sm:$0xff] %vm1563_vm5, %v1419_v26  ;;  %1641 = vst.msk [vmem:[%s4129_s3 + $0x268] sm:$0xff] %vm1563_vm5, %v1493_v27  ;;  %v703_v30 = vadd.f32 %v3139_v48, %v702_v28  ;;  %v2032_v31 = vpop.f32.mrb[9].mxu0  ;;  %2190 = vmatmul.mubr.msk.f32.gmra.mrb[114].mxu0 %vm170_vm4, %v71_v24  ;;  %v1073_v32 = vadd.f32 %v3139_v48, %v1072_v29  ;;  %v2254_v33 = vpop.f32.mrb[9].mxu1  ;;  %2412 = vmatmul.mubr.msk.f32.gmra.mrb[114].mxu1 %vm170_vm4, %v145_v25 }
  0xec   :  { %2192 = vmatprep.mubr.msk.f32.mxu0 %vm2472_vm3, %v2473_v4  ;;  %2414 = vmatprep.mubr.msk.f32.mxu1 %vm2472_vm3, %v2473_v4  ;;  %v152_v33 = vld [vmem:[%s4127_s0 + $0x450] sm:$0xff] }
  0xed   :  { %v1420_v36 = vmax.f32 %v703_v30, 0.0  ;;  %v1494_v37 = vmax.f32 %v1073_v32, 0.0  ;;  %v78_v32 = vld [vmem:[%s4127_s0 + $0x200] sm:$0xff] }
  0xee   :  { %v707_v38 = vpop.f32.mrb[10].mxu0  ;;  %v1077_v39 = vpop.f32.mrb[10].mxu1 }
  0xef   :  { %1568 = vst.msk [vmem:[%s4129_s3 + $0x20] sm:$0xff] %vm1563_vm5, %v1420_v36  ;;  %1642 = vst.msk [vmem:[%s4129_s3 + $0x270] sm:$0xff] %vm1563_vm5, %v1494_v37  ;;  %v708_v40 = vadd.f32 %v3139_v48, %v707_v38  ;;  %v2035_v41 = vpop.f32.mrb[11].mxu0  ;;  %2193 = vmatmul.mubr.msk.f32.gmra.mrb[116].mxu0 %vm170_vm4, %v72_v34  ;;  %v1078_v42 = vadd.f32 %v3139_v48, %v1077_v39  ;;  %v2257_v43 = vpop.f32.mrb[11].mxu1  ;;  %2415 = vmatmul.mubr.msk.f32.gmra.mrb[116].mxu1 %vm170_vm4, %v146_v35 }
  0xf0   :  { %2195 = vmatprep.mubr.msk.f32.mxu0 %vm2472_vm3, %v2473_v4  ;;  %2417 = vmatprep.mubr.msk.f32.mxu1 %vm2472_vm3, %v2473_v4  ;;  %v153_v43 = vld [vmem:[%s4127_s0 + $0x458] sm:$0xff] }
  0xf1   :  { %v1421_v46 = vmax.f32 %v708_v40, 0.0  ;;  %v1495_v47 = vmax.f32 %v1078_v42, 0.0  ;;  %v79_v42 = vld [vmem:[%s4127_s0 + $0x208] sm:$0xff] }
  0xf2   :  { %v712_v49 = vpop.f32.mrb[12].mxu0  ;;  %v1082_v50 = vpop.f32.mrb[12].mxu1 }
  0xf3   :  { %1569 = vst.msk [vmem:[%s4129_s3 + $0x28] sm:$0xff] %vm1563_vm5, %v1421_v46  ;;  %1643 = vst.msk [vmem:[%s4129_s3 + $0x278] sm:$0xff] %vm1563_vm5, %v1495_v47  ;;  %v713_v51 = vadd.f32 %v3139_v48, %v712_v49  ;;  %v2038_v52 = vpop.f32.mrb[13].mxu0  ;;  %2196 = vmatmul.mubr.msk.f32.gmra.mrb[118].mxu0 %vm170_vm4, %v73_v44  ;;  %v1083_v53 = vadd.f32 %v3139_v48, %v1082_v50  ;;  %v2260_v54 = vpop.f32.mrb[13].mxu1  ;;  %2418 = vmatmul.mubr.msk.f32.gmra.mrb[118].mxu1 %vm170_vm4, %v147_v45 }
  0xf4   :  { %2198 = vmatprep.mubr.msk.f32.mxu0 %vm2472_vm3, %v2473_v4  ;;  %2420 = vmatprep.mubr.msk.f32.mxu1 %vm2472_vm3, %v2473_v4  ;;  %v154_v54 = vld [vmem:[%s4127_s0 + $0x460] sm:$0xff] }
  0xf5   :  { %v1422_v57 = vmax.f32 %v713_v51, 0.0  ;;  %v1496_v58 = vmax.f32 %v1083_v53, 0.0  ;;  %v80_v53 = vld [vmem:[%s4127_s0 + $0x210] sm:$0xff] }
  0xf6   :  { %v717_v59 = vpop.f32.mrb[14].mxu0  ;;  %v1087_v60 = vpop.f32.mrb[14].mxu1 }
  0xf7   :  { %1570 = vst.msk [vmem:[%s4129_s3 + $0x30] sm:$0xff] %vm1563_vm5, %v1422_v57  ;;  %1644 = vst.msk [vmem:[%s4129_s3 + $0x280] sm:$0xff] %vm1563_vm5, %v1496_v58  ;;  %v718_v61 = vadd.f32 %v3139_v48, %v717_v59  ;;  %v2041_v62 = vpop.f32.mrb[15].mxu0  ;;  %2199 = vmatmul.mubr.msk.f32.gmra.mrb[120].mxu0 %vm170_vm4, %v74_v55  ;;  %v1088_v63 = vadd.f32 %v3139_v48, %v1087_v60  ;;  %v2263_v0 = vpop.f32.mrb[15].mxu1  ;;  %2421 = vmatmul.mubr.msk.f32.gmra.mrb[120].mxu1 %vm170_vm4, %v148_v56 }
  0xf8   :  { %2201 = vmatprep.mubr.msk.f32.mxu0 %vm2472_vm3, %v2473_v4  ;;  %2423 = vmatprep.mubr.msk.f32.mxu1 %vm2472_vm3, %v2473_v4  ;;  %v155_v0 = vld [vmem:[%s4127_s0 + $0x468] sm:$0xff] }
  0xf9   :  { %v1423_v3 = vmax.f32 %v718_v61, 0.0  ;;  %v1497_v5 = vmax.f32 %v1088_v63, 0.0  ;;  %v81_v63 = vld [vmem:[%s4127_s0 + $0x218] sm:$0xff] }
  0xfa   :  { %v722_v6 = vpop.f32.mrb[16].mxu0  ;;  %v1092_v7 = vpop.f32.mrb[16].mxu1 }
  0xfb   :  { %1571 = vst.msk [vmem:[%s4129_s3 + $0x38] sm:$0xff] %vm1563_vm5, %v1423_v3  ;;  %1645 = vst.msk [vmem:[%s4129_s3 + $0x288] sm:$0xff] %vm1563_vm5, %v1497_v5  ;;  %v723_v8 = vadd.f32 %v3139_v48, %v722_v6  ;;  %v2044_v9 = vpop.f32.mrb[17].mxu0  ;;  %2202 = vmatmul.mubr.msk.f32.gmra.mrb[122].mxu0 %vm170_vm4, %v75_v1  ;;  %v1093_v10 = vadd.f32 %v3139_v48, %v1092_v7  ;;  %v2266_v11 = vpop.f32.mrb[17].mxu1  ;;  %2424 = vmatmul.mubr.msk.f32.gmra.mrb[122].mxu1 %vm170_vm4, %v149_v2 }
  0xfc   :  { %2204 = vmatprep.mubr.msk.f32.mxu0 %vm2472_vm3, %v2473_v4  ;;  %2426 = vmatprep.mubr.msk.f32.mxu1 %vm2472_vm3, %v2473_v4  ;;  %v156_v11 = vld [vmem:[%s4127_s0 + $0x470] sm:$0xff] }
  0xfd   :  { %v1424_v14 = vmax.f32 %v723_v8, 0.0  ;;  %v1498_v15 = vmax.f32 %v1093_v10, 0.0  ;;  %v82_v10 = vld [vmem:[%s4127_s0 + $0x220] sm:$0xff] }
  0xfe   :  { %v727_v16 = vpop.f32.mrb[18].mxu0  ;;  %v1097_v17 = vpop.f32.mrb[18].mxu1 }
  0xff   :  { %1572 = vst.msk [vmem:[%s4129_s3 + $0x40] sm:$0xff] %vm1563_vm5, %v1424_v14  ;;  %1646 = vst.msk [vmem:[%s4129_s3 + $0x290] sm:$0xff] %vm1563_vm5, %v1498_v15  ;;  %v728_v18 = vadd.f32 %v3139_v48, %v727_v16  ;;  %v2047_v19 = vpop.f32.mrb[19].mxu0  ;;  %2205 = vmatmul.mubr.msk.f32.gmra.mrb[124].mxu0 %vm170_vm4, %v76_v12  ;;  %v1098_v20 = vadd.f32 %v3139_v48, %v1097_v17  ;;  %v2269_v21 = vpop.f32.mrb[19].mxu1  ;;  %2427 = vmatmul.mubr.msk.f32.gmra.mrb[124].mxu1 %vm170_vm4, %v150_v13 }
 0x100   :  { %2207 = vmatprep.mubr.msk.f32.mxu0 %vm2472_vm3, %v2473_v4  ;;  %2429 = vmatprep.mubr.msk.f32.mxu1 %vm2472_vm3, %v2473_v4  ;;  %v157_v21 = vld [vmem:[%s4127_s0 + $0x478] sm:$0xff] }
 0x101   :  { %v1425_v24 = vmax.f32 %v728_v18, 0.0  ;;  %v1499_v25 = vmax.f32 %v1098_v20, 0.0  ;;  %v83_v20 = vld [vmem:[%s4127_s0 + $0x228] sm:$0xff] }
 0x102   :  { %v732_v26 = vpop.f32.mrb[20].mxu0  ;;  %v1102_v27 = vpop.f32.mrb[20].mxu1 }
 0x103   :  { %1573 = vst.msk [vmem:[%s4129_s3 + $0x48] sm:$0xff] %vm1563_vm5, %v1425_v24  ;;  %1647 = vst.msk [vmem:[%s4129_s3 + $0x298] sm:$0xff] %vm1563_vm5, %v1499_v25  ;;  %v733_v28 = vadd.f32 %v3139_v48, %v732_v26  ;;  %v2050_v29 = vpop.f32.mrb[21].mxu0  ;;  %2208 = vmatmul.mubr.msk.f32.gmra.mrb[126].mxu0 %vm170_vm4, %v77_v22  ;;  %v1103_v30 = vadd.f32 %v3139_v48, %v1102_v27  ;;  %v2272_v31 = vpop.f32.mrb[21].mxu1  ;;  %2430 = vmatmul.mubr.msk.f32.gmra.mrb[126].mxu1 %vm170_vm4, %v151_v23 }
 0x104   :  { %2210 = vmatprep.mubr.msk.f32.mxu0 %vm2472_vm3, %v2473_v4  ;;  %2432 = vmatprep.mubr.msk.f32.mxu1 %vm2472_vm3, %v2473_v4  ;;  %v158_v31 = vld [vmem:[%s4127_s0 + $0x480] sm:$0xff] }
 0x105   :  { %v1426_v34 = vmax.f32 %v733_v28, 0.0  ;;  %v1500_v35 = vmax.f32 %v1103_v30, 0.0  ;;  %v84_v30 = vld [vmem:[%s4127_s0 + $0x230] sm:$0xff] }
 0x106   :  { %v737_v36 = vpop.f32.mrb[22].mxu0  ;;  %v1107_v37 = vpop.f32.mrb[22].mxu1 }
 0x107   :  { %1574 = vst.msk [vmem:[%s4129_s3 + $0x50] sm:$0xff] %vm1563_vm5, %v1426_v34  ;;  %1648 = vst.msk [vmem:[%s4129_s3 + $0x2a0] sm:$0xff] %vm1563_vm5, %v1500_v35  ;;  %v738_v38 = vadd.f32 %v3139_v48, %v737_v36  ;;  %v2053_v39 = vpop.f32.mrb[23].mxu0  ;;  %2211 = vmatmul.mubr.msk.f32.gmra.mrb[128].mxu0 %vm170_vm4, %v78_v32  ;;  %v1108_v40 = vadd.f32 %v3139_v48, %v1107_v37  ;;  %v2275_v41 = vpop.f32.mrb[23].mxu1  ;;  %2433 = vmatmul.mubr.msk.f32.gmra.mrb[128].mxu1 %vm170_vm4, %v152_v33 }
 0x108   :  { %2213 = vmatprep.mubr.msk.f32.mxu0 %vm2472_vm3, %v2473_v4  ;;  %2435 = vmatprep.mubr.msk.f32.mxu1 %vm2472_vm3, %v2473_v4  ;;  %v159_v41 = vld [vmem:[%s4127_s0 + $0x488] sm:$0xff] }
 0x109   :  { %v1427_v44 = vmax.f32 %v738_v38, 0.0  ;;  %v1501_v45 = vmax.f32 %v1108_v40, 0.0  ;;  %v85_v40 = vld [vmem:[%s4127_s0 + $0x238] sm:$0xff] }
 0x10a   :  { %v742_v46 = vpop.f32.mrb[24].mxu0  ;;  %v1112_v47 = vpop.f32.mrb[24].mxu1 }
 0x10b   :  { %1575 = vst.msk [vmem:[%s4129_s3 + $0x58] sm:$0xff] %vm1563_vm5, %v1427_v44  ;;  %1649 = vst.msk [vmem:[%s4129_s3 + $0x2a8] sm:$0xff] %vm1563_vm5, %v1501_v45  ;;  %v743_v49 = vadd.f32 %v3139_v48, %v742_v46  ;;  %v2056_v50 = vpop.f32.mrb[25].mxu0  ;;  %2214 = vmatmul.mubr.msk.f32.gmra.mrb[130].mxu0 %vm170_vm4, %v79_v42  ;;  %v1113_v51 = vadd.f32 %v3139_v48, %v1112_v47  ;;  %v2278_v52 = vpop.f32.mrb[25].mxu1  ;;  %2436 = vmatmul.mubr.msk.f32.gmra.mrb[130].mxu1 %vm170_vm4, %v153_v43 }
 0x10c   :  { %2216 = vmatprep.mubr.msk.f32.mxu0 %vm2472_vm3, %v2473_v4  ;;  %2438 = vmatprep.mubr.msk.f32.mxu1 %vm2472_vm3, %v2473_v4  ;;  %v160_v52 = vld [vmem:[%s4127_s0 + $0x490] sm:$0x3] }
 0x10d   :  { %v1428_v55 = vmax.f32 %v743_v49, 0.0  ;;  %v1502_v56 = vmax.f32 %v1113_v51, 0.0  ;;  %v86_v51 = vld [vmem:[%s4127_s0 + $0x240] sm:$0xff] }
 0x10e   :  { %v747_v57 = vpop.f32.mrb[26].mxu0  ;;  %v1117_v58 = vpop.f32.mrb[26].mxu1 }
 0x10f   :  { %1576 = vst.msk [vmem:[%s4129_s3 + $0x60] sm:$0xff] %vm1563_vm5, %v1428_v55  ;;  %1650 = vst.msk [vmem:[%s4129_s3 + $0x2b0] sm:$0xff] %vm1563_vm5, %v1502_v56  ;;  %v748_v59 = vadd.f32 %v3139_v48, %v747_v57  ;;  %v2059_v60 = vpop.f32.mrb[27].mxu0  ;;  %2217 = vmatmul.mubr.msk.f32.gmra.mrb[132].mxu0 %vm170_vm4, %v80_v53  ;;  %v1118_v61 = vadd.f32 %v3139_v48, %v1117_v58  ;;  %v2281_v62 = vpop.f32.mrb[27].mxu1  ;;  %2439 = vmatmul.mubr.msk.f32.gmra.mrb[132].mxu1 %vm170_vm4, %v154_v54 }
 0x110   :  { %2219 = vmatprep.mubr.msk.f32.mxu0 %vm2472_vm3, %v2473_v4  ;;  %2441 = vmatprep.mubr.msk.f32.mxu1 %vm2472_vm3, %v2473_v4 }
 0x111   :  { %v1429_v1 = vmax.f32 %v748_v59, 0.0  ;;  %v1503_v2 = vmax.f32 %v1118_v61, 0.0  ;;  %v87_v61 = vld [vmem:[%s4127_s0 + $0x248] sm:$0xff] }
 0x112   :  { %v752_v3 = vpop.f32.mrb[28].mxu0  ;;  %v1122_v5 = vpop.f32.mrb[28].mxu1 }
 0x113   :  { %1577 = vst.msk [vmem:[%s4129_s3 + $0x68] sm:$0xff] %vm1563_vm5, %v1429_v1  ;;  %1651 = vst.msk [vmem:[%s4129_s3 + $0x2b8] sm:$0xff] %vm1563_vm5, %v1503_v2  ;;  %v753_v6 = vadd.f32 %v3139_v48, %v752_v3  ;;  %v2062_v7 = vpop.f32.mrb[29].mxu0  ;;  %2220 = vmatmul.mubr.msk.f32.gmra.mrb[134].mxu0 %vm170_vm4, %v81_v63  ;;  %v1123_v8 = vadd.f32 %v3139_v48, %v1122_v5  ;;  %v2284_v9 = vpop.f32.mrb[29].mxu1  ;;  %2442 = vmatmul.mubr.msk.f32.gmra.mrb[134].mxu1 %vm170_vm4, %v155_v0 }
 0x114   :  { %2222 = vmatprep.mubr.msk.f32.mxu0 %vm2472_vm3, %v2473_v4  ;;  %2444 = vmatprep.mubr.msk.f32.mxu1 %vm2472_vm3, %v2473_v4 }
 0x115   :  { %v1430_v12 = vmax.f32 %v753_v6, 0.0  ;;  %v1504_v13 = vmax.f32 %v1123_v8, 0.0 }
 0x116   :  { %v757_v14 = vpop.f32.mrb[30].mxu0  ;;  %v1127_v15 = vpop.f32.mrb[30].mxu1 }
 0x117   :  { %1578 = vst.msk [vmem:[%s4129_s3 + $0x70] sm:$0xff] %vm1563_vm5, %v1430_v12  ;;  %1652 = vst.msk [vmem:[%s4129_s3 + $0x2c0] sm:$0xff] %vm1563_vm5, %v1504_v13  ;;  %v758_v16 = vadd.f32 %v3139_v48, %v757_v14  ;;  %v2065_v17 = vpop.f32.mrb[31].mxu0  ;;  %2223 = vmatmul.mubr.msk.f32.gmra.mrb[136].mxu0 %vm170_vm4, %v82_v10  ;;  %v1128_v18 = vadd.f32 %v3139_v48, %v1127_v15  ;;  %v2287_v19 = vpop.f32.mrb[31].mxu1  ;;  %2445 = vmatmul.mubr.msk.f32.gmra.mrb[136].mxu1 %vm170_vm4, %v156_v11 }
 0x118   :  { %2225 = vmatprep.mubr.msk.f32.mxu0 %vm2472_vm3, %v2473_v4  ;;  %2447 = vmatprep.mubr.msk.f32.mxu1 %vm2472_vm3, %v2473_v4 }
 0x119   :  { %v1431_v22 = vmax.f32 %v758_v16, 0.0  ;;  %v1505_v23 = vmax.f32 %v1128_v18, 0.0 }
 0x11a   :  { %v762_v24 = vpop.f32.mrb[32].mxu0  ;;  %v1132_v25 = vpop.f32.mrb[32].mxu1 }
 0x11b   :  { %1579 = vst.msk [vmem:[%s4129_s3 + $0x78] sm:$0xff] %vm1563_vm5, %v1431_v22  ;;  %1653 = vst.msk [vmem:[%s4129_s3 + $0x2c8] sm:$0xff] %vm1563_vm5, %v1505_v23  ;;  %v763_v26 = vadd.f32 %v3139_v48, %v762_v24  ;;  %v2068_v27 = vpop.f32.mrb[33].mxu0  ;;  %2226 = vmatmul.mubr.msk.f32.gmra.mrb[138].mxu0 %vm170_vm4, %v83_v20  ;;  %v1133_v28 = vadd.f32 %v3139_v48, %v1132_v25  ;;  %v2290_v29 = vpop.f32.mrb[33].mxu1  ;;  %2448 = vmatmul.mubr.msk.f32.gmra.mrb[138].mxu1 %vm170_vm4, %v157_v21 }
 0x11c   :  { %2228 = vmatprep.mubr.msk.f32.mxu0 %vm2472_vm3, %v2473_v4  ;;  %2450 = vmatprep.mubr.msk.f32.mxu1 %vm2472_vm3, %v2473_v4 }
 0x11d   :  { %v1432_v32 = vmax.f32 %v763_v26, 0.0  ;;  %v1506_v33 = vmax.f32 %v1133_v28, 0.0 }
 0x11e   :  { %v767_v34 = vpop.f32.mrb[34].mxu0  ;;  %v1137_v35 = vpop.f32.mrb[34].mxu1 }
 0x11f   :  { %1580 = vst.msk [vmem:[%s4129_s3 + $0x80] sm:$0xff] %vm1563_vm5, %v1432_v32  ;;  %1654 = vst.msk [vmem:[%s4129_s3 + $0x2d0] sm:$0xff] %vm1563_vm5, %v1506_v33  ;;  %v768_v36 = vadd.f32 %v3139_v48, %v767_v34  ;;  %v2071_v37 = vpop.f32.mrb[35].mxu0  ;;  %2229 = vmatmul.mubr.msk.f32.gmra.mrb[140].mxu0 %vm170_vm4, %v84_v30  ;;  %v1138_v38 = vadd.f32 %v3139_v48, %v1137_v35  ;;  %v2293_v39 = vpop.f32.mrb[35].mxu1  ;;  %2451 = vmatmul.mubr.msk.f32.gmra.mrb[140].mxu1 %vm170_vm4, %v158_v31 }
 0x120   :  { %2231 = vmatprep.mubr.msk.f32.mxu0 %vm2472_vm3, %v2473_v4  ;;  %2453 = vmatprep.mubr.msk.f32.mxu1 %vm2472_vm3, %v2473_v4 }
 0x121   :  { %v1433_v42 = vmax.f32 %v768_v36, 0.0  ;;  %v1507_v43 = vmax.f32 %v1138_v38, 0.0 }
 0x122   :  { %v772_v44 = vpop.f32.mrb[36].mxu0  ;;  %v1142_v45 = vpop.f32.mrb[36].mxu1 }
 0x123   :  { %1581 = vst.msk [vmem:[%s4129_s3 + $0x88] sm:$0xff] %vm1563_vm5, %v1433_v42  ;;  %1655 = vst.msk [vmem:[%s4129_s3 + $0x2d8] sm:$0xff] %vm1563_vm5, %v1507_v43  ;;  %v773_v46 = vadd.f32 %v3139_v48, %v772_v44  ;;  %v2074_v47 = vpop.f32.mrb[37].mxu0  ;;  %2232 = vmatmul.mubr.msk.f32.gmra.mrb[142].mxu0 %vm170_vm4, %v85_v40  ;;  %v1143_v49 = vadd.f32 %v3139_v48, %v1142_v45  ;;  %v2296_v50 = vpop.f32.mrb[37].mxu1  ;;  %2454 = vmatmul.mubr.msk.f32.gmra.mrb[142].mxu1 %vm170_vm4, %v159_v41 }
 0x124   :  { %2234 = vmatprep.mubr.msk.f32.mxu0 %vm2472_vm3, %v2473_v4  ;;  %2456 = vmatprep.mubr.msk.f32.mxu1 %vm2472_vm3, %v2473_v4 }
 0x125   :  { %v1434_v53 = vmax.f32 %v773_v46, 0.0  ;;  %v1508_v54 = vmax.f32 %v1143_v49, 0.0 }
 0x126   :  { %v777_v55 = vpop.f32.mrb[38].mxu0  ;;  %v1147_v56 = vpop.f32.mrb[38].mxu1 }
 0x127   :  { %1582 = vst.msk [vmem:[%s4129_s3 + $0x90] sm:$0xff] %vm1563_vm5, %v1434_v53  ;;  %1656 = vst.msk [vmem:[%s4129_s3 + $0x2e0] sm:$0xff] %vm1563_vm5, %v1508_v54  ;;  %v778_v57 = vadd.f32 %v3139_v48, %v777_v55  ;;  %v2077_v58 = vpop.f32.mrb[39].mxu0  ;;  %2235 = vmatmul.mubr.msk.f32.gmra.mrb[144].mxu0 %vm170_vm4, %v86_v51  ;;  %v1148_v59 = vadd.f32 %v3139_v48, %v1147_v56  ;;  %v2299_v60 = vpop.f32.mrb[39].mxu1  ;;  %2457 = vmatmul.mubr.msk.f32.gmra.mrb[144].mxu1 %vm170_vm4, %v160_v52 }
 0x128   :  { %2237 = vmatprep.mubr.msk.f32.mxu0 %vm2472_vm3, %v2473_v4 }
 0x129   :  { %v1435_v62 = vmax.f32 %v778_v57, 0.0  ;;  %v1509_v63 = vmax.f32 %v1148_v59, 0.0 }
 0x12a   :  { %v782_v0 = vpop.f32.mrb[40].mxu0  ;;  %v1152_v1 = vpop.f32.mrb[40].mxu1 }
 0x12b   :  { %1583 = vst.msk [vmem:[%s4129_s3 + $0x98] sm:$0xff] %vm1563_vm5, %v1435_v62  ;;  %1657 = vst.msk [vmem:[%s4129_s3 + $0x2e8] sm:$0xff] %vm1563_vm5, %v1509_v63  ;;  %v783_v4 = vadd.f32 %v3139_v48, %v782_v0  ;;  %v2080_v2 = vpop.f32.mrb[41].mxu0  ;;  %2238 = vmatmul.mubr.msk.f32.gmra.mrb[146].mxu0 %vm170_vm4, %v87_v61  ;;  %v1153_v3 = vadd.f32 %v3139_v48, %v1152_v1  ;;  %v2302_v5 = vpop.f32.mrb[41].mxu1 }
 0x12d   :  { %v1436_v6 = vmax.f32 %v783_v4, 0.0  ;;  %v1510_v7 = vmax.f32 %v1153_v3, 0.0 }
 0x12e   :  { %v787_v8 = vpop.f32.mrb[42].mxu0  ;;  %v1157_v9 = vpop.f32.mrb[42].mxu1 }
 0x12f   :  { %1584 = vst.msk [vmem:[%s4129_s3 + $0xa0] sm:$0xff] %vm1563_vm5, %v1436_v6  ;;  %1658 = vst.msk [vmem:[%s4129_s3 + $0x2f0] sm:$0xff] %vm1563_vm5, %v1510_v7  ;;  %v788_v10 = vadd.f32 %v3139_v48, %v787_v8  ;;  %v2083_v11 = vpop.f32.mrb[43].mxu0  ;;  %v1158_v12 = vadd.f32 %v3139_v48, %v1157_v9  ;;  %v2305_v13 = vpop.f32.mrb[43].mxu1 }
 0x131   :  { %v1437_v14 = vmax.f32 %v788_v10, 0.0  ;;  %v1511_v15 = vmax.f32 %v1158_v12, 0.0 }
 0x132   :  { %v792_v16 = vpop.f32.mrb[44].mxu0  ;;  %v1162_v17 = vpop.f32.mrb[44].mxu1 }
 0x133   :  { %1585 = vst.msk [vmem:[%s4129_s3 + $0xa8] sm:$0xff] %vm1563_vm5, %v1437_v14  ;;  %1659 = vst.msk [vmem:[%s4129_s3 + $0x2f8] sm:$0xff] %vm1563_vm5, %v1511_v15  ;;  %v793_v18 = vadd.f32 %v3139_v48, %v792_v16  ;;  %v2086_v19 = vpop.f32.mrb[45].mxu0  ;;  %v1163_v20 = vadd.f32 %v3139_v48, %v1162_v17  ;;  %v2308_v21 = vpop.f32.mrb[45].mxu1 }
 0x135   :  { %v1438_v22 = vmax.f32 %v793_v18, 0.0  ;;  %v1512_v23 = vmax.f32 %v1163_v20, 0.0 }
 0x136   :  { %v797_v24 = vpop.f32.mrb[46].mxu0  ;;  %v1167_v25 = vpop.f32.mrb[46].mxu1 }
 0x137   :  { %1586 = vst.msk [vmem:[%s4129_s3 + $0xb0] sm:$0xff] %vm1563_vm5, %v1438_v22  ;;  %1660 = vst.msk [vmem:[%s4129_s3 + $0x300] sm:$0xff] %vm1563_vm5, %v1512_v23  ;;  %v798_v26 = vadd.f32 %v3139_v48, %v797_v24  ;;  %v2089_v27 = vpop.f32.mrb[47].mxu0  ;;  %v1168_v28 = vadd.f32 %v3139_v48, %v1167_v25  ;;  %v2311_v29 = vpop.f32.mrb[47].mxu1 }
 0x139   :  { %v1439_v30 = vmax.f32 %v798_v26, 0.0  ;;  %v1513_v31 = vmax.f32 %v1168_v28, 0.0 }
 0x13a   :  { %v802_v32 = vpop.f32.mrb[48].mxu0  ;;  %v1172_v33 = vpop.f32.mrb[48].mxu1 }
 0x13b   :  { %1587 = vst.msk [vmem:[%s4129_s3 + $0xb8] sm:$0xff] %vm1563_vm5, %v1439_v30  ;;  %1661 = vst.msk [vmem:[%s4129_s3 + $0x308] sm:$0xff] %vm1563_vm5, %v1513_v31  ;;  %v803_v34 = vadd.f32 %v3139_v48, %v802_v32  ;;  %v2092_v35 = vpop.f32.mrb[49].mxu0  ;;  %v1173_v36 = vadd.f32 %v3139_v48, %v1172_v33  ;;  %v2314_v37 = vpop.f32.mrb[49].mxu1 }
 0x13d   :  { %v1440_v38 = vmax.f32 %v803_v34, 0.0  ;;  %v1514_v39 = vmax.f32 %v1173_v36, 0.0 }
 0x13e   :  { %v807_v40 = vpop.f32.mrb[50].mxu0  ;;  %v1177_v41 = vpop.f32.mrb[50].mxu1 }
 0x13f   :  { %1588 = vst.msk [vmem:[%s4129_s3 + $0xc0] sm:$0xff] %vm1563_vm5, %v1440_v38  ;;  %1662 = vst.msk [vmem:[%s4129_s3 + $0x310] sm:$0xff] %vm1563_vm5, %v1514_v39  ;;  %v808_v42 = vadd.f32 %v3139_v48, %v807_v40  ;;  %v2095_v43 = vpop.f32.mrb[51].mxu0  ;;  %v1178_v44 = vadd.f32 %v3139_v48, %v1177_v41  ;;  %v2317_v45 = vpop.f32.mrb[51].mxu1 }
 0x141   :  { %v1441_v46 = vmax.f32 %v808_v42, 0.0  ;;  %v1515_v47 = vmax.f32 %v1178_v44, 0.0 }
 0x142   :  { %v812_v49 = vpop.f32.mrb[52].mxu0  ;;  %v1182_v50 = vpop.f32.mrb[52].mxu1 }
 0x143   :  { %1589 = vst.msk [vmem:[%s4129_s3 + $0xc8] sm:$0xff] %vm1563_vm5, %v1441_v46  ;;  %1663 = vst.msk [vmem:[%s4129_s3 + $0x318] sm:$0xff] %vm1563_vm5, %v1515_v47  ;;  %v813_v51 = vadd.f32 %v3139_v48, %v812_v49  ;;  %v2098_v52 = vpop.f32.mrb[53].mxu0  ;;  %v1183_v53 = vadd.f32 %v3139_v48, %v1182_v50  ;;  %v2320_v54 = vpop.f32.mrb[53].mxu1 }
 0x145   :  { %v1442_v55 = vmax.f32 %v813_v51, 0.0  ;;  %v1516_v56 = vmax.f32 %v1183_v53, 0.0 }
 0x146   :  { %v817_v57 = vpop.f32.mrb[54].mxu0  ;;  %v1187_v58 = vpop.f32.mrb[54].mxu1 }
 0x147   :  { %1590 = vst.msk [vmem:[%s4129_s3 + $0xd0] sm:$0xff] %vm1563_vm5, %v1442_v55  ;;  %1664 = vst.msk [vmem:[%s4129_s3 + $0x320] sm:$0xff] %vm1563_vm5, %v1516_v56  ;;  %v818_v59 = vadd.f32 %v3139_v48, %v817_v57  ;;  %v2101_v60 = vpop.f32.mrb[55].mxu0  ;;  %v1188_v61 = vadd.f32 %v3139_v48, %v1187_v58  ;;  %v2323_v62 = vpop.f32.mrb[55].mxu1 }
 0x149   :  { %v1443_v63 = vmax.f32 %v818_v59, 0.0  ;;  %v1517_v0 = vmax.f32 %v1188_v61, 0.0 }
 0x14a   :  { %v822_v1 = vpop.f32.mrb[56].mxu0  ;;  %v1192_v4 = vpop.f32.mrb[56].mxu1 }
 0x14b   :  { %1591 = vst.msk [vmem:[%s4129_s3 + $0xd8] sm:$0xff] %vm1563_vm5, %v1443_v63  ;;  %1665 = vst.msk [vmem:[%s4129_s3 + $0x328] sm:$0xff] %vm1563_vm5, %v1517_v0  ;;  %v823_v2 = vadd.f32 %v3139_v48, %v822_v1  ;;  %v2104_v3 = vpop.f32.mrb[57].mxu0  ;;  %v1193_v5 = vadd.f32 %v3139_v48, %v1192_v4  ;;  %v2326_v6 = vpop.f32.mrb[57].mxu1 }
 0x14d   :  { %v1444_v7 = vmax.f32 %v823_v2, 0.0  ;;  %v1518_v8 = vmax.f32 %v1193_v5, 0.0 }
 0x14e   :  { %v827_v9 = vpop.f32.mrb[58].mxu0  ;;  %v1197_v10 = vpop.f32.mrb[58].mxu1 }
 0x14f   :  { %1592 = vst.msk [vmem:[%s4129_s3 + $0xe0] sm:$0xff] %vm1563_vm5, %v1444_v7  ;;  %1666 = vst.msk [vmem:[%s4129_s3 + $0x330] sm:$0xff] %vm1563_vm5, %v1518_v8  ;;  %v828_v11 = vadd.f32 %v3139_v48, %v827_v9  ;;  %v2107_v12 = vpop.f32.mrb[59].mxu0  ;;  %v1198_v13 = vadd.f32 %v3139_v48, %v1197_v10  ;;  %v2329_v14 = vpop.f32.mrb[59].mxu1 }
 0x151   :  { %v1445_v15 = vmax.f32 %v828_v11, 0.0  ;;  %v1519_v16 = vmax.f32 %v1198_v13, 0.0 }
 0x152   :  { %v832_v17 = vpop.f32.mrb[60].mxu0  ;;  %v1202_v18 = vpop.f32.mrb[60].mxu1 }
 0x153   :  { %1593 = vst.msk [vmem:[%s4129_s3 + $0xe8] sm:$0xff] %vm1563_vm5, %v1445_v15  ;;  %1667 = vst.msk [vmem:[%s4129_s3 + $0x338] sm:$0xff] %vm1563_vm5, %v1519_v16  ;;  %v833_v19 = vadd.f32 %v3139_v48, %v832_v17  ;;  %v2110_v20 = vpop.f32.mrb[61].mxu0  ;;  %v1203_v21 = vadd.f32 %v3139_v48, %v1202_v18  ;;  %v2332_v22 = vpop.f32.mrb[61].mxu1 }
 0x155   :  { %v1446_v23 = vmax.f32 %v833_v19, 0.0  ;;  %v1520_v24 = vmax.f32 %v1203_v21, 0.0 }
 0x156   :  { %v837_v25 = vpop.f32.mrb[62].mxu0  ;;  %v1207_v26 = vpop.f32.mrb[62].mxu1 }
 0x157   :  { %1594 = vst.msk [vmem:[%s4129_s3 + $0xf0] sm:$0xff] %vm1563_vm5, %v1446_v23  ;;  %1668 = vst.msk [vmem:[%s4129_s3 + $0x340] sm:$0xff] %vm1563_vm5, %v1520_v24  ;;  %v838_v27 = vadd.f32 %v3139_v48, %v837_v25  ;;  %v2113_v28 = vpop.f32.mrb[63].mxu0  ;;  %v1208_v29 = vadd.f32 %v3139_v48, %v1207_v26  ;;  %v2335_v30 = vpop.f32.mrb[63].mxu1 }
 0x158   :  { %v3780_v28 = vld [vmem:[%s4128_s2] ss:$0 sm:$0xff] }
 0x159   :  { %v1447_v31 = vmax.f32 %v838_v27, 0.0  ;;  %v1521_v32 = vmax.f32 %v1208_v29, 0.0 }
 0x15a   :  { %v842_v33 = vpop.f32.mrb[64].mxu0  ;;  %v1212_v34 = vpop.f32.mrb[64].mxu1 }
 0x15b   :  { %1595 = vst.msk [vmem:[%s4129_s3 + $0xf8] sm:$0xff] %vm1563_vm5, %v1447_v31  ;;  %1669 = vst.msk [vmem:[%s4129_s3 + $0x348] sm:$0xff] %vm1563_vm5, %v1521_v32  ;;  %v843_v35 = vadd.f32 %v3139_v48, %v842_v33  ;;  %v2116_v36 = vpop.f32.mrb[65].mxu0  ;;  %v1213_v37 = vadd.f32 %v3139_v48, %v1212_v34  ;;  %v2338_v38 = vpop.f32.mrb[65].mxu1 }
 0x15d   :  { %v1448_v39 = vmax.f32 %v843_v35, 0.0  ;;  %v1522_v40 = vmax.f32 %v1213_v37, 0.0 }
 0x15e   :  { %v847_v41 = vpop.f32.mrb[66].mxu0  ;;  %v1217_v42 = vpop.f32.mrb[66].mxu1 }
 0x15f   :  { %1596 = vst.msk [vmem:[%s4129_s3 + $0x100] sm:$0xff] %vm1563_vm5, %v1448_v39  ;;  %1670 = vst.msk [vmem:[%s4129_s3 + $0x350] sm:$0xff] %vm1563_vm5, %v1522_v40  ;;  %v848_v43 = vadd.f32 %v3139_v48, %v847_v41  ;;  %v2119_v44 = vpop.f32.mrb[67].mxu0  ;;  %v1218_v45 = vadd.f32 %v3139_v48, %v1217_v42  ;;  %v2341_v46 = vpop.f32.mrb[67].mxu1 }
 0x161   :  { %v1449_v47 = vmax.f32 %v848_v43, 0.0  ;;  %v1523_v49 = vmax.f32 %v1218_v45, 0.0 }
 0x162   :  { %v852_v50 = vpop.f32.mrb[68].mxu0  ;;  %v1222_v51 = vpop.f32.mrb[68].mxu1 }
 0x163   :  { %1597 = vst.msk [vmem:[%s4129_s3 + $0x108] sm:$0xff] %vm1563_vm5, %v1449_v47  ;;  %1671 = vst.msk [vmem:[%s4129_s3 + $0x358] sm:$0xff] %vm1563_vm5, %v1523_v49  ;;  %v853_v52 = vadd.f32 %v3139_v48, %v852_v50  ;;  %v2122_v53 = vpop.f32.mrb[69].mxu0  ;;  %v1223_v54 = vadd.f32 %v3139_v48, %v1222_v51  ;;  %v2344_v55 = vpop.f32.mrb[69].mxu1 }
 0x165   :  { %v1450_v56 = vmax.f32 %v853_v52, 0.0  ;;  %v1524_v57 = vmax.f32 %v1223_v54, 0.0 }
 0x166   :  { %v857_v58 = vpop.f32.mrb[70].mxu0  ;;  %v1227_v59 = vpop.f32.mrb[70].mxu1 }
 0x167   :  { %1598 = vst.msk [vmem:[%s4129_s3 + $0x110] sm:$0xff] %vm1563_vm5, %v1450_v56  ;;  %1672 = vst.msk [vmem:[%s4129_s3 + $0x360] sm:$0xff] %vm1563_vm5, %v1524_v57  ;;  %v858_v60 = vadd.f32 %v3139_v48, %v857_v58  ;;  %v2125_v61 = vpop.f32.mrb[71].mxu0  ;;  %v1228_v62 = vadd.f32 %v3139_v48, %v1227_v59  ;;  %v2347_v63 = vpop.f32.mrb[71].mxu1 }
 0x169   :  { %v1451_v0 = vmax.f32 %v858_v60, 0.0  ;;  %v1525_v1 = vmax.f32 %v1228_v62, 0.0 }
 0x16a   :  { %v862_v4 = vpop.f32.mrb[72].mxu0  ;;  %v1232_v2 = vpop.f32.mrb[72].mxu1 }
 0x16b   :  { %1599 = vst.msk [vmem:[%s4129_s3 + $0x118] sm:$0xff] %vm1563_vm5, %v1451_v0  ;;  %1673 = vst.msk [vmem:[%s4129_s3 + $0x368] sm:$0xff] %vm1563_vm5, %v1525_v1  ;;  %v863_v3 = vadd.f32 %v3139_v48, %v862_v4  ;;  %v2128_v5 = vpop.f32.mrb[73].mxu0  ;;  %v1233_v6 = vadd.f32 %v3139_v48, %v1232_v2  ;;  %v2350_v7 = vpop.f32.mrb[73].mxu1 }
 0x16d   :  { %v1452_v8 = vmax.f32 %v863_v3, 0.0  ;;  %v1526_v9 = vmax.f32 %v1233_v6, 0.0 }
 0x16e   :  { %v867_v10 = vpop.f32.mrb[74].mxu0  ;;  %v1237_v11 = vpop.f32.mrb[74].mxu1 }
 0x16f   :  { %1600 = vst.msk [vmem:[%s4129_s3 + $0x120] sm:$0xff] %vm1563_vm5, %v1452_v8  ;;  %1674 = vst.msk [vmem:[%s4129_s3 + $0x370] sm:$0xff] %vm1563_vm5, %v1526_v9  ;;  %v868_v12 = vadd.f32 %v3139_v48, %v867_v10  ;;  %v2131_v13 = vpop.f32.mrb[75].mxu0  ;;  %v1238_v14 = vadd.f32 %v3139_v48, %v1237_v11  ;;  %v2353_v15 = vpop.f32.mrb[75].mxu1 }
 0x171   :  { %v1453_v16 = vmax.f32 %v868_v12, 0.0  ;;  %v1527_v17 = vmax.f32 %v1238_v14, 0.0 }
 0x172   :  { %v872_v18 = vpop.f32.mrb[76].mxu0  ;;  %v1242_v19 = vpop.f32.mrb[76].mxu1 }
 0x173   :  { %1601 = vst.msk [vmem:[%s4129_s3 + $0x128] sm:$0xff] %vm1563_vm5, %v1453_v16  ;;  %1675 = vst.msk [vmem:[%s4129_s3 + $0x378] sm:$0xff] %vm1563_vm5, %v1527_v17  ;;  %v873_v20 = vadd.f32 %v3139_v48, %v872_v18  ;;  %v2134_v21 = vpop.f32.mrb[77].mxu0  ;;  %v1243_v22 = vadd.f32 %v3139_v48, %v1242_v19  ;;  %v2356_v23 = vpop.f32.mrb[77].mxu1 }
 0x175   :  { %v1454_v24 = vmax.f32 %v873_v20, 0.0  ;;  %v1528_v25 = vmax.f32 %v1243_v22, 0.0 }
 0x176   :  { %v877_v26 = vpop.f32.mrb[78].mxu0  ;;  %v1247_v27 = vpop.f32.mrb[78].mxu1 }
 0x177   :  { %1602 = vst.msk [vmem:[%s4129_s3 + $0x130] sm:$0xff] %vm1563_vm5, %v1454_v24  ;;  %1676 = vst.msk [vmem:[%s4129_s3 + $0x380] sm:$0xff] %vm1563_vm5, %v1528_v25  ;;  %v878_v48 = vadd.f32 %v3780_v28, %v877_v26  ;;  %v2137_v29 = vpop.f32.mrb[79].mxu0  ;;  %v1248_v30 = vadd.f32 %v3780_v28, %v1247_v27  ;;  %v2359_v31 = vpop.f32.mrb[79].mxu1 }
 0x179   :  { %v1455_v32 = vmax.f32 %v878_v48, 0.0  ;;  %v1529_v33 = vmax.f32 %v1248_v30, 0.0 }
 0x17a   :  { %v882_v34 = vpop.f32.mrb[80].mxu0  ;;  %v1252_v35 = vpop.f32.mrb[80].mxu1 }
 0x17b   :  { %1603 = vst.msk [vmem:[%s4129_s3 + $0x138] sm:$0xff] %vm1563_vm5, %v1455_v32  ;;  %1677 = vst.msk [vmem:[%s4129_s3 + $0x388] sm:$0xff] %vm1563_vm5, %v1529_v33  ;;  %v883_v36 = vadd.f32 %v3780_v28, %v882_v34  ;;  %v2140_v37 = vpop.f32.mrb[81].mxu0  ;;  %v1253_v38 = vadd.f32 %v3780_v28, %v1252_v35  ;;  %v2362_v39 = vpop.f32.mrb[81].mxu1 }
 0x17d   :  { %v1456_v40 = vmax.f32 %v883_v36, 0.0  ;;  %v1530_v41 = vmax.f32 %v1253_v38, 0.0 }
 0x17e   :  { %v887_v42 = vpop.f32.mrb[82].mxu0  ;;  %v1257_v43 = vpop.f32.mrb[82].mxu1 }
 0x17f   :  { %1604 = vst.msk [vmem:[%s4129_s3 + $0x140] sm:$0xff] %vm1563_vm5, %v1456_v40  ;;  %1678 = vst.msk [vmem:[%s4129_s3 + $0x390] sm:$0xff] %vm1563_vm5, %v1530_v41  ;;  %v888_v44 = vadd.f32 %v3780_v28, %v887_v42  ;;  %v2143_v45 = vpop.f32.mrb[83].mxu0  ;;  %v1258_v46 = vadd.f32 %v3780_v28, %v1257_v43  ;;  %v2365_v47 = vpop.f32.mrb[83].mxu1 }
 0x181   :  { %v1457_v49 = vmax.f32 %v888_v44, 0.0  ;;  %v1531_v50 = vmax.f32 %v1258_v46, 0.0 }
 0x182   :  { %v892_v51 = vpop.f32.mrb[84].mxu0  ;;  %v1262_v52 = vpop.f32.mrb[84].mxu1 }
 0x183   :  { %1605 = vst.msk [vmem:[%s4129_s3 + $0x148] sm:$0xff] %vm1563_vm5, %v1457_v49  ;;  %1679 = vst.msk [vmem:[%s4129_s3 + $0x398] sm:$0xff] %vm1563_vm5, %v1531_v50  ;;  %v893_v53 = vadd.f32 %v3780_v28, %v892_v51  ;;  %v2146_v54 = vpop.f32.mrb[85].mxu0  ;;  %v1263_v55 = vadd.f32 %v3780_v28, %v1262_v52  ;;  %v2368_v56 = vpop.f32.mrb[85].mxu1 }
 0x185   :  { %v1458_v57 = vmax.f32 %v893_v53, 0.0  ;;  %v1532_v58 = vmax.f32 %v1263_v55, 0.0 }
 0x186   :  { %v897_v59 = vpop.f32.mrb[86].mxu0  ;;  %v1267_v60 = vpop.f32.mrb[86].mxu1 }
 0x187   :  { %1606 = vst.msk [vmem:[%s4129_s3 + $0x150] sm:$0xff] %vm1563_vm5, %v1458_v57  ;;  %1680 = vst.msk [vmem:[%s4129_s3 + $0x3a0] sm:$0xff] %vm1563_vm5, %v1532_v58  ;;  %v898_v61 = vadd.f32 %v3780_v28, %v897_v59  ;;  %v2149_v62 = vpop.f32.mrb[87].mxu0  ;;  %v1268_v63 = vadd.f32 %v3780_v28, %v1267_v60  ;;  %v2371_v0 = vpop.f32.mrb[87].mxu1 }
 0x189   :  { %v1459_v1 = vmax.f32 %v898_v61, 0.0  ;;  %v1533_v4 = vmax.f32 %v1268_v63, 0.0 }
 0x18a   :  { %v902_v2 = vpop.f32.mrb[88].mxu0  ;;  %v1272_v3 = vpop.f32.mrb[88].mxu1 }
 0x18b   :  { %1607 = vst.msk [vmem:[%s4129_s3 + $0x158] sm:$0xff] %vm1563_vm5, %v1459_v1  ;;  %1681 = vst.msk [vmem:[%s4129_s3 + $0x3a8] sm:$0xff] %vm1563_vm5, %v1533_v4  ;;  %v903_v5 = vadd.f32 %v3780_v28, %v902_v2  ;;  %v2152_v6 = vpop.f32.mrb[89].mxu0  ;;  %v1273_v7 = vadd.f32 %v3780_v28, %v1272_v3  ;;  %v2374_v8 = vpop.f32.mrb[89].mxu1 }
 0x18d   :  { %v1460_v9 = vmax.f32 %v903_v5, 0.0  ;;  %v1534_v10 = vmax.f32 %v1273_v7, 0.0 }
 0x18e   :  { %v907_v11 = vpop.f32.mrb[90].mxu0  ;;  %v1277_v12 = vpop.f32.mrb[90].mxu1 }
 0x18f   :  { %1608 = vst.msk [vmem:[%s4129_s3 + $0x160] sm:$0xff] %vm1563_vm5, %v1460_v9  ;;  %1682 = vst.msk [vmem:[%s4129_s3 + $0x3b0] sm:$0xff] %vm1563_vm5, %v1534_v10  ;;  %v908_v13 = vadd.f32 %v3780_v28, %v907_v11  ;;  %v2155_v14 = vpop.f32.mrb[91].mxu0  ;;  %v1278_v15 = vadd.f32 %v3780_v28, %v1277_v12  ;;  %v2377_v16 = vpop.f32.mrb[91].mxu1 }
 0x191   :  { %v1461_v17 = vmax.f32 %v908_v13, 0.0  ;;  %v1535_v18 = vmax.f32 %v1278_v15, 0.0 }
 0x192   :  { %v912_v19 = vpop.f32.mrb[92].mxu0  ;;  %v1282_v20 = vpop.f32.mrb[92].mxu1 }
 0x193   :  { %1609 = vst.msk [vmem:[%s4129_s3 + $0x168] sm:$0xff] %vm1563_vm5, %v1461_v17  ;;  %1683 = vst.msk [vmem:[%s4129_s3 + $0x3b8] sm:$0xff] %vm1563_vm5, %v1535_v18  ;;  %v913_v21 = vadd.f32 %v3780_v28, %v912_v19  ;;  %v2158_v22 = vpop.f32.mrb[93].mxu0  ;;  %v1283_v23 = vadd.f32 %v3780_v28, %v1282_v20  ;;  %v2380_v24 = vpop.f32.mrb[93].mxu1 }
 0x195   :  { %v1462_v25 = vmax.f32 %v913_v21, 0.0  ;;  %v1536_v26 = vmax.f32 %v1283_v23, 0.0 }
 0x196   :  { %v917_v27 = vpop.f32.mrb[94].mxu0  ;;  %v1287_v48 = vpop.f32.mrb[94].mxu1 }
 0x197   :  { %1610 = vst.msk [vmem:[%s4129_s3 + $0x170] sm:$0xff] %vm1563_vm5, %v1462_v25  ;;  %1684 = vst.msk [vmem:[%s4129_s3 + $0x3c0] sm:$0xff] %vm1563_vm5, %v1536_v26  ;;  %v918_v29 = vadd.f32 %v3780_v28, %v917_v27  ;;  %v2161_v30 = vpop.f32.mrb[95].mxu0  ;;  %v1288_v31 = vadd.f32 %v3780_v28, %v1287_v48  ;;  %v2383_v32 = vpop.f32.mrb[95].mxu1 }
 0x199   :  { %v1463_v33 = vmax.f32 %v918_v29, 0.0  ;;  %v1537_v34 = vmax.f32 %v1288_v31, 0.0 }
 0x19a   :  { %v922_v35 = vpop.f32.mrb[96].mxu0  ;;  %v1292_v36 = vpop.f32.mrb[96].mxu1 }
 0x19b   :  { %1611 = vst.msk [vmem:[%s4129_s3 + $0x178] sm:$0xff] %vm1563_vm5, %v1463_v33  ;;  %1685 = vst.msk [vmem:[%s4129_s3 + $0x3c8] sm:$0xff] %vm1563_vm5, %v1537_v34  ;;  %v923_v37 = vadd.f32 %v3780_v28, %v922_v35  ;;  %v2164_v38 = vpop.f32.mrb[97].mxu0  ;;  %v1293_v39 = vadd.f32 %v3780_v28, %v1292_v36  ;;  %v2386_v40 = vpop.f32.mrb[97].mxu1 }
 0x19d   :  { %v1464_v41 = vmax.f32 %v923_v37, 0.0  ;;  %v1538_v42 = vmax.f32 %v1293_v39, 0.0 }
 0x19e   :  { %v927_v43 = vpop.f32.mrb[98].mxu0  ;;  %v1297_v44 = vpop.f32.mrb[98].mxu1 }
 0x19f   :  { %1612 = vst.msk [vmem:[%s4129_s3 + $0x180] sm:$0xff] %vm1563_vm5, %v1464_v41  ;;  %1686 = vst.msk [vmem:[%s4129_s3 + $0x3d0] sm:$0xff] %vm1563_vm5, %v1538_v42  ;;  %v928_v45 = vadd.f32 %v3780_v28, %v927_v43  ;;  %v2167_v46 = vpop.f32.mrb[99].mxu0  ;;  %v1298_v47 = vadd.f32 %v3780_v28, %v1297_v44  ;;  %v2389_v49 = vpop.f32.mrb[99].mxu1 }
 0x1a1   :  { %v1465_v50 = vmax.f32 %v928_v45, 0.0  ;;  %v1539_v51 = vmax.f32 %v1298_v47, 0.0 }
 0x1a2   :  { %v932_v52 = vpop.f32.mrb[100].mxu0  ;;  %v1302_v53 = vpop.f32.mrb[100].mxu1 }
 0x1a3   :  { %1613 = vst.msk [vmem:[%s4129_s3 + $0x188] sm:$0xff] %vm1563_vm5, %v1465_v50  ;;  %1687 = vst.msk [vmem:[%s4129_s3 + $0x3d8] sm:$0xff] %vm1563_vm5, %v1539_v51  ;;  %v933_v54 = vadd.f32 %v3780_v28, %v932_v52  ;;  %v2170_v55 = vpop.f32.mrb[101].mxu0  ;;  %v1303_v56 = vadd.f32 %v3780_v28, %v1302_v53  ;;  %v2392_v57 = vpop.f32.mrb[101].mxu1 }
 0x1a5   :  { %v1466_v58 = vmax.f32 %v933_v54, 0.0  ;;  %v1540_v59 = vmax.f32 %v1303_v56, 0.0 }
 0x1a6   :  { %v937_v60 = vpop.f32.mrb[102].mxu0  ;;  %v1307_v61 = vpop.f32.mrb[102].mxu1 }
 0x1a7   :  { %1614 = vst.msk [vmem:[%s4129_s3 + $0x190] sm:$0xff] %vm1563_vm5, %v1466_v58  ;;  %1688 = vst.msk [vmem:[%s4129_s3 + $0x3e0] sm:$0xff] %vm1563_vm5, %v1540_v59  ;;  %v938_v62 = vadd.f32 %v3780_v28, %v937_v60  ;;  %v2173_v63 = vpop.f32.mrb[103].mxu0  ;;  %v1308_v0 = vadd.f32 %v3780_v28, %v1307_v61  ;;  %v2395_v1 = vpop.f32.mrb[103].mxu1 }
 0x1a9   :  { %v1467_v4 = vmax.f32 %v938_v62, 0.0  ;;  %v1541_v2 = vmax.f32 %v1308_v0, 0.0 }
 0x1aa   :  { %v942_v3 = vpop.f32.mrb[104].mxu0  ;;  %v1312_v5 = vpop.f32.mrb[104].mxu1 }
 0x1ab   :  { %1615 = vst.msk [vmem:[%s4129_s3 + $0x198] sm:$0xff] %vm1563_vm5, %v1467_v4  ;;  %1689 = vst.msk [vmem:[%s4129_s3 + $0x3e8] sm:$0xff] %vm1563_vm5, %v1541_v2  ;;  %v943_v6 = vadd.f32 %v3780_v28, %v942_v3  ;;  %v2176_v7 = vpop.f32.mrb[105].mxu0  ;;  %v1313_v8 = vadd.f32 %v3780_v28, %v1312_v5  ;;  %v2398_v9 = vpop.f32.mrb[105].mxu1 }
 0x1ad   :  { %v1468_v10 = vmax.f32 %v943_v6, 0.0  ;;  %v1542_v11 = vmax.f32 %v1313_v8, 0.0 }
 0x1ae   :  { %v947_v12 = vpop.f32.mrb[106].mxu0  ;;  %v1317_v13 = vpop.f32.mrb[106].mxu1 }
 0x1af   :  { %1616 = vst.msk [vmem:[%s4129_s3 + $0x1a0] sm:$0xff] %vm1563_vm5, %v1468_v10  ;;  %1690 = vst.msk [vmem:[%s4129_s3 + $0x3f0] sm:$0xff] %vm1563_vm5, %v1542_v11  ;;  %v948_v14 = vadd.f32 %v3780_v28, %v947_v12  ;;  %v2179_v15 = vpop.f32.mrb[107].mxu0  ;;  %v1318_v16 = vadd.f32 %v3780_v28, %v1317_v13  ;;  %v2401_v17 = vpop.f32.mrb[107].mxu1 }
 0x1b1   :  { %v1469_v18 = vmax.f32 %v948_v14, 0.0  ;;  %v1543_v19 = vmax.f32 %v1318_v16, 0.0 }
 0x1b2   :  { %v952_v20 = vpop.f32.mrb[108].mxu0  ;;  %v1322_v21 = vpop.f32.mrb[108].mxu1 }
 0x1b3   :  { %1617 = vst.msk [vmem:[%s4129_s3 + $0x1a8] sm:$0xff] %vm1563_vm5, %v1469_v18  ;;  %1691 = vst.msk [vmem:[%s4129_s3 + $0x3f8] sm:$0xff] %vm1563_vm5, %v1543_v19  ;;  %v953_v22 = vadd.f32 %v3780_v28, %v952_v20  ;;  %v2182_v23 = vpop.f32.mrb[109].mxu0  ;;  %v1323_v24 = vadd.f32 %v3780_v28, %v1322_v21  ;;  %v2404_v25 = vpop.f32.mrb[109].mxu1 }
 0x1b5   :  { %v1470_v26 = vmax.f32 %v953_v22, 0.0  ;;  %v1544_v27 = vmax.f32 %v1323_v24, 0.0 }
 0x1b6   :  { %v957_v48 = vpop.f32.mrb[110].mxu0  ;;  %v1327_v29 = vpop.f32.mrb[110].mxu1 }
 0x1b7   :  { %1618 = vst.msk [vmem:[%s4129_s3 + $0x1b0] sm:$0xff] %vm1563_vm5, %v1470_v26  ;;  %1692 = vst.msk [vmem:[%s4129_s3 + $0x400] sm:$0xff] %vm1563_vm5, %v1544_v27  ;;  %v958_v30 = vadd.f32 %v3780_v28, %v957_v48  ;;  %v2185_v31 = vpop.f32.mrb[111].mxu0  ;;  %v1328_v32 = vadd.f32 %v3780_v28, %v1327_v29  ;;  %v2407_v33 = vpop.f32.mrb[111].mxu1 }
 0x1b9   :  { %v1471_v34 = vmax.f32 %v958_v30, 0.0  ;;  %v1545_v35 = vmax.f32 %v1328_v32, 0.0 }
 0x1ba   :  { %v962_v36 = vpop.f32.mrb[112].mxu0  ;;  %v1332_v37 = vpop.f32.mrb[112].mxu1 }
 0x1bb   :  { %1619 = vst.msk [vmem:[%s4129_s3 + $0x1b8] sm:$0xff] %vm1563_vm5, %v1471_v34  ;;  %1693 = vst.msk [vmem:[%s4129_s3 + $0x408] sm:$0xff] %vm1563_vm5, %v1545_v35  ;;  %v963_v38 = vadd.f32 %v3780_v28, %v962_v36  ;;  %v2188_v39 = vpop.f32.mrb[113].mxu0  ;;  %v1333_v40 = vadd.f32 %v3780_v28, %v1332_v37  ;;  %v2410_v41 = vpop.f32.mrb[113].mxu1 }
 0x1bd   :  { %v1472_v42 = vmax.f32 %v963_v38, 0.0  ;;  %v1546_v43 = vmax.f32 %v1333_v40, 0.0 }
 0x1be   :  { %v967_v44 = vpop.f32.mrb[114].mxu0  ;;  %v1337_v45 = vpop.f32.mrb[114].mxu1 }
 0x1bf   :  { %1620 = vst.msk [vmem:[%s4129_s3 + $0x1c0] sm:$0xff] %vm1563_vm5, %v1472_v42  ;;  %1694 = vst.msk [vmem:[%s4129_s3 + $0x410] sm:$0xff] %vm1563_vm5, %v1546_v43  ;;  %v968_v46 = vadd.f32 %v3780_v28, %v967_v44  ;;  %v2191_v47 = vpop.f32.mrb[115].mxu0  ;;  %v1338_v49 = vadd.f32 %v3780_v28, %v1337_v45  ;;  %v2413_v50 = vpop.f32.mrb[115].mxu1 }
 0x1c1   :  { %v1473_v51 = vmax.f32 %v968_v46, 0.0  ;;  %v1547_v52 = vmax.f32 %v1338_v49, 0.0 }
 0x1c2   :  { %v972_v53 = vpop.f32.mrb[116].mxu0  ;;  %v1342_v54 = vpop.f32.mrb[116].mxu1 }
 0x1c3   :  { %1621 = vst.msk [vmem:[%s4129_s3 + $0x1c8] sm:$0xff] %vm1563_vm5, %v1473_v51  ;;  %1695 = vst.msk [vmem:[%s4129_s3 + $0x418] sm:$0xff] %vm1563_vm5, %v1547_v52  ;;  %v973_v55 = vadd.f32 %v3780_v28, %v972_v53  ;;  %v2194_v56 = vpop.f32.mrb[117].mxu0  ;;  %v1343_v57 = vadd.f32 %v3780_v28, %v1342_v54  ;;  %v2416_v58 = vpop.f32.mrb[117].mxu1 }
 0x1c5   :  { %v1474_v59 = vmax.f32 %v973_v55, 0.0  ;;  %v1548_v60 = vmax.f32 %v1343_v57, 0.0 }
 0x1c6   :  { %v977_v61 = vpop.f32.mrb[118].mxu0  ;;  %v1347_v62 = vpop.f32.mrb[118].mxu1 }
 0x1c7   :  { %1622 = vst.msk [vmem:[%s4129_s3 + $0x1d0] sm:$0xff] %vm1563_vm5, %v1474_v59  ;;  %1696 = vst.msk [vmem:[%s4129_s3 + $0x420] sm:$0xff] %vm1563_vm5, %v1548_v60  ;;  %v978_v63 = vadd.f32 %v3780_v28, %v977_v61  ;;  %v2197_v0 = vpop.f32.mrb[119].mxu0  ;;  %v1348_v1 = vadd.f32 %v3780_v28, %v1347_v62  ;;  %v2419_v4 = vpop.f32.mrb[119].mxu1 }
 0x1c9   :  { %v1475_v2 = vmax.f32 %v978_v63, 0.0  ;;  %v1549_v3 = vmax.f32 %v1348_v1, 0.0 }
 0x1ca   :  { %v982_v5 = vpop.f32.mrb[120].mxu0  ;;  %v1352_v6 = vpop.f32.mrb[120].mxu1 }
 0x1cb   :  { %1623 = vst.msk [vmem:[%s4129_s3 + $0x1d8] sm:$0xff] %vm1563_vm5, %v1475_v2  ;;  %1697 = vst.msk [vmem:[%s4129_s3 + $0x428] sm:$0xff] %vm1563_vm5, %v1549_v3  ;;  %v983_v7 = vadd.f32 %v3780_v28, %v982_v5  ;;  %v2200_v8 = vpop.f32.mrb[121].mxu0  ;;  %v1353_v9 = vadd.f32 %v3780_v28, %v1352_v6  ;;  %v2422_v10 = vpop.f32.mrb[121].mxu1 }
 0x1cd   :  { %v1476_v11 = vmax.f32 %v983_v7, 0.0  ;;  %v1550_v12 = vmax.f32 %v1353_v9, 0.0 }
 0x1ce   :  { %v987_v13 = vpop.f32.mrb[122].mxu0  ;;  %v1357_v14 = vpop.f32.mrb[122].mxu1 }
 0x1cf   :  { %1624 = vst.msk [vmem:[%s4129_s3 + $0x1e0] sm:$0xff] %vm1563_vm5, %v1476_v11  ;;  %1698 = vst.msk [vmem:[%s4129_s3 + $0x430] sm:$0xff] %vm1563_vm5, %v1550_v12  ;;  %v988_v15 = vadd.f32 %v3780_v28, %v987_v13  ;;  %v2203_v16 = vpop.f32.mrb[123].mxu0  ;;  %v1358_v17 = vadd.f32 %v3780_v28, %v1357_v14  ;;  %v2425_v18 = vpop.f32.mrb[123].mxu1 }
 0x1d1   :  { %v1477_v19 = vmax.f32 %v988_v15, 0.0  ;;  %v1551_v20 = vmax.f32 %v1358_v17, 0.0 }
 0x1d2   :  { %v992_v21 = vpop.f32.mrb[124].mxu0  ;;  %v1362_v22 = vpop.f32.mrb[124].mxu1 }
 0x1d3   :  { %1625 = vst.msk [vmem:[%s4129_s3 + $0x1e8] sm:$0xff] %vm1563_vm5, %v1477_v19  ;;  %1699 = vst.msk [vmem:[%s4129_s3 + $0x438] sm:$0xff] %vm1563_vm5, %v1551_v20  ;;  %v993_v23 = vadd.f32 %v3780_v28, %v992_v21  ;;  %v2206_v24 = vpop.f32.mrb[125].mxu0  ;;  %v1363_v25 = vadd.f32 %v3780_v28, %v1362_v22  ;;  %v2428_v26 = vpop.f32.mrb[125].mxu1 }
 0x1d5   :  { %v1478_v27 = vmax.f32 %v993_v23, 0.0  ;;  %v1552_v48 = vmax.f32 %v1363_v25, 0.0 }
 0x1d6   :  { %v997_v29 = vpop.f32.mrb[126].mxu0  ;;  %v1367_v30 = vpop.f32.mrb[126].mxu1 }
 0x1d7   :  { %1626 = vst.msk [vmem:[%s4129_s3 + $0x1f0] sm:$0xff] %vm1563_vm5, %v1478_v27  ;;  %1700 = vst.msk [vmem:[%s4129_s3 + $0x440] sm:$0xff] %vm1563_vm5, %v1552_v48  ;;  %v998_v31 = vadd.f32 %v3780_v28, %v997_v29  ;;  %v2209_v32 = vpop.f32.mrb[127].mxu0  ;;  %v1368_v33 = vadd.f32 %v3780_v28, %v1367_v30  ;;  %v2431_v34 = vpop.f32.mrb[127].mxu1 }
 0x1d9   :  { %v1479_v35 = vmax.f32 %v998_v31, 0.0  ;;  %v1553_v36 = vmax.f32 %v1368_v33, 0.0 }
 0x1da   :  { %v1002_v37 = vpop.f32.mrb[128].mxu0  ;;  %v1372_v38 = vpop.f32.mrb[128].mxu1 }
 0x1db   :  { %1627 = vst.msk [vmem:[%s4129_s3 + $0x1f8] sm:$0xff] %vm1563_vm5, %v1479_v35  ;;  %1701 = vst.msk [vmem:[%s4129_s3 + $0x448] sm:$0xff] %vm1563_vm5, %v1553_v36  ;;  %v1003_v39 = vadd.f32 %v3780_v28, %v1002_v37  ;;  %v2212_v40 = vpop.f32.mrb[129].mxu0  ;;  %v1373_v41 = vadd.f32 %v3780_v28, %v1372_v38  ;;  %v2434_v42 = vpop.f32.mrb[129].mxu1 }
 0x1dd   :  { %v1480_v43 = vmax.f32 %v1003_v39, 0.0  ;;  %v1554_v44 = vmax.f32 %v1373_v41, 0.0 }
 0x1de   :  { %v1007_v45 = vpop.f32.mrb[130].mxu0  ;;  %v1377_v46 = vpop.f32.mrb[130].mxu1 }
 0x1df   :  { %1628 = vst.msk [vmem:[%s4129_s3 + $0x200] sm:$0xff] %vm1563_vm5, %v1480_v43  ;;  %1702 = vst.msk [vmem:[%s4129_s3 + $0x450] sm:$0xff] %vm1563_vm5, %v1554_v44  ;;  %v1008_v47 = vadd.f32 %v3780_v28, %v1007_v45  ;;  %v2215_v49 = vpop.f32.mrb[131].mxu0  ;;  %v1378_v50 = vadd.f32 %v3780_v28, %v1377_v46  ;;  %v2437_v51 = vpop.f32.mrb[131].mxu1 }
 0x1e1   :  { %v1481_v52 = vmax.f32 %v1008_v47, 0.0  ;;  %v1555_v53 = vmax.f32 %v1378_v50, 0.0 }
 0x1e2   :  { %v1012_v54 = vpop.f32.mrb[132].mxu0  ;;  %v1382_v55 = vpop.f32.mrb[132].mxu1 }
 0x1e3   :  { %1629 = vst.msk [vmem:[%s4129_s3 + $0x208] sm:$0xff] %vm1563_vm5, %v1481_v52  ;;  %1703 = vst.msk [vmem:[%s4129_s3 + $0x458] sm:$0xff] %vm1563_vm5, %v1555_v53  ;;  %v1013_v56 = vadd.f32 %v3780_v28, %v1012_v54  ;;  %v2218_v57 = vpop.f32.mrb[133].mxu0  ;;  %v1383_v58 = vadd.f32 %v3780_v28, %v1382_v55  ;;  %v2440_v59 = vpop.f32.mrb[133].mxu1 }
 0x1e5   :  { %v1482_v60 = vmax.f32 %v1013_v56, 0.0  ;;  %v1556_v61 = vmax.f32 %v1383_v58, 0.0 }
 0x1e6   :  { %v1017_v62 = vpop.f32.mrb[134].mxu0  ;;  %v1387_v63 = vpop.f32.mrb[134].mxu1 }
 0x1e7   :  { %1630 = vst.msk [vmem:[%s4129_s3 + $0x210] sm:$0xff] %vm1563_vm5, %v1482_v60  ;;  %1704 = vst.msk [vmem:[%s4129_s3 + $0x460] sm:$0xff] %vm1563_vm5, %v1556_v61  ;;  %v1018_v0 = vadd.f32 %v3780_v28, %v1017_v62  ;;  %v2221_v1 = vpop.f32.mrb[135].mxu0  ;;  %v1388_v4 = vadd.f32 %v3780_v28, %v1387_v63  ;;  %v2443_v2 = vpop.f32.mrb[135].mxu1 }
 0x1e9   :  { %v1483_v3 = vmax.f32 %v1018_v0, 0.0  ;;  %v1557_v5 = vmax.f32 %v1388_v4, 0.0 }
 0x1ea   :  { %v1022_v6 = vpop.f32.mrb[136].mxu0  ;;  %v1392_v7 = vpop.f32.mrb[136].mxu1 }
 0x1eb   :  { %1631 = vst.msk [vmem:[%s4129_s3 + $0x218] sm:$0xff] %vm1563_vm5, %v1483_v3  ;;  %1705 = vst.msk [vmem:[%s4129_s3 + $0x468] sm:$0xff] %vm1563_vm5, %v1557_v5  ;;  %v1023_v8 = vadd.f32 %v3780_v28, %v1022_v6  ;;  %v2224_v9 = vpop.f32.mrb[137].mxu0  ;;  %v1393_v10 = vadd.f32 %v3780_v28, %v1392_v7  ;;  %v2446_v11 = vpop.f32.mrb[137].mxu1 }
 0x1ed   :  { %v1484_v12 = vmax.f32 %v1023_v8, 0.0  ;;  %v1558_v13 = vmax.f32 %v1393_v10, 0.0 }
 0x1ee   :  { %v1027_v14 = vpop.f32.mrb[138].mxu0  ;;  %v1397_v15 = vpop.f32.mrb[138].mxu1 }
 0x1ef   :  { %1632 = vst.msk [vmem:[%s4129_s3 + $0x220] sm:$0xff] %vm1563_vm5, %v1484_v12  ;;  %1706 = vst.msk [vmem:[%s4129_s3 + $0x470] sm:$0xff] %vm1563_vm5, %v1558_v13  ;;  %v1028_v16 = vadd.f32 %v3780_v28, %v1027_v14  ;;  %v2227_v17 = vpop.f32.mrb[139].mxu0  ;;  %v1398_v18 = vadd.f32 %v3780_v28, %v1397_v15  ;;  %v2449_v19 = vpop.f32.mrb[139].mxu1 }
 0x1f1   :  { %v1485_v20 = vmax.f32 %v1028_v16, 0.0  ;;  %v1559_v21 = vmax.f32 %v1398_v18, 0.0 }
 0x1f2   :  { %v1032_v22 = vpop.f32.mrb[140].mxu0  ;;  %v1402_v23 = vpop.f32.mrb[140].mxu1 }
 0x1f3   :  { %1633 = vst.msk [vmem:[%s4129_s3 + $0x228] sm:$0xff] %vm1563_vm5, %v1485_v20  ;;  %1707 = vst.msk [vmem:[%s4129_s3 + $0x478] sm:$0xff] %vm1563_vm5, %v1559_v21  ;;  %v1033_v24 = vadd.f32 %v3780_v28, %v1032_v22  ;;  %v2230_v25 = vpop.f32.mrb[141].mxu0  ;;  %v1403_v26 = vadd.f32 %v3780_v28, %v1402_v23  ;;  %v2452_v27 = vpop.f32.mrb[141].mxu1 }
 0x1f5   :  { %v1486_v48 = vmax.f32 %v1033_v24, 0.0  ;;  %v1560_v29 = vmax.f32 %v1403_v26, 0.0 }
 0x1f6   :  { %v1037_v30 = vpop.f32.mrb[142].mxu0  ;;  %v1407_v31 = vpop.f32.mrb[142].mxu1 }
 0x1f7   :  { %1634 = vst.msk [vmem:[%s4129_s3 + $0x230] sm:$0xff] %vm1563_vm5, %v1486_v48  ;;  %1708 = vst.msk [vmem:[%s4129_s3 + $0x480] sm:$0xff] %vm1563_vm5, %v1560_v29  ;;  %v1038_v32 = vadd.f32 %v3780_v28, %v1037_v30  ;;  %v2233_v33 = vpop.f32.mrb[143].mxu0  ;;  %v1408_v34 = vadd.f32 %v3780_v28, %v1407_v31  ;;  %v2455_v35 = vpop.f32.mrb[143].mxu1 }
 0x1f9   :  { %v1487_v36 = vmax.f32 %v1038_v32, 0.0  ;;  %v1561_v37 = vmax.f32 %v1408_v34, 0.0 }
 0x1fa   :  { %v1042_v38 = vpop.f32.mrb[144].mxu0  ;;  %v1412_v39 = vpop.f32.mrb[144].mxu1 }
 0x1fb   :  { %1635 = vst.msk [vmem:[%s4129_s3 + $0x238] sm:$0xff] %vm1563_vm5, %v1487_v36  ;;  %1709 = vst.msk [vmem:[%s4129_s3 + $0x488] sm:$0xff] %vm1563_vm5, %v1561_v37  ;;  %v1043_v40 = vadd.f32 %v3780_v28, %v1042_v38  ;;  %v2236_v41 = vpop.f32.mrb[145].mxu0  ;;  %v1413_v42 = vadd.f32 %v3780_v28, %v1412_v39  ;;  %v2458_v43 = vpop.f32.mrb[145].mxu1 }
 0x1fd   :  { %v1488_v44 = vmax.f32 %v1043_v40, 0.0  ;;  %v1562_v45 = vmax.f32 %v1413_v42, 0.0 }
 0x1fe   :  { %v1047_v46 = vpop.f32.mrb[146].mxu0 }
 0x1ff   :  { %1636 = vst.msk [vmem:[%s4129_s3 + $0x240] sm:$0xff] %vm1563_vm5, %v1488_v44  ;;  %v1048_v47 = vadd.f32 %v3780_v28, %v1047_v46  ;;  %v2239_v49 = vpop.f32.mrb[147].mxu0 }
 0x200   :  { %1711 = vst.msk [vmem:[%s4129_s3 + $0x490] sm:$0x3] %vm1710_vm6, %v1562_v45 }
 0x201   :  { %v1489_v50 = vmax.f32 %v1048_v47, 0.0 }
 0x203   :  { %1637 = vst.msk [vmem:[%s4129_s3 + $0x248] sm:$0xff] %vm1563_vm5, %v1489_v50 }

// kernel: _lambda_.17
= control target key start
LH: loop header
LB: loop body
LE: loop exit
PB: predicated region body
PF: predicated region fallthrough
CT: control target
= control target key end

     0   :  { %v1510_v0 = vmov 0.0|0.0   ;;  %vm263_vm0 = vcmask 523264   ;;  %vm1138_vm1 = vcmask 517120   ;;  %s2688_s1 = inlined_call_operand.vmem [shape: f32[576,64], index: 1, kind: input, shape index: {}]   ;;  %s2689_s0 = inlined_call_operand.vmem [shape: f32[266,576], index: 0, kind: input, shape index: {}]   ;;  %s2690_s2 = inlined_call_operand.vmem [shape: f32[1,64], index: 2, kind: input, shape index: {}]   ;;  %s2691_s3 = inlined_call_operand.vmem [shape: f32[266,64], index: 3, kind: output, shape index: {}]  }
   0x1   :  { %1288 = vmatprep.subr.bf16.mxu0 %v1510_v0  ;;  %1400 = vmatprep.subr.bf16.mxu1 %v1510_v0  ;;  %v184_v1 = vld [vmem:[%s2688_s1] sm:$0xff]  ;;  %v185_v2 = vld [vmem:[%s2688_s1 + $0x8] sm:$0xff]  ;;  %v186_v6 = vld [vmem:[%s2688_s1 + $0x10] sm:$0xff] }
   0x2   :  { %v216_v3 = vld [vmem:[%s2688_s1 + $0x100] sm:$0xff]  ;;  %v1289_v4 = vpack.c.bf16 %v185_v2, %v184_v1  ;;  %v217_v5 = vld [vmem:[%s2688_s1 + $0x108] sm:$0xff]  ;;  %v187_v7 = vld [vmem:[%s2688_s1 + $0x18] sm:$0xff] }
   0x3   :  { %v1551_v8 = vpack.c.bf16 %v217_v5, %v216_v3  ;;  %v218_v9 = vld [vmem:[%s2688_s1 + $0x110] sm:$0xff]  ;;  %v219_v10 = vld [vmem:[%s2688_s1 + $0x118] sm:$0xff]  ;;  %v1292_v11 = vpack.c.bf16 %v187_v7, %v186_v6  ;;  %v188_v13 = vld [vmem:[%s2688_s1 + $0x20] sm:$0xff] }
   0x4   :  { %1290 = vmatpush1.bf16.msra.mxu0 %v1289_v4  ;;  %v1561_v12 = vpack.c.bf16 %v219_v10, %v218_v9  ;;  %v189_v14 = vld [vmem:[%s2688_s1 + $0x28] sm:$0xff]  ;;  %v220_v15 = vld [vmem:[%s2688_s1 + $0x120] sm:$0xff]  ;;  %v190_v19 = vld [vmem:[%s2688_s1 + $0x30] sm:$0xff] }
   0x5   :  { %1416 = vmatpush1.bf16.msra.mxu1 %v1551_v8  ;;  %1291 = vmatprep.subr.bf16.mxu0 %v1510_v0  ;;  %v221_v16 = vld [vmem:[%s2688_s1 + $0x128] sm:$0xff]  ;;  %v1295_v17 = vpack.c.bf16 %v189_v14, %v188_v13  ;;  %v191_v20 = vld [vmem:[%s2688_s1 + $0x38] sm:$0xff]  ;;  %v222_v21 = vld [vmem:[%s2688_s1 + $0x130] sm:$0xff] }
   0x6   :  { %1401 = vmatprep.subr.bf16.mxu1 %v1510_v0  ;;  %v1578_v18 = vpack.c.bf16 %v221_v16, %v220_v15  ;;  %v223_v22 = vld [vmem:[%s2688_s1 + $0x138] sm:$0xff]  ;;  %v1298_v23 = vpack.c.bf16 %v191_v20, %v190_v19  ;;  %v192_v25 = vld [vmem:[%s2688_s1 + $0x40] sm:$0xff]  ;;  %v193_v26 = vld [vmem:[%s2688_s1 + $0x48] sm:$0xff] }
   0x7   :  { %v1595_v24 = vpack.c.bf16 %v223_v22, %v222_v21  ;;  %v224_v27 = vld [vmem:[%s2688_s1 + $0x140] sm:$0xff]  ;;  %v225_v28 = vld [vmem:[%s2688_s1 + $0x148] sm:$0xff]  ;;  %v1301_v29 = vpack.c.bf16 %v193_v26, %v192_v25  ;;  %v194_v31 = vld [vmem:[%s2688_s1 + $0x50] sm:$0xff] }
   0x8   :  { %1293 = vmatpush1.bf16.msra.mxu0 %v1292_v11  ;;  %v1612_v30 = vpack.c.bf16 %v225_v28, %v224_v27  ;;  %v195_v32 = vld [vmem:[%s2688_s1 + $0x58] sm:$0xff]  ;;  %v226_v33 = vld [vmem:[%s2688_s1 + $0x150] sm:$0xff]  ;;  %v196_v37 = vld [vmem:[%s2688_s1 + $0x60] sm:$0xff] }
   0x9   :  { %1417 = vmatpush1.bf16.msra.mxu1 %v1561_v12  ;;  %1294 = vmatprep.subr.bf16.mxu0 %v1510_v0  ;;  %v227_v34 = vld [vmem:[%s2688_s1 + $0x158] sm:$0xff]  ;;  %v1304_v35 = vpack.c.bf16 %v195_v32, %v194_v31  ;;  %v197_v38 = vld [vmem:[%s2688_s1 + $0x68] sm:$0xff]  ;;  %v228_v39 = vld [vmem:[%s2688_s1 + $0x160] sm:$0xff] }
   0xa   :  { %1402 = vmatprep.subr.bf16.mxu1 %v1510_v0  ;;  %v1629_v36 = vpack.c.bf16 %v227_v34, %v226_v33  ;;  %v229_v40 = vld [vmem:[%s2688_s1 + $0x168] sm:$0xff]  ;;  %v62_v42 = vld [vmem:[%s2689_s0 + $0x180] sm:$0xff]  ;;  %v1307_v43 = vpack.c.bf16 %v197_v38, %v196_v37  ;;  %v198_v45 = vld [vmem:[%s2688_s1 + $0x70] sm:$0xff] }
   0xb   :  { %v15_v41 = vld [vmem:[%s2689_s0 + $0x8] sm:$0xff]  ;;  %710 = vmatprep.mubr.f32.mxu1 %v62_v42  ;;  %v1652_v44 = vpack.c.bf16 %v229_v40, %v228_v39  ;;  %v199_v46 = vld [vmem:[%s2688_s1 + $0x78] sm:$0xff]  ;;  %v230_v47 = vld [vmem:[%s2688_s1 + $0x170] sm:$0xff] }
   0xc   :  { %1296 = vmatpush1.bf16.msra.mxu0 %v1295_v17  ;;  %430 = vmatprep.mubr.f32.mxu0 %v15_v41  ;;  %v231_v48 = vld [vmem:[%s2688_s1 + $0x178] sm:$0xff]  ;;  %v1310_v49 = vpack.c.bf16 %v199_v46, %v198_v45  ;;  %v200_v51 = vld [vmem:[%s2688_s1 + $0x80] sm:$0xff]  ;;  %v201_v52 = vld [vmem:[%s2688_s1 + $0x88] sm:$0xff] }
   0xd   :  { %1418 = vmatpush1.bf16.msra.mxu1 %v1578_v18  ;;  %1297 = vmatprep.subr.bf16.mxu0 %v1510_v0  ;;  %v1669_v50 = vpack.c.bf16 %v231_v48, %v230_v47  ;;  %v232_v53 = vld [vmem:[%s2688_s1 + $0x180] sm:$0xff]  ;;  %v233_v54 = vld [vmem:[%s2688_s1 + $0x188] sm:$0xff]  ;;  %v1313_v55 = vpack.c.bf16 %v201_v52, %v200_v51  ;;  %v202_v57 = vld [vmem:[%s2688_s1 + $0x90] sm:$0xff] }
   0xe   :  { %1403 = vmatprep.subr.bf16.mxu1 %v1510_v0  ;;  %v1686_v56 = vpack.c.bf16 %v233_v54, %v232_v53  ;;  %v203_v58 = vld [vmem:[%s2688_s1 + $0x98] sm:$0xff]  ;;  %v234_v59 = vld [vmem:[%s2688_s1 + $0x190] sm:$0xff]  ;;  %v204_v63 = vld [vmem:[%s2688_s1 + $0xa0] sm:$0xff] }
   0xf   :  { %v235_v60 = vld [vmem:[%s2688_s1 + $0x198] sm:$0xff]  ;;  %v1316_v61 = vpack.c.bf16 %v203_v58, %v202_v57  ;;  %v205_v1 = vld [vmem:[%s2688_s1 + $0xa8] sm:$0xff]  ;;  %v236_v2 = vld [vmem:[%s2688_s1 + $0x1a0] sm:$0xff] }
  0x10   :  { %1299 = vmatpush1.bf16.msra.mxu0 %v1298_v23  ;;  %v1703_v62 = vpack.c.bf16 %v235_v60, %v234_v59  ;;  %v237_v3 = vld [vmem:[%s2688_s1 + $0x1a8] sm:$0xff]  ;;  %v1319_v4 = vpack.c.bf16 %v205_v1, %v204_v63  ;;  %v206_v6 = vld [vmem:[%s2688_s1 + $0xb0] sm:$0xff]  ;;  %v207_v7 = vld [vmem:[%s2688_s1 + $0xb8] sm:$0xff] }
  0x11   :  { %1419 = vmatpush1.bf16.msra.mxu1 %v1595_v24  ;;  %1300 = vmatprep.subr.bf16.mxu0 %v1510_v0  ;;  %v1720_v5 = vpack.c.bf16 %v237_v3, %v236_v2  ;;  %v238_v9 = vld [vmem:[%s2688_s1 + $0x1b0] sm:$0xff]  ;;  %v239_v10 = vld [vmem:[%s2688_s1 + $0x1b8] sm:$0xff]  ;;  %v1322_v11 = vpack.c.bf16 %v207_v7, %v206_v6  ;;  %v208_v14 = vld [vmem:[%s2688_s1 + $0xc0] sm:$0xff] }
  0x12   :  { %1404 = vmatprep.subr.bf16.mxu1 %v1510_v0  ;;  %v1737_v13 = vpack.c.bf16 %v239_v10, %v238_v9  ;;  %v209_v15 = vld [vmem:[%s2688_s1 + $0xc8] sm:$0xff]  ;;  %v240_v16 = vld [vmem:[%s2688_s1 + $0x1c0] sm:$0xff]  ;;  %v210_v21 = vld [vmem:[%s2688_s1 + $0xd0] sm:$0xff] }
  0x13   :  { %v241_v17 = vld [vmem:[%s2688_s1 + $0x1c8] sm:$0xff]  ;;  %v1325_v19 = vpack.c.bf16 %v209_v15, %v208_v14  ;;  %v211_v22 = vld [vmem:[%s2688_s1 + $0xd8] sm:$0xff]  ;;  %v242_v23 = vld [vmem:[%s2688_s1 + $0x1d0] sm:$0xff] }
  0x14   :  { %1302 = vmatpush1.bf16.msra.mxu0 %v1301_v29  ;;  %v1754_v20 = vpack.c.bf16 %v241_v17, %v240_v16  ;;  %v243_v25 = vld [vmem:[%s2688_s1 + $0x1d8] sm:$0xff]  ;;  %v1328_v26 = vpack.c.bf16 %v211_v22, %v210_v21  ;;  %v212_v28 = vld [vmem:[%s2688_s1 + $0xe0] sm:$0xff]  ;;  %v213_v29 = vld [vmem:[%s2688_s1 + $0xe8] sm:$0xff] }
  0x15   :  { %1420 = vmatpush1.bf16.msra.mxu1 %v1612_v30  ;;  %1303 = vmatprep.subr.bf16.mxu0 %v1510_v0  ;;  %v1771_v27 = vpack.c.bf16 %v243_v25, %v242_v23  ;;  %v244_v31 = vld [vmem:[%s2688_s1 + $0x1e0] sm:$0xff]  ;;  %v245_v32 = vld [vmem:[%s2688_s1 + $0x1e8] sm:$0xff]  ;;  %v1331_v33 = vpack.c.bf16 %v213_v29, %v212_v28  ;;  %v215_v37 = vld [vmem:[%s2688_s1 + $0xf8] sm:$0xff] }
  0x16   :  { %1405 = vmatprep.subr.bf16.mxu1 %v1510_v0  ;;  %v1788_v34 = vpack.c.bf16 %v245_v32, %v244_v31  ;;  %v246_v38 = vld [vmem:[%s2688_s1 + $0x1f0] sm:$0xff]  ;;  %v247_v39 = vld [vmem:[%s2688_s1 + $0x1f8] sm:$0xff]  ;;  %v248_v40 = vld [vmem:[%s2688_s1 + $0x200] sm:$0xff] }
  0x17   :  { %v249_v41 = vld [vmem:[%s2688_s1 + $0x208] sm:$0xff]  ;;  %v14_v46 = vld [vmem:[%s2689_s0] sm:$0xff]  ;;  %v250_v47 = vld [vmem:[%s2688_s1 + $0x210] sm:$0xff] }
  0x18   :  { %1305 = vmatpush1.bf16.msra.mxu0 %v1304_v35  ;;  %v214_v35 = vld [vmem:[%s2688_s1 + $0xf0] sm:$0xff]  ;;  %v1384_v45 = vpack.c.bf16 %v249_v41, %v248_v40  ;;  %v251_v48 = vld [vmem:[%s2688_s1 + $0x218] sm:$0xff]  ;;  %v67_v52 = vld [vmem:[%s2689_s0 + $0x1a8] sm:$0xff] }
  0x19   :  { %1421 = vmatpush1.bf16.msra.mxu1 %v1629_v36  ;;  %1306 = vmatprep.subr.bf16.mxu0 %v1510_v0  ;;  %v1334_v42 = vpack.c.bf16 %v215_v37, %v214_v35  ;;  %v20_v51 = vld [vmem:[%s2689_s0 + $0x30] sm:$0xff]  ;;  %v1388_v53 = vpack.c.bf16 %v251_v48, %v250_v47  ;;  %v19_v54 = vld [vmem:[%s2689_s0 + $0x28] sm:$0xff]  ;;  %v66_v58 = vld [vmem:[%s2689_s0 + $0x1a0] sm:$0xff] }
  0x1a   :  { %1406 = vmatprep.subr.bf16.mxu1 %v1510_v0  ;;  %v253_v57 = vld [vmem:[%s2688_s1 + $0x228] sm:$0xff]  ;;  %v72_v59 = vld [vmem:[%s2689_s0 + $0x1d0] sm:$0xff]  ;;  %v255_v1 = vld [vmem:[%s2688_s1 + $0x238] sm:$0xff] }
  0x1b   :  { %v254_v63 = vld [vmem:[%s2688_s1 + $0x230] sm:$0xff]  ;;  %v71_v2 = vld [vmem:[%s2689_s0 + $0x1c8] sm:$0xff]  ;;  %v30_v3 = vld [vmem:[%s2689_s0 + $0x80] sm:$0xff] }
  0x1c   :  { %1308 = vmatpush1.bf16.msra.mxu0 %v1307_v43  ;;  %v1811_v43 = vpack.c.bf16 %v247_v39, %v246_v38  ;;  %v1396_v6 = vpack.c.bf16 %v255_v1, %v254_v63  ;;  %v76_v7 = vld [vmem:[%s2689_s0 + $0x1f0] sm:$0xff]  ;;  %v35_v9 = vld [vmem:[%s2689_s0 + $0xa8] sm:$0xff]  ;;  %v82_v10 = vld [vmem:[%s2689_s0 + $0x220] sm:$0xff] }
  0x1d   :  { %1422 = vmatpush1.bf16.msra.mxu1 %v1652_v44  ;;  %1309 = vmatprep.subr.bf16.mxu0 %v1510_v0  ;;  %v40_v14 = vld [vmem:[%s2689_s0 + $0xd0] sm:$0xff]  ;;  %v87_v15 = vld [vmem:[%s2689_s0 + $0x248] sm:$0xff]  ;;  %v86_v17 = vld [vmem:[%s2689_s0 + $0x240] sm:$0xff] }
  0x1e   :  { %1407 = vmatprep.subr.bf16.mxu1 %v1510_v0  ;;  %v39_v16 = vld [vmem:[%s2689_s0 + $0xc8] sm:$0xff]  ;;  %v44_v21 = vld [vmem:[%s2689_s0 + $0xf0] sm:$0xff]  ;;  %v97_v23 = vld [vmem:[%s2689_s0 + $0x298] sm:$0xff] }
  0x1f   :  { %v91_v22 = vld [vmem:[%s2689_s0 + $0x268] sm:$0xff]  ;;  %v49_v25 = vld [vmem:[%s2689_s0 + $0x118] sm:$0xff]  ;;  %v102_v28 = vld [vmem:[%s2689_s0 + $0x2c0] sm:$0xff] }
  0x20   :  { %1311 = vmatpush1.bf16.msra.mxu0 %v1310_v49  ;;  %v61_v49 = vld [vmem:[%s2689_s0 + $0x178] sm:$0xff]  ;;  %v54_v29 = vld [vmem:[%s2689_s0 + $0x140] sm:$0xff]  ;;  %v107_v32 = vld [vmem:[%s2689_s0 + $0x2e8] sm:$0xff] }
  0x21   :  { %1423 = vmatpush1.bf16.msra.mxu1 %v1669_v50  ;;  %1312 = vmatprep.subr.bf16.mxu0 %v1510_v0  ;;  %v101_v31 = vld [vmem:[%s2689_s0 + $0x2b8] sm:$0xff]  ;;  %v106_v35 = vld [vmem:[%s2689_s0 + $0x2e0] sm:$0xff]  ;;  %v112_v37 = vld [vmem:[%s2689_s0 + $0x310] sm:$0xff] }
  0x22   :  { %1408 = vmatprep.subr.bf16.mxu1 %v1510_v0  ;;  %v64_v38 = vld [vmem:[%s2689_s0 + $0x190] sm:$0xff]  ;;  %v111_v39 = vld [vmem:[%s2689_s0 + $0x308] sm:$0xff]  ;;  %v117_v40 = vld [vmem:[%s2689_s0 + $0x338] sm:$0xff] }
  0x23   :  { %v69_v41 = vld [vmem:[%s2689_s0 + $0x1b8] sm:$0xff]  ;;  %v127_v48 = vld [vmem:[%s2689_s0 + $0x388] sm:$0xff]  ;;  %v146_v63 = vld [vmem:[%s2689_s0 + $0x420] sm:$0xff] }
  0x24   :  { %1314 = vmatpush1.bf16.msra.mxu0 %v1313_v55  ;;  %v252_v55 = vld [vmem:[%s2688_s1 + $0x220] sm:$0xff]  ;;  %v121_v47 = vld [vmem:[%s2689_s0 + $0x358] sm:$0xff]  ;;  %v152_v1 = vld [vmem:[%s2689_s0 + $0x450] sm:$0xff] }
  0x25   :  { %1424 = vmatpush1.bf16.msra.mxu1 %v1686_v56  ;;  %1315 = vmatprep.subr.bf16.mxu0 %v1510_v0  ;;  %v1392_v60 = vpack.c.bf16 %v253_v57, %v252_v55  ;;  %v137_v55 = vld [vmem:[%s2689_s0 + $0x3d8] sm:$0xff] }
  0x26   :  { %1409 = vmatprep.subr.bf16.mxu1 %v1510_v0  ;;  %v89_v57 = vld [vmem:[%s2689_s0 + $0x258] sm:$0xff] }
  0x28   :  { %1317 = vmatpush1.bf16.msra.mxu0 %v1316_v61  ;;  %v24_v61 = vld [vmem:[%s2689_s0 + $0x50] sm:$0xff] }
  0x29   :  { %1425 = vmatpush1.bf16.msra.mxu1 %v1703_v62  ;;  %1318 = vmatprep.subr.bf16.mxu0 %v1510_v0 }
  0x2a   :  { %1410 = vmatprep.subr.bf16.mxu1 %v1510_v0 }
  0x2c   :  { %1320 = vmatpush1.bf16.msra.mxu0 %v1319_v4  ;;  %v77_v4 = vld [vmem:[%s2689_s0 + $0x1f8] sm:$0xff] }
  0x2d   :  { %1426 = vmatpush1.bf16.msra.mxu1 %v1720_v5  ;;  %1321 = vmatprep.subr.bf16.mxu0 %v1510_v0 }
  0x2e   :  { %1411 = vmatprep.subr.bf16.mxu1 %v1510_v0 }
  0x30   :  { %1323 = vmatpush1.bf16.msra.mxu0 %v1322_v11  ;;  %v34_v11 = vld [vmem:[%s2689_s0 + $0xa0] sm:$0xff] }
  0x31   :  { %1427 = vmatpush1.bf16.msra.mxu1 %v1737_v13  ;;  %1324 = vmatprep.subr.bf16.mxu0 %v1510_v0 }
  0x32   :  { %1412 = vmatprep.subr.bf16.mxu1 %v1510_v0 }
  0x34   :  { %1326 = vmatpush1.bf16.msra.mxu0 %v1325_v19  ;;  %v92_v19 = vld [vmem:[%s2689_s0 + $0x270] sm:$0xff] }
  0x35   :  { %1428 = vmatpush1.bf16.msra.mxu1 %v1754_v20  ;;  %1327 = vmatprep.subr.bf16.mxu0 %v1510_v0 }
  0x36   :  { %1413 = vmatprep.subr.bf16.mxu1 %v1510_v0 }
  0x38   :  { %1329 = vmatpush1.bf16.msra.mxu0 %v1328_v26  ;;  %v96_v26 = vld [vmem:[%s2689_s0 + $0x290] sm:$0xff] }
  0x39   :  { %1429 = vmatpush1.bf16.msra.mxu1 %v1771_v27  ;;  %1330 = vmatprep.subr.bf16.mxu0 %v1510_v0 }
  0x3a   :  { %1414 = vmatprep.subr.bf16.mxu1 %v1510_v0 }
  0x3c   :  { %1332 = vmatpush1.bf16.msra.mxu0 %v1331_v33  ;;  %v59_v33 = vld [vmem:[%s2689_s0 + $0x168] sm:$0xff] }
  0x3d   :  { %1430 = vmatpush1.bf16.msra.mxu1 %v1788_v34  ;;  %1333 = vmatprep.subr.bf16.mxu0 %v1510_v0 }
  0x3e   :  { %1415 = vmatprep.subr.bf16.mxu1 %v1510_v0 }
  0x40   :  { %1335 = vmatpush1.bf16.msra.mxu0 %v1334_v42  ;;  %v116_v42 = vld [vmem:[%s2689_s0 + $0x330] sm:$0xff] }
  0x41   :  { %1431 = vmatpush1.bf16.msra.mxu1 %v1811_v43  ;;  %1336 = vmatprep.subr.bf16.mxu0 %v1510_v0 }
  0x42   :  { %1385 = vmatprep.subr.bf16.mxu1 %v1384_v45 }
  0x43   :  { %431 = vmatmul.mubr.f32.vlgmr.msra.gmra.mrb[0].mxu0 %v14_v46  ;;  %v74_v46 = vld [vmem:[%s2689_s0 + $0x1e0] sm:$0xff] }
  0x44   :  { %711 = vmatmul.mubr.f32.vlgmr.msra.gmra.mrb[0].mxu1 %v61_v49  ;;  %1338 = vmatpush1.bf16.msra.mxu0 %v1551_v8  ;;  %v25_v8 = vld [vmem:[%s2689_s0 + $0x58] sm:$0xff]  ;;  %v79_v49 = vld [vmem:[%s2689_s0 + $0x208] sm:$0xff] }
  0x45   :  { %435 = vmatprep.mubr.f32.mxu0 %v20_v51  ;;  %715 = vmatprep.mubr.f32.mxu1 %v67_v52  ;;  %v126_v51 = vld [vmem:[%s2689_s0 + $0x380] sm:$0xff]  ;;  %v132_v52 = vld [vmem:[%s2689_s0 + $0x3b0] sm:$0xff] }
  0x46   :  { %1387 = vmatpush3.bf16.msra.mxu1 %v1384_v45  ;;  %1339 = vmatprep.subr.bf16.mxu0 %v1510_v0  ;;  %v122_v45 = vld [vmem:[%s2689_s0 + $0x360] sm:$0xff] }
  0x47   :  { %436 = vmatmul.mubr.f32.gmra.mrb[2].mxu0 %v19_v54  ;;  %1389 = vmatprep.subr.bf16.mxu1 %v1388_v53  ;;  %v131_v54 = vld [vmem:[%s2689_s0 + $0x3a8] sm:$0xff] }
  0x48   :  { %716 = vmatmul.mubr.f32.gmra.mrb[2].mxu1 %v66_v58  ;;  %440 = vmatprep.mubr.f32.mxu0 %v25_v8  ;;  %v136_v58 = vld [vmem:[%s2689_s0 + $0x3d0] sm:$0xff]  ;;  %v142_v8 = vld [vmem:[%s2689_s0 + $0x400] sm:$0xff] }
  0x49   :  { %720 = vmatprep.mubr.f32.mxu1 %v72_v59  ;;  %1341 = vmatpush1.bf16.msra.mxu0 %v1561_v12  ;;  %v29_v12 = vld [vmem:[%s2689_s0 + $0x78] sm:$0xff]  ;;  %v94_v59 = vld [vmem:[%s2689_s0 + $0x280] sm:$0xff] }
  0x4a   :  { %1342 = vmatprep.subr.bf16.mxu0 %v1510_v0  ;;  %1391 = vmatpush3.bf16.msra.mxu1 %v1388_v53  ;;  %v84_v53 = vld [vmem:[%s2689_s0 + $0x230] sm:$0xff] }
  0x4b   :  { %441 = vmatmul.mubr.f32.gmra.mrb[4].mxu0 %v24_v61  ;;  %1393 = vmatprep.subr.bf16.mxu1 %v1392_v60  ;;  %v99_v61 = vld [vmem:[%s2689_s0 + $0x2a8] sm:$0xff] }
  0x4c   :  { %721 = vmatmul.mubr.f32.gmra.mrb[4].mxu1 %v71_v2  ;;  %445 = vmatprep.mubr.f32.mxu0 %v30_v3  ;;  %v104_v2 = vld [vmem:[%s2689_s0 + $0x2d0] sm:$0xff]  ;;  %v151_v3 = vld [vmem:[%s2689_s0 + $0x448] sm:$0xff] }
  0x4d   :  { %725 = vmatprep.mubr.f32.mxu1 %v77_v4  ;;  %1344 = vmatpush1.bf16.msra.mxu0 %v1578_v18  ;;  %v81_v18 = vld [vmem:[%s2689_s0 + $0x218] sm:$0xff]  ;;  %v110_v4 = vld [vmem:[%s2689_s0 + $0x300] sm:$0xff] }
  0x4e   :  { %1345 = vmatprep.subr.bf16.mxu0 %v1510_v0  ;;  %1395 = vmatpush3.bf16.msra.mxu1 %v1392_v60  ;;  %v141_v60 = vld [vmem:[%s2689_s0 + $0x3f8] sm:$0xff] }
  0x4f   :  { %446 = vmatmul.mubr.f32.gmra.mrb[6].mxu0 %v29_v12  ;;  %1397 = vmatprep.subr.bf16.mxu1 %v1396_v6  ;;  %v109_v12 = vld [vmem:[%s2689_s0 + $0x2f8] sm:$0xff] }
  0x50   :  { %726 = vmatmul.mubr.f32.gmra.mrb[6].mxu1 %v76_v7  ;;  %450 = vmatprep.mubr.f32.mxu0 %v35_v9  ;;  %v156_v7 = vld [vmem:[%s2689_s0 + $0x470] sm:$0xff]  ;;  %v115_v9 = vld [vmem:[%s2689_s0 + $0x328] sm:$0xff] }
  0x51   :  { %730 = vmatprep.mubr.f32.mxu1 %v82_v10  ;;  %1347 = vmatpush1.bf16.msra.mxu0 %v1595_v24  ;;  %v45_v24 = vld [vmem:[%s2689_s0 + $0xf8] sm:$0xff]  ;;  %v162_v10 = vld [vmem:[%s2689_s0 + $0x4a0] sm:$0xff] }
  0x52   :  { %1348 = vmatprep.subr.bf16.mxu0 %v1510_v0  ;;  %1399 = vmatpush3.bf16.msra.mxu1 %v1396_v6  ;;  %v157_v6 = vld [vmem:[%s2689_s0 + $0x478] sm:$0xff] }
  0x53   :  { %451 = vmatmul.mubr.f32.gmra.mrb[8].mxu0 %v34_v11  ;;  %v114_v11 = vld [vmem:[%s2689_s0 + $0x320] sm:$0xff] }
  0x54   :  { %731 = vmatmul.mubr.f32.gmra.mrb[8].mxu1 %v81_v18  ;;  %455 = vmatprep.mubr.f32.mxu0 %v40_v14  ;;  %v161_v18 = vld [vmem:[%s2689_s0 + $0x498] sm:$0xff]  ;;  %v120_v14 = vld [vmem:[%s2689_s0 + $0x350] sm:$0xff] }
  0x55   :  { %735 = vmatprep.mubr.f32.mxu1 %v87_v15  ;;  %1350 = vmatpush1.bf16.msra.mxu0 %v1612_v30  ;;  %v50_v30 = vld [vmem:[%s2689_s0 + $0x120] sm:$0xff]  ;;  %v167_v15 = vld [vmem:[%s2689_s0 + $0x4c8] sm:$0xff] }
  0x56   :  { %1351 = vmatprep.subr.bf16.mxu0 %v1510_v0 }
  0x57   :  { %456 = vmatmul.mubr.f32.gmra.mrb[10].mxu0 %v39_v16  ;;  %v119_v16 = vld [vmem:[%s2689_s0 + $0x348] sm:$0xff] }
  0x58   :  { %736 = vmatmul.mubr.f32.gmra.mrb[10].mxu1 %v86_v17  ;;  %460 = vmatprep.mubr.f32.mxu0 %v45_v24  ;;  %v166_v17 = vld [vmem:[%s2689_s0 + $0x4c0] sm:$0xff]  ;;  %v125_v24 = vld [vmem:[%s2689_s0 + $0x378] sm:$0xff] }
  0x59   :  { %740 = vmatprep.mubr.f32.mxu1 %v92_v19  ;;  %1353 = vmatpush1.bf16.msra.mxu0 %v1629_v36  ;;  %v55_v36 = vld [vmem:[%s2689_s0 + $0x148] sm:$0xff]  ;;  %v172_v19 = vld [vmem:[%s2689_s0 + $0x4f0] sm:$0xff] }
  0x5a   :  { %1354 = vmatprep.subr.bf16.mxu0 %v1510_v0 }
  0x5b   :  { %461 = vmatmul.mubr.f32.gmra.mrb[12].mxu0 %v44_v21  ;;  %v124_v21 = vld [vmem:[%s2689_s0 + $0x370] sm:$0xff] }
  0x5c   :  { %741 = vmatmul.mubr.f32.gmra.mrb[12].mxu1 %v91_v22  ;;  %465 = vmatprep.mubr.f32.mxu0 %v50_v30  ;;  %v171_v22 = vld [vmem:[%s2689_s0 + $0x4e8] sm:$0xff]  ;;  %v130_v30 = vld [vmem:[%s2689_s0 + $0x3a0] sm:$0xff] }
  0x5d   :  { %745 = vmatprep.mubr.f32.mxu1 %v97_v23  ;;  %1356 = vmatpush1.bf16.msra.mxu0 %v1652_v44  ;;  %v60_v44 = vld [vmem:[%s2689_s0 + $0x170] sm:$0xff]  ;;  %v177_v23 = vld [vmem:[%s2689_s0 + $0x518] sm:$0xff] }
  0x5e   :  { %1357 = vmatprep.subr.bf16.mxu0 %v1510_v0 }
  0x5f   :  { %466 = vmatmul.mubr.f32.gmra.mrb[14].mxu0 %v49_v25  ;;  %v129_v25 = vld [vmem:[%s2689_s0 + $0x398] sm:$0xff] }
  0x60   :  { %746 = vmatmul.mubr.f32.gmra.mrb[14].mxu1 %v96_v26  ;;  %470 = vmatprep.mubr.f32.mxu0 %v55_v36  ;;  %v176_v26 = vld [vmem:[%s2689_s0 + $0x510] sm:$0xff]  ;;  %v135_v36 = vld [vmem:[%s2689_s0 + $0x3c8] sm:$0xff] }
  0x61   :  { %750 = vmatprep.mubr.f32.mxu1 %v102_v28  ;;  %1359 = vmatpush1.bf16.msra.mxu0 %v1669_v50  ;;  %v65_v50 = vld [vmem:[%s2689_s0 + $0x198] sm:$0xff]  ;;  %v182_v28 = vld [vmem:[%s2689_s0 + $0x540] sm:$0x3] }
  0x62   :  { %1360 = vmatprep.subr.bf16.mxu0 %v1510_v0 }
  0x63   :  { %471 = vmatmul.mubr.f32.gmra.mrb[16].mxu0 %v54_v29  ;;  %v134_v29 = vld [vmem:[%s2689_s0 + $0x3c0] sm:$0xff] }
  0x64   :  { %751 = vmatmul.mubr.f32.gmra.mrb[16].mxu1 %v101_v31  ;;  %475 = vmatprep.mubr.f32.mxu0 %v60_v44  ;;  %v181_v31 = vld [vmem:[%s2689_s0 + $0x538] sm:$0x3]  ;;  %v140_v44 = vld [vmem:[%s2689_s0 + $0x3f0] sm:$0xff] }
  0x65   :  { %755 = vmatprep.mubr.f32.mxu1 %v107_v32  ;;  %1362 = vmatpush1.bf16.msra.mxu0 %v1686_v56  ;;  %v70_v56 = vld [vmem:[%s2689_s0 + $0x1c0] sm:$0xff] }
  0x66   :  { %1363 = vmatprep.subr.bf16.mxu0 %v1510_v0  ;;  %v18_v32 = vld [vmem:[%s2689_s0 + $0x20] sm:$0xff] }
  0x67   :  { %476 = vmatmul.mubr.f32.gmra.mrb[18].mxu0 %v59_v33  ;;  %v139_v33 = vld [vmem:[%s2689_s0 + $0x3e8] sm:$0xff] }
  0x68   :  { %756 = vmatmul.mubr.f32.gmra.mrb[18].mxu1 %v106_v35  ;;  %480 = vmatprep.mubr.f32.mxu0 %v65_v50  ;;  %v23_v35 = vld [vmem:[%s2689_s0 + $0x48] sm:$0xff]  ;;  %v145_v50 = vld [vmem:[%s2689_s0 + $0x418] sm:$0xff] }
  0x69   :  { %760 = vmatprep.mubr.f32.mxu1 %v112_v37  ;;  %1365 = vmatpush1.bf16.msra.mxu0 %v1703_v62  ;;  %v75_v62 = vld [vmem:[%s2689_s0 + $0x1e8] sm:$0xff]  ;;  %v28_v37 = vld [vmem:[%s2689_s0 + $0x70] sm:$0xff] }
  0x6a   :  { %1366 = vmatprep.subr.bf16.mxu0 %v1510_v0 }
  0x6b   :  { %481 = vmatmul.mubr.f32.gmra.mrb[20].mxu0 %v64_v38  ;;  %v144_v38 = vld [vmem:[%s2689_s0 + $0x410] sm:$0xff] }
  0x6c   :  { %761 = vmatmul.mubr.f32.gmra.mrb[20].mxu1 %v111_v39  ;;  %485 = vmatprep.mubr.f32.mxu0 %v70_v56  ;;  %v33_v39 = vld [vmem:[%s2689_s0 + $0x98] sm:$0xff]  ;;  %v150_v56 = vld [vmem:[%s2689_s0 + $0x440] sm:$0xff] }
  0x6d   :  { %765 = vmatprep.mubr.f32.mxu1 %v117_v40  ;;  %1368 = vmatpush1.bf16.msra.mxu0 %v1720_v5  ;;  %v80_v5 = vld [vmem:[%s2689_s0 + $0x210] sm:$0xff]  ;;  %v38_v40 = vld [vmem:[%s2689_s0 + $0xc0] sm:$0xff] }
  0x6e   :  { %1369 = vmatprep.subr.bf16.mxu0 %v1510_v0 }
  0x6f   :  { %486 = vmatmul.mubr.f32.gmra.mrb[22].mxu0 %v69_v41  ;;  %v149_v41 = vld [vmem:[%s2689_s0 + $0x438] sm:$0xff] }
  0x70   :  { %766 = vmatmul.mubr.f32.gmra.mrb[22].mxu1 %v116_v42  ;;  %490 = vmatprep.mubr.f32.mxu0 %v75_v62  ;;  %v43_v42 = vld [vmem:[%s2689_s0 + $0xe8] sm:$0xff] }
  0x71   :  { %770 = vmatprep.mubr.f32.mxu1 %v122_v45  ;;  %1371 = vmatpush1.bf16.msra.mxu0 %v1737_v13  ;;  %v85_v13 = vld [vmem:[%s2689_s0 + $0x238] sm:$0xff]  ;;  %v155_v62 = vld [vmem:[%s2689_s0 + $0x468] sm:$0xff]  ;;  %v48_v45 = vld [vmem:[%s2689_s0 + $0x110] sm:$0xff] }
  0x72   :  { %1372 = vmatprep.subr.bf16.mxu0 %v1510_v0 }
  0x73   :  { %491 = vmatmul.mubr.f32.gmra.mrb[24].mxu0 %v74_v46  ;;  %v154_v46 = vld [vmem:[%s2689_s0 + $0x460] sm:$0xff] }
  0x74   :  { %771 = vmatmul.mubr.f32.gmra.mrb[24].mxu1 %v121_v47  ;;  %495 = vmatprep.mubr.f32.mxu0 %v80_v5  ;;  %v53_v47 = vld [vmem:[%s2689_s0 + $0x138] sm:$0xff]  ;;  %v160_v5 = vld [vmem:[%s2689_s0 + $0x490] sm:$0xff] }
  0x75   :  { %775 = vmatprep.mubr.f32.mxu1 %v127_v48  ;;  %1374 = vmatpush1.bf16.msra.mxu0 %v1754_v20  ;;  %v90_v20 = vld [vmem:[%s2689_s0 + $0x260] sm:$0xff] }
  0x76   :  { %1375 = vmatprep.subr.bf16.mxu0 %v1510_v0  ;;  %v58_v48 = vld [vmem:[%s2689_s0 + $0x160] sm:$0xff] }
  0x77   :  { %496 = vmatmul.mubr.f32.gmra.mrb[26].mxu0 %v79_v49  ;;  %v159_v49 = vld [vmem:[%s2689_s0 + $0x488] sm:$0xff] }
  0x78   :  { %776 = vmatmul.mubr.f32.gmra.mrb[26].mxu1 %v126_v51  ;;  %500 = vmatprep.mubr.f32.mxu0 %v85_v13  ;;  %v63_v51 = vld [vmem:[%s2689_s0 + $0x188] sm:$0xff]  ;;  %v165_v13 = vld [vmem:[%s2689_s0 + $0x4b8] sm:$0xff] }
  0x79   :  { %780 = vmatprep.mubr.f32.mxu1 %v132_v52  ;;  %1377 = vmatpush1.bf16.msra.mxu0 %v1771_v27  ;;  %v95_v27 = vld [vmem:[%s2689_s0 + $0x288] sm:$0xff]  ;;  %v68_v52 = vld [vmem:[%s2689_s0 + $0x1b0] sm:$0xff] }
  0x7a   :  { %1378 = vmatprep.subr.bf16.mxu0 %v1510_v0 }
  0x7b   :  { %501 = vmatmul.mubr.f32.gmra.mrb[28].mxu0 %v84_v53  ;;  %v164_v53 = vld [vmem:[%s2689_s0 + $0x4b0] sm:$0xff] }
  0x7c   :  { %781 = vmatmul.mubr.f32.gmra.mrb[28].mxu1 %v131_v54  ;;  %505 = vmatprep.mubr.f32.mxu0 %v90_v20  ;;  %v73_v54 = vld [vmem:[%s2689_s0 + $0x1d8] sm:$0xff]  ;;  %v170_v20 = vld [vmem:[%s2689_s0 + $0x4e0] sm:$0xff] }
  0x7d   :  { %785 = vmatprep.mubr.f32.mxu1 %v137_v55  ;;  %1380 = vmatpush1.bf16.msra.mxu0 %v1788_v34  ;;  %v100_v34 = vld [vmem:[%s2689_s0 + $0x2b0] sm:$0xff]  ;;  %v78_v55 = vld [vmem:[%s2689_s0 + $0x200] sm:$0xff] }
  0x7e   :  { %1381 = vmatprep.subr.bf16.mxu0 %v1510_v0  ;;  %v147_v0 = vld [vmem:[%s2689_s0 + $0x428] sm:$0xff] }
  0x7f   :  { %506 = vmatmul.mubr.f32.gmra.mrb[30].mxu0 %v89_v57  ;;  %v169_v57 = vld [vmem:[%s2689_s0 + $0x4d8] sm:$0xff] }
  0x80   :  { %786 = vmatmul.mubr.f32.gmra.mrb[30].mxu1 %v136_v58  ;;  %510 = vmatprep.mubr.f32.mxu0 %v95_v27  ;;  %v83_v58 = vld [vmem:[%s2689_s0 + $0x228] sm:$0xff] }
  0x81   :  { %790 = vmatprep.mubr.f32.mxu1 %v142_v8  ;;  %1383 = vmatpush1.bf16.msra.mxu0 %v1811_v43  ;;  %v105_v43 = vld [vmem:[%s2689_s0 + $0x2d8] sm:$0xff]  ;;  %v175_v27 = vld [vmem:[%s2689_s0 + $0x508] sm:$0xff]  ;;  %v88_v8 = vld [vmem:[%s2689_s0 + $0x250] sm:$0xff] }
  0x83   :  { %511 = vmatmul.mubr.f32.gmra.mrb[32].mxu0 %v94_v59  ;;  %v174_v59 = vld [vmem:[%s2689_s0 + $0x500] sm:$0xff] }
  0x84   :  { %791 = vmatmul.mubr.f32.gmra.mrb[32].mxu1 %v141_v60  ;;  %515 = vmatprep.mubr.f32.mxu0 %v100_v34  ;;  %v93_v60 = vld [vmem:[%s2689_s0 + $0x278] sm:$0xff]  ;;  %v180_v34 = vld [vmem:[%s2689_s0 + $0x530] sm:$0x3] }
  0x85   :  { %795 = vmatprep.mubr.f32.mxu1 %v147_v0  ;;  %v98_v0 = vld [vmem:[%s2689_s0 + $0x2a0] sm:$0xff] }
  0x87   :  { %516 = vmatmul.mubr.f32.gmra.mrb[34].mxu0 %v99_v61  ;;  %v179_v61 = vld [vmem:[%s2689_s0 + $0x528] sm:$0x3] }
  0x88   :  { %796 = vmatmul.mubr.f32.gmra.mrb[34].mxu1 %v146_v63  ;;  %520 = vmatprep.mubr.f32.mxu0 %v105_v43  ;;  %v103_v63 = vld [vmem:[%s2689_s0 + $0x2c8] sm:$0xff]  ;;  %v17_v43 = vld [vmem:[%s2689_s0 + $0x18] sm:$0xff] }
  0x89   :  { %800 = vmatprep.mubr.f32.mxu1 %v152_v1  ;;  %v108_v1 = vld [vmem:[%s2689_s0 + $0x2f0] sm:$0xff] }
  0x8b   :  { %521 = vmatmul.mubr.f32.gmra.mrb[36].mxu0 %v104_v2  ;;  %v16_v2 = vld [vmem:[%s2689_s0 + $0x10] sm:$0xff] }
  0x8c   :  { %801 = vmatmul.mubr.f32.gmra.mrb[36].mxu1 %v151_v3  ;;  %525 = vmatprep.mubr.f32.mxu0 %v110_v4  ;;  %v113_v3 = vld [vmem:[%s2689_s0 + $0x318] sm:$0xff]  ;;  %v22_v4 = vld [vmem:[%s2689_s0 + $0x40] sm:$0xff] }
  0x8d   :  { %805 = vmatprep.mubr.f32.mxu1 %v157_v6  ;;  %v118_v6 = vld [vmem:[%s2689_s0 + $0x340] sm:$0xff] }
  0x8f   :  { %526 = vmatmul.mubr.f32.gmra.mrb[38].mxu0 %v109_v12  ;;  %v21_v12 = vld [vmem:[%s2689_s0 + $0x38] sm:$0xff] }
  0x90   :  { %806 = vmatmul.mubr.f32.gmra.mrb[38].mxu1 %v156_v7  ;;  %530 = vmatprep.mubr.f32.mxu0 %v115_v9  ;;  %v123_v7 = vld [vmem:[%s2689_s0 + $0x368] sm:$0xff] }
  0x91   :  { %810 = vmatprep.mubr.f32.mxu1 %v162_v10  ;;  %v27_v9 = vld [vmem:[%s2689_s0 + $0x68] sm:$0xff]  ;;  %v128_v10 = vld [vmem:[%s2689_s0 + $0x390] sm:$0xff] }
  0x93   :  { %531 = vmatmul.mubr.f32.gmra.mrb[40].mxu0 %v114_v11  ;;  %v26_v11 = vld [vmem:[%s2689_s0 + $0x60] sm:$0xff] }
  0x94   :  { %811 = vmatmul.mubr.f32.gmra.mrb[40].mxu1 %v161_v18  ;;  %535 = vmatprep.mubr.f32.mxu0 %v120_v14  ;;  %v133_v18 = vld [vmem:[%s2689_s0 + $0x3b8] sm:$0xff]  ;;  %v32_v14 = vld [vmem:[%s2689_s0 + $0x90] sm:$0xff] }
  0x95   :  { %815 = vmatprep.mubr.f32.mxu1 %v167_v15  ;;  %v138_v15 = vld [vmem:[%s2689_s0 + $0x3e0] sm:$0xff] }
  0x97   :  { %536 = vmatmul.mubr.f32.gmra.mrb[42].mxu0 %v119_v16  ;;  %v31_v16 = vld [vmem:[%s2689_s0 + $0x88] sm:$0xff] }
  0x98   :  { %816 = vmatmul.mubr.f32.gmra.mrb[42].mxu1 %v166_v17  ;;  %540 = vmatprep.mubr.f32.mxu0 %v125_v24  ;;  %v143_v17 = vld [vmem:[%s2689_s0 + $0x408] sm:$0xff]  ;;  %v37_v24 = vld [vmem:[%s2689_s0 + $0xb8] sm:$0xff] }
  0x99   :  { %820 = vmatprep.mubr.f32.mxu1 %v172_v19  ;;  %v148_v19 = vld [vmem:[%s2689_s0 + $0x430] sm:$0xff] }
  0x9b   :  { %541 = vmatmul.mubr.f32.gmra.mrb[44].mxu0 %v124_v21  ;;  %v36_v21 = vld [vmem:[%s2689_s0 + $0xb0] sm:$0xff] }
  0x9c   :  { %821 = vmatmul.mubr.f32.gmra.mrb[44].mxu1 %v171_v22  ;;  %545 = vmatprep.mubr.f32.mxu0 %v130_v30  ;;  %v153_v22 = vld [vmem:[%s2689_s0 + $0x458] sm:$0xff]  ;;  %v42_v30 = vld [vmem:[%s2689_s0 + $0xe0] sm:$0xff] }
  0x9d   :  { %825 = vmatprep.mubr.f32.mxu1 %v177_v23  ;;  %v158_v23 = vld [vmem:[%s2689_s0 + $0x480] sm:$0xff] }
  0x9f   :  { %546 = vmatmul.mubr.f32.gmra.mrb[46].mxu0 %v129_v25  ;;  %v41_v25 = vld [vmem:[%s2689_s0 + $0xd8] sm:$0xff] }
  0xa0   :  { %826 = vmatmul.mubr.f32.gmra.mrb[46].mxu1 %v176_v26  ;;  %550 = vmatprep.mubr.f32.mxu0 %v135_v36  ;;  %v163_v26 = vld [vmem:[%s2689_s0 + $0x4a8] sm:$0xff] }
  0xa1   :  { %830 = vmatprep.mubr.f32.mxu1 %v182_v28  ;;  %v47_v36 = vld [vmem:[%s2689_s0 + $0x108] sm:$0xff]  ;;  %v168_v28 = vld [vmem:[%s2689_s0 + $0x4d0] sm:$0xff] }
  0xa3   :  { %551 = vmatmul.mubr.f32.gmra.mrb[48].mxu0 %v134_v29  ;;  %v46_v29 = vld [vmem:[%s2689_s0 + $0x100] sm:$0xff] }
  0xa4   :  { %831 = vmatmul.mubr.f32.gmra.mrb[48].mxu1 %v181_v31  ;;  %555 = vmatprep.mubr.f32.mxu0 %v140_v44  ;;  %v173_v31 = vld [vmem:[%s2689_s0 + $0x4f8] sm:$0xff]  ;;  %v52_v44 = vld [vmem:[%s2689_s0 + $0x130] sm:$0xff] }
  0xa5   :  { %1237 = vmatprep.mubr.msk.f32.mxu1 %vm263_vm0, %v18_v32  ;;  %v178_v32 = vld [vmem:[%s2689_s0 + $0x520] sm:$0xff] }
  0xa7   :  { %556 = vmatmul.mubr.f32.gmra.mrb[50].mxu0 %v139_v33  ;;  %v51_v33 = vld [vmem:[%s2689_s0 + $0x128] sm:$0xff] }
  0xa8   :  { %1238 = vmatmul.mubr.msk.f32.vlgmr.msra.gmra.mrb[50].mxu1 %vm263_vm0, %v23_v35  ;;  %560 = vmatprep.mubr.f32.mxu0 %v145_v50  ;;  %v183_v35 = vld [vmem:[%s2689_s0 + $0x548] sm:$0x3]  ;;  %v57_v50 = vld [vmem:[%s2689_s0 + $0x158] sm:$0xff] }
  0xa9   :  { %1240 = vmatprep.mubr.msk.f32.mxu1 %vm263_vm0, %v28_v37  ;;  %v56_v37 = vld [vmem:[%s2689_s0 + $0x150] sm:$0xff] }
  0xab   :  { %561 = vmatmul.mubr.f32.gmra.mrb[52].mxu0 %v144_v38 }
  0xac   :  { %1241 = vmatmul.mubr.msk.f32.gmra.mrb[52].mxu1 %vm263_vm0, %v33_v39  ;;  %565 = vmatprep.mubr.f32.mxu0 %v150_v56 }
  0xad   :  { %1243 = vmatprep.mubr.msk.f32.mxu1 %vm263_vm0, %v38_v40 }
  0xaf   :  { %566 = vmatmul.mubr.f32.gmra.mrb[54].mxu0 %v149_v41 }
  0xb0   :  { %1244 = vmatmul.mubr.msk.f32.gmra.mrb[54].mxu1 %vm263_vm0, %v43_v42  ;;  %570 = vmatprep.mubr.f32.mxu0 %v155_v62 }
  0xb1   :  { %1246 = vmatprep.mubr.msk.f32.mxu1 %vm263_vm0, %v48_v45 }
  0xb3   :  { %571 = vmatmul.mubr.f32.gmra.mrb[56].mxu0 %v154_v46 }
  0xb4   :  { %1247 = vmatmul.mubr.msk.f32.gmra.mrb[56].mxu1 %vm263_vm0, %v53_v47  ;;  %575 = vmatprep.mubr.f32.mxu0 %v160_v5 }
  0xb5   :  { %1249 = vmatprep.mubr.msk.f32.mxu1 %vm263_vm0, %v58_v48 }
  0xb7   :  { %576 = vmatmul.mubr.f32.gmra.mrb[58].mxu0 %v159_v49 }
  0xb8   :  { %1250 = vmatmul.mubr.msk.f32.gmra.mrb[58].mxu1 %vm263_vm0, %v63_v51  ;;  %580 = vmatprep.mubr.f32.mxu0 %v165_v13 }
  0xb9   :  { %1252 = vmatprep.mubr.msk.f32.mxu1 %vm263_vm0, %v68_v52 }
  0xbb   :  { %581 = vmatmul.mubr.f32.gmra.mrb[60].mxu0 %v164_v53 }
  0xbc   :  { %1253 = vmatmul.mubr.msk.f32.gmra.mrb[60].mxu1 %vm263_vm0, %v73_v54  ;;  %585 = vmatprep.mubr.f32.mxu0 %v170_v20  ;;  %v2406_v54 = vld [vmem:[%s2690_s2] ss:$0 sm:$0xff] }
  0xbd   :  { %1255 = vmatprep.mubr.msk.f32.mxu1 %vm263_vm0, %v78_v55 }
  0xbf   :  { %586 = vmatmul.mubr.f32.gmra.mrb[62].mxu0 %v169_v57 }
  0xc0   :  { %1256 = vmatmul.mubr.msk.f32.gmra.mrb[62].mxu1 %vm263_vm0, %v83_v58  ;;  %590 = vmatprep.mubr.f32.mxu0 %v175_v27 }
  0xc1   :  { %1258 = vmatprep.mubr.msk.f32.mxu1 %vm263_vm0, %v88_v8 }
  0xc3   :  { %591 = vmatmul.mubr.f32.gmra.mrb[64].mxu0 %v174_v59 }
  0xc4   :  { %1259 = vmatmul.mubr.msk.f32.gmra.mrb[64].mxu1 %vm263_vm0, %v93_v60  ;;  %595 = vmatprep.mubr.f32.mxu0 %v180_v34 }
  0xc5   :  { %1261 = vmatprep.mubr.msk.f32.mxu1 %vm263_vm0, %v98_v0 }
  0xc7   :  { %596 = vmatmul.mubr.f32.gmra.mrb[66].mxu0 %v179_v61 }
  0xc8   :  { %1262 = vmatmul.mubr.msk.f32.gmra.mrb[66].mxu1 %vm263_vm0, %v103_v63  ;;  %665 = vmatprep.mubr.f32.mxu0 %v17_v43 }
  0xc9   :  { %1264 = vmatprep.mubr.msk.f32.mxu1 %vm263_vm0, %v108_v1 }
  0xcb   :  { %666 = vmatmul.mubr.f32.vlgmr.msra.gmra.mrb[0].mxu0 %v16_v2 }
  0xcc   :  { %1265 = vmatmul.mubr.msk.f32.gmra.mrb[68].mxu1 %vm263_vm0, %v113_v3  ;;  %670 = vmatprep.mubr.f32.mxu0 %v22_v4 }
  0xcd   :  { %1267 = vmatprep.mubr.msk.f32.mxu1 %vm263_vm0, %v118_v6 }
  0xcf   :  { %671 = vmatmul.mubr.f32.gmra.mrb[2].mxu0 %v21_v12 }
  0xd0   :  { %1268 = vmatmul.mubr.msk.f32.gmra.mrb[70].mxu1 %vm263_vm0, %v123_v7  ;;  %675 = vmatprep.mubr.f32.mxu0 %v27_v9 }
  0xd1   :  { %1270 = vmatprep.mubr.msk.f32.mxu1 %vm263_vm0, %v128_v10 }
  0xd3   :  { %676 = vmatmul.mubr.f32.gmra.mrb[4].mxu0 %v26_v11 }
  0xd4   :  { %1271 = vmatmul.mubr.msk.f32.gmra.mrb[72].mxu1 %vm263_vm0, %v133_v18  ;;  %680 = vmatprep.mubr.f32.mxu0 %v32_v14 }
  0xd5   :  { %1273 = vmatprep.mubr.msk.f32.mxu1 %vm263_vm0, %v138_v15 }
  0xd7   :  { %681 = vmatmul.mubr.f32.gmra.mrb[6].mxu0 %v31_v16 }
  0xd8   :  { %1274 = vmatmul.mubr.msk.f32.gmra.mrb[74].mxu1 %vm263_vm0, %v143_v17  ;;  %685 = vmatprep.mubr.f32.mxu0 %v37_v24 }
  0xd9   :  { %1276 = vmatprep.mubr.msk.f32.mxu1 %vm263_vm0, %v148_v19 }
  0xdb   :  { %686 = vmatmul.mubr.f32.gmra.mrb[8].mxu0 %v36_v21 }
  0xdc   :  { %1277 = vmatmul.mubr.msk.f32.gmra.mrb[76].mxu1 %vm263_vm0, %v153_v22  ;;  %690 = vmatprep.mubr.f32.mxu0 %v42_v30 }
  0xdd   :  { %1279 = vmatprep.mubr.msk.f32.mxu1 %vm263_vm0, %v158_v23 }
  0xdf   :  { %691 = vmatmul.mubr.f32.gmra.mrb[10].mxu0 %v41_v25 }
  0xe0   :  { %1280 = vmatmul.mubr.msk.f32.gmra.mrb[78].mxu1 %vm263_vm0, %v163_v26  ;;  %695 = vmatprep.mubr.f32.mxu0 %v47_v36 }
  0xe1   :  { %1282 = vmatprep.mubr.msk.f32.mxu1 %vm263_vm0, %v168_v28 }
  0xe3   :  { %696 = vmatmul.mubr.f32.gmra.mrb[12].mxu0 %v46_v29 }
  0xe4   :  { %1283 = vmatmul.mubr.msk.f32.gmra.mrb[80].mxu1 %vm263_vm0, %v173_v31  ;;  %700 = vmatprep.mubr.f32.mxu0 %v52_v44 }
  0xe5   :  { %1285 = vmatprep.mubr.msk.f32.mxu1 %vm263_vm0, %v178_v32 }
  0xe7   :  { %701 = vmatmul.mubr.f32.gmra.mrb[14].mxu0 %v51_v33 }
  0xe8   :  { %1286 = vmatmul.mubr.msk.f32.gmra.mrb[82].mxu1 %vm263_vm0, %v183_v35  ;;  %705 = vmatprep.mubr.f32.mxu0 %v57_v50 }
  0xeb   :  { %706 = vmatmul.mubr.f32.gmra.mrb[16].mxu0 %v56_v37 }
 0x117   :  { %v712_v38 = vpop.f32.mrb[0].mxu1 }
 0x118   :  { %v714_v39 = vpop.f32.mrb[1].mxu1 }
 0x11b   :  { %v717_v56 = vpop.f32.mrb[2].mxu1 }
 0x11c   :  { %v719_v40 = vpop.f32.mrb[3].mxu1 }
 0x11f   :  { %v722_v41 = vpop.f32.mrb[4].mxu1 }
 0x120   :  { %v724_v42 = vpop.f32.mrb[5].mxu1 }
 0x123   :  { %v727_v62 = vpop.f32.mrb[6].mxu1 }
 0x124   :  { %v729_v45 = vpop.f32.mrb[7].mxu1 }
 0x127   :  { %v732_v46 = vpop.f32.mrb[8].mxu1 }
 0x128   :  { %v734_v47 = vpop.f32.mrb[9].mxu1 }
 0x12b   :  { %v737_v5 = vpop.f32.mrb[10].mxu1 }
 0x12c   :  { %v739_v48 = vpop.f32.mrb[11].mxu1 }
 0x12f   :  { %v742_v49 = vpop.f32.mrb[12].mxu1 }
 0x130   :  { %v744_v51 = vpop.f32.mrb[13].mxu1 }
 0x133   :  { %v747_v13 = vpop.f32.mrb[14].mxu1 }
 0x134   :  { %v749_v52 = vpop.f32.mrb[15].mxu1 }
 0x137   :  { %v752_v53 = vpop.f32.mrb[16].mxu1 }
 0x138   :  { %v754_v20 = vpop.f32.mrb[17].mxu1 }
 0x13a   :  { %v477_v55 = vpop.f32.mrb[18].mxu0 }
 0x13b   :  { %v478_v57 = vadd.f32 %v2406_v54, %v477_v55  ;;  %v479_v58 = vpop.f32.mrb[19].mxu0  ;;  %v757_v27 = vpop.f32.mrb[18].mxu1 }
 0x13c   :  { %v759_v8 = vpop.f32.mrb[19].mxu1 }
 0x13d   :  { %v2409_v59 = vadd.f32 %v712_v38, %v478_v57 }
 0x13e   :  { %v482_v60 = vpop.f32.mrb[20].mxu0 }
 0x13f   :  { %v483_v34 = vadd.f32 %v2406_v54, %v482_v60  ;;  %v484_v0 = vpop.f32.mrb[21].mxu0  ;;  %v762_v61 = vpop.f32.mrb[20].mxu1 }
 0x140   :  { %v764_v63 = vpop.f32.mrb[21].mxu1 }
 0x141   :  { %v2412_v43 = vadd.f32 %v717_v56, %v483_v34 }
 0x142   :  { %v487_v1 = vpop.f32.mrb[22].mxu0 }
 0x143   :  { %v488_v2 = vadd.f32 %v2406_v54, %v487_v1  ;;  %v489_v3 = vpop.f32.mrb[23].mxu0  ;;  %v767_v4 = vpop.f32.mrb[22].mxu1 }
 0x144   :  { %v769_v6 = vpop.f32.mrb[23].mxu1 }
 0x145   :  { %v2415_v12 = vadd.f32 %v722_v41, %v488_v2 }
 0x146   :  { %v492_v7 = vpop.f32.mrb[24].mxu0 }
 0x147   :  { %v493_v9 = vadd.f32 %v2406_v54, %v492_v7  ;;  %v494_v10 = vpop.f32.mrb[25].mxu0  ;;  %v772_v11 = vpop.f32.mrb[24].mxu1 }
 0x148   :  { %v774_v18 = vpop.f32.mrb[25].mxu1 }
 0x149   :  { %v2418_v14 = vadd.f32 %v727_v62, %v493_v9 }
 0x14a   :  { %v497_v15 = vpop.f32.mrb[26].mxu0 }
 0x14b   :  { %v498_v16 = vadd.f32 %v2406_v54, %v497_v15  ;;  %v499_v17 = vpop.f32.mrb[27].mxu0  ;;  %v777_v24 = vpop.f32.mrb[26].mxu1 }
 0x14c   :  { %v779_v19 = vpop.f32.mrb[27].mxu1 }
 0x14d   :  { %v2421_v21 = vadd.f32 %v732_v46, %v498_v16 }
 0x14e   :  { %v502_v22 = vpop.f32.mrb[28].mxu0 }
 0x14f   :  { %v503_v30 = vadd.f32 %v2406_v54, %v502_v22  ;;  %v504_v23 = vpop.f32.mrb[29].mxu0  ;;  %v782_v25 = vpop.f32.mrb[28].mxu1 }
 0x150   :  { %v784_v26 = vpop.f32.mrb[29].mxu1 }
 0x151   :  { %v2424_v36 = vadd.f32 %v737_v5, %v503_v30 }
 0x152   :  { %v507_v28 = vpop.f32.mrb[30].mxu0 }
 0x153   :  { %v508_v29 = vadd.f32 %v2406_v54, %v507_v28  ;;  %v509_v31 = vpop.f32.mrb[31].mxu0  ;;  %v787_v44 = vpop.f32.mrb[30].mxu1 }
 0x154   :  { %v789_v32 = vpop.f32.mrb[31].mxu1 }
 0x155   :  { %v2427_v33 = vadd.f32 %v742_v49, %v508_v29 }
 0x156   :  { %v512_v35 = vpop.f32.mrb[32].mxu0 }
 0x157   :  { %v513_v50 = vadd.f32 %v2406_v54, %v512_v35  ;;  %v514_v37 = vpop.f32.mrb[33].mxu0  ;;  %v792_v38 = vpop.f32.mrb[32].mxu1 }
 0x158   :  { %v794_v39 = vpop.f32.mrb[33].mxu1 }
 0x159   :  { %v2430_v56 = vadd.f32 %v747_v13, %v513_v50 }
 0x15a   :  { %v517_v40 = vpop.f32.mrb[34].mxu0 }
 0x15b   :  { %v518_v41 = vadd.f32 %v2406_v54, %v517_v40  ;;  %v519_v42 = vpop.f32.mrb[35].mxu0  ;;  %v797_v62 = vpop.f32.mrb[34].mxu1 }
 0x15c   :  { %v799_v45 = vpop.f32.mrb[35].mxu1 }
 0x15d   :  { %v2433_v46 = vadd.f32 %v752_v53, %v518_v41 }
 0x15e   :  { %v522_v47 = vpop.f32.mrb[36].mxu0 }
 0x15f   :  { %v523_v5 = vadd.f32 %v2406_v54, %v522_v47  ;;  %v524_v48 = vpop.f32.mrb[37].mxu0  ;;  %v802_v49 = vpop.f32.mrb[36].mxu1 }
 0x160   :  { %v804_v51 = vpop.f32.mrb[37].mxu1 }
 0x161   :  { %v2436_v52 = vadd.f32 %v757_v27, %v523_v5 }
 0x162   :  { %v527_v20 = vpop.f32.mrb[38].mxu0 }
 0x163   :  { %v528_v13 = vadd.f32 %v2406_v54, %v527_v20  ;;  %v529_v55 = vpop.f32.mrb[39].mxu0  ;;  %v807_v57 = vpop.f32.mrb[38].mxu1 }
 0x164   :  { %v809_v58 = vpop.f32.mrb[39].mxu1 }
 0x165   :  { %v2439_v8 = vadd.f32 %v762_v61, %v528_v13 }
 0x166   :  { %v532_v60 = vpop.f32.mrb[40].mxu0 }
 0x167   :  { %v533_v53 = vadd.f32 %v2406_v54, %v532_v60  ;;  %v534_v34 = vpop.f32.mrb[41].mxu0  ;;  %v812_v0 = vpop.f32.mrb[40].mxu1 }
 0x168   :  { %v814_v63 = vpop.f32.mrb[41].mxu1 }
 0x169   :  { %v2442_v1 = vadd.f32 %v767_v4, %v533_v53 }
 0x16a   :  { %v537_v2 = vpop.f32.mrb[42].mxu0 }
 0x16b   :  { %v538_v27 = vadd.f32 %v2406_v54, %v537_v2  ;;  %v539_v3 = vpop.f32.mrb[43].mxu0  ;;  %v817_v6 = vpop.f32.mrb[42].mxu1 }
 0x16c   :  { %v819_v7 = vpop.f32.mrb[43].mxu1 }
 0x16d   :  { %v2445_v9 = vadd.f32 %v772_v11, %v538_v27 }
 0x16e   :  { %v542_v10 = vpop.f32.mrb[44].mxu0 }
 0x16f   :  { %v543_v61 = vadd.f32 %v2406_v54, %v542_v10  ;;  %v544_v18 = vpop.f32.mrb[45].mxu0  ;;  %v2448_v15 = vpop.f32.mrb[44].mxu1 }
 0x170   :  { %v824_v16 = vpop.f32.mrb[45].mxu1 }
 0x171   :  { %v2450_v17 = vadd.f32 %v777_v24, %v543_v61 }
 0x172   :  { %v547_v19 = vpop.f32.mrb[46].mxu0 }
 0x173   :  { %v548_v4 = vadd.f32 %v2406_v54, %v547_v19  ;;  %v549_v22 = vpop.f32.mrb[47].mxu0  ;;  %v2453_v30 = vpop.f32.mrb[46].mxu1 }
 0x174   :  { %v829_v23 = vpop.f32.mrb[47].mxu1 }
 0x175   :  { %v2455_v26 = vadd.f32 %v782_v25, %v548_v4 }
 0x176   :  { %v552_v11 = vpop.f32.mrb[48].mxu0 }
 0x177   :  { %v553_v28 = vadd.f32 %v2406_v54, %v552_v11  ;;  %v554_v29 = vpop.f32.mrb[49].mxu0  ;;  %v2458_v31 = vpop.f32.mrb[48].mxu1 }
 0x178   :  { %v834_v32 = vpop.f32.mrb[49].mxu1 }
 0x179   :  { %v2460_v35 = vadd.f32 %v787_v44, %v553_v28 }
 0x17a   :  { %v557_v24 = vpop.f32.mrb[50].mxu0 }
 0x17b   :  { %v558_v50 = vadd.f32 %v2406_v54, %v557_v24  ;;  %v559_v37 = vpop.f32.mrb[51].mxu0  ;;  %v2463_v39 = vpop.f32.mrb[50].mxu1 }
 0x17c   :  { %v2465_v40 = vpop.f32.mrb[51].mxu1 }
 0x17d   :  { %v2467_v41 = vadd.f32 %v792_v38, %v558_v50 }
 0x17e   :  { %v562_v25 = vpop.f32.mrb[52].mxu0 }
 0x17f   :  { %v563_v42 = vadd.f32 %v2406_v54, %v562_v25  ;;  %v564_v45 = vpop.f32.mrb[53].mxu0  ;;  %v2470_v47 = vpop.f32.mrb[52].mxu1 }
 0x180   :  { %v2472_v5 = vpop.f32.mrb[53].mxu1 }
 0x181   :  { %v2474_v44 = vadd.f32 %v797_v62, %v563_v42 }
 0x182   :  { %v567_v48 = vpop.f32.mrb[54].mxu0 }
 0x183   :  { %v568_v51 = vadd.f32 %v2406_v54, %v567_v48  ;;  %v569_v20 = vpop.f32.mrb[55].mxu0  ;;  %v2477_v13 = vpop.f32.mrb[54].mxu1 }
 0x184   :  { %v2479_v55 = vpop.f32.mrb[55].mxu1 }
 0x185   :  { %v2481_v38 = vadd.f32 %v802_v49, %v568_v51 }
 0x186   :  { %v572_v58 = vpop.f32.mrb[56].mxu0 }
 0x187   :  { %v573_v60 = vadd.f32 %v2406_v54, %v572_v58  ;;  %v574_v53 = vpop.f32.mrb[57].mxu0  ;;  %v2484_v34 = vpop.f32.mrb[56].mxu1 }
 0x188   :  { %v2486_v63 = vpop.f32.mrb[57].mxu1 }
 0x189   :  { %v2488_v62 = vadd.f32 %v807_v57, %v573_v60 }
 0x18a   :  { %v577_v2 = vpop.f32.mrb[58].mxu0 }
 0x18b   :  { %v578_v27 = vadd.f32 %v2406_v54, %v577_v2  ;;  %v1251_v3 = vpop.f32.mrb[58].mxu1  ;;  %v579_v7 = vpop.f32.mrb[59].mxu0 }
 0x18c   :  { %v948_v10 = vadd.f32 %v1251_v3, %v2409_v59  ;;  %v2492_v61 = vpop.f32.mrb[59].mxu1 }
 0x18d   :  { %v2494_v49 = vadd.f32 %v812_v0, %v578_v27 }
 0x18e   :  { %v1080_v18 = vmax.f32 %v948_v10, 0.0  ;;  %v582_v16 = vpop.f32.mrb[60].mxu0 }
 0x18f   :  { %v583_v19 = vadd.f32 %v2406_v54, %v582_v16  ;;  %v1254_v4 = vpop.f32.mrb[60].mxu1  ;;  %v584_v22 = vpop.f32.mrb[61].mxu0 }
 0x190   :  { %1114 = vst.msk [vmem:[%s2691_s3 + $0x48] sm:$0xff] %vm263_vm0, %v1080_v18  ;;  %v958_v57 = vadd.f32 %v1254_v4, %v2415_v12  ;;  %v952_v23 = vpop.f32.mrb[61].mxu1 }
 0x191   :  { %v953_v59 = vadd.f32 %v952_v23, %v2412_v43  ;;  %v2503_v11 = vadd.f32 %v817_v6, %v583_v19 }
 0x192   :  { %v1082_v0 = vmax.f32 %v958_v57, 0.0  ;;  %v587_v28 = vpop.f32.mrb[62].mxu0 }
 0x193   :  { %v1081_v29 = vmax.f32 %v953_v59, 0.0  ;;  %v588_v32 = vadd.f32 %v2406_v54, %v587_v28  ;;  %v1257_v24 = vpop.f32.mrb[62].mxu1  ;;  %v589_v50 = vpop.f32.mrb[63].mxu0 }
 0x194   :  { %1116 = vst.msk [vmem:[%s2691_s3 + $0x58] sm:$0xff] %vm263_vm0, %v1082_v0  ;;  %v968_v37 = vadd.f32 %v1257_v24, %v2421_v21  ;;  %v962_v12 = vpop.f32.mrb[63].mxu1 }
 0x195   :  { %1115 = vst.msk [vmem:[%s2691_s3 + $0x50] sm:$0xff] %vm263_vm0, %v1081_v29  ;;  %v963_v43 = vadd.f32 %v962_v12, %v2418_v14  ;;  %v2517_v6 = vadd.f32 %v2448_v15, %v588_v32 }
 0x196   :  { %v1084_v25 = vmax.f32 %v968_v37, 0.0  ;;  %v592_v42 = vpop.f32.mrb[64].mxu0 }
 0x197   :  { %v1083_v45 = vmax.f32 %v963_v43, 0.0  ;;  %v593_v48 = vadd.f32 %v2406_v54, %v592_v42  ;;  %v1260_v51 = vpop.f32.mrb[64].mxu1  ;;  %v594_v20 = vpop.f32.mrb[65].mxu0 }
 0x198   :  { %1118 = vst.msk [vmem:[%s2691_s3 + $0x68] sm:$0xff] %vm263_vm0, %v1084_v25  ;;  %v978_v21 = vadd.f32 %v1260_v51, %v2427_v33  ;;  %v972_v58 = vpop.f32.mrb[65].mxu1 }
 0x199   :  { %1117 = vst.msk [vmem:[%s2691_s3 + $0x60] sm:$0xff] %vm263_vm0, %v1083_v45  ;;  %v973_v14 = vadd.f32 %v972_v58, %v2424_v36  ;;  %v2531_v15 = vadd.f32 %v2453_v30, %v593_v48 }
 0x19a   :  { %v1086_v60 = vmax.f32 %v978_v21, 0.0  ;;  %v597_v53 = vpop.f32.mrb[66].mxu0 }
 0x19b   :  { %v1085_v2 = vmax.f32 %v973_v14, 0.0  ;;  %v598_v27 = vadd.f32 %v2406_v54, %v597_v53  ;;  %v1263_v3 = vpop.f32.mrb[66].mxu1  ;;  %v599_v7 = vpop.f32.mrb[67].mxu0 }
 0x19c   :  { %1120 = vst.msk [vmem:[%s2691_s3 + $0x78] sm:$0xff] %vm263_vm0, %v1086_v60  ;;  %v988_v33 = vadd.f32 %v1263_v3, %v2433_v46  ;;  %v982_v10 = vpop.f32.mrb[67].mxu1 }
 0x19d   :  { %1119 = vst.msk [vmem:[%s2691_s3 + $0x70] sm:$0xff] %vm263_vm0, %v1085_v2  ;;  %v983_v36 = vadd.f32 %v982_v10, %v2430_v56  ;;  %v2545_v30 = vadd.f32 %v2458_v31, %v598_v27 }
 0x19e   :  { %v1088_v18 = vmax.f32 %v988_v33, 0.0  ;;  %v667_v16 = vpop.f32.mrb[0].mxu0 }
 0x19f   :  { %v1087_v19 = vmax.f32 %v983_v36, 0.0  ;;  %v1432_v4 = vadd.f32 %v2406_v54, %v667_v16  ;;  %v1266_v22 = vpop.f32.mrb[68].mxu1  ;;  %v669_v57 = vpop.f32.mrb[1].mxu0 }
 0x1a0   :  { %1122 = vst.msk [vmem:[%s2691_s3 + $0x88] sm:$0xff] %vm263_vm0, %v1088_v18  ;;  %v998_v46 = vadd.f32 %v1266_v22, %v2439_v8  ;;  %v992_v23 = vpop.f32.mrb[69].mxu1 }
 0x1a1   :  { %1121 = vst.msk [vmem:[%s2691_s3 + $0x80] sm:$0xff] %vm263_vm0, %v1087_v19  ;;  %v903_v56 = vadd.f32 %v1432_v4, %v2465_v40  ;;  %v993_v31 = vadd.f32 %v992_v23, %v2436_v52 }
 0x1a2   :  { %v1090_v59 = vmax.f32 %v998_v46, 0.0  ;;  %v672_v0 = vpop.f32.mrb[2].mxu0 }
 0x1a3   :  { %v1071_v28 = vmax.f32 %v903_v56, 0.0  ;;  %v1089_v29 = vmax.f32 %v993_v31, 0.0  ;;  %v1433_v32 = vadd.f32 %v2406_v54, %v672_v0  ;;  %v1269_v24 = vpop.f32.mrb[70].mxu1  ;;  %v674_v50 = vpop.f32.mrb[3].mxu0 }
 0x1a4   :  { %1124 = vst.msk [vmem:[%s2691_s3 + $0x98] sm:$0xff] %vm263_vm0, %v1090_v59  ;;  %v1008_v8 = vadd.f32 %v1269_v24, %v2445_v9  ;;  %v1002_v37 = vpop.f32.mrb[71].mxu1 }
 0x1a5   :  { %1105 = vst.msk [vmem:[%s2691_s3] sm:$0xff] %vm263_vm0, %v1071_v28  ;;  %1123 = vst.msk [vmem:[%s2691_s3 + $0x90] sm:$0xff] %vm263_vm0, %v1089_v29  ;;  %v908_v52 = vadd.f32 %v1433_v32, %v2463_v39  ;;  %v1003_v40 = vadd.f32 %v1002_v37, %v2442_v1 }
 0x1a6   :  { %v1092_v12 = vmax.f32 %v1008_v8, 0.0  ;;  %v677_v43 = vpop.f32.mrb[4].mxu0 }
 0x1a7   :  { %v1072_v25 = vmax.f32 %v908_v52, 0.0  ;;  %v1091_v42 = vmax.f32 %v1003_v40, 0.0  ;;  %v1434_v9 = vadd.f32 %v2406_v54, %v677_v43  ;;  %v1272_v45 = vpop.f32.mrb[72].mxu1  ;;  %v679_v48 = vpop.f32.mrb[5].mxu0 }
 0x1a8   :  { %1126 = vst.msk [vmem:[%s2691_s3 + $0xa8] sm:$0xff] %vm263_vm0, %v1092_v12  ;;  %v1018_v51 = vadd.f32 %v1272_v45, %v2455_v26  ;;  %v1012_v20 = vpop.f32.mrb[73].mxu1 }
 0x1a9   :  { %1106 = vst.msk [vmem:[%s2691_s3 + $0x8] sm:$0xff] %vm263_vm0, %v1072_v25  ;;  %1125 = vst.msk [vmem:[%s2691_s3 + $0xa0] sm:$0xff] %vm263_vm0, %v1091_v42  ;;  %v913_v1 = vadd.f32 %v1434_v9, %v2472_v5  ;;  %v1013_v39 = vadd.f32 %v1012_v20, %v2450_v17 }
 0x1aa   :  { %v1094_v21 = vmax.f32 %v1018_v51, 0.0  ;;  %v682_v58 = vpop.f32.mrb[6].mxu0 }
 0x1ab   :  { %v1073_v14 = vmax.f32 %v913_v1, 0.0  ;;  %v1093_v60 = vmax.f32 %v1013_v39, 0.0  ;;  %v1435_v26 = vadd.f32 %v2406_v54, %v682_v58  ;;  %v1275_v53 = vpop.f32.mrb[74].mxu1  ;;  %v684_v2 = vpop.f32.mrb[7].mxu0 }
 0x1ac   :  { %1128 = vst.msk [vmem:[%s2691_s3 + $0xb8] sm:$0xff] %vm263_vm0, %v1094_v21  ;;  %v1028_v27 = vadd.f32 %v1275_v53, %v2467_v41  ;;  %v1022_v3 = vpop.f32.mrb[75].mxu1 }
 0x1ad   :  { %1107 = vst.msk [vmem:[%s2691_s3 + $0x10] sm:$0xff] %vm263_vm0, %v1073_v14  ;;  %1127 = vst.msk [vmem:[%s2691_s3 + $0xb0] sm:$0xff] %vm263_vm0, %v1093_v60  ;;  %v918_v17 = vadd.f32 %v1435_v26, %v2470_v47  ;;  %v1023_v5 = vadd.f32 %v1022_v3, %v2460_v35 }
 0x1ae   :  { %v1096_v7 = vmax.f32 %v1028_v27, 0.0  ;;  %v687_v33 = vpop.f32.mrb[8].mxu0 }
 0x1af   :  { %v1074_v10 = vmax.f32 %v918_v17, 0.0  ;;  %v1095_v36 = vmax.f32 %v1023_v5, 0.0  ;;  %v1436_v41 = vadd.f32 %v2406_v54, %v687_v33  ;;  %v1278_v18 = vpop.f32.mrb[76].mxu1  ;;  %v689_v16 = vpop.f32.mrb[9].mxu0 }
 0x1b0   :  { %1130 = vst.msk [vmem:[%s2691_s3 + $0xc8] sm:$0xff] %vm263_vm0, %v1096_v7  ;;  %v1038_v19 = vadd.f32 %v1278_v18, %v2481_v38  ;;  %v1032_v4 = vpop.f32.mrb[77].mxu1 }
 0x1b1   :  { %1108 = vst.msk [vmem:[%s2691_s3 + $0x18] sm:$0xff] %vm263_vm0, %v1074_v10  ;;  %1129 = vst.msk [vmem:[%s2691_s3 + $0xc0] sm:$0xff] %vm263_vm0, %v1095_v36  ;;  %v923_v35 = vadd.f32 %v1436_v41, %v2479_v55  ;;  %v1033_v47 = vadd.f32 %v1032_v4, %v2474_v44 }
 0x1b2   :  { %v1098_v22 = vmax.f32 %v1038_v19, 0.0  ;;  %v692_v57 = vpop.f32.mrb[10].mxu0 }
 0x1b3   :  { %v1075_v46 = vmax.f32 %v923_v35, 0.0  ;;  %v1097_v23 = vmax.f32 %v1033_v47, 0.0  ;;  %v1437_v38 = vadd.f32 %v2406_v54, %v692_v57  ;;  %v1281_v56 = vpop.f32.mrb[78].mxu1  ;;  %v694_v31 = vpop.f32.mrb[11].mxu0 }
 0x1b4   :  { %1132 = vst.msk [vmem:[%s2691_s3 + $0xd8] sm:$0xff] %vm263_vm0, %v1098_v22  ;;  %v1048_v59 = vadd.f32 %v1281_v56, %v2494_v49  ;;  %v1042_v0 = vpop.f32.mrb[79].mxu1 }
 0x1b5   :  { %1109 = vst.msk [vmem:[%s2691_s3 + $0x20] sm:$0xff] %vm263_vm0, %v1075_v46  ;;  %1131 = vst.msk [vmem:[%s2691_s3 + $0xd0] sm:$0xff] %vm263_vm0, %v1097_v23  ;;  %v928_v44 = vadd.f32 %v1437_v38, %v2477_v13  ;;  %v1043_v55 = vadd.f32 %v1042_v0, %v2488_v62 }
 0x1b6   :  { %v1100_v28 = vmax.f32 %v1048_v59, 0.0  ;;  %v697_v29 = vpop.f32.mrb[12].mxu0 }
 0x1b7   :  { %v1076_v32 = vmax.f32 %v928_v44, 0.0  ;;  %v1099_v24 = vmax.f32 %v1043_v55, 0.0  ;;  %v1438_v49 = vadd.f32 %v2406_v54, %v697_v29  ;;  %v1284_v50 = vpop.f32.mrb[80].mxu1  ;;  %v699_v8 = vpop.f32.mrb[13].mxu0 }
 0x1b8   :  { %1134 = vst.msk [vmem:[%s2691_s3 + $0xe8] sm:$0xff] %vm263_vm0, %v1100_v28  ;;  %v1058_v37 = vadd.f32 %v1284_v50, %v2517_v6  ;;  %v1052_v52 = vpop.f32.mrb[81].mxu1 }
 0x1b9   :  { %1110 = vst.msk [vmem:[%s2691_s3 + $0x28] sm:$0xff] %vm263_vm0, %v1076_v32  ;;  %1133 = vst.msk [vmem:[%s2691_s3 + $0xe0] sm:$0xff] %vm263_vm0, %v1099_v24  ;;  %v933_v13 = vadd.f32 %v1438_v49, %v2486_v63  ;;  %v1053_v62 = vadd.f32 %v1052_v52, %v2503_v11 }
 0x1ba   :  { %v1102_v40 = vmax.f32 %v1058_v37, 0.0  ;;  %v702_v12 = vpop.f32.mrb[14].mxu0 }
 0x1bb   :  { %v1077_v43 = vmax.f32 %v933_v13, 0.0  ;;  %v1101_v25 = vmax.f32 %v1053_v62, 0.0  ;;  %v1439_v6 = vadd.f32 %v2406_v54, %v702_v12  ;;  %v1287_v42 = vpop.f32.mrb[82].mxu1  ;;  %v704_v9 = vpop.f32.mrb[15].mxu0 }
 0x1bc   :  { %1136 = vst.msk [vmem:[%s2691_s3 + $0xf8] sm:$0xff] %vm263_vm0, %v1102_v40  ;;  %v1068_v45 = vadd.f32 %v1287_v42, %v2545_v30  ;;  %v1062_v48 = vpop.f32.mrb[83].mxu1 }
 0x1bd   :  { %1111 = vst.msk [vmem:[%s2691_s3 + $0x30] sm:$0xff] %vm263_vm0, %v1077_v43  ;;  %1135 = vst.msk [vmem:[%s2691_s3 + $0xf0] sm:$0xff] %vm263_vm0, %v1101_v25  ;;  %v938_v63 = vadd.f32 %v1439_v6, %v2484_v34  ;;  %v1063_v11 = vadd.f32 %v1062_v48, %v2531_v15 }
 0x1be   :  { %v1104_v51 = vmax.f32 %v1068_v45, 0.0  ;;  %v707_v20 = vpop.f32.mrb[16].mxu0 }
 0x1bf   :  { %v1078_v1 = vmax.f32 %v938_v63, 0.0  ;;  %v1103_v30 = vmax.f32 %v1063_v11, 0.0  ;;  %v1440_v39 = vadd.f32 %v2406_v54, %v707_v20  ;;  %v709_v21 = vpop.f32.mrb[17].mxu0 }
 0x1c0   :  { %1139 = vst.msk [vmem:[%s2691_s3 + $0x108] sm:$0x3] %vm1138_vm1, %v1104_v51 }
 0x1c1   :  { %1112 = vst.msk [vmem:[%s2691_s3 + $0x38] sm:$0xff] %vm263_vm0, %v1078_v1  ;;  %1137 = vst.msk [vmem:[%s2691_s3 + $0x100] sm:$0xff] %vm263_vm0, %v1103_v30  ;;  %v943_v34 = vadd.f32 %v1440_v39, %v2492_v61 }
 0x1c3   :  { %v1079_v15 = vmax.f32 %v943_v34, 0.0 }
 0x1c5   :  { %1113 = vst.msk [vmem:[%s2691_s3 + $0x40] sm:$0xff] %vm263_vm0, %v1079_v15 }

// kernel: _lambda_.18
= control target key start
LH: loop header
LB: loop body
LE: loop exit
PB: predicated region body
PF: predicated region fallthrough
CT: control target
= control target key end

     0   :  { %vm193_vm0 = vcmask 523264   ;;  %vm576_vm1 = vcmask 521216   ;;  %s1463_s1 = inlined_call_operand.vmem [shape: f32[1216,64], index: 1, kind: input, shape index: {}]   ;;  %s1464_s0 = inlined_call_operand.vmem [shape: f32[14,1216], index: 0, kind: input, shape index: {}]   ;;  %s1465_s2 = inlined_call_operand.vmem [shape: f32[1,64], index: 2, kind: input, shape index: {}]   ;;  %s1466_s3 = inlined_call_operand.vmem [shape: f32[14,64], index: 3, kind: output, shape index: {}]  }
   0x1   :  { %v50_v0 = vld [vmem:[%s1463_s1 + $0x80] sm:$0xff]  ;;  %v51_v1 = vld [vmem:[%s1463_s1 + $0x88] sm:$0xff]  ;;  %v52_v5 = vld [vmem:[%s1463_s1 + $0x90] sm:$0xff] }
   0x2   :  { %v34_v2 = vld [vmem:[%s1463_s1] sm:$0xff]  ;;  %v737_v3 = vpack.c.bf16 %v51_v1, %v50_v0  ;;  %v35_v4 = vld [vmem:[%s1463_s1 + $0x8] sm:$0xff]  ;;  %v53_v6 = vld [vmem:[%s1463_s1 + $0x98] sm:$0xff] }
   0x3   :  { %v739_v7 = vpack.c.bf16 %v35_v4, %v34_v2  ;;  %v741_v8 = vpack.c.bf16 %v53_v6, %v52_v5  ;;  %v36_v9 = vld [vmem:[%s1463_s1 + $0x10] sm:$0xff]  ;;  %v37_v10 = vld [vmem:[%s1463_s1 + $0x18] sm:$0xff]  ;;  %v54_v11 = vld [vmem:[%s1463_s1 + $0xa0] sm:$0xff] }
   0x4   :  { %738 = vmatprep.subr.bf16.mxu1 %v737_v3  ;;  %v55_v12 = vld [vmem:[%s1463_s1 + $0xa8] sm:$0xff]  ;;  %v743_v13 = vpack.c.bf16 %v37_v10, %v36_v9  ;;  %v38_v15 = vld [vmem:[%s1463_s1 + $0x20] sm:$0xff]  ;;  %v56_v17 = vld [vmem:[%s1463_s1 + $0xb0] sm:$0xff] }
   0x5   :  { %740 = vmatpush3.bf16.msra.mxu1 %v739_v7  ;;  %v745_v14 = vpack.c.bf16 %v55_v12, %v54_v11  ;;  %v39_v16 = vld [vmem:[%s1463_s1 + $0x28] sm:$0xff]  ;;  %v57_v18 = vld [vmem:[%s1463_s1 + $0xb8] sm:$0xff]  ;;  %v114_v19 = vld [vmem:[%s1463_s1 + $0x280] sm:$0xff] }
   0x6   :  { %742 = vmatprep.subr.bf16.mxu1 %v741_v8  ;;  %v115_v20 = vld [vmem:[%s1463_s1 + $0x288] sm:$0xff]  ;;  %v747_v21 = vpack.c.bf16 %v39_v16, %v38_v15  ;;  %v40_v22 = vld [vmem:[%s1463_s1 + $0x30] sm:$0xff]  ;;  %v98_v24 = vld [vmem:[%s1463_s1 + $0x200] sm:$0xff]  ;;  %v749_v25 = vpack.c.bf16 %v57_v18, %v56_v17 }
   0x7   :  { %v801_v23 = vpack.c.bf16 %v115_v20, %v114_v19  ;;  %v41_v26 = vld [vmem:[%s1463_s1 + $0x38] sm:$0xff]  ;;  %v58_v27 = vld [vmem:[%s1463_s1 + $0xc0] sm:$0xff]  ;;  %v99_v28 = vld [vmem:[%s1463_s1 + $0x208] sm:$0xff] }
   0x8   :  { %v59_v29 = vld [vmem:[%s1463_s1 + $0xc8] sm:$0xff]  ;;  %v803_v30 = vpack.c.bf16 %v99_v28, %v98_v24  ;;  %v116_v31 = vld [vmem:[%s1463_s1 + $0x290] sm:$0xff]  ;;  %v117_v32 = vld [vmem:[%s1463_s1 + $0x298] sm:$0xff]  ;;  %v751_v36 = vpack.c.bf16 %v41_v26, %v40_v22 }
   0x9   :  { %744 = vmatpush3.bf16.msra.mxu1 %v743_v13  ;;  %802 = vmatprep.subr.bf16.mxu0 %v801_v23  ;;  %v805_v33 = vpack.c.bf16 %v117_v32, %v116_v31  ;;  %v100_v34 = vld [vmem:[%s1463_s1 + $0x210] sm:$0xff]  ;;  %v101_v35 = vld [vmem:[%s1463_s1 + $0x218] sm:$0xff]  ;;  %v42_v37 = vld [vmem:[%s1463_s1 + $0x40] sm:$0xff]  ;;  %v753_v41 = vpack.c.bf16 %v59_v29, %v58_v27 }
   0xa   :  { %746 = vmatprep.subr.bf16.mxu1 %v745_v14  ;;  %v43_v38 = vld [vmem:[%s1463_s1 + $0x48] sm:$0xff]  ;;  %804 = vmatpush3.bf16.msra.mxu0 %v803_v30  ;;  %v807_v39 = vpack.c.bf16 %v101_v35, %v100_v34  ;;  %v118_v40 = vld [vmem:[%s1463_s1 + $0x2a0] sm:$0xff]  ;;  %v60_v42 = vld [vmem:[%s1463_s1 + $0xd0] sm:$0xff] }
   0xb   :  { %v61_v43 = vld [vmem:[%s1463_s1 + $0xd8] sm:$0xff]  ;;  %806 = vmatprep.subr.bf16.mxu0 %v805_v33  ;;  %v119_v44 = vld [vmem:[%s1463_s1 + $0x2a8] sm:$0xff]  ;;  %v102_v46 = vld [vmem:[%s1463_s1 + $0x220] sm:$0xff]  ;;  %v755_v49 = vpack.c.bf16 %v43_v38, %v42_v37 }
   0xc   :  { %v809_v45 = vpack.c.bf16 %v119_v44, %v118_v40  ;;  %v103_v47 = vld [vmem:[%s1463_s1 + $0x228] sm:$0xff]  ;;  %v44_v50 = vld [vmem:[%s1463_s1 + $0x50] sm:$0xff]  ;;  %v121_v53 = vld [vmem:[%s1463_s1 + $0x2b8] sm:$0xff]  ;;  %v757_v54 = vpack.c.bf16 %v61_v43, %v60_v42 }
   0xd   :  { %748 = vmatpush3.bf16.msra.mxu1 %v747_v21  ;;  %v15_v48 = vld [vmem:[%s1464_s0 + $0x8] sm:$0xff]  ;;  %v811_v51 = vpack.c.bf16 %v103_v47, %v102_v46  ;;  %v120_v52 = vld [vmem:[%s1463_s1 + $0x2b0] sm:$0xff]  ;;  %v45_v55 = vld [vmem:[%s1463_s1 + $0x58] sm:$0xff] }
   0xe   :  { %750 = vmatprep.subr.bf16.mxu1 %v749_v25  ;;  %264 = vmatprep.mubr.f32.mxu1 %v15_v48  ;;  %v813_v56 = vpack.c.bf16 %v121_v53, %v120_v52  ;;  %v104_v57 = vld [vmem:[%s1463_s1 + $0x230] sm:$0xff]  ;;  %v105_v58 = vld [vmem:[%s1463_s1 + $0x238] sm:$0xff]  ;;  %v62_v59 = vld [vmem:[%s1463_s1 + $0xe0] sm:$0xff]  ;;  %v759_v63 = vpack.c.bf16 %v45_v55, %v44_v50 }
   0xf   :  { %808 = vmatpush3.bf16.msra.mxu0 %v807_v39  ;;  %v63_v60 = vld [vmem:[%s1463_s1 + $0xe8] sm:$0xff]  ;;  %v122_v61 = vld [vmem:[%s1463_s1 + $0x2c0] sm:$0xff]  ;;  %v815_v2 = vpack.c.bf16 %v105_v58, %v104_v57  ;;  %v64_v4 = vld [vmem:[%s1463_s1 + $0xf0] sm:$0xff] }
  0x10   :  { %810 = vmatprep.subr.bf16.mxu0 %v809_v45  ;;  %v123_v62 = vld [vmem:[%s1463_s1 + $0x2c8] sm:$0xff]  ;;  %v46_v0 = vld [vmem:[%s1463_s1 + $0x60] sm:$0xff]  ;;  %v761_v3 = vpack.c.bf16 %v63_v60, %v62_v59  ;;  %v65_v8 = vld [vmem:[%s1463_s1 + $0xf8] sm:$0xff] }
  0x11   :  { %752 = vmatpush3.bf16.msra.mxu1 %v751_v36  ;;  %v47_v1 = vld [vmem:[%s1463_s1 + $0x68] sm:$0xff]  ;;  %v817_v5 = vpack.c.bf16 %v123_v62, %v122_v61  ;;  %v106_v6 = vld [vmem:[%s1463_s1 + $0x240] sm:$0xff]  ;;  %v124_v9 = vld [vmem:[%s1463_s1 + $0x2d0] sm:$0xff]  ;;  %v765_v15 = vpack.c.bf16 %v65_v8, %v64_v4 }
  0x12   :  { %754 = vmatprep.subr.bf16.mxu1 %v753_v41  ;;  %v107_v7 = vld [vmem:[%s1463_s1 + $0x248] sm:$0xff]  ;;  %v125_v10 = vld [vmem:[%s1463_s1 + $0x2d8] sm:$0xff]  ;;  %v763_v11 = vpack.c.bf16 %v47_v1, %v46_v0  ;;  %v48_v12 = vld [vmem:[%s1463_s1 + $0x70] sm:$0xff]  ;;  %v902_v1 = vmov 0.0|0.0  }
  0x13   :  { %812 = vmatpush3.bf16.msra.mxu0 %v811_v51  ;;  %v49_v13 = vld [vmem:[%s1463_s1 + $0x78] sm:$0xff]  ;;  %v819_v14 = vpack.c.bf16 %v107_v7, %v106_v6  ;;  %v82_v16 = vld [vmem:[%s1463_s1 + $0x180] sm:$0xff]  ;;  %v821_v17 = vpack.c.bf16 %v125_v10, %v124_v9  ;;  %v108_v18 = vld [vmem:[%s1463_s1 + $0x250] sm:$0xff] }
  0x14   :  { %814 = vmatprep.subr.bf16.mxu0 %v813_v56  ;;  %v109_v19 = vld [vmem:[%s1463_s1 + $0x258] sm:$0xff]  ;;  %v83_v20 = vld [vmem:[%s1463_s1 + $0x188] sm:$0xff]  ;;  %v126_v21 = vld [vmem:[%s1463_s1 + $0x2e0] sm:$0xff]  ;;  %v767_v23 = vpack.c.bf16 %v49_v13, %v48_v12 }
  0x15   :  { %756 = vmatpush3.bf16.msra.mxu1 %v755_v49  ;;  %v127_v22 = vld [vmem:[%s1463_s1 + $0x2e8] sm:$0xff]  ;;  %v66_v24 = vld [vmem:[%s1463_s1 + $0x100] sm:$0xff]  ;;  %v84_v26 = vld [vmem:[%s1463_s1 + $0x190] sm:$0xff]  ;;  %v823_v27 = vpack.c.bf16 %v109_v19, %v108_v18  ;;  %v769_v28 = vpack.c.bf16 %v83_v20, %v82_v16 }
  0x16   :  { %758 = vmatprep.subr.bf16.mxu1 %v757_v54  ;;  %v67_v25 = vld [vmem:[%s1463_s1 + $0x108] sm:$0xff]  ;;  %v825_v29 = vpack.c.bf16 %v127_v22, %v126_v21  ;;  %v110_v30 = vld [vmem:[%s1463_s1 + $0x260] sm:$0xff]  ;;  %v85_v33 = vld [vmem:[%s1463_s1 + $0x198] sm:$0xff] }
  0x17   :  { %816 = vmatpush3.bf16.msra.mxu0 %v815_v2  ;;  %v111_v31 = vld [vmem:[%s1463_s1 + $0x268] sm:$0xff]  ;;  %v128_v34 = vld [vmem:[%s1463_s1 + $0x2f0] sm:$0xff]  ;;  %v129_v35 = vld [vmem:[%s1463_s1 + $0x2f8] sm:$0xff]  ;;  %v771_v37 = vpack.c.bf16 %v67_v25, %v66_v24  ;;  %v773_v40 = vpack.c.bf16 %v85_v33, %v84_v26 }
  0x18   :  { %818 = vmatprep.subr.bf16.mxu0 %v817_v5  ;;  %v19_v32 = vld [vmem:[%s1464_s0 + $0x28] sm:$0xff]  ;;  %v14_v36 = vld [vmem:[%s1464_s0] sm:$0xff]  ;;  %v68_v38 = vld [vmem:[%s1463_s1 + $0x110] sm:$0xff]  ;;  %v827_v39 = vpack.c.bf16 %v111_v31, %v110_v30  ;;  %v829_v42 = vpack.c.bf16 %v129_v35, %v128_v34 }
  0x19   :  { %760 = vmatpush3.bf16.msra.mxu1 %v759_v63  ;;  %414 = vmatprep.mubr.f32.mxu0 %v19_v32  ;;  %v69_v41 = vld [vmem:[%s1463_s1 + $0x118] sm:$0xff]  ;;  %v112_v43 = vld [vmem:[%s1463_s1 + $0x270] sm:$0xff]  ;;  %v86_v45 = vld [vmem:[%s1463_s1 + $0x1a0] sm:$0xff] }
  0x1a   :  { %762 = vmatprep.subr.bf16.mxu1 %v761_v3  ;;  %v113_v44 = vld [vmem:[%s1463_s1 + $0x278] sm:$0xff]  ;;  %v87_v46 = vld [vmem:[%s1463_s1 + $0x1a8] sm:$0xff]  ;;  %v775_v48 = vpack.c.bf16 %v69_v41, %v68_v38  ;;  %v70_v49 = vld [vmem:[%s1463_s1 + $0x120] sm:$0xff] }
  0x1b   :  { %820 = vmatpush3.bf16.msra.mxu0 %v819_v14  ;;  %v25_v47 = vld [vmem:[%s1464_s0 + $0x58] sm:$0x3f]  ;;  %v831_v50 = vpack.c.bf16 %v113_v44, %v112_v43  ;;  %v24_v51 = vld [vmem:[%s1464_s0 + $0x50] sm:$0x3f]  ;;  %v777_v52 = vpack.c.bf16 %v87_v46, %v86_v45  ;;  %v71_v53 = vld [vmem:[%s1463_s1 + $0x128] sm:$0xff] }
  0x1c   :  { %822 = vmatprep.subr.bf16.mxu0 %v821_v17  ;;  %v162_v54 = vld [vmem:[%s1463_s1 + $0x400] sm:$0xff]  ;;  %v163_v55 = vld [vmem:[%s1463_s1 + $0x408] sm:$0xff]  ;;  %v88_v56 = vld [vmem:[%s1463_s1 + $0x1b0] sm:$0xff]  ;;  %v779_v59 = vpack.c.bf16 %v71_v53, %v70_v49 }
  0x1d   :  { %764 = vmatpush3.bf16.msra.mxu1 %v763_v11  ;;  %v89_v57 = vld [vmem:[%s1463_s1 + $0x1b8] sm:$0xff]  ;;  %v72_v60 = vld [vmem:[%s1463_s1 + $0x130] sm:$0xff]  ;;  %v18_v61 = vld [vmem:[%s1464_s0 + $0x20] sm:$0xff]  ;;  %v866_v62 = vpack.c.bf16 %v163_v55, %v162_v54 }
  0x1e   :  { %766 = vmatprep.subr.bf16.mxu1 %v765_v15  ;;  %v17_v58 = vld [vmem:[%s1464_s0 + $0x18] sm:$0xff]  ;;  %v781_v63 = vpack.c.bf16 %v89_v57, %v88_v56  ;;  %v164_v2 = vld [vmem:[%s1463_s1 + $0x410] sm:$0xff]  ;;  %v90_v4 = vld [vmem:[%s1463_s1 + $0x1c0] sm:$0xff] }
  0x1f   :  { %824 = vmatpush3.bf16.msra.mxu0 %v823_v27  ;;  %v73_v0 = vld [vmem:[%s1463_s1 + $0x138] sm:$0xff]  ;;  %v91_v5 = vld [vmem:[%s1463_s1 + $0x1c8] sm:$0xff]  ;;  %v74_v8 = vld [vmem:[%s1463_s1 + $0x140] sm:$0xff] }
  0x20   :  { %826 = vmatprep.subr.bf16.mxu0 %v825_v29  ;;  %v165_v3 = vld [vmem:[%s1463_s1 + $0x418] sm:$0xff]  ;;  %v783_v7 = vpack.c.bf16 %v73_v0, %v72_v60  ;;  %v28_v10 = vld [vmem:[%s1464_s0 + $0x70] sm:$0x3f]  ;;  %v785_v11 = vpack.c.bf16 %v91_v5, %v90_v4  ;;  %v75_v12 = vld [vmem:[%s1463_s1 + $0x148] sm:$0xff] }
  0x21   :  { %768 = vmatpush3.bf16.msra.mxu1 %v767_v23  ;;  %v29_v6 = vld [vmem:[%s1464_s0 + $0x78] sm:$0x3f]  ;;  %v869_v9 = vpack.c.bf16 %v165_v3, %v164_v2  ;;  %v166_v13 = vld [vmem:[%s1463_s1 + $0x420] sm:$0xff]  ;;  %v167_v14 = vld [vmem:[%s1463_s1 + $0x428] sm:$0xff]  ;;  %v787_v17 = vpack.c.bf16 %v75_v12, %v74_v8 }
  0x22   :  { %770 = vmatprep.subr.bf16.mxu1 %v769_v28  ;;  %v92_v15 = vld [vmem:[%s1463_s1 + $0x1d0] sm:$0xff]  ;;  %v93_v16 = vld [vmem:[%s1463_s1 + $0x1d8] sm:$0xff]  ;;  %v872_v19 = vpack.c.bf16 %v167_v14, %v166_v13  ;;  %v94_v24 = vld [vmem:[%s1463_s1 + $0x1e0] sm:$0xff] }
  0x23   :  { %828 = vmatpush3.bf16.msra.mxu0 %v827_v39  ;;  %v76_v18 = vld [vmem:[%s1463_s1 + $0x150] sm:$0xff]  ;;  %v789_v20 = vpack.c.bf16 %v93_v16, %v92_v15  ;;  %v77_v21 = vld [vmem:[%s1463_s1 + $0x158] sm:$0xff]  ;;  %v95_v25 = vld [vmem:[%s1463_s1 + $0x1e8] sm:$0xff] }
  0x24   :  { %265 = vmatmul.mubr.f32.vlgmr.msra.gmra.mrb[0].mxu1 %v14_v36  ;;  %830 = vmatprep.subr.bf16.mxu0 %v829_v42  ;;  %v168_v22 = vld [vmem:[%s1463_s1 + $0x430] sm:$0xff]  ;;  %v169_v23 = vld [vmem:[%s1463_s1 + $0x438] sm:$0xff]  ;;  %v791_v26 = vpack.c.bf16 %v77_v21, %v76_v18  ;;  %v78_v27 = vld [vmem:[%s1463_s1 + $0x160] sm:$0xff]  ;;  %v793_v29 = vpack.c.bf16 %v95_v25, %v94_v24 }
  0x25   :  { %772 = vmatpush3.bf16.msra.mxu1 %v771_v37  ;;  %269 = vmatprep.mubr.f32.mxu1 %v25_v47  ;;  %v875_v28 = vpack.c.bf16 %v169_v23, %v168_v22  ;;  %v79_v30 = vld [vmem:[%s1463_s1 + $0x168] sm:$0xff]  ;;  %v170_v31 = vld [vmem:[%s1463_s1 + $0x440] sm:$0xff]  ;;  %v96_v33 = vld [vmem:[%s1463_s1 + $0x1f0] sm:$0xff] }
  0x26   :  { %774 = vmatprep.subr.bf16.mxu1 %v773_v40  ;;  %v171_v32 = vld [vmem:[%s1463_s1 + $0x448] sm:$0xff]  ;;  %v97_v34 = vld [vmem:[%s1463_s1 + $0x1f8] sm:$0xff]  ;;  %v795_v36 = vpack.c.bf16 %v79_v30, %v78_v27  ;;  %v80_v37 = vld [vmem:[%s1463_s1 + $0x170] sm:$0xff] }
  0x27   :  { %832 = vmatpush3.bf16.msra.mxu0 %v831_v50  ;;  %v23_v35 = vld [vmem:[%s1464_s0 + $0x48] sm:$0xff]  ;;  %v878_v38 = vpack.c.bf16 %v171_v32, %v170_v31  ;;  %v797_v39 = vpack.c.bf16 %v97_v34, %v96_v33  ;;  %v81_v40 = vld [vmem:[%s1463_s1 + $0x178] sm:$0xff]  ;;  %v172_v41 = vld [vmem:[%s1463_s1 + $0x450] sm:$0xff] }
  0x28   :  { %270 = vmatmul.mubr.f32.gmra.mrb[2].mxu1 %v24_v51  ;;  %865 = vmatprep.subr.bf16.mxu0 %v902_v1  ;;  %v173_v42 = vld [vmem:[%s1463_s1 + $0x458] sm:$0xff]  ;;  %v146_v43 = vld [vmem:[%s1463_s1 + $0x380] sm:$0xff]  ;;  %v147_v44 = vld [vmem:[%s1463_s1 + $0x388] sm:$0xff]  ;;  %v799_v45 = vpack.c.bf16 %v81_v40, %v80_v37 }
  0x29   :  { %776 = vmatpush3.bf16.msra.mxu1 %v775_v48  ;;  %339 = vmatprep.mubr.f32.mxu1 %v17_v58  ;;  %v881_v46 = vpack.c.bf16 %v173_v42, %v172_v41  ;;  %v833_v47 = vpack.c.bf16 %v147_v44, %v146_v43  ;;  %v130_v48 = vld [vmem:[%s1463_s1 + $0x300] sm:$0xff]  ;;  %v131_v49 = vld [vmem:[%s1463_s1 + $0x308] sm:$0xff]  ;;  %v148_v50 = vld [vmem:[%s1463_s1 + $0x390] sm:$0xff] }
  0x2a   :  { %778 = vmatprep.subr.bf16.mxu1 %v777_v52  ;;  %415 = vmatmul.mubr.f32.vlgmr.msra.gmra.mrb[0].mxu0 %v18_v61  ;;  %v149_v51 = vld [vmem:[%s1463_s1 + $0x398] sm:$0xff]  ;;  %v174_v52 = vld [vmem:[%s1463_s1 + $0x460] sm:$0xff]  ;;  %v175_v53 = vld [vmem:[%s1463_s1 + $0x468] sm:$0xff]  ;;  %v835_v55 = vpack.c.bf16 %v131_v49, %v130_v48 }
  0x2b   :  { %867 = vmatpush1.bf16.msra.mxu0 %v866_v62  ;;  %419 = vmatprep.mubr.f32.mxu0 %v29_v6  ;;  %v16_v54 = vld [vmem:[%s1464_s0 + $0x10] sm:$0xff]  ;;  %v27_v56 = vld [vmem:[%s1464_s0 + $0x68] sm:$0x3f]  ;;  %v837_v57 = vpack.c.bf16 %v149_v51, %v148_v50  ;;  %v150_v60 = vld [vmem:[%s1463_s1 + $0x3a0] sm:$0xff]  ;;  %v884_v61 = vpack.c.bf16 %v175_v53, %v174_v52 }
  0x2c   :  { %868 = vmatprep.subr.bf16.mxu0 %v902_v1  ;;  %v132_v58 = vld [vmem:[%s1463_s1 + $0x310] sm:$0xff]  ;;  %v151_v62 = vld [vmem:[%s1463_s1 + $0x3a8] sm:$0xff]  ;;  %v177_v0 = vld [vmem:[%s1463_s1 + $0x478] sm:$0xff] }
  0x2d   :  { %780 = vmatpush3.bf16.msra.mxu1 %v779_v59  ;;  %v133_v59 = vld [vmem:[%s1463_s1 + $0x318] sm:$0xff]  ;;  %v26_v2 = vld [vmem:[%s1464_s0 + $0x60] sm:$0x3f]  ;;  %v841_v5 = vpack.c.bf16 %v151_v62, %v150_v60  ;;  %v135_v6 = vld [vmem:[%s1463_s1 + $0x328] sm:$0xff] }
  0x2e   :  { %782 = vmatprep.subr.bf16.mxu1 %v781_v63  ;;  %420 = vmatmul.mubr.f32.gmra.mrb[2].mxu0 %v28_v10  ;;  %v176_v63 = vld [vmem:[%s1463_s1 + $0x470] sm:$0xff]  ;;  %v839_v3 = vpack.c.bf16 %v133_v59, %v132_v58  ;;  %v134_v4 = vld [vmem:[%s1463_s1 + $0x320] sm:$0xff]  ;;  %v153_v10 = vld [vmem:[%s1463_s1 + $0x3b8] sm:$0xff] }
  0x2f   :  { %870 = vmatpush1.bf16.msra.mxu0 %v869_v9  ;;  %583 = vmatprep.mubr.msk.f32.mxu0 %vm193_vm0, %v23_v35  ;;  %v887_v8 = vpack.c.bf16 %v177_v0, %v176_v63  ;;  %v21_v9 = vld [vmem:[%s1464_s0 + $0x38] sm:$0xff]  ;;  %v179_v12 = vld [vmem:[%s1463_s1 + $0x488] sm:$0xff]  ;;  %v843_v13 = vpack.c.bf16 %v135_v6, %v134_v4  ;;  %v136_v15 = vld [vmem:[%s1463_s1 + $0x330] sm:$0xff] }
  0x30   :  { %871 = vmatprep.subr.bf16.mxu0 %v902_v1  ;;  %v137_v16 = vld [vmem:[%s1463_s1 + $0x338] sm:$0xff]  ;;  %v138_v24 = vld [vmem:[%s1463_s1 + $0x340] sm:$0xff]  ;;  %v139_v25 = vld [vmem:[%s1463_s1 + $0x348] sm:$0xff] }
  0x31   :  { %784 = vmatpush3.bf16.msra.mxu1 %v783_v7  ;;  %v152_v7 = vld [vmem:[%s1463_s1 + $0x3b0] sm:$0xff]  ;;  %v181_v21 = vld [vmem:[%s1463_s1 + $0x498] sm:$0xff]  ;;  %v847_v22 = vpack.c.bf16 %v137_v16, %v136_v15  ;;  %v183_v30 = vld [vmem:[%s1463_s1 + $0x4a8] sm:$0xff]  ;;  %v851_v31 = vpack.c.bf16 %v139_v25, %v138_v24 }
  0x32   :  { %786 = vmatprep.subr.bf16.mxu1 %v785_v11  ;;  %v178_v11 = vld [vmem:[%s1463_s1 + $0x480] sm:$0xff]  ;;  %v845_v14 = vpack.c.bf16 %v153_v10, %v152_v7  ;;  %v140_v33 = vld [vmem:[%s1463_s1 + $0x350] sm:$0xff]  ;;  %v141_v34 = vld [vmem:[%s1463_s1 + $0x358] sm:$0xff] }
  0x33   :  { %873 = vmatpush1.bf16.msra.mxu0 %v872_v19  ;;  %v890_v18 = vpack.c.bf16 %v179_v12, %v178_v11  ;;  %v155_v19 = vld [vmem:[%s1463_s1 + $0x3c8] sm:$0xff]  ;;  %v158_v35 = vld [vmem:[%s1463_s1 + $0x3e0] sm:$0xff]  ;;  %v855_v40 = vpack.c.bf16 %v141_v34, %v140_v33  ;;  %v144_v49 = vld [vmem:[%s1463_s1 + $0x370] sm:$0xff] }
  0x34   :  { %874 = vmatprep.subr.bf16.mxu0 %v902_v1  ;;  %v159_v37 = vld [vmem:[%s1463_s1 + $0x3e8] sm:$0xff]  ;;  %v142_v42 = vld [vmem:[%s1463_s1 + $0x360] sm:$0xff]  ;;  %v145_v50 = vld [vmem:[%s1463_s1 + $0x378] sm:$0xff] }
  0x35   :  { %788 = vmatpush3.bf16.msra.mxu1 %v787_v17  ;;  %v154_v17 = vld [vmem:[%s1463_s1 + $0x3c0] sm:$0xff]  ;;  %v857_v41 = vpack.c.bf16 %v159_v37, %v158_v35  ;;  %v143_v43 = vld [vmem:[%s1463_s1 + $0x368] sm:$0xff]  ;;  %v863_v52 = vpack.c.bf16 %v145_v50, %v144_v49  ;;  %v32_v53 = vld [vmem:[%s1464_s0 + $0x90] sm:$0x3f] }
  0x36   :  { %790 = vmatprep.subr.bf16.mxu1 %v789_v20  ;;  %v180_v20 = vld [vmem:[%s1463_s1 + $0x490] sm:$0xff]  ;;  %v849_v23 = vpack.c.bf16 %v155_v19, %v154_v17  ;;  %v22_v51 = vld [vmem:[%s1464_s0 + $0x40] sm:$0xff] }
  0x37   :  { %876 = vmatpush1.bf16.msra.mxu0 %v875_v28  ;;  %v893_v27 = vpack.c.bf16 %v181_v21, %v180_v20  ;;  %v157_v28 = vld [vmem:[%s1463_s1 + $0x3d8] sm:$0xff]  ;;  %v582_v6 = vld [vmem:[%s1465_s2] ss:$0 sm:$0xff] }
  0x38   :  { %877 = vmatprep.subr.bf16.mxu0 %v902_v1 }
  0x39   :  { %792 = vmatpush3.bf16.msra.mxu1 %v791_v26  ;;  %v156_v26 = vld [vmem:[%s1463_s1 + $0x3d0] sm:$0xff] }
  0x3a   :  { %794 = vmatprep.subr.bf16.mxu1 %v793_v29  ;;  %v182_v29 = vld [vmem:[%s1463_s1 + $0x4a0] sm:$0xff]  ;;  %v853_v32 = vpack.c.bf16 %v157_v28, %v156_v26 }
  0x3b   :  { %879 = vmatpush1.bf16.msra.mxu0 %v878_v38  ;;  %v184_v38 = vld [vmem:[%s1463_s1 + $0x4b0] sm:$0xff] }
  0x3c   :  { %880 = vmatprep.subr.bf16.mxu0 %v902_v1 }
  0x3d   :  { %796 = vmatpush3.bf16.msra.mxu1 %v795_v36  ;;  %v896_v36 = vpack.c.bf16 %v183_v30, %v182_v29 }
  0x3e   :  { %798 = vmatprep.subr.bf16.mxu1 %v797_v39  ;;  %v185_v39 = vld [vmem:[%s1463_s1 + $0x4b8] sm:$0xff] }
  0x3f   :  { %882 = vmatpush1.bf16.msra.mxu0 %v881_v46  ;;  %v899_v44 = vpack.c.bf16 %v185_v39, %v184_v38  ;;  %v161_v46 = vld [vmem:[%s1463_s1 + $0x3f8] sm:$0xff] }
  0x40   :  { %883 = vmatprep.subr.bf16.mxu0 %v902_v1 }
  0x41   :  { %800 = vmatpush3.bf16.msra.mxu1 %v799_v45  ;;  %v160_v45 = vld [vmem:[%s1463_s1 + $0x3f0] sm:$0xff] }
  0x42   :  { %834 = vmatprep.subr.bf16.mxu1 %v833_v47  ;;  %v859_v47 = vpack.c.bf16 %v143_v43, %v142_v42  ;;  %v861_v48 = vpack.c.bf16 %v161_v46, %v160_v45 }
  0x43   :  { %885 = vmatpush1.bf16.msra.mxu0 %v884_v61 }
  0x44   :  { %340 = vmatmul.mubr.f32.vlgmr.msra.gmra.mrb[4].mxu1 %v16_v54  ;;  %886 = vmatprep.subr.bf16.mxu0 %v902_v1  ;;  %v20_v54 = vld [vmem:[%s1464_s0 + $0x30] sm:$0xff] }
  0x45   :  { %836 = vmatpush3.bf16.msra.mxu1 %v835_v55  ;;  %344 = vmatprep.mubr.f32.mxu1 %v27_v56  ;;  %v31_v55 = vld [vmem:[%s1464_s0 + $0x88] sm:$0x3f]  ;;  %v30_v56 = vld [vmem:[%s1464_s0 + $0x80] sm:$0x3f] }
  0x46   :  { %838 = vmatprep.subr.bf16.mxu1 %v837_v57 }
  0x47   :  { %888 = vmatpush1.bf16.msra.mxu0 %v887_v8 }
  0x48   :  { %345 = vmatmul.mubr.f32.gmra.mrb[6].mxu1 %v26_v2  ;;  %889 = vmatprep.subr.bf16.mxu0 %v902_v1 }
  0x49   :  { %840 = vmatpush3.bf16.msra.mxu1 %v839_v3  ;;  %489 = vmatprep.mubr.f32.mxu1 %v21_v9 }
  0x4a   :  { %842 = vmatprep.subr.bf16.mxu1 %v841_v5 }
  0x4b   :  { %891 = vmatpush1.bf16.msra.mxu0 %v890_v18 }
  0x4c   :  { %892 = vmatprep.subr.bf16.mxu0 %v902_v1 }
  0x4d   :  { %844 = vmatpush3.bf16.msra.mxu1 %v843_v13 }
  0x4e   :  { %846 = vmatprep.subr.bf16.mxu1 %v845_v14 }
  0x4f   :  { %894 = vmatpush1.bf16.msra.mxu0 %v893_v27 }
  0x50   :  { %895 = vmatprep.subr.bf16.mxu0 %v902_v1 }
  0x51   :  { %848 = vmatpush3.bf16.msra.mxu1 %v847_v22 }
  0x52   :  { %850 = vmatprep.subr.bf16.mxu1 %v849_v23 }
  0x53   :  { %897 = vmatpush1.bf16.msra.mxu0 %v896_v36 }
  0x54   :  { %898 = vmatprep.subr.bf16.mxu0 %v902_v1  ;;  %v33_v1 = vld [vmem:[%s1464_s0 + $0x98] sm:$0x3f] }
  0x55   :  { %852 = vmatpush3.bf16.msra.mxu1 %v851_v31 }
  0x56   :  { %854 = vmatprep.subr.bf16.mxu1 %v853_v32 }
  0x57   :  { %900 = vmatpush1.bf16.msra.mxu0 %v899_v44 }
  0x59   :  { %856 = vmatpush3.bf16.msra.mxu1 %v855_v40 }
  0x5a   :  { %858 = vmatprep.subr.bf16.mxu1 %v857_v41  ;;  %565 = vmatmul.mubr.f32.vlgmr.msra.gmra.mrb[4].mxu0 %v22_v51 }
  0x5b   :  { %584 = vmatprep.mubr.msk.f32.mxu0 %vm193_vm0, %v33_v1 }
  0x5d   :  { %860 = vmatpush3.bf16.msra.mxu1 %v859_v47 }
  0x5e   :  { %862 = vmatprep.subr.bf16.mxu1 %v861_v48  ;;  %570 = vmatmul.mubr.f32.gmra.mrb[6].mxu0 %v32_v53 }
  0x61   :  { %864 = vmatpush3.bf16.msra.mxu1 %v863_v52 }
  0x64   :  { %490 = vmatmul.mubr.f32.vlgmr.msra.gmra.mrb[8].mxu1 %v20_v54 }
  0x65   :  { %494 = vmatprep.mubr.f32.mxu1 %v31_v55 }
  0x68   :  { %495 = vmatmul.mubr.f32.gmra.mrb[10].mxu1 %v30_v56 }
  0xf7   :  { %v617_v57 = vpop.f32.mrb[0].mxu1 }
  0xf8   :  { %v618_v58 = vpop.f32.mrb[1].mxu1 }
  0xf9   :  { %v619_v59 = vadd.f32 %v618_v58, %v617_v57 }
  0xfb   :  { %v620_v60 = vpop.f32.mrb[2].mxu1  ;;  %v267_v9 = vadd.f32 %v619_v59, %v582_v6 }
  0xfc   :  { %v621_v61 = vpop.f32.mrb[3].mxu1 }
  0xfd   :  { %v622_v62 = vadd.f32 %v621_v61, %v620_v60  ;;  %v693_v63 = vpop.f32.mrb[0].mxu0 }
  0xfe   :  { %v694_v0 = vpop.f32.mrb[1].mxu0 }
  0xff   :  { %v695_v2 = vadd.f32 %v694_v0, %v693_v63  ;;  %v272_v14 = vadd.f32 %v622_v62, %v582_v6 }
 0x101   :  { %v696_v3 = vpop.f32.mrb[2].mxu0 }
 0x102   :  { %v697_v4 = vpop.f32.mrb[3].mxu0 }
 0x103   :  { %v698_v5 = vadd.f32 %v697_v4, %v696_v3 }
 0x117   :  { %v655_v7 = vpop.f32.mrb[4].mxu1 }
 0x118   :  { %v656_v8 = vpop.f32.mrb[5].mxu1 }
 0x119   :  { %v657_v10 = vadd.f32 %v656_v8, %v655_v7 }
 0x11b   :  { %v342_v11 = vadd.f32 %v657_v10, %v267_v9  ;;  %v658_v12 = vpop.f32.mrb[6].mxu1 }
 0x11c   :  { %v659_v13 = vpop.f32.mrb[7].mxu1 }
 0x11d   :  { %v660_v15 = vadd.f32 %v659_v13, %v658_v12  ;;  %v417_v16 = vadd.f32 %v695_v2, %v342_v11 }
 0x11f   :  { %v347_v17 = vadd.f32 %v660_v15, %v272_v14 }
 0x121   :  { %v422_v18 = vadd.f32 %v698_v5, %v347_v17 }
 0x12d   :  { %v566_v19 = vpop.f32.mrb[4].mxu0 }
 0x12e   :  { %v568_v20 = vpop.f32.mrb[5].mxu0 }
 0x131   :  { %v571_v21 = vpop.f32.mrb[6].mxu0 }
 0x132   :  { %v573_v22 = vpop.f32.mrb[7].mxu0 }
 0x137   :  { %v731_v23 = vpop.f32.mrb[8].mxu1 }
 0x138   :  { %v732_v24 = vpop.f32.mrb[9].mxu1 }
 0x139   :  { %v733_v25 = vadd.f32 %v732_v24, %v731_v23 }
 0x13b   :  { %v734_v26 = vpop.f32.mrb[10].mxu1  ;;  %v492_v27 = vadd.f32 %v733_v25, %v417_v16 }
 0x13c   :  { %v735_v28 = vpop.f32.mrb[11].mxu1 }
 0x13d   :  { %v567_v29 = vadd.f32 %v566_v19, %v492_v27  ;;  %v736_v30 = vadd.f32 %v735_v28, %v734_v26 }
 0x13f   :  { %575 = vst.msk [vmem:[%s1466_s3] sm:$0xff] %vm193_vm0, %v567_v29  ;;  %v497_v31 = vadd.f32 %v736_v30, %v422_v18 }
 0x141   :  { %v572_v32 = vadd.f32 %v571_v21, %v497_v31 }
 0x143   :  { %577 = vst.msk [vmem:[%s1466_s3 + $0x8] sm:$0x3f] %vm576_vm1, %v572_v32 }

// kernel: _lambda_.19
= control target key start
LH: loop header
LB: loop body
LE: loop exit
PB: predicated region body
PF: predicated region fallthrough
CT: control target
= control target key end

     0   :  { %11 = vsyncpa [#allocation3], 0  ;;  %s789_s21 = smov 0   ;;  %s1013_s0 = inlined_call_operand.vmem [shape: f32[2,7,64], index: 0, kind: input, shape index: {}]   ;;  %s1014_s1 = inlined_call_operand.vmem [shape: f32[2,64], index: 1, kind: input, shape index: {}]   ;;  %s1015_s2 = inlined_call_operand.vmem [shape: f32[64,256], index: 2, kind: input, shape index: {}]   ;;  %s1016_s3 = inlined_call_operand.vmem [shape: f32[1,256], index: 3, kind: input, shape index: {}]   ;;  %s1017_s4 = inlined_call_operand.vmem [shape: f32[256,64], index: 4, kind: input, shape index: {}]   ;;  %s1018_s5 = inlined_call_operand.hbm [shape: f32[1,64], index: 5, kind: input, shape index: {}]   ;;  %s1019_s6 = inlined_call_operand.vmem [shape: f32[2,7,64], index: 6, kind: output, shape index: {}]  }
   0x1 LB: > { %s795_s22 = sadd.s32 4294967295, %s750_s21   ;;  %p584_p0 = scmp.ge.s32.totalorder %s750_s21, 1  ;;  %s750_s21 = sphi %s789_s21, %s17_s21  }
   0x2   : > { %p179_p1 = scmp.lt.s32.totalorder %s750_s21, 3  ;;  %p1020_p3 = scmp.eq.s32.totalorder %s795_s22, 0 }
   0x3   : > { %s752_s24 = smov [#allocation2]   ;;  %s712_s29 = scalar_lea.hbm %s1018_s5, 16 }
   0x4   : > { %p799_p2 = pnand %p584_p0, %p179_p1  ;;  %s204_s25 = sshll.u32 %s752_s24, 4  ;;  %s205_s25 = int_to_ptr.vmem [resolvable:$true] %s204_s25 }
   0x5   : > { %p713_p6 = scmp.ne.s32.totalorder %s1018_s5, %s712_s29  ;;  %p719_p10 = scmp.lt.u32.totalorder %s712_s29, %s1018_s5 }
   0x6   : > { %s1022_s23 = scalar_select %p799_p2, 1, 0 }
   0x7   : > { %p686_p4 = pneg %p799_p2 }
   0x9   : > { %p808_p5 = pnand %p1020_p3, %p686_p4 }
   0xb   : > { %p714_p7 = pneg %p808_p5 }
   0xd   : > { %p715_p8 = pnand %p714_p7, %p713_p6 }
   0xf   : > { %p716_p9 = pneg %p715_p8 }
  0x11   : > { %p721_p11 = pnand %p719_p10, %p716_p9 }
  0x13   : > { %724 = shalt.err (!%p721_p11)
}
  0x14   : > { %s725_s10 = scalar_lea.vmem %s205_s25, 16  ;;  %s732_s11 = scalar_lea.vmem %s205_s25, 32 }
  0x15   : > { %p726_p12 = scmp.ne.s32.totalorder %s205_s25, %s725_s10  ;;  %p733_p1 = scmp.lt.s32.totalorder %s205_s25, %s205_s25 }
  0x16   : > { %p734_p4 = scmp.lt.s32.totalorder %s732_s11, %s725_s10 }
  0x17   : > { %p728_p13 = pnand %p726_p12, %p714_p7 }
  0x18   : > { %p735_p3 = por %p734_p4, %p733_p1 }
  0x19   : > { %p729_p0 = pneg %p728_p13 }
  0x1b   : > { %p736_p2 = pnand %p735_p3, %p729_p0 }
  0x1d   : > { %739 = shalt.err (!%p736_p2)
}
  0x1e   : > { %689 = dma.hbm_to_vmem [thread:$0]  (!%p808_p5), %s1018_s5, 16, %s205_s25, [#allocation3]  }
  0x1f   : > { %p1024_p6 = scmp.ne.s32.totalorder %s1022_s23, 0 }
  0x20   : > { %p1025_p8 = scmp.eq.s32.totalorder (!%p1024_p6), %s795_s22, 0 }
  0x21   : > { %224 = sbr.rel (%p1024_p6) target bundleno = 826 (0x33a), region = 44 }
  0x28   : > { %745 = dma.done.wait (%p1025_p8), [#allocation3], 16   ;;  %p1026_p7 = pmov %p1025_p8 }
  0x29   : > { %p252_p9 = scmp.lt.s32.totalorder %s795_s22, 1  ;;  %vm263_vm0 = vcmask 522240   ;;  %v289_v7 = vld [vmem:[%s1015_s2 + $0x8] sm:$0xff]  ;;  %v291_v8 = vld [vmem:[%s1015_s2 + $0x18] sm:$0xff]  ;;  %v288_v10 = vld [vmem:[%s1015_s2] sm:$0xff]  ;;  %v753_v20 = vmov 0.0  }
  0x2a   : > { %747 = vsyncadd (%p1026_p7), [#allocation3], 4294967280  ;;  %v634_v9 = vpack.c.bf16 %v291_v8, %v289_v7  ;;  %v290_v11 = vld [vmem:[%s1015_s2 + $0x10] sm:$0xff]  ;;  %v293_v13 = vld [vmem:[%s1015_s2 + $0x28] sm:$0xff]  ;;  %384 = vmatprep.mubr.f32.mxu0 %v753_v20  ;;  %vm316_vm1 = vcmask 523264  }
  0x2b   : > { %s1028_s22 = smov (!%p252_p9, %s795_s22), 1  ;;  %v636_v12 = vpack.c.bf16 %v290_v11, %v288_v10  ;;  %v295_v14 = vld [vmem:[%s1015_s2 + $0x38] sm:$0xff]  ;;  %v292_v15 = vld [vmem:[%s1015_s2 + $0x20] sm:$0xff]  ;;  %v294_v17 = vld [vmem:[%s1015_s2 + $0x30] sm:$0xff] }
  0x2c   : > { %s589_s14 = sshll.u32 %s1028_s22, 3  ;;  %635 = vmatprep.subr.bf16.mxu0 %v634_v9  ;;  %v638_v16 = vpack.c.bf16 %v295_v14, %v293_v13  ;;  %v297_v18 = vld [vmem:[%s1015_s2 + $0x48] sm:$0xff]  ;;  %v299_v19 = vld [vmem:[%s1015_s2 + $0x58] sm:$0xff]  ;;  %v640_v21 = vpack.c.bf16 %v294_v17, %v292_v15  ;;  %v296_v23 = vld [vmem:[%s1015_s2 + $0x40] sm:$0xff] }
  0x2d   : > { %s255_s17 = scalar_lea.vmem %s1013_s0, %s589_s14  ;;  %637 = vmatpush1.bf16.msra.mxu0 %v636_v12  ;;  %v642_v22 = vpack.c.bf16 %v299_v19, %v297_v18  ;;  %v298_v24 = vld [vmem:[%s1015_s2 + $0x50] sm:$0xff]  ;;  %v301_v25 = vld [vmem:[%s1015_s2 + $0x68] sm:$0xff]  ;;  %v303_v26 = vld [vmem:[%s1015_s2 + $0x78] sm:$0xff] }
  0x2e   : > { %v844_v0 = vld [vmem:[%s255_s17] sm:$0x7f]  ;;  %639 = vmatprep.subr.bf16.mxu0 %v638_v16  ;;  %v644_v27 = vpack.c.bf16 %v298_v24, %v296_v23  ;;  %v646_v28 = vpack.c.bf16 %v303_v26, %v301_v25  ;;  %v302_v30 = vld [vmem:[%s1015_s2 + $0x70] sm:$0xff]  ;;  %v422_v42 = vld [vmem:[%s1017_s4 + $0x88] sm:$0xff]  ;;  %v306_v26 = vlaneseq  ;;  %s259_s17 = scalar_lea.vmem %s1019_s6, %s589_s14 }
  0x2f   : > { %v264_v1 = vsel %vm263_vm0, %v844_v0, 0.0  ;;  %v300_v29 = vld [vmem:[%s1015_s2 + $0x60] sm:$0xff]  ;;  %v406_v45 = vld [vmem:[%s1017_s4 + $0x8] sm:$0xff]  ;;  %v423_v47 = vld [vmem:[%s1017_s4 + $0x90] sm:$0xff] }
  0x30   : > { %265 = vadd.xlane.f32.xlu0 %v264_v1  ;;  %v648_v31 = vpack.c.bf16 %v302_v30, %v300_v29  ;;  %v591_v36 = vld [vmem:[%s1014_s1] ss:$0 sm:$0xff]  ;;  %v592_v38 = vld [vmem:[%s1014_s1 + $0x1] ss:$0 sm:$0xff]  ;;  %v424_v48 = vld [vmem:[%s1017_s4 + $0x98] sm:$0xff] }
  0x31   : > { %641 = vmatpush1.bf16.msra.mxu0 %v640_v21  ;;  %v421_v41 = vld [vmem:[%s1017_s4 + $0x80] sm:$0xff]  ;;  %v654_v49 = vpack.c.bf16 %v424_v48, %v423_v47  ;;  %v407_v50 = vld [vmem:[%s1017_s4 + $0x10] sm:$0xff]  ;;  %v408_v51 = vld [vmem:[%s1017_s4 + $0x18] sm:$0xff] }
  0x32   : > { %643 = vmatprep.subr.bf16.mxu0 %v642_v22  ;;  %v650_v43 = vpack.c.bf16 %v422_v42, %v421_v41  ;;  %v405_v44 = vld [vmem:[%s1017_s4] sm:$0xff]  ;;  %v656_v52 = vpack.c.bf16 %v408_v51, %v407_v50  ;;  %v426_v54 = vld [vmem:[%s1017_s4 + $0xa8] sm:$0xff]  ;;  %v427_v59 = vld [vmem:[%s1017_s4 + $0xb0] sm:$0xff] }
  0x33   : > { %v652_v46 = vpack.c.bf16 %v406_v45, %v405_v44  ;;  %v425_v53 = vld [vmem:[%s1017_s4 + $0xa0] sm:$0xff]  ;;  %v410_v57 = vld [vmem:[%s1017_s4 + $0x28] sm:$0xff]  ;;  %v428_v60 = vld [vmem:[%s1017_s4 + $0xb8] sm:$0xff] }
  0x34   : > { %651 = vmatprep.subr.bf16.mxu1 %v650_v43  ;;  %v658_v55 = vpack.c.bf16 %v426_v54, %v425_v53  ;;  %v409_v56 = vld [vmem:[%s1017_s4 + $0x20] sm:$0xff]  ;;  %v662_v61 = vpack.c.bf16 %v428_v60, %v427_v59  ;;  %v411_v62 = vld [vmem:[%s1017_s4 + $0x30] sm:$0xff]  ;;  %v412_v63 = vld [vmem:[%s1017_s4 + $0x38] sm:$0xff] }
  0x35   : > { %645 = vmatpush1.bf16.msra.mxu0 %v644_v27  ;;  %653 = vmatpush3.bf16.msra.mxu1 %v652_v46  ;;  %v660_v58 = vpack.c.bf16 %v410_v57, %v409_v56  ;;  %v664_v1 = vpack.c.bf16 %v412_v63, %v411_v62  ;;  %v431_v8 = vld [vmem:[%s1017_s4 + $0xd0] sm:$0xff]  ;;  %v432_v9 = vld [vmem:[%s1017_s4 + $0xd8] sm:$0xff]  ;;  %v433_v14 = vld [vmem:[%s1017_s4 + $0xe0] sm:$0xff]  ;;  %v307_v27 = vshrl.u32 %v306_v26, 7 }
  0x36   : > { %647 = vmatprep.subr.bf16.mxu0 %v646_v28  ;;  %655 = vmatprep.subr.bf16.mxu1 %v654_v49  ;;  %v670_v10 = vpack.c.bf16 %v432_v9, %v431_v8  ;;  %v415_v11 = vld [vmem:[%s1017_s4 + $0x50] sm:$0xff]  ;;  %v416_v12 = vld [vmem:[%s1017_s4 + $0x58] sm:$0xff]  ;;  %v434_v15 = vld [vmem:[%s1017_s4 + $0xe8] sm:$0xff] }
  0x37   : > { %v672_v13 = vpack.c.bf16 %v416_v12, %v415_v11  ;;  %v674_v16 = vpack.c.bf16 %v434_v15, %v433_v14  ;;  %v417_v17 = vld [vmem:[%s1017_s4 + $0x60] sm:$0xff]  ;;  %v418_v18 = vld [vmem:[%s1017_s4 + $0x68] sm:$0xff]  ;;  %v435_v20 = vld [vmem:[%s1017_s4 + $0xf0] sm:$0xff]  ;;  %v308_v28 = vsub.s32 0, %v307_v27  ;;  %v312_v30 = vsub.s32 1, %v307_v27 }
  0x38   : > { %v676_v19 = vpack.c.bf16 %v418_v18, %v417_v17  ;;  %v436_v21 = vld [vmem:[%s1017_s4 + $0xf8] sm:$0xff]  ;;  %v419_v23 = vld [vmem:[%s1017_s4 + $0x70] sm:$0xff]  ;;  %v304_v29 = vld [vmem:[%s1016_s3] sm:$0x3] }
  0x39   : > { %649 = vmatpush1.bf16.msra.mxu0 %v648_v31  ;;  %657 = vmatpush3.bf16.msra.mxu1 %v656_v52  ;;  %v678_v22 = vpack.c.bf16 %v436_v21, %v435_v20  ;;  %v420_v24 = vld [vmem:[%s1017_s4 + $0x78] sm:$0xff]  ;;  %v309_v31 = vrot.slane %v304_v29, %v308_v28  ;;  %v596_v48 = vld [vmem:[#allocation2] ss:$0 sm:$0xff] }
  0x3a   : > { %659 = vmatprep.subr.bf16.mxu1 %v658_v55  ;;  %v680_v25 = vpack.c.bf16 %v420_v24, %v419_v23 }
  0x3d   : > { %661 = vmatpush3.bf16.msra.mxu1 %v660_v58 }
  0x3e   : > { %663 = vmatprep.subr.bf16.mxu1 %v662_v61 }
  0x41   : > { %665 = vmatpush3.bf16.msra.mxu1 %v664_v1 }
  0xbd   : > { %v266_v2 = vpop.xlane.xlu0 %265 }
  0xbe   : > { %v268_v3 = vmul.f32 0.015625, %v266_v2  ;;  %v429_v2 = vld [vmem:[%s1017_s4 + $0xc0] sm:$0xff] }
  0xc0   : > { %v269_v4 = vsub.f32 %v844_v0, %v268_v3  ;;  %v430_v3 = vld [vmem:[%s1017_s4 + $0xc8] sm:$0xff] }
  0xc2   : > { %v270_v5 = vmul.f32 %v269_v4, %v269_v4 }
  0xc4   : > { %v271_v6 = vsel %vm263_vm0, %v270_v5, 0.0  ;;  %v413_v5 = vld [vmem:[%s1017_s4 + $0x40] sm:$0xff] }
  0xc5   : > { %272 = vadd.xlane.f32.xlu0 %v271_v6  ;;  %v414_v6 = vld [vmem:[%s1017_s4 + $0x48] sm:$0xff] }
  0xc6   : > { %v668_v7 = vpack.c.bf16 %v414_v6, %v413_v5 }
 0x152   : > { %v273_v32 = vpop.xlane.xlu0 %272 }
 0x153   : > { %v274_v33 = vmul.f32 0.015625, %v273_v32  ;;  %v313_v32 = vrot.slane %v304_v29, %v312_v30 }
 0x155   : > { %v275_v34 = vadd.f32 1e-05, %v274_v33 }
 0x157   : > { %702 = vrsqrt.f32 %v275_v34 }
 0x161   : > { %v703_v35 = vpop.eup %702 }
 0x162   : > { %v277_v37 = vmul.f32 %v703_v35, %v269_v4  ;;  %v666_v4 = vpack.c.bf16 %v430_v3, %v429_v2 }
 0x164   : > { %v282_v39 = vmul.f32 %v591_v36, %v277_v37  ;;  %667 = vmatprep.subr.bf16.mxu1 %v666_v4 }
 0x165   : > { %669 = vmatpush3.bf16.msra.mxu1 %v668_v7 }
 0x166   : > { %v287_v40 = vadd.f32 %v592_v38, %v282_v39  ;;  %671 = vmatprep.subr.bf16.mxu1 %v670_v10 }
 0x168   : > { %593 = vmatmul.mubr.msk.f32.vlgmr.msra.gmra.mrb[0].mxu0 %vm316_vm1, %v287_v40 }
 0x169   : > { %673 = vmatpush3.bf16.msra.mxu1 %v672_v13 }
 0x16a   : > { %675 = vmatprep.subr.bf16.mxu1 %v674_v16 }
 0x16d   : > { %677 = vmatpush3.bf16.msra.mxu1 %v676_v19 }
 0x16e   : > { %679 = vmatprep.subr.bf16.mxu1 %v678_v22 }
 0x171   : > { %681 = vmatpush3.bf16.msra.mxu1 %v680_v25 }
 0x23b   : > { %v386_v33 = vpop.f32.mrb[0].mxu0 }
 0x23c   : > { %v387_v34 = vadd.f32 %v386_v33, %v309_v31  ;;  %v388_v35 = vpop.f32.mrb[1].mxu0 }
 0x23d   : > { %v389_v36 = vadd.f32 %v388_v35, %v313_v32 }
 0x23e   : > { %v594_v37 = vmul.f32 -1.442695, %v387_v34 }
 0x23f   : > { %v595_v38 = vmul.f32 -1.442695, %v389_v36 }
 0x240   : > { %704 = vpow2.f32 %v594_v37 }
 0x241   : > { %706 = vpow2.f32 %v595_v38 }
 0x24a   : > { %v705_v39 = vpop.eup %704 }
 0x24b   : > { %v707_v40 = vpop.eup %706  ;;  %v397_v41 = vadd.f32 1.0, %v705_v39 }
 0x24c   : > { %v398_v42 = vadd.f32 1.0, %v707_v40 }
 0x24d   : > { %708 = vrcp.f32 %v397_v41 }
 0x24e   : > { %710 = vrcp.f32 %v398_v42 }
 0x257   : > { %v709_v43 = vpop.eup %708 }
 0x258   : > { %v711_v44 = vpop.eup %710  ;;  %v403_v46 = vmul.f32 %v709_v43, %v387_v34 }
 0x259   : > { %v404_v45 = vmul.f32 %v711_v44, %v389_v36 }
 0x25b   : > { %508 = vmatprep.mubr.f32.mxu1 %v404_v45 }
 0x25c   : > { %509 = vmatmul.mubr.f32.vlgmr.msra.gmra.mrb[0].mxu1 %v403_v46 }
 0x32f   : > { %v631_v47 = vpop.f32.mrb[0].mxu1 }
 0x330   : > { %v632_v49 = vpop.f32.mrb[1].mxu1 }
 0x331   : > { %v633_v50 = vadd.f32 %v632_v49, %v631_v47 }
 0x333   : > { %v511_v51 = vadd.f32 %v633_v50, %v596_v48 }
 0x335   : > { %v514_v52 = vmul.f32 0.5, %v511_v51 }
 0x337   : > { %v515_v53 = vadd.f32 %v514_v52, %v844_v0 }
 0x339   : > { %516 = vst.msk [vmem:[%s259_s17] sm:$0x7f] %vm263_vm0, %v515_v53 }
 0x33a PF: > { %s17_s21 = sadd.s32 1, %s750_s21  }
 0x33b   : > { %p14_p2 = scmp.ge.s32.totalorder %s17_s21, 4  }
 0x33d   :  { %16 = sbr.rel (!%p14_p2) target bundleno = 1 (0x1), region = 79 }
 0x344   :  { %536 = vsyncpa [#allocation3], 1 }
 0x345   :  { %538 = vsyncpa [#allocation3 + $0x1], 1 }

// kernel: _lambda_.20
= control target key start
LH: loop header
LB: loop body
LE: loop exit
PB: predicated region body
PF: predicated region fallthrough
CT: control target
= control target key end

     0   :  { %s1570_s30 = smov 0   ;;  %s1756_s0 = inlined_call_operand.vmem [shape: f32[2,7,64], index: 0, kind: input, shape index: {}]   ;;  %s1757_s1 = inlined_call_operand.vmem [shape: f32[2,64], index: 1, kind: input, shape index: {}]   ;;  %s1758_s2 = inlined_call_operand.vmem [shape: f32[64,192], index: 2, kind: input, shape index: {}]   ;;  %s1759_s3 = inlined_call_operand.vmem [shape: f32[1,192], index: 3, kind: input, shape index: {}]   ;;  %s1760_s4 = inlined_call_operand.vmem [shape: f32[64,64], index: 4, kind: input, shape index: {}]   ;;  %s1761_s5 = inlined_call_operand.vmem [shape: f32[7,64], index: 5, kind: input, shape index: {}]   ;;  %s1762_s6 = inlined_call_operand.vmem [shape: f32[2,64], index: 6, kind: input, shape index: {}]   ;;  %s1763_s7 = inlined_call_operand.vmem [shape: f32[2,4,7,7], index: 7, kind: output, shape index: {0}]   ;;  %s1764_s8 = inlined_call_operand.vmem [shape: f32[2,4,7,7], index: 8, kind: output, shape index: {1}]   ;;  %s1765_s9 = inlined_call_operand.vmem [shape: f32[2,7,64], index: 9, kind: output, shape index: {2}]  }
   0x1 LB: > { %s1335_s10 = sadd.s32 4294967295, %s1514_s30   ;;  %p1339_p0 = scmp.ge.s32.totalorder %s1514_s30, 1  ;;  %s1514_s30 = sphi %s1570_s30, %s20_s30  }
   0x2   : > { %p291_p1 = scmp.lt.s32.totalorder %s1514_s30, 3 }
   0x4   : > { %p292_p2 = pnand %p1339_p0, %p291_p1 }
   0x5   : > { %p335_p3 = scmp.lt.s32.totalorder (!%p292_p2), %s1335_s10, 1  ;;  %vm356_vm0 = vcmask (!%p292_p2), 522240   ;;  %v382_v7 = vld [vmem:[%s1758_s2 + $0x8] sm:$0xff] (!%p292_p2)  ;;  %v384_v8 = vld [vmem:[%s1758_s2 + $0x18] sm:$0xff] (!%p292_p2)  ;;  %v381_v10 = vld [vmem:[%s1758_s2] sm:$0xff] (!%p292_p2)  ;;  %v1516_v16 = vmov (!%p292_p2), 0.0|0.0   ;;  %v399_v57 = vlaneseq (!%p292_p2) }
   0x6   : > { %295 = sbr.rel (%p292_p2) target bundleno = 887 (0x377), region = 48  ;;  %v1466_v9 = vpack.c.bf16 (!%p292_p2), %v384_v8, %v382_v7  ;;  %v383_v11 = vld [vmem:[%s1758_s2 + $0x10] sm:$0xff] (!%p292_p2)  ;;  %v386_v13 = vld [vmem:[%s1758_s2 + $0x28] sm:$0xff] (!%p292_p2)  ;;  %v388_v14 = vld [vmem:[%s1758_s2 + $0x38] sm:$0xff] (!%p292_p2)  ;;  %1482 = vmatprep.subr.bf16.mxu1 (!%p292_p2), %v1516_v16  ;;  %v1517_v26 = vmov (!%p292_p2), 0.0   ;;  %vm1518_vm1 = vmmov (!%p292_p2), 0  }
   0x7   : > { %v1468_v12 = vpack.c.bf16 (!%p292_p2), %v383_v11, %v381_v10  ;;  %v485_v15 = vld [vmem:[%s1760_s4] sm:$0xff] (!%p292_p2)  ;;  %v1470_v17 = vpack.c.bf16 (!%p292_p2), %v388_v14, %v386_v13  ;;  %v486_v18 = vld [vmem:[%s1760_s4 + $0x8] sm:$0xff] (!%p292_p2)  ;;  %v387_v20 = vld [vmem:[%s1758_s2 + $0x30] sm:$0xff] (!%p292_p2)  ;;  %477 = vmatprep.mubr.f32.mxu0 (!%p292_p2), %v1517_v26  ;;  %1423 = vmatprep.mubr.msk.f32.mxu1 (!%p292_p2), %vm1518_vm1, %v1517_v26  ;;  %vm409_vm2 = vcmask (!%p292_p2), 523264   ;;  %v400_v58 = vshrl.u32 (!%p292_p2), %v399_v57, 7  ;;  %s1519_s24 = smov (!%p292_p2), 64  }
   0x8   : > { %1467 = vmatprep.subr.bf16.mxu0 (!%p292_p2), %v1466_v9  ;;  %v385_v19 = vld [vmem:[%s1758_s2 + $0x20] sm:$0xff] (!%p292_p2)  ;;  %v1483_v21 = vpack.c.bf16 (!%p292_p2), %v486_v18, %v485_v15  ;;  %v390_v23 = vld [vmem:[%s1758_s2 + $0x48] sm:$0xff] (!%p292_p2)  ;;  %v392_v24 = vld [vmem:[%s1758_s2 + $0x58] sm:$0xff] (!%p292_p2)  ;;  %v579_v59 = vand.u32 (!%p292_p2), 127, %v399_v57  ;;  %vm664_vm13 = vcmask (!%p292_p2), 55296  }
   0x9   : > { %1469 = vmatpush1.bf16.msra.mxu0 (!%p292_p2), %v1468_v12  ;;  %v1472_v22 = vpack.c.bf16 (!%p292_p2), %v387_v20, %v385_v19  ;;  %v487_v25 = vld [vmem:[%s1760_s4 + $0x10] sm:$0xff] (!%p292_p2)  ;;  %v1474_v27 = vpack.c.bf16 (!%p292_p2), %v392_v24, %v390_v23  ;;  %v488_v28 = vld [vmem:[%s1760_s4 + $0x18] sm:$0xff] (!%p292_p2)  ;;  %v389_v29 = vld [vmem:[%s1758_s2 + $0x40] sm:$0xff] (!%p292_p2)  ;;  %v401_v60 = vsub.s32 (!%p292_p2), 0, %v400_v58  ;;  %v405_v62 = vsub.s32 (!%p292_p2), 1, %v400_v58 }
   0xa   : > { %1471 = vmatprep.subr.bf16.mxu0 (!%p292_p2), %v1470_v17  ;;  %v391_v30 = vld [vmem:[%s1758_s2 + $0x50] sm:$0xff] (!%p292_p2)  ;;  %1484 = vmatpush3.bf16.msra.mxu1 (!%p292_p2), %v1483_v21  ;;  %v1486_v31 = vpack.c.bf16 (!%p292_p2), %v488_v28, %v487_v25  ;;  %v394_v32 = vld [vmem:[%s1758_s2 + $0x68] sm:$0xff] (!%p292_p2)  ;;  %v396_v33 = vld [vmem:[%s1758_s2 + $0x78] sm:$0xff] (!%p292_p2)  ;;  %vm744_vm3 = vcmp.ge.s32.totalorder (!%p292_p2), %v579_v59, 16  ;;  %vm745_vm4 = vcmp.lt.s32.totalorder (!%p292_p2), %v579_v59, 32  ;;  %vm901_vm5 = vcmp.ge.s32.totalorder (!%p292_p2), %v579_v59, 32 }
   0xb   : > { %1485 = vmatprep.subr.bf16.mxu1 (!%p292_p2), %v1516_v16  ;;  %v489_v34 = vld [vmem:[%s1760_s4 + $0x20] sm:$0xff] (!%p292_p2)  ;;  %v490_v35 = vld [vmem:[%s1760_s4 + $0x28] sm:$0xff] (!%p292_p2)  ;;  %v1476_v36 = vpack.c.bf16 (!%p292_p2), %v391_v30, %v389_v29  ;;  %v1478_v37 = vpack.c.bf16 (!%p292_p2), %v396_v33, %v394_v32  ;;  %v395_v39 = vld [vmem:[%s1758_s2 + $0x70] sm:$0xff] (!%p292_p2)  ;;  %vm902_vm6 = vcmp.lt.s32.totalorder (!%p292_p2), %v579_v59, 48  ;;  %vm1058_vm7 = vcmp.ge.s32.totalorder (!%p292_p2), %v579_v59, 48 }
   0xc   : > { %v393_v38 = vld [vmem:[%s1758_s2 + $0x60] sm:$0xff] (!%p292_p2)  ;;  %v1489_v40 = vpack.c.bf16 (!%p292_p2), %v490_v35, %v489_v34  ;;  %v491_v42 = vld [vmem:[%s1760_s4 + $0x30] sm:$0xff] (!%p292_p2)  ;;  %v492_v43 = vld [vmem:[%s1760_s4 + $0x38] sm:$0xff] (!%p292_p2)  ;;  %vm1059_vm8 = vcmp.lt.s32.totalorder (!%p292_p2), %v579_v59, 64  ;;  %vm581_vm10 = vcmp.lt.s32.totalorder (!%p292_p2), %v579_v59, 16 }
   0xd   : > { %s1767_s10 = smov (!%p335_p3, %s1335_s10), 1  ;;  %1473 = vmatpush1.bf16.msra.mxu0 %v1472_v22  ;;  %v1480_v41 = vpack.c.bf16 %v395_v39, %v393_v38  ;;  %v1492_v44 = vpack.c.bf16 %v492_v43, %v491_v42  ;;  %v484_v45 = vld [vmem:[%s1761_s5] sm:$0x7f]  ;;  %vm746_vm9 = vmand %vm744_vm3, %vm745_vm4  ;;  %v1352_v7 = vsel %vm581_vm10, 1.0, %v1517_v26 }
   0xe   : > { %s1340_s11 = sshll.u32 %s1767_s10, 3  ;;  %1475 = vmatprep.subr.bf16.mxu0 %v1474_v27  ;;  %1487 = vmatpush3.bf16.msra.mxu1 %v1486_v31  ;;  %v1346_v50 = vld [vmem:[%s1757_s1] ss:$0 sm:$0xff]  ;;  %v1347_v52 = vld [vmem:[%s1757_s1 + $0x1] ss:$0 sm:$0xff]  ;;  %vm903_vm11 = vmand %vm901_vm5, %vm902_vm6  ;;  %v1357_v8 = vsel %vm746_vm9, 1.0, %v1517_v26 }
   0xf   : > { %s338_s14 = scalar_lea.vmem %s1756_s0, %s1340_s11  ;;  %1488 = vmatprep.subr.bf16.mxu1 %v1516_v16  ;;  %v397_v61 = vld [vmem:[%s1759_s3] sm:$0x3]  ;;  %vm1060_vm12 = vmand %vm1058_vm7, %vm1059_vm8  ;;  %s352_s23 = scalar_lea.vmem %s1765_s9, %s1340_s11  ;;  %v1364_v11 = vsel %vm903_vm11, 1.0, %v1517_v26 }
  0x10   : > { %v353_v0 = vld [vmem:[%s338_s14] sm:$0x7f]  ;;  %v402_v63 = vrot.slane %v397_v61, %v401_v60  ;;  %v1371_v12 = vsel %vm1060_vm12, 1.0, %v1517_v26  ;;  %s1380_s11 = sshll.u32 %s1767_s10, 5 }
  0x11   : > { %v357_v1 = vsel %vm356_vm0, %v353_v0, 0.0  ;;  %1477 = vmatpush1.bf16.msra.mxu0 %v1476_v36  ;;  %s348_s27 = scalar_lea.vmem %s1764_s8, %s1380_s11  ;;  %s343_s29 = scalar_lea.vmem %s1763_s7, %s1380_s11 }
  0x12   : > { %358 = vadd.xlane.f32.xlu0 %v357_v1  ;;  %1479 = vmatprep.subr.bf16.mxu0 %v1478_v37 }
  0x13   : > { %1490 = vmatpush3.bf16.msra.mxu1 %v1489_v40 }
  0x14   : > { %1491 = vmatprep.subr.bf16.mxu1 %v1516_v16 }
  0x15   : > { %1481 = vmatpush1.bf16.msra.mxu0 %v1480_v41 }
  0x16   : > { %1426 = vmatprep.subr.mxu0 %v1517_v26 }
  0x17   : > { %1493 = vmatpush3.bf16.msra.mxu1 %v1492_v44 }
  0x18   : > { %1431 = vmatprep.subr.mxu1 %v1517_v26 }
  0x1a   : > { %1424 = vmatmul.mubr.msk.f32.vlgmr.msra.gmra.mrb[0].mxu1 %vm409_vm2, %v484_v45 }
  0x1b   : > { %1433 = vmatprep.mubr.msk.f32.mxu1 %vm1518_vm1, %v1517_v26 }
  0x9f   : > { %v359_v2 = vpop.xlane.xlu0 %358 }
  0xa0   : > { %v361_v3 = vmul.f32 0.015625, %v359_v2  ;;  %v1350_v2 = vld [vmem:[%s1762_s6] ss:$0 sm:$0xff] }
  0xa2   : > { %v1587_v4 = vsub.f32 %v353_v0, %v361_v3  ;;  %v406_v0 = vrot.slane %v397_v61, %v405_v62  ;;  %v1351_v3 = vld [vmem:[%s1762_s6 + $0x1] ss:$0 sm:$0xff] }
  0xa4   : > { %v363_v5 = vmul.f32 %v1587_v4, %v1587_v4 }
  0xa6   : > { %v364_v6 = vsel %vm356_vm0, %v363_v5, 0.0 }
  0xa7   : > { %365 = vadd.xlane.f32.xlu0 %v364_v6 }
  0xed   : > { %v562_v55 = vpop.f32.mrb[0].mxu1 }
  0xee   : > { %1432 = vmatpush3.xpose.msk.msra.mxu1 %vm409_vm2, %v562_v55  ;;  %v1425_v56 = vpop.f32.mrb[1].mxu1 }
  0xef   : > { %1441 = vmatprep.subr.mxu1 %v1517_v26 }
 0x134   : > { %v366_v46 = vpop.xlane.xlu0 %365 }
 0x135   : > { %v367_v47 = vmul.f32 0.015625, %v366_v46 }
 0x137   : > { %v368_v48 = vadd.f32 1e-05, %v367_v47 }
 0x139   : > { %1506 = vrsqrt.f32 %v368_v48 }
 0x143   : > { %v1507_v49 = vpop.eup %1506 }
 0x144   : > { %v370_v51 = vmul.f32 %v1507_v49, %v1587_v4 }
 0x146   : > { %v375_v53 = vmul.f32 %v1346_v50, %v370_v51 }
 0x148   : > { %v380_v54 = vadd.f32 %v1347_v52, %v375_v53 }
 0x14a   : > { %1348 = vmatmul.mubr.msk.f32.vlgmr.msra.gmra.mrb[0].mxu0 %vm409_vm2, %v380_v54 }
 0x14b   : > { %1428 = vmatprep.mubr.msk.f32.mxu0 %vm1518_vm1, %v1517_v26 }
 0x21d   : > { %v479_v1 = vpop.f32.mrb[0].mxu0 }
 0x21e   : > { %v480_v4 = vadd.f32 %v479_v1, %v402_v63  ;;  %v481_v5 = vpop.f32.mrb[1].mxu0 }
 0x21f   : > { %v482_v6 = vadd.f32 %v481_v5, %v406_v0 }
 0x220   : > { %v571_v9 = vadd.f32 %v1350_v2, %v480_v4  ;;  %v577_v10 = vadd.f32 %v1351_v3, %v480_v4  ;;  %587 = vrot.lane.b32.xlu1 %v480_v4, %s1519_s24 }
 0x221   : > { %1215 = vst.msk [vmem:[%s352_s23] sm:$0x7f] %vm356_vm0, %v482_v6 }
 0x222   : > { %v666_v13 = vmul.f32 %v1352_v7, %v577_v10  ;;  %v585_v14 = vmul.f32 %v1352_v7, %v571_v9  ;;  %v749_v15 = vmul.f32 %v1357_v8, %v571_v9  ;;  %v906_v16 = vmul.f32 %v1364_v11, %v571_v9 }
 0x223   : > { %v1063_v17 = vmul.f32 %v1371_v12, %v571_v9  ;;  %v825_v18 = vmul.f32 %v1357_v8, %v577_v10  ;;  %v982_v19 = vmul.f32 %v1364_v11, %v577_v10  ;;  %v1139_v20 = vmul.f32 %v1371_v12, %v577_v10 }
 0x224   : > { %1434 = vmatmul.mubr.msk.f32.vlgmr.msra.gmra.mrb[2].mxu1 %vm409_vm2, %v666_v13 }
 0x225   : > { %1442 = vmatpush3.xpose.msk.msra.mxu1 %vm409_vm2, %v562_v55  ;;  %1443 = vmatprep.mubr.msk.f32.mxu1 %vm1518_vm1, %v1517_v26 }
 0x226   : > { %1451 = vmatprep.subr.mxu1 %v1517_v26 }
 0x228   : > { %1444 = vmatmul.mubr.msk.f32.vlgmr.msra.gmra.mrb[4].mxu1 %vm409_vm2, %v825_v18 }
 0x229   : > { %1452 = vmatpush3.xpose.msk.msra.mxu1 %vm409_vm2, %v562_v55  ;;  %1453 = vmatprep.mubr.msk.f32.mxu1 %vm1518_vm1, %v1517_v26 }
 0x22a   : > { %1461 = vmatprep.subr.mxu1 %v1517_v26 }
 0x22c   : > { %1454 = vmatmul.mubr.msk.f32.vlgmr.msra.gmra.mrb[6].mxu1 %vm409_vm2, %v982_v19 }
 0x22d   : > { %1462 = vmatpush3.xpose.msk.msra.mxu1 %vm409_vm2, %v562_v55  ;;  %1463 = vmatprep.mubr.msk.f32.mxu1 %vm1518_vm1, %v1517_v26 }
 0x230   : > { %1464 = vmatmul.mubr.msk.f32.vlgmr.msra.gmra.mrb[8].mxu1 %vm409_vm2, %v1139_v20 }
 0x292   : > { %v588_v21 = vpop.permute.xlu1 %587 }
 0x293   : > { %1427 = vmatpush3.xpose.msk.msra.mxu0 %vm409_vm2, %v588_v21 }
 0x294   : > { %1436 = vmatprep.subr.mxu0 %v1517_v26 }
 0x296   : > { %1429 = vmatmul.mubr.msk.f32.vlgmr.msra.gmra.mrb[2].mxu0 %vm409_vm2, %v585_v14 }
 0x297   : > { %1437 = vmatpush3.xpose.msk.msra.mxu0 %vm409_vm2, %v588_v21  ;;  %1438 = vmatprep.mubr.msk.f32.mxu0 %vm1518_vm1, %v1517_v26 }
 0x298   : > { %1446 = vmatprep.subr.mxu0 %v1517_v26 }
 0x29a   : > { %1439 = vmatmul.mubr.msk.f32.vlgmr.msra.gmra.mrb[4].mxu0 %vm409_vm2, %v749_v15 }
 0x29b   : > { %1447 = vmatpush3.xpose.msk.msra.mxu0 %vm409_vm2, %v588_v21  ;;  %1448 = vmatprep.mubr.msk.f32.mxu0 %vm1518_vm1, %v1517_v26 }
 0x29c   : > { %1456 = vmatprep.subr.mxu0 %v1517_v26 }
 0x29e   : > { %1449 = vmatmul.mubr.msk.f32.vlgmr.msra.gmra.mrb[6].mxu0 %vm409_vm2, %v906_v16 }
 0x29f   : > { %1457 = vmatpush3.xpose.msk.msra.mxu0 %vm409_vm2, %v588_v21  ;;  %1458 = vmatprep.mubr.msk.f32.mxu0 %vm1518_vm1, %v1517_v26 }
 0x2a2   : > { %1459 = vmatmul.mubr.msk.f32.vlgmr.msra.gmra.mrb[8].mxu0 %vm409_vm2, %v1063_v17 }
 0x2f7   : > { %v739_v22 = vpop.f32.mrb[2].mxu1 }
 0x2f8   : > { %743 = vst.msk [vmem:[%s348_s27] sm:$0x7f] %vm664_vm13, %v739_v22  ;;  %v1435_v23 = vpop.f32.mrb[3].mxu1 }
 0x2fb   : > { %v895_v24 = vpop.f32.mrb[4].mxu1 }
 0x2fc   : > { %1363 = vst.msk [vmem:[%s348_s27 + $0x8] sm:$0x7f] %vm664_vm13, %v895_v24  ;;  %v1445_v25 = vpop.f32.mrb[5].mxu1 }
 0x2ff   : > { %v1052_v27 = vpop.f32.mrb[6].mxu1 }
 0x300   : > { %1370 = vst.msk [vmem:[%s348_s27 + $0x10] sm:$0x7f] %vm664_vm13, %v1052_v27  ;;  %v1455_v26 = vpop.f32.mrb[7].mxu1 }
 0x303   : > { %v1209_v28 = vpop.f32.mrb[8].mxu1 }
 0x304   : > { %1377 = vst.msk [vmem:[%s348_s27 + $0x18] sm:$0x7f] %vm664_vm13, %v1209_v28  ;;  %v1465_v29 = vpop.f32.mrb[9].mxu1 }
 0x369   : > { %v660_v30 = vpop.f32.mrb[2].mxu0 }
 0x36a   : > { %665 = vst.msk [vmem:[%s343_s29] sm:$0x7f] %vm664_vm13, %v660_v30  ;;  %v1430_v31 = vpop.f32.mrb[3].mxu0 }
 0x36d   : > { %v819_v32 = vpop.f32.mrb[4].mxu0 }
 0x36e   : > { %1360 = vst.msk [vmem:[%s343_s29 + $0x8] sm:$0x7f] %vm664_vm13, %v819_v32  ;;  %v1440_v33 = vpop.f32.mrb[5].mxu0 }
 0x371   : > { %v976_v34 = vpop.f32.mrb[6].mxu0 }
 0x372   : > { %1367 = vst.msk [vmem:[%s343_s29 + $0x10] sm:$0x7f] %vm664_vm13, %v976_v34  ;;  %v1450_v35 = vpop.f32.mrb[7].mxu0 }
 0x375   : > { %v1133_v36 = vpop.f32.mrb[8].mxu0 }
 0x376   : > { %1374 = vst.msk [vmem:[%s343_s29 + $0x18] sm:$0x7f] %vm664_vm13, %v1133_v36  ;;  %v1460_v37 = vpop.f32.mrb[9].mxu0 }
 0x377 PF: > { %s20_s30 = sadd.s32 1, %s1514_s30  }
 0x378   : > { %p17_p4 = scmp.ge.s32.totalorder %s20_s30, 4  }
 0x37a   :  { %19 = sbr.rel (!%p17_p4) target bundleno = 1 (0x1), region = 108 }

// kernel: _lambda_.21
= control target key start
LH: loop header
LB: loop body
LE: loop exit
PB: predicated region body
PF: predicated region fallthrough
CT: control target
= control target key end

     0   :  { %10 = vsyncpa [#allocation3], 0  ;;  %s1061_s18 = smov 0   ;;  %s1206_s0 = inlined_call_operand.vmem [shape: f32[2,4,7,7], index: 0, kind: input, shape index: {}]   ;;  %s1207_s1 = inlined_call_operand.vmem [shape: f32[2,7,64], index: 1, kind: input, shape index: {}]   ;;  %s1208_s2 = inlined_call_operand.vmem [shape: f32[2,7,64], index: 2, kind: input, shape index: {}]   ;;  %s1209_s3 = inlined_call_operand.vmem [shape: f32[64,64], index: 3, kind: input, shape index: {}]   ;;  %s1210_s4 = inlined_call_operand.hbm [shape: f32[1,64], index: 4, kind: input, shape index: {}]   ;;  %s1211_s5 = inlined_call_operand.vmem [shape: f32[2,7,64], index: 5, kind: output, shape index: {}]  }
   0x1 LB: > { %s1067_s19 = sadd.s32 4294967295, %s1025_s18   ;;  %p845_p0 = scmp.ge.s32.totalorder %s1025_s18, 1  ;;  %s1025_s18 = sphi %s1061_s18, %s16_s18  }
   0x2   : > { %p167_p1 = scmp.lt.s32.totalorder %s1025_s18, 3  ;;  %p1212_p3 = scmp.eq.s32.totalorder %s1067_s19, 0 }
   0x3   : > { %s1027_s21 = smov [#allocation2]   ;;  %s987_s26 = scalar_lea.hbm %s1210_s4, 16 }
   0x4   : > { %p1071_p2 = pnand %p845_p0, %p167_p1  ;;  %s183_s22 = sshll.u32 %s1027_s21, 4  ;;  %s184_s22 = int_to_ptr.vmem [resolvable:$true] %s183_s22 }
   0x5   : > { %p988_p6 = scmp.ne.s32.totalorder %s1210_s4, %s987_s26  ;;  %p994_p10 = scmp.lt.u32.totalorder %s987_s26, %s1210_s4 }
   0x6   : > { %s1214_s20 = scalar_select %p1071_p2, 1, 0 }
   0x7   : > { %p953_p4 = pneg %p1071_p2 }
   0x9   : > { %p1080_p5 = pnand %p1212_p3, %p953_p4 }
   0xb   : > { %p989_p7 = pneg %p1080_p5 }
   0xd   : > { %p990_p8 = pnand %p989_p7, %p988_p6 }
   0xf   : > { %p991_p9 = pneg %p990_p8 }
  0x11   : > { %p996_p11 = pnand %p994_p10, %p991_p9 }
  0x13   : > { %999 = shalt.err (!%p996_p11)
}
  0x14   : > { %s1000_s6 = scalar_lea.vmem %s184_s22, 16  ;;  %s1007_s7 = scalar_lea.vmem %s184_s22, 32 }
  0x15   : > { %p1001_p12 = scmp.ne.s32.totalorder %s184_s22, %s1000_s6  ;;  %p1008_p1 = scmp.lt.s32.totalorder %s184_s22, %s184_s22 }
  0x16   : > { %p1009_p4 = scmp.lt.s32.totalorder %s1007_s7, %s1000_s6 }
  0x17   : > { %p1003_p13 = pnand %p1001_p12, %p989_p7 }
  0x18   : > { %p1010_p3 = por %p1009_p4, %p1008_p1 }
  0x19   : > { %p1004_p0 = pneg %p1003_p13 }
  0x1b   : > { %p1011_p2 = pnand %p1010_p3, %p1004_p0 }
  0x1d   : > { %1014 = shalt.err (!%p1011_p2)
}
  0x1e   : > { %956 = dma.hbm_to_vmem [thread:$0]  (!%p1080_p5), %s1210_s4, 16, %s184_s22, [#allocation3]  }
  0x1f   : > { %p1216_p6 = scmp.ne.s32.totalorder %s1214_s20, 0 }
  0x20   : > { %p1217_p8 = scmp.eq.s32.totalorder (!%p1216_p6), %s1067_s19, 0 }
  0x21   : > { %218 = sbr.rel (%p1216_p6) target bundleno = 816 (0x330), region = 40 }
  0x28   : > { %1020 = dma.done.wait (%p1217_p8), [#allocation3], 16   ;;  %p1218_p7 = pmov %p1217_p8 }
  0x29   : > { %p253_p9 = scmp.lt.s32.totalorder %s1067_s19, 1  ;;  %vm280_vm0 = vcmask 55296   ;;  %v271_v32 = vlaneseq  ;;  %v1028_v34 = vmov 0.0   ;;  %vm317_vm4 = vcmask 1046528   ;;  %v661_v44 = vld [vmem:[%s1209_s3] sm:$0xff]  ;;  %v662_v45 = vld [vmem:[%s1209_s3 + $0x8] sm:$0xff] }
  0x2a   : > { %1022 = vsyncadd (%p1218_p7), [#allocation3], 4294967280  ;;  %892 = vmatprep.subr.mxu0 %v1028_v34  ;;  %vm1029_vm5 = vmmov 0   ;;  %v663_v46 = vld [vmem:[%s1209_s3 + $0x10] sm:$0xff]  ;;  %v1030_v47 = vmov 0.0|0.0   ;;  %v932_v48 = vpack.c.bf16 %v662_v45, %v661_v44  ;;  %v664_v49 = vld [vmem:[%s1209_s3 + $0x18] sm:$0xff] }
  0x2b   : > { %s1220_s19 = smov (!%p253_p9, %s1067_s19), 1  ;;  %v272_v33 = vand.u32 127, %v271_v32  ;;  %894 = vmatprep.mubr.msk.f32.mxu0 %vm1029_vm5, %v1028_v34  ;;  %928 = vmatprep.mubr.msk.f32.mxu1 %vm1029_vm5, %v1028_v34  ;;  %v935_v50 = vpack.c.bf16 %v664_v49, %v663_v46  ;;  %v665_v51 = vld [vmem:[%s1209_s3 + $0x20] sm:$0xff]  ;;  %v666_v52 = vld [vmem:[%s1209_s3 + $0x28] sm:$0xff]  ;;  %v667_v54 = vld [vmem:[%s1209_s3 + $0x30] sm:$0xff]  ;;  %vm313_vm13 = vcmask 56320  }
  0x2c   : > { %s874_s10 = sshll.u32 %s1220_s19, 5  ;;  %s1135_s14 = sshll.u32 %s1220_s19, 3  ;;  %931 = vmatprep.subr.bf16.mxu1 %v1030_v47  ;;  %v938_v53 = vpack.c.bf16 %v666_v52, %v665_v51  ;;  %v668_v55 = vld [vmem:[%s1209_s3 + $0x38] sm:$0xff]  ;;  %vm676_vm14 = vcmask 523264   ;;  %vm752_vm15 = vcmask 522240  }
  0x2d   : > { %s257_s13 = scalar_lea.vmem %s1206_s0, %s874_s10  ;;  %vm293_vm1 = vcmp.ge.s32.totalorder %v272_v33, 16  ;;  %vm294_vm2 = vcmp.lt.s32.totalorder %v272_v33, 32  ;;  %s261_s17 = scalar_lea.vmem %s1207_s1, %s1135_s14  ;;  %vm274_vm6 = vcmp.lt.s32.totalorder %v272_v33, 16  ;;  %vm467_vm7 = vcmp.ge.s32.totalorder %v272_v33, 32  ;;  %933 = vmatpush3.bf16.msra.mxu1 %v932_v48 }
  0x2e   : > { %v857_v0 = vld [vmem:[%s257_s13 + $0x8] sm:$0x7f]  ;;  %v863_v1 = vld [vmem:[%s257_s13 + $0x10] sm:$0x7f]  ;;  %v278_v2 = vld [vmem:[%s257_s13] sm:$0x7f]  ;;  %934 = vmatprep.subr.bf16.mxu1 %v1030_v47  ;;  %v941_v56 = vpack.c.bf16 %v668_v55, %v667_v54  ;;  %s265_s12 = scalar_lea.vmem %s1208_s2, %s1135_s14  ;;  %s269_s16 = scalar_lea.vmem %s1211_s5, %s1135_s14 }
  0x2f   : > { %v300_v3 = vmul.f32 0.125, %v857_v0  ;;  %v474_v4 = vmul.f32 0.125, %v863_v1  ;;  %v279_v5 = vmul.f32 0.125, %v278_v2  ;;  %v867_v6 = vld [vmem:[%s257_s13 + $0x18] sm:$0x7f]  ;;  %vm295_vm3 = vmand %vm293_vm1, %vm294_vm2  ;;  %v855_v38 = vsel %vm274_vm6, 1.0, %v1028_v34 }
  0x30   : > { %v571_v7 = vmul.f32 0.125, %v867_v6  ;;  %v270_v35 = vld [vmem:[%s261_s17] sm:$0x7f]  ;;  %v856_v36 = vsel %vm295_vm3, 1.0, %v1028_v34  ;;  %vm468_vm8 = vcmp.lt.s32.totalorder %v272_v33, 48  ;;  %vm564_vm10 = vcmp.ge.s32.totalorder %v272_v33, 48 }
  0x31   : > { %v301_v8 = vsel %vm280_vm0, %v300_v3, -inf  ;;  %v475_v9 = vsel %vm280_vm0, %v474_v4, -inf  ;;  %v281_v10 = vsel %vm280_vm0, %v279_v5, -inf  ;;  %v312_v37 = vmul.f32 %v856_v36, %v270_v35  ;;  %vm469_vm9 = vmand %vm467_vm7, %vm468_vm8  ;;  %936 = vmatpush3.bf16.msra.mxu1 %v935_v50 }
  0x32   : > { %302 = vmax.xlane.f32.xlu0 %v301_v8  ;;  %476 = vmax.xlane.f32.xlu1 %v475_v9  ;;  %v572_v11 = vsel %vm280_vm0, %v571_v7, -inf  ;;  %v292_v39 = vmul.f32 %v855_v38, %v270_v35  ;;  %v862_v40 = vsel %vm469_vm9, 1.0, %v1028_v34  ;;  %vm565_vm11 = vcmp.lt.s32.totalorder %v272_v33, 64  ;;  %v750_v9 = vld [vmem:[%s265_s12] sm:$0x7f] }
  0x33   : > { %893 = vmatpush3.msk.msra.mxu0 %vm317_vm4, %v312_v37  ;;  %v486_v41 = vmul.f32 %v862_v40, %v270_v35  ;;  %vm566_vm12 = vmand %vm564_vm10, %vm565_vm11  ;;  %937 = vmatprep.subr.bf16.mxu1 %v1030_v47 }
  0x34   : > { %897 = vmatprep.subr.mxu0 %v1028_v34  ;;  %v866_v42 = vsel %vm566_vm12, 1.0, %v1028_v34 }
  0x35   : > { %v583_v43 = vmul.f32 %v866_v42, %v270_v35  ;;  %939 = vmatpush3.bf16.msra.mxu1 %v938_v53 }
  0x36   : > { %282 = vmax.xlane.f32.xlu0 %v281_v10  ;;  %573 = vmax.xlane.f32.xlu1 %v572_v11 }
  0x37   : > { %940 = vmatprep.subr.bf16.mxu1 %v1030_v47 }
  0x39   : > { %942 = vmatpush3.bf16.msra.mxu1 %v941_v56 }
  0xbf   : > { %v303_v12 = vpop.xlane.xlu0 %302  ;;  %v477_v13 = vpop.xlane.xlu1 %476 }
  0xc0   : > { %v304_v14 = vsub.f32 %v300_v3, %v303_v12  ;;  %v478_v15 = vsub.f32 %v474_v4, %v477_v13 }
  0xc2   : > { %v305_v16 = vmul.f32 1.442695, %v304_v14  ;;  %v479_v17 = vmul.f32 1.442695, %v478_v15 }
  0xc3   : > { %v283_v18 = vpop.xlane.xlu0 %282  ;;  %v574_v19 = vpop.xlane.xlu1 %573 }
  0xc4   : > { %971 = vpow2.f32 %v305_v16  ;;  %v284_v20 = vsub.f32 %v279_v5, %v283_v18  ;;  %v575_v21 = vsub.f32 %v571_v7, %v574_v19  ;;  %v870_v7 = vld [vmem:[#allocation2] ss:$0 sm:$0xff] }
  0xc5   : > { %973 = vpow2.f32 %v479_v17 }
  0xc6   : > { %v285_v22 = vmul.f32 1.442695, %v284_v20  ;;  %v576_v23 = vmul.f32 1.442695, %v575_v21 }
  0xc8   : > { %975 = vpow2.f32 %v285_v22 }
  0xc9   : > { %977 = vpow2.f32 %v576_v23 }
  0xce   : > { %v1118_v24 = vpop.eup %971 }
  0xcf   : > { %v1120_v25 = vpop.eup %973  ;;  %v307_v26 = vsel %vm280_vm0, %v1118_v24, 0.0 }
  0xd0   : > { %308 = vadd.xlane.f32.xlu0 %v307_v26  ;;  %v481_v27 = vsel %vm280_vm0, %v1120_v25, 0.0 }
  0xd2   : > { %v1126_v28 = vpop.eup %975 }
  0xd3   : > { %v1128_v29 = vpop.eup %977  ;;  %v287_v30 = vsel %vm280_vm0, %v1126_v28, 0.0 }
  0xd4   : > { %482 = vadd.xlane.f32.xlu0 %v481_v27  ;;  %288 = vadd.xlane.f32.xlu1 %v287_v30  ;;  %v578_v31 = vsel %vm280_vm0, %v1128_v29, 0.0 }
  0xd8   : > { %579 = vadd.xlane.f32.xlu1 %v578_v31 }
 0x15d   : > { %v309_v57 = vpop.xlane.xlu0 %308 }
 0x15e   : > { %979 = vrcp.f32 %v309_v57 }
 0x161   : > { %v289_v58 = vpop.xlane.xlu1 %288  ;;  %v483_v60 = vpop.xlane.xlu0 %482 }
 0x162   : > { %981 = vrcp.f32 %v289_v58 }
 0x163   : > { %983 = vrcp.f32 %v483_v60 }
 0x165   : > { %v580_v0 = vpop.xlane.xlu1 %579 }
 0x166   : > { %985 = vrcp.f32 %v580_v0 }
 0x168   : > { %v980_v59 = vpop.eup %979 }
 0x169   : > { %v311_v61 = vmul.f32 %v980_v59, %v1118_v24 }
 0x16b   : > { %895 = vmatmul.mubr.msk.f32.vlgmr.msra.gmra.mrb[0].mxu0 %vm313_vm13, %v311_v61 }
 0x16c   : > { %898 = vmatpush3.msk.msra.mxu0 %vm317_vm4, %v292_v39  ;;  %899 = vmatprep.mubr.msk.f32.mxu0 %vm1029_vm5, %v1028_v34  ;;  %v982_v62 = vpop.eup %981 }
 0x16d   : > { %902 = vmatprep.subr.mxu0 %v1028_v34  ;;  %v291_v63 = vmul.f32 %v982_v62, %v1126_v28  ;;  %v984_v1 = vpop.eup %983 }
 0x16e   : > { %v485_v2 = vmul.f32 %v984_v1, %v1120_v25 }
 0x170   : > { %v986_v3 = vpop.eup %985 }
 0x171   : > { %v582_v4 = vmul.f32 %v986_v3, %v1128_v29 }
 0x173   : > { %900 = vmatmul.mubr.msk.f32.vlgmr.msra.gmra.mrb[0].mxu0 %vm313_vm13, %v291_v63 }
 0x174   : > { %903 = vmatpush3.msk.msra.mxu0 %vm317_vm4, %v486_v41  ;;  %904 = vmatprep.mubr.msk.f32.mxu0 %vm1029_vm5, %v1028_v34 }
 0x175   : > { %907 = vmatprep.subr.mxu0 %v1028_v34 }
 0x17b   : > { %905 = vmatmul.mubr.msk.f32.vlgmr.msra.gmra.mrb[0].mxu0 %vm313_vm13, %v485_v2 }
 0x17c   : > { %908 = vmatpush3.msk.msra.mxu0 %vm317_vm4, %v583_v43  ;;  %909 = vmatprep.mubr.msk.f32.mxu0 %vm1029_vm5, %v1028_v34 }
 0x183   : > { %910 = vmatmul.mubr.msk.f32.vlgmr.msra.gmra.mrb[0].mxu0 %vm313_vm13, %v582_v4 }
 0x256   : > { %v656_v5 = vpop.f32.mrb[0].mxu0 }
 0x257   : > { %v911_v6 = vpop.f32.mrb[1].mxu0  ;;  %929 = vmatmul.mubr.msk.f32.vlgmr.msra.gmra.mrb[0].mxu1 %vm676_vm14, %v656_v5 }
 0x32a   : > { %v746_v8 = vpop.f32.mrb[0].mxu1 }
 0x32b   : > { %v747_v10 = vadd.f32 %v870_v7, %v746_v8  ;;  %v930_v11 = vpop.f32.mrb[1].mxu1 }
 0x32d   : > { %v751_v12 = vadd.f32 %v750_v9, %v747_v10 }
 0x32f   : > { %753 = vst.msk [vmem:[%s269_s16] sm:$0x7f] %vm752_vm15, %v751_v12 }
 0x330 PF: > { %s16_s18 = sadd.s32 1, %s1025_s18  }
 0x331   : > { %p13_p2 = scmp.ge.s32.totalorder %s16_s18, 4  }
 0x333   :  { %15 = sbr.rel (!%p13_p2) target bundleno = 1 (0x1), region = 84 }
 0x33a   :  { %773 = vsyncpa [#allocation3], 1 }
 0x33b   :  { %775 = vsyncpa [#allocation3 + $0x1], 1 }

// kernel: _lambda_.23
= control target key start
LH: loop header
LB: loop body
LE: loop exit
PB: predicated region body
PF: predicated region fallthrough
CT: control target
= control target key end

     0   :  { %12 = vsyncpa [#allocation3], 0  ;;  %s850_s24 = smov 0   ;;  %s1082_s0 = inlined_call_operand.vmem [shape: f32[2,7,64], index: 0, kind: input, shape index: {}]   ;;  %s1083_s1 = inlined_call_operand.vmem [shape: f32[2,64], index: 1, kind: input, shape index: {}]   ;;  %s1084_s2 = inlined_call_operand.vmem [shape: f32[64,256], index: 2, kind: input, shape index: {}]   ;;  %s1085_s3 = inlined_call_operand.vmem [shape: f32[1,256], index: 3, kind: input, shape index: {}]   ;;  %s1086_s4 = inlined_call_operand.vmem [shape: f32[256,64], index: 4, kind: input, shape index: {}]   ;;  %s1087_s5 = inlined_call_operand.hbm [shape: f32[1,64], index: 5, kind: input, shape index: {}]   ;;  %s1088_s6 = inlined_call_operand.vmem [shape: f32[2,64], index: 6, kind: input, shape index: {}]   ;;  %s1089_s7 = inlined_call_operand.vmem [shape: f32[2,7,64], index: 7, kind: output, shape index: {}]  }
   0x1 LB: > { %s856_s25 = sadd.s32 4294967295, %s806_s24   ;;  %p636_p0 = scmp.ge.s32.totalorder %s806_s24, 1  ;;  %s806_s24 = sphi %s850_s24, %s18_s24  }
   0x2   : > { %p201_p1 = scmp.lt.s32.totalorder %s806_s24, 3  ;;  %p1090_p3 = scmp.eq.s32.totalorder %s856_s25, 0 }
   0x3   : > { %s808_s27 = smov [#allocation2]   ;;  %s768_s9 = scalar_lea.hbm %s1087_s5, 16 }
   0x4   : > { %p860_p2 = pnand %p636_p0, %p201_p1  ;;  %s226_s28 = sshll.u32 %s808_s27, 4  ;;  %s227_s28 = int_to_ptr.vmem [resolvable:$true] %s226_s28 }
   0x5   : > { %p769_p6 = scmp.ne.s32.totalorder %s1087_s5, %s768_s9  ;;  %p775_p10 = scmp.lt.u32.totalorder %s768_s9, %s1087_s5 }
   0x6   : > { %s1092_s26 = scalar_select %p860_p2, 1, 0 }
   0x7   : > { %p740_p4 = pneg %p860_p2 }
   0x9   : > { %p869_p5 = pnand %p1090_p3, %p740_p4 }
   0xb   : > { %p770_p7 = pneg %p869_p5 }
   0xd   : > { %p771_p8 = pnand %p770_p7, %p769_p6 }
   0xf   : > { %p772_p9 = pneg %p771_p8 }
  0x11   : > { %p777_p11 = pnand %p775_p10, %p772_p9 }
  0x13   : > { %780 = shalt.err (!%p777_p11)
}
  0x14   : > { %s781_s14 = scalar_lea.vmem %s227_s28, 16  ;;  %s788_s15 = scalar_lea.vmem %s227_s28, 32 }
  0x15   : > { %p782_p12 = scmp.ne.s32.totalorder %s227_s28, %s781_s14  ;;  %p789_p1 = scmp.lt.s32.totalorder %s227_s28, %s227_s28 }
  0x16   : > { %p790_p4 = scmp.lt.s32.totalorder %s788_s15, %s781_s14 }
  0x17   : > { %p784_p13 = pnand %p782_p12, %p770_p7 }
  0x18   : > { %p791_p3 = por %p790_p4, %p789_p1 }
  0x19   : > { %p785_p0 = pneg %p784_p13 }
  0x1b   : > { %p792_p2 = pnand %p791_p3, %p785_p0 }
  0x1d   : > { %795 = shalt.err (!%p792_p2)
}
  0x1e   : > { %743 = dma.hbm_to_vmem [thread:$0]  (!%p869_p5), %s1087_s5, 16, %s227_s28, [#allocation3]  }
  0x1f   : > { %p1094_p6 = scmp.ne.s32.totalorder %s1092_s26, 0 }
  0x20   : > { %p1095_p8 = scmp.eq.s32.totalorder (!%p1094_p6), %s856_s25, 0 }
  0x21   : > { %249 = sbr.rel (%p1094_p6) target bundleno = 1139 (0x473), region = 48 }
  0x28   : > { %801 = dma.done.wait (%p1095_p8), [#allocation3], 16   ;;  %p1096_p7 = pmov %p1095_p8 }
  0x29   : > { %p279_p9 = scmp.lt.s32.totalorder %s856_s25, 1  ;;  %vm290_vm0 = vcmask 522240   ;;  %v316_v7 = vld [vmem:[%s1084_s2 + $0x8] sm:$0xff]  ;;  %v318_v8 = vld [vmem:[%s1084_s2 + $0x18] sm:$0xff]  ;;  %v315_v10 = vld [vmem:[%s1084_s2] sm:$0xff]  ;;  %v809_v20 = vmov 0.0  }
  0x2a   : > { %803 = vsyncadd (%p1096_p7), [#allocation3], 4294967280  ;;  %v688_v9 = vpack.c.bf16 %v318_v8, %v316_v7  ;;  %v317_v11 = vld [vmem:[%s1084_s2 + $0x10] sm:$0xff]  ;;  %v320_v13 = vld [vmem:[%s1084_s2 + $0x28] sm:$0xff]  ;;  %411 = vmatprep.mubr.f32.mxu0 %v809_v20  ;;  %vm343_vm1 = vcmask 523264  }
  0x2b   : > { %s1098_s25 = smov (!%p279_p9, %s856_s25), 1  ;;  %v690_v12 = vpack.c.bf16 %v317_v11, %v315_v10  ;;  %v322_v14 = vld [vmem:[%s1084_s2 + $0x38] sm:$0xff]  ;;  %v319_v15 = vld [vmem:[%s1084_s2 + $0x20] sm:$0xff]  ;;  %v321_v17 = vld [vmem:[%s1084_s2 + $0x30] sm:$0xff] }
  0x2c   : > { %s641_s18 = sshll.u32 %s1098_s25, 3  ;;  %689 = vmatprep.subr.bf16.mxu0 %v688_v9  ;;  %v692_v16 = vpack.c.bf16 %v322_v14, %v320_v13  ;;  %v324_v18 = vld [vmem:[%s1084_s2 + $0x48] sm:$0xff]  ;;  %v326_v19 = vld [vmem:[%s1084_s2 + $0x58] sm:$0xff]  ;;  %v694_v21 = vpack.c.bf16 %v321_v17, %v319_v15  ;;  %v323_v23 = vld [vmem:[%s1084_s2 + $0x40] sm:$0xff] }
  0x2d   : > { %s282_s21 = scalar_lea.vmem %s1082_s0, %s641_s18  ;;  %691 = vmatpush1.bf16.msra.mxu0 %v690_v12  ;;  %v696_v22 = vpack.c.bf16 %v326_v19, %v324_v18  ;;  %v325_v24 = vld [vmem:[%s1084_s2 + $0x50] sm:$0xff]  ;;  %v328_v25 = vld [vmem:[%s1084_s2 + $0x68] sm:$0xff]  ;;  %v330_v26 = vld [vmem:[%s1084_s2 + $0x78] sm:$0xff]  ;;  %s286_s9 = scalar_lea.vmem %s1089_s7, %s641_s18 }
  0x2e   : > { %v905_v0 = vld [vmem:[%s282_s21] sm:$0x7f]  ;;  %693 = vmatprep.subr.bf16.mxu0 %v692_v16  ;;  %v698_v27 = vpack.c.bf16 %v325_v24, %v323_v23  ;;  %v700_v28 = vpack.c.bf16 %v330_v26, %v328_v25  ;;  %v329_v30 = vld [vmem:[%s1084_s2 + $0x70] sm:$0xff]  ;;  %v449_v42 = vld [vmem:[%s1086_s4 + $0x88] sm:$0xff]  ;;  %v333_v26 = vlaneseq }
  0x2f   : > { %v291_v1 = vsel %vm290_vm0, %v905_v0, 0.0  ;;  %v327_v29 = vld [vmem:[%s1084_s2 + $0x60] sm:$0xff]  ;;  %v433_v45 = vld [vmem:[%s1086_s4 + $0x8] sm:$0xff]  ;;  %v450_v47 = vld [vmem:[%s1086_s4 + $0x90] sm:$0xff] }
  0x30   : > { %292 = vadd.xlane.f32.xlu0 %v291_v1  ;;  %v702_v31 = vpack.c.bf16 %v329_v30, %v327_v29  ;;  %v643_v36 = vld [vmem:[%s1083_s1] ss:$0 sm:$0xff]  ;;  %v644_v38 = vld [vmem:[%s1083_s1 + $0x1] ss:$0 sm:$0xff]  ;;  %v451_v48 = vld [vmem:[%s1086_s4 + $0x98] sm:$0xff] }
  0x31   : > { %695 = vmatpush1.bf16.msra.mxu0 %v694_v21  ;;  %v448_v41 = vld [vmem:[%s1086_s4 + $0x80] sm:$0xff]  ;;  %v708_v49 = vpack.c.bf16 %v451_v48, %v450_v47  ;;  %v434_v50 = vld [vmem:[%s1086_s4 + $0x10] sm:$0xff]  ;;  %v435_v51 = vld [vmem:[%s1086_s4 + $0x18] sm:$0xff] }
  0x32   : > { %697 = vmatprep.subr.bf16.mxu0 %v696_v22  ;;  %v704_v43 = vpack.c.bf16 %v449_v42, %v448_v41  ;;  %v432_v44 = vld [vmem:[%s1086_s4] sm:$0xff]  ;;  %v710_v52 = vpack.c.bf16 %v435_v51, %v434_v50  ;;  %v453_v54 = vld [vmem:[%s1086_s4 + $0xa8] sm:$0xff]  ;;  %v454_v59 = vld [vmem:[%s1086_s4 + $0xb0] sm:$0xff] }
  0x33   : > { %v706_v46 = vpack.c.bf16 %v433_v45, %v432_v44  ;;  %v452_v53 = vld [vmem:[%s1086_s4 + $0xa0] sm:$0xff]  ;;  %v437_v57 = vld [vmem:[%s1086_s4 + $0x28] sm:$0xff]  ;;  %v455_v60 = vld [vmem:[%s1086_s4 + $0xb8] sm:$0xff] }
  0x34   : > { %705 = vmatprep.subr.bf16.mxu1 %v704_v43  ;;  %v712_v55 = vpack.c.bf16 %v453_v54, %v452_v53  ;;  %v436_v56 = vld [vmem:[%s1086_s4 + $0x20] sm:$0xff]  ;;  %v716_v61 = vpack.c.bf16 %v455_v60, %v454_v59  ;;  %v438_v62 = vld [vmem:[%s1086_s4 + $0x30] sm:$0xff]  ;;  %v439_v63 = vld [vmem:[%s1086_s4 + $0x38] sm:$0xff] }
  0x35   : > { %699 = vmatpush1.bf16.msra.mxu0 %v698_v27  ;;  %707 = vmatpush3.bf16.msra.mxu1 %v706_v46  ;;  %v714_v58 = vpack.c.bf16 %v437_v57, %v436_v56  ;;  %v718_v1 = vpack.c.bf16 %v439_v63, %v438_v62  ;;  %v458_v8 = vld [vmem:[%s1086_s4 + $0xd0] sm:$0xff]  ;;  %v459_v9 = vld [vmem:[%s1086_s4 + $0xd8] sm:$0xff]  ;;  %v460_v14 = vld [vmem:[%s1086_s4 + $0xe0] sm:$0xff]  ;;  %v334_v27 = vshrl.u32 %v333_v26, 7 }
  0x36   : > { %701 = vmatprep.subr.bf16.mxu0 %v700_v28  ;;  %709 = vmatprep.subr.bf16.mxu1 %v708_v49  ;;  %v724_v10 = vpack.c.bf16 %v459_v9, %v458_v8  ;;  %v442_v11 = vld [vmem:[%s1086_s4 + $0x50] sm:$0xff]  ;;  %v443_v12 = vld [vmem:[%s1086_s4 + $0x58] sm:$0xff]  ;;  %v461_v15 = vld [vmem:[%s1086_s4 + $0xe8] sm:$0xff] }
  0x37   : > { %v726_v13 = vpack.c.bf16 %v443_v12, %v442_v11  ;;  %v728_v16 = vpack.c.bf16 %v461_v15, %v460_v14  ;;  %v444_v17 = vld [vmem:[%s1086_s4 + $0x60] sm:$0xff]  ;;  %v445_v18 = vld [vmem:[%s1086_s4 + $0x68] sm:$0xff]  ;;  %v462_v20 = vld [vmem:[%s1086_s4 + $0xf0] sm:$0xff]  ;;  %v335_v28 = vsub.s32 0, %v334_v27  ;;  %v339_v30 = vsub.s32 1, %v334_v27 }
  0x38   : > { %v730_v19 = vpack.c.bf16 %v445_v18, %v444_v17  ;;  %v463_v21 = vld [vmem:[%s1086_s4 + $0xf8] sm:$0xff]  ;;  %v446_v23 = vld [vmem:[%s1086_s4 + $0x70] sm:$0xff]  ;;  %v331_v29 = vld [vmem:[%s1085_s3] sm:$0x3] }
  0x39   : > { %703 = vmatpush1.bf16.msra.mxu0 %v702_v31  ;;  %711 = vmatpush3.bf16.msra.mxu1 %v710_v52  ;;  %v732_v22 = vpack.c.bf16 %v463_v21, %v462_v20  ;;  %v447_v24 = vld [vmem:[%s1086_s4 + $0x78] sm:$0xff]  ;;  %v336_v31 = vrot.slane %v331_v29, %v335_v28  ;;  %v648_v48 = vld [vmem:[#allocation2] ss:$0 sm:$0xff] }
  0x3a   : > { %713 = vmatprep.subr.bf16.mxu1 %v712_v55  ;;  %v734_v25 = vpack.c.bf16 %v447_v24, %v446_v23 }
  0x3d   : > { %715 = vmatpush3.bf16.msra.mxu1 %v714_v58 }
  0x3e   : > { %717 = vmatprep.subr.bf16.mxu1 %v716_v61 }
  0x41   : > { %719 = vmatpush3.bf16.msra.mxu1 %v718_v1 }
  0xbd   : > { %v293_v2 = vpop.xlane.xlu0 %292 }
  0xbe   : > { %v295_v3 = vmul.f32 0.015625, %v293_v2  ;;  %v456_v2 = vld [vmem:[%s1086_s4 + $0xc0] sm:$0xff] }
  0xc0   : > { %v296_v4 = vsub.f32 %v905_v0, %v295_v3  ;;  %v457_v3 = vld [vmem:[%s1086_s4 + $0xc8] sm:$0xff] }
  0xc2   : > { %v297_v5 = vmul.f32 %v296_v4, %v296_v4 }
  0xc4   : > { %v298_v6 = vsel %vm290_vm0, %v297_v5, 0.0  ;;  %v440_v5 = vld [vmem:[%s1086_s4 + $0x40] sm:$0xff] }
  0xc5   : > { %299 = vadd.xlane.f32.xlu0 %v298_v6  ;;  %v441_v6 = vld [vmem:[%s1086_s4 + $0x48] sm:$0xff] }
  0xc6   : > { %v722_v7 = vpack.c.bf16 %v441_v6, %v440_v5 }
 0x152   : > { %v300_v32 = vpop.xlane.xlu0 %299 }
 0x153   : > { %v301_v33 = vmul.f32 0.015625, %v300_v32  ;;  %v340_v32 = vrot.slane %v331_v29, %v339_v30 }
 0x155   : > { %v302_v34 = vadd.f32 1e-05, %v301_v33 }
 0x157   : > { %756 = vrsqrt.f32 %v302_v34 }
 0x161   : > { %v757_v35 = vpop.eup %756 }
 0x162   : > { %v304_v37 = vmul.f32 %v757_v35, %v296_v4  ;;  %v720_v4 = vpack.c.bf16 %v457_v3, %v456_v2  ;;  %v650_v2 = vld [vmem:[%s1088_s6 + $0x1] ss:$0 sm:$0xff] }
 0x164   : > { %v309_v39 = vmul.f32 %v643_v36, %v304_v37  ;;  %721 = vmatprep.subr.bf16.mxu1 %v720_v4 }
 0x165   : > { %723 = vmatpush3.bf16.msra.mxu1 %v722_v7 }
 0x166   : > { %v314_v40 = vadd.f32 %v644_v38, %v309_v39  ;;  %725 = vmatprep.subr.bf16.mxu1 %v724_v10 }
 0x168   : > { %645 = vmatmul.mubr.msk.f32.vlgmr.msra.gmra.mrb[0].mxu0 %vm343_vm1, %v314_v40 }
 0x169   : > { %727 = vmatpush3.bf16.msra.mxu1 %v726_v13 }
 0x16a   : > { %729 = vmatprep.subr.bf16.mxu1 %v728_v16 }
 0x16d   : > { %731 = vmatpush3.bf16.msra.mxu1 %v730_v19 }
 0x16e   : > { %733 = vmatprep.subr.bf16.mxu1 %v732_v22 }
 0x171   : > { %735 = vmatpush3.bf16.msra.mxu1 %v734_v25 }
 0x23b   : > { %v413_v33 = vpop.f32.mrb[0].mxu0 }
 0x23c   : > { %v414_v34 = vadd.f32 %v413_v33, %v336_v31  ;;  %v415_v35 = vpop.f32.mrb[1].mxu0 }
 0x23d   : > { %v416_v36 = vadd.f32 %v415_v35, %v340_v32 }
 0x23e   : > { %v646_v37 = vmul.f32 -1.442695, %v414_v34 }
 0x23f   : > { %v647_v38 = vmul.f32 -1.442695, %v416_v36 }
 0x240   : > { %758 = vpow2.f32 %v646_v37 }
 0x241   : > { %760 = vpow2.f32 %v647_v38 }
 0x24a   : > { %v759_v39 = vpop.eup %758 }
 0x24b   : > { %v761_v40 = vpop.eup %760  ;;  %v424_v41 = vadd.f32 1.0, %v759_v39 }
 0x24c   : > { %v425_v42 = vadd.f32 1.0, %v761_v40 }
 0x24d   : > { %762 = vrcp.f32 %v424_v41 }
 0x24e   : > { %764 = vrcp.f32 %v425_v42 }
 0x257   : > { %v763_v43 = vpop.eup %762 }
 0x258   : > { %v765_v44 = vpop.eup %764  ;;  %v430_v46 = vmul.f32 %v763_v43, %v414_v34 }
 0x259   : > { %v431_v45 = vmul.f32 %v765_v44, %v416_v36 }
 0x25b   : > { %535 = vmatprep.mubr.f32.mxu1 %v431_v45 }
 0x25c   : > { %536 = vmatmul.mubr.f32.vlgmr.msra.gmra.mrb[0].mxu1 %v430_v46 }
 0x32f   : > { %v685_v47 = vpop.f32.mrb[0].mxu1 }
 0x330   : > { %v686_v49 = vpop.f32.mrb[1].mxu1 }
 0x331   : > { %v687_v50 = vadd.f32 %v686_v49, %v685_v47 }
 0x333   : > { %v538_v51 = vadd.f32 %v687_v50, %v648_v48 }
 0x335   : > { %v541_v52 = vmul.f32 0.5, %v538_v51 }
 0x337   : > { %v542_v53 = vadd.f32 %v541_v52, %v905_v0  ;;  %v649_v0 = vld [vmem:[%s1088_s6] ss:$0 sm:$0xff] }
 0x339   : > { %v545_v54 = vsel %vm290_vm0, %v542_v53, 0.0 }
 0x33a   : > { %546 = vadd.xlane.f32.xlu1 %v545_v54 }
 0x3c7   : > { %v547_v55 = vpop.xlane.xlu1 %546 }
 0x3c8   : > { %v548_v56 = vmul.f32 0.015625, %v547_v55 }
 0x3ca   : > { %v549_v57 = vsub.f32 %v542_v53, %v548_v56 }
 0x3cc   : > { %v550_v58 = vmul.f32 %v549_v57, %v549_v57 }
 0x3ce   : > { %v551_v59 = vsel %vm290_vm0, %v550_v58, 0.0 }
 0x3cf   : > { %552 = vadd.xlane.f32.xlu1 %v551_v59 }
 0x45c   : > { %v553_v60 = vpop.xlane.xlu1 %552 }
 0x45d   : > { %v554_v61 = vmul.f32 0.015625, %v553_v60 }
 0x45f   : > { %v555_v62 = vadd.f32 1e-05, %v554_v61 }
 0x461   : > { %766 = vrsqrt.f32 %v555_v62 }
 0x46b   : > { %v767_v63 = vpop.eup %766 }
 0x46c   : > { %v557_v1 = vmul.f32 %v767_v63, %v549_v57 }
 0x46e   : > { %v562_v3 = vmul.f32 %v649_v0, %v557_v1 }
 0x470   : > { %v567_v4 = vadd.f32 %v650_v2, %v562_v3 }
 0x472   : > { %568 = vst.msk [vmem:[%s286_s9] sm:$0x7f] %vm290_vm0, %v567_v4 }
 0x473 PF: > { %s18_s24 = sadd.s32 1, %s806_s24  }
 0x474   : > { %p15_p2 = scmp.ge.s32.totalorder %s18_s24, 4  }
 0x476   :  { %17 = sbr.rel (!%p15_p2) target bundleno = 1 (0x1), region = 83 }
 0x47d   :  { %588 = vsyncpa [#allocation3], 1 }
 0x47e   :  { %590 = vsyncpa [#allocation3 + $0x1], 1 }

// kernel: _lambda_.22
= control target key start
LH: loop header
LB: loop body
LE: loop exit
PB: predicated region body
PF: predicated region fallthrough
CT: control target
= control target key end

     0   :  { %13 = vsyncpa [#allocation3], 0  ;;  %s2470_s0 = inlined_call_operand.vmem [shape: f32[2,7,64], index: 0, kind: input, shape index: {}]   ;;  %s2471_s1 = inlined_call_operand.vmem [shape: f32[2,64], index: 1, kind: input, shape index: {}]   ;;  %s2472_s2 = inlined_call_operand.vmem [shape: f32[64,128], index: 2, kind: input, shape index: {}]   ;;  %s2473_s3 = inlined_call_operand.hbm [shape: f32[1,128], index: 3, kind: input, shape index: {}]   ;;  %s2474_s4 = inlined_call_operand.vmem [shape: f32[31,64], index: 4, kind: input, shape index: {}]   ;;  %s2475_s5 = inlined_call_operand.vmem [shape: f32[4,64], index: 5, kind: input, shape index: {}]   ;;  %s2476_s6 = inlined_call_operand.vmem [shape: f32[64,64], index: 6, kind: input, shape index: {}]   ;;  %s2477_s7 = inlined_call_operand.hbm [shape: f32[1,64], index: 7, kind: input, shape index: {}]   ;;  %s2478_s8 = inlined_call_operand.vmem [shape: f32[2,7,64], index: 8, kind: output, shape index: {}]  }
   0x1   :  { %14 = vsyncpa [#allocation5], 0  ;;  %s2144_s27 = smov 0  }
   0x2 LB: > { %s2150_s28 = sadd.s32 4294967295, %s2091_s27   ;;  %p1744_p0 = scmp.ge.s32.totalorder %s2091_s27, 1  ;;  %s2091_s27 = sphi %s2144_s27, %s20_s27  }
   0x3   : > { %p224_p1 = scmp.lt.s32.totalorder %s2091_s27, 3  ;;  %p2479_p2 = scmp.eq.s32.totalorder %s2150_s28, 0 }
   0x4   : > { %s2093_s30 = smov [#allocation2]   ;;  %s2094_s10 = smov [#allocation4]  }
   0x5   : > { %p2155_p3 = pnand %p1744_p0, %p224_p1  ;;  %s243_s9 = sshll.u32 %s2093_s30, 4  ;;  %s244_s9 = int_to_ptr.vmem [resolvable:$true] %s243_s9 }
   0x6   : > { %s263_s11 = sshll.u32 %s2094_s10, 4  ;;  %s2021_s15 = scalar_lea.hbm %s2473_s3, 16  ;;  %s2167_s11 = int_to_ptr.vmem [resolvable:$true] %s263_s11 }
   0x7   : > { %s2481_s29 = scalar_select %p2155_p3, 1, 0 }
   0x8   : > { %p1984_p4 = pneg %p2155_p3  ;;  %p2022_p6 = scmp.ne.s32.totalorder %s2473_s3, %s2021_s15 }
   0x9   : > { %p2028_p10 = scmp.lt.u32.totalorder %s2021_s15, %s2473_s3 }
   0xa   : > { %p2163_p5 = pnand %p2479_p2, %p1984_p4 }
   0xc   : > { %p2023_p7 = pneg %p2163_p5 }
   0xe   : > { %p2024_p8 = pnand %p2023_p7, %p2022_p6 }
  0x10   : > { %p2025_p9 = pneg %p2024_p8 }
  0x12   : > { %p2030_p11 = pnand %p2028_p10, %p2025_p9 }
  0x14   : > { %2033 = shalt.err (!%p2030_p11)
}
  0x15   : > { %s2034_s20 = scalar_lea.vmem %s244_s9, 16  ;;  %s2041_s21 = scalar_lea.vmem %s244_s9, 32 }
  0x16   : > { %p2035_p12 = scmp.ne.s32.totalorder %s244_s9, %s2034_s20  ;;  %p2042_p1 = scmp.lt.s32.totalorder %s244_s9, %s244_s9 }
  0x17   : > { %p2043_p4 = scmp.lt.s32.totalorder %s2041_s21, %s2034_s20 }
  0x18   : > { %p2037_p13 = pnand %p2035_p12, %p2023_p7 }
  0x19   : > { %p2044_p2 = por %p2043_p4, %p2042_p1 }
  0x1a   : > { %p2038_p0 = pneg %p2037_p13 }
  0x1c   : > { %p2045_p3 = pnand %p2044_p2, %p2038_p0 }
  0x1e   : > { %2048 = shalt.err (!%p2045_p3)
}
  0x1f   : > { %1987 = dma.hbm_to_vmem [thread:$0]  (!%p2163_p5), %s2473_s3, 16, %s244_s9, [#allocation3]  }
  0x20   : > { %s2049_s26 = scalar_lea.hbm %s2477_s7, 16 }
  0x21   : > { %p2050_p6 = scmp.ne.s32.totalorder %s2477_s7, %s2049_s26  ;;  %p2056_p3 = scmp.lt.u32.totalorder %s2049_s26, %s2477_s7 }
  0x23   : > { %p2052_p8 = pnand %p2050_p6, %p2023_p7 }
  0x25   : > { %p2053_p2 = pneg %p2052_p8 }
  0x27   : > { %p2058_p9 = pnand %p2056_p3, %p2053_p2 }
  0x29   : > { %2061 = shalt.err (!%p2058_p9)
}
  0x2a   : > { %s2062_s9 = scalar_lea.vmem %s2167_s11, 16  ;;  %s2069_s15 = scalar_lea.vmem %s2167_s11, 32 }
  0x2b   : > { %p2063_p10 = scmp.ne.s32.totalorder %s2167_s11, %s2062_s9  ;;  %p2070_p13 = scmp.lt.s32.totalorder %s2167_s11, %s2167_s11 }
  0x2c   : > { %p2071_p0 = scmp.lt.s32.totalorder %s2069_s15, %s2062_s9 }
  0x2d   : > { %p2065_p11 = pnand %p2063_p10, %p2023_p7 }
  0x2e   : > { %p2072_p1 = por %p2071_p0, %p2070_p13 }
  0x2f   : > { %p2066_p12 = pneg %p2065_p11 }
  0x31   : > { %p2073_p4 = pnand %p2072_p1, %p2066_p12 }
  0x33   : > { %2076 = shalt.err (!%p2073_p4)
}
  0x34   : > { %1990 = dma.hbm_to_vmem [thread:$0]  (!%p2163_p5), %s2477_s7, 16, %s2167_s11, [#allocation5]  }
  0x35   : > { %p2483_p6 = scmp.ne.s32.totalorder %s2481_s29, 0 }
  0x36   : > { %p2484_p7 = scmp.eq.s32.totalorder (!%p2483_p6), %s2150_s28, 0 }
  0x37   : > { %283 = sbr.rel (%p2483_p6) target bundleno = 1252 (0x4e4), region = 52 }
  0x3e   : > { %2082 = dma.done.wait (%p2484_p7), [#allocation3], 16   ;;  %p2485_p8 = pmov %p2484_p7 }
  0x3f   : > { %p2486_p2 = pmov %p2484_p7 }
  0x40   : > { %2084 = vsyncadd (%p2485_p8), [#allocation3], 4294967280 }
  0x41   : > { %2086 = dma.done.wait (%p2486_p2), [#allocation5], 16   ;;  %p2487_p3 = pmov %p2486_p2 }
  0x42   : > { %p319_p9 = scmp.lt.s32.totalorder %s2150_s28, 1  ;;  %vm330_vm0 = vcmask 522240   ;;  %v355_v7 = vld [vmem:[%s2472_s2] sm:$0xff]  ;;  %v356_v8 = vld [vmem:[%s2472_s2 + $0x8] sm:$0xff]  ;;  %v357_v10 = vld [vmem:[%s2472_s2 + $0x10] sm:$0xff]  ;;  %v2095_v12 = vmov 0.0|0.0   ;;  %v457_v38 = vlaneseq }
  0x43   : > { %2088 = vsyncadd (%p2487_p3), [#allocation5], 4294967280  ;;  %v1953_v9 = vpack.c.bf16 %v356_v8, %v355_v7  ;;  %v358_v11 = vld [vmem:[%s2472_s2 + $0x18] sm:$0xff]  ;;  %1952 = vmatprep.subr.bf16.mxu0 %v2095_v12  ;;  %vm2096_vm1 = vmmov 0   ;;  %v2097_v13 = vmov 0.0   ;;  %v359_v15 = vld [vmem:[%s2472_s2 + $0x20] sm:$0xff] }
  0x44   : > { %s2489_s28 = smov (!%p319_p9, %s2150_s28), 1  ;;  %1865 = vmatprep.mubr.msk.f32.mxu0 %vm2096_vm1, %v2097_v13  ;;  %v1956_v14 = vpack.c.bf16 %v358_v11, %v357_v10  ;;  %1868 = vmatprep.subr.mxu1 %v2097_v13  ;;  %v360_v16 = vld [vmem:[%s2472_s2 + $0x28] sm:$0xff]  ;;  %v361_v18 = vld [vmem:[%s2472_s2 + $0x30] sm:$0xff]  ;;  %v362_v19 = vld [vmem:[%s2472_s2 + $0x38] sm:$0xff]  ;;  %vm370_vm2 = vcmask 523264   ;;  %s2098_s20 = smov 64  }
  0x45   : > { %s1751_s29 = sshll.u32 %s2489_s28, 3  ;;  %1954 = vmatpush3.bf16.msra.mxu0 %v1953_v9  ;;  %1870 = vmatprep.mubr.msk.f32.mxu1 %vm2096_vm1, %v2097_v13  ;;  %v1959_v17 = vpack.c.bf16 %v360_v16, %v359_v15  ;;  %v1962_v20 = vpack.c.bf16 %v362_v19, %v361_v18  ;;  %v1753_v25 = vld [vmem:[%s2471_s1] ss:$0 sm:$0xff]  ;;  %v1754_v27 = vld [vmem:[%s2471_s1 + $0x1] ss:$0 sm:$0xff]  ;;  %v2286_v39 = vshrl.u32 %v457_v38, 7 }
  0x46   : > { %s322_s18 = scalar_lea.vmem %s2470_s0, %s1751_s29  ;;  %1955 = vmatprep.subr.bf16.mxu0 %v2095_v12  ;;  %v1755_v30 = vld [vmem:[#allocation2] ss:$0 sm:$0xff]  ;;  %v2288_v40 = vand.u32 127, %v457_v38  ;;  %vm469_vm4 = vcmask 1046528   ;;  %vm465_vm6 = vcmask 56320   ;;  %v1579_v8 = vld [vmem:[%s2476_s6 + $0x10] sm:$0xff]  ;;  %s326_s15 = scalar_lea.vmem %s2478_s8, %s1751_s29 }
  0x47   : > { %v2237_v0 = vld [vmem:[%s322_s18] sm:$0x7f]  ;;  %v461_v41 = vadd.s32 4294967290, %v2286_v39  ;;  %v1212_v42 = vadd.s32 3, %v2286_v39  ;;  %v549_v43 = vadd.s32 4294967291, %v2286_v39  ;;  %v1378_v45 = vadd.s32 5, %v2286_v39 }
  0x48   : > { %v331_v1 = vsel %vm330_vm0, %v2237_v0, 0.0  ;;  %v632_v48 = vadd.s32 4294967292, %v2286_v39  ;;  %v715_v51 = vadd.s32 4294967293, %v2286_v39  ;;  %v798_v54 = vadd.s32 4294967294, %v2286_v39  ;;  %v1580_v9 = vld [vmem:[%s2476_s6 + $0x18] sm:$0xff]  ;;  %v1581_v11 = vld [vmem:[%s2476_s6 + $0x20] sm:$0xff] }
  0x49   : > { %332 = vadd.xlane.f32.xlu0 %v331_v1  ;;  %1957 = vmatpush3.bf16.msra.mxu0 %v1956_v14  ;;  %vm462_vm3 = vcmp.eq.s32.totalorder %v2288_v40, %v461_v41  ;;  %vm1213_vm5 = vcmp.eq.s32.totalorder %v2288_v40, %v1212_v42  ;;  %vm550_vm7 = vcmp.eq.s32.totalorder %v2288_v40, %v549_v43  ;;  %v881_v56 = vadd.s32 4294967295, %v2286_v39  ;;  %v1583_v15 = vld [vmem:[%s2476_s6 + $0x30] sm:$0xff]  ;;  %v1584_v16 = vld [vmem:[%s2476_s6 + $0x38] sm:$0xff] }
  0x4a   : > { %1958 = vmatprep.subr.bf16.mxu0 %v2095_v12  ;;  %v1758_v47 = vsel %vm462_vm3, 1.0, %v2097_v13  ;;  %v1785_v49 = vsel %vm1213_vm5, 1.0, %v2097_v13  ;;  %vm1379_vm8 = vcmp.eq.s32.totalorder %v2288_v40, %v1378_v45  ;;  %v1761_v50 = vsel %vm550_vm7, 1.0, %v2097_v13 }
  0x4b   : > { %vm633_vm9 = vcmp.eq.s32.totalorder %v2288_v40, %v632_v48  ;;  %v1791_v52 = vsel %vm1379_vm8, 1.0, %v2097_v13  ;;  %vm716_vm10 = vcmp.eq.s32.totalorder %v2288_v40, %v715_v51  ;;  %vm799_vm11 = vcmp.eq.s32.totalorder %v2288_v40, %v798_v54 }
  0x4c   : > { %v1764_v53 = vsel %vm633_vm9, 1.0, %v2097_v13  ;;  %v1767_v55 = vsel %vm716_vm10, 1.0, %v2097_v13  ;;  %v1770_v57 = vsel %vm799_vm11, 1.0, %v2097_v13  ;;  %vm882_vm12 = vcmp.eq.s32.totalorder %v2288_v40, %v881_v56 }
  0x4d   : > { %1960 = vmatpush3.bf16.msra.mxu0 %v1959_v17  ;;  %v1773_v58 = vsel %vm882_vm12, 1.0, %v2097_v13  ;;  %vm964_vm13 = vcmp.eq.s32.totalorder %v2288_v40, %v2286_v39  ;;  %v1046_v59 = vadd.s32 1, %v2286_v39  ;;  %v1129_v61 = vadd.s32 2, %v2286_v39 }
  0x4e   : > { %1961 = vmatprep.subr.bf16.mxu0 %v2095_v12  ;;  %v1776_v60 = vsel %vm964_vm13, 1.0, %v2097_v13  ;;  %v1295_v63 = vadd.s32 4, %v2286_v39  ;;  %v1968_v10 = vpack.c.bf16 %v1580_v9, %v1579_v8  ;;  %v1974_v17 = vpack.c.bf16 %v1584_v16, %v1583_v15 }
  0x4f   : > { %vm1047_vm14 = vcmp.eq.s32.totalorder %v2288_v40, %v1046_v59  ;;  %vm1130_vm15 = vcmp.eq.s32.totalorder %v2288_v40, %v1129_v61  ;;  %v545_v18 = vsub.s32 1, %v2286_v39  ;;  %v628_v19 = vsub.s32 2, %v2286_v39 }
  0x50   : > { %v1779_v62 = vsel %vm1047_vm14, 1.0, %v2097_v13  ;;  %v1782_v1 = vsel %vm1130_vm15, 1.0, %v2097_v13  ;;  %vm1296_vm3 = vcmp.eq.s32.totalorder %v2288_v40, %v1295_v63  ;;  %v877_v41 = vsub.s32 5, %v2286_v39 }
  0x51   : > { %1963 = vmatpush3.bf16.msra.mxu0 %v1962_v20  ;;  %v455_v20 = vld [vmem:[%s2474_s4 + $0x8] sm:$0xff]  ;;  %v1125_v59 = vsub.s32 0, %v2286_v39 }
  0x52   : > { %1913 = vmatprep.subr.mxu0 %v2097_v13 }
  0xd6   : > { %v333_v2 = vpop.xlane.xlu0 %332 }
  0xd7   : > { %v335_v3 = vmul.f32 0.015625, %v333_v2  ;;  %v1461_v2 = vadd.s32 6, %v2286_v39 }
  0xd9   : > { %v336_v4 = vsub.f32 %v2237_v0, %v335_v3  ;;  %v1788_v3 = vsel %vm1296_vm3, 1.0, %v2097_v13  ;;  %vm1462_vm5 = vcmp.eq.s32.totalorder %v2288_v40, %v1461_v2 }
  0xdb   : > { %v337_v5 = vmul.f32 %v336_v4, %v336_v4 }
  0xdd   : > { %v338_v6 = vsel %vm330_vm0, %v337_v5, 0.0  ;;  %v1577_v5 = vld [vmem:[%s2476_s6] sm:$0xff] }
  0xde   : > { %339 = vadd.xlane.f32.xlu0 %v338_v6  ;;  %v1578_v6 = vld [vmem:[%s2476_s6 + $0x8] sm:$0xff] }
  0xdf   : > { %v1965_v7 = vpack.c.bf16 %v1578_v6, %v1577_v5 }
 0x16b   : > { %v340_v21 = vpop.xlane.xlu0 %339 }
 0x16c   : > { %v341_v22 = vmul.f32 0.015625, %v340_v21 }
 0x16e   : > { %v342_v23 = vadd.f32 1e-05, %v341_v22  ;;  %v546_v22 = vrot.slane %v455_v20, %v545_v18 }
 0x170   : > { %2009 = vrsqrt.f32 %v342_v23 }
 0x17a   : > { %v2010_v24 = vpop.eup %2009 }
 0x17b   : > { %v344_v26 = vmul.f32 %v2010_v24, %v336_v4  ;;  %v1794_v4 = vsel %vm1462_vm5, 1.0, %v2097_v13  ;;  %v629_v24 = vrot.slane %v455_v20, %v628_v19 }
 0x17d   : > { %v349_v28 = vmul.f32 %v1753_v25, %v344_v26  ;;  %v711_v25 = vsub.s32 3, %v2286_v39 }
 0x17f   : > { %v354_v29 = vadd.f32 %v1754_v27, %v349_v28 }
 0x181   : > { %1866 = vmatmul.mubr.msk.f32.vlgmr.msra.gmra.mrb[0].mxu0 %vm370_vm2, %v354_v29 }
 0x182   : > { %1915 = vmatprep.mubr.msk.f32.mxu0 %vm2096_vm1, %v2097_v13 }
 0x254   : > { %v440_v31 = vpop.f32.mrb[0].mxu0 }
 0x255   : > { %v441_v32 = vadd.f32 %v1755_v30, %v440_v31  ;;  %v1867_v33 = vpop.f32.mrb[1].mxu0  ;;  %v712_v31 = vrot.slane %v455_v20, %v711_v25 }
 0x257   : > { %v1757_v34 = vmul.f32 -1.442695, %v441_v32 }
 0x259   : > { %2011 = vpow2.f32 %v1757_v34 }
 0x263   : > { %v2012_v35 = vpop.eup %2011 }
 0x264   : > { %v447_v36 = vadd.f32 1.0, %v2012_v35 }
 0x266   : > { %2013 = vrcp.f32 %v447_v36 }
 0x270   : > { %v2014_v37 = vpop.eup %2013 }
 0x271   : > { %451 = vrot.lane.b32.xlu1 %v2014_v37, %s2098_s20 }
 0x2e3   : > { %v452_v44 = vpop.permute.xlu1 %451 }
 0x2e4   : > { %v2296_v46 = vmul.f32 %v452_v44, %v441_v32  ;;  %v794_v32 = vsub.s32 4, %v2286_v39 }
 0x2e6   : > { %1869 = vmatpush3.msk.msra.mxu1 %vm469_vm4, %v2296_v46  ;;  %1914 = vmatpush3.msk.msra.mxu0 %vm469_vm4, %v2296_v46  ;;  %v795_v40 = vrot.slane %v455_v20, %v794_v32 }
 0x2e7   : > { %1871 = vmatmul.mubr.msk.f32.vlgmr.msra.gmra.mrb[0].mxu1 %vm465_vm6, %v1758_v47  ;;  %1873 = vmatprep.subr.mxu1 %v2097_v13  ;;  %v960_v47 = vsub.s32 6, %v2286_v39 }
 0x2e8   : > { %1923 = vmatprep.subr.mxu0 %v2097_v13  ;;  %1874 = vmatpush3.msk.msra.mxu1 %vm469_vm4, %v2296_v46 }
 0x2e9   : > { %1916 = vmatmul.mubr.msk.f32.vlgmr.msra.gmra.mrb[2].mxu0 %vm465_vm6, %v1785_v49  ;;  %1875 = vmatprep.mubr.msk.f32.mxu1 %vm2096_vm1, %v2097_v13 }
 0x2ea   : > { %1924 = vmatpush3.msk.msra.mxu0 %vm469_vm4, %v2296_v46  ;;  %1878 = vmatprep.subr.mxu1 %v2097_v13 }
 0x2eb   : > { %1876 = vmatmul.mubr.msk.f32.vlgmr.msra.gmra.mrb[2].mxu1 %vm465_vm6, %v1761_v50  ;;  %1925 = vmatprep.mubr.msk.f32.mxu0 %vm2096_vm1, %v2097_v13 }
 0x2ec   : > { %1879 = vmatpush3.msk.msra.mxu1 %vm469_vm4, %v2296_v46  ;;  %1880 = vmatprep.mubr.msk.f32.mxu1 %vm2096_vm1, %v2097_v13 }
 0x2ed   : > { %1883 = vmatprep.subr.mxu1 %v2097_v13  ;;  %1926 = vmatmul.mubr.msk.f32.vlgmr.msra.gmra.mrb[4].mxu0 %vm465_vm6, %v1791_v52  ;;  %v961_v52 = vrot.slane %v455_v20, %v960_v47 }
 0x2ee   : > { %1964 = vmatprep.subr.bf16.mxu0 %v2095_v12  ;;  %1949 = vmatprep.mubr.msk.f32.mxu0 %vm2096_vm1, %v2097_v13 }
 0x2ef   : > { %1881 = vmatmul.mubr.msk.f32.vlgmr.msra.gmra.mrb[4].mxu1 %vm465_vm6, %v1764_v53  ;;  %1966 = vmatpush3.bf16.msra.mxu0 %v1965_v7  ;;  %v1042_v53 = vsub.s32 7, %v2286_v39 }
 0x2f0   : > { %1884 = vmatpush3.msk.msra.mxu1 %vm469_vm4, %v2296_v46  ;;  %1885 = vmatprep.mubr.msk.f32.mxu1 %vm2096_vm1, %v2097_v13 }
 0x2f1   : > { %1888 = vmatprep.subr.mxu1 %v2097_v13  ;;  %1967 = vmatprep.subr.bf16.mxu0 %v2095_v12 }
 0x2f3   : > { %1886 = vmatmul.mubr.msk.f32.vlgmr.msra.gmra.mrb[6].mxu1 %vm465_vm6, %v1767_v55  ;;  %1969 = vmatpush3.bf16.msra.mxu0 %v1968_v10 }
 0x2f4   : > { %1889 = vmatpush3.msk.msra.mxu1 %vm469_vm4, %v2296_v46  ;;  %1890 = vmatprep.mubr.msk.f32.mxu1 %vm2096_vm1, %v2097_v13 }
 0x2f5   : > { %1893 = vmatprep.subr.mxu1 %v2097_v13  ;;  %1970 = vmatprep.subr.bf16.mxu0 %v2095_v12 }
 0x2f7   : > { %1891 = vmatmul.mubr.msk.f32.vlgmr.msra.gmra.mrb[8].mxu1 %vm465_vm6, %v1770_v57 }
 0x2f8   : > { %1894 = vmatpush3.msk.msra.mxu1 %vm469_vm4, %v2296_v46  ;;  %1895 = vmatprep.mubr.msk.f32.mxu1 %vm2096_vm1, %v2097_v13 }
 0x2f9   : > { %1898 = vmatprep.subr.mxu1 %v2097_v13 }
 0x2fb   : > { %1896 = vmatmul.mubr.msk.f32.vlgmr.msra.gmra.mrb[10].mxu1 %vm465_vm6, %v1773_v58  ;;  %v1043_v58 = vrot.slane %v455_v20, %v1042_v53 }
 0x2fc   : > { %1899 = vmatpush3.msk.msra.mxu1 %vm469_vm4, %v2296_v46  ;;  %1900 = vmatprep.mubr.msk.f32.mxu1 %vm2096_vm1, %v2097_v13 }
 0x2fd   : > { %1903 = vmatprep.subr.mxu1 %v2097_v13 }
 0x2ff   : > { %1901 = vmatmul.mubr.msk.f32.vlgmr.msra.gmra.mrb[12].mxu1 %vm465_vm6, %v1776_v60  ;;  %v456_v60 = vld [vmem:[%s2474_s4 + $0x10] sm:$0xff] }
 0x300   : > { %1904 = vmatpush3.msk.msra.mxu1 %vm469_vm4, %v2296_v46  ;;  %1905 = vmatprep.mubr.msk.f32.mxu1 %vm2096_vm1, %v2097_v13  ;;  %v1209_v9 = vrot.slane %v456_v60, %v545_v18  ;;  %v1292_v39 = vrot.slane %v456_v60, %v628_v19  ;;  %v1375_v16 = vrot.slane %v456_v60, %v711_v25 }
 0x301   : > { %1908 = vmatprep.subr.mxu1 %v2097_v13 }
 0x303   : > { %1906 = vmatmul.mubr.msk.f32.vlgmr.msra.gmra.mrb[14].mxu1 %vm465_vm6, %v1779_v62  ;;  %v1547_v62 = vld [vmem:[%s2475_s5 + $0x3] sm:$0x1] }
 0x304   : > { %1909 = vmatpush3.msk.msra.mxu1 %vm469_vm4, %v2296_v46  ;;  %1910 = vmatprep.mubr.msk.f32.mxu1 %vm2096_vm1, %v2097_v13 }
 0x305   : > { %1918 = vmatprep.subr.mxu1 %v2097_v13 }
 0x307   : > { %1911 = vmatmul.mubr.msk.f32.vlgmr.msra.gmra.mrb[16].mxu1 %vm465_vm6, %v1782_v1 }
 0x308   : > { %1919 = vmatpush3.msk.msra.mxu1 %vm469_vm4, %v2296_v46  ;;  %1920 = vmatprep.mubr.msk.f32.mxu1 %vm2096_vm1, %v2097_v13 }
 0x309   : > { %1928 = vmatprep.subr.mxu1 %v2097_v13 }
 0x30b   : > { %1921 = vmatmul.mubr.msk.f32.vlgmr.msra.gmra.mrb[18].mxu1 %vm465_vm6, %v1788_v3  ;;  %v1126_v3 = vrot.slane %v456_v60, %v1125_v59 }
 0x30c   : > { %1929 = vmatpush3.msk.msra.mxu1 %vm469_vm4, %v2296_v46  ;;  %1930 = vmatprep.mubr.msk.f32.mxu1 %vm2096_vm1, %v2097_v13  ;;  %v1582_v13 = vld [vmem:[%s2476_s6 + $0x28] sm:$0xff]  ;;  %v878_v46 = vrot.slane %v455_v20, %v877_v41 }
 0x30d   : > { %v1971_v14 = vpack.c.bf16 %v1582_v13, %v1581_v11 }
 0x30f   : > { %1931 = vmatmul.mubr.msk.f32.vlgmr.msra.gmra.mrb[20].mxu1 %vm465_vm6, %v1794_v4  ;;  %1972 = vmatpush3.bf16.msra.mxu0 %v1971_v14  ;;  %v1553_v4 = vadd.f32 1e-05, %v1547_v62 }
 0x310   : > { %1973 = vmatprep.subr.bf16.mxu0 %v2095_v12 }
 0x311   : > { %2015 = vrsqrt.f32 %v1553_v4 }
 0x313   : > { %1975 = vmatpush3.bf16.msra.mxu0 %v1974_v17  ;;  %v1458_v17 = vrot.slane %v456_v60, %v794_v32 }
 0x3ba   : > { %v539_v21 = vpop.f32.mrb[0].mxu1 }
 0x3bb   : > { %v1872_v23 = vpop.f32.mrb[1].mxu1  ;;  %v547_v29 = vmul.f32 %v546_v22, %v539_v21 }
 0x3bc   : > { %v1285_v26 = vpop.f32.mrb[2].mxu0 }
 0x3bd   : > { %v1917_v27 = vpop.f32.mrb[3].mxu0  ;;  %v1293_v15 = vmul.f32 %v1292_v39, %v1285_v26 }
 0x3be   : > { %v622_v28 = vpop.f32.mrb[2].mxu1 }
 0x3bf   : > { %v630_v12 = vmul.f32 %v629_v24, %v622_v28  ;;  %v1877_v30 = vpop.f32.mrb[3].mxu1  ;;  %v1541_v28 = vrot.slane %v456_v60, %v877_v41 }
 0x3c0   : > { %v1451_v33 = vpop.f32.mrb[4].mxu0 }
 0x3c1   : > { %v631_v34 = vadd.f32 %v630_v12, %v547_v29  ;;  %v1927_v35 = vpop.f32.mrb[5].mxu0  ;;  %v1459_v27 = vmul.f32 %v1458_v17, %v1451_v33  ;;  %v2016_v12 = vpop.eup %2015  ;;  %v1799_v33 = vld [vmem:[%s2475_s5 + $0x1] ss:$0 sm:$0xff] }
 0x3c2   : > { %v705_v36 = vpop.f32.mrb[4].mxu1  ;;  %v1558_v26 = vrot.slane %v2016_v12, %v1125_v59  ;;  %v1798_v35 = vld [vmem:[%s2475_s5] ss:$0 sm:$0xff] }
 0x3c3   : > { %v713_v37 = vmul.f32 %v712_v31, %v705_v36  ;;  %v1882_v38 = vpop.f32.mrb[5].mxu1 }
 0x3c5   : > { %v714_v42 = vadd.f32 %v713_v37, %v631_v34  ;;  %v1797_v34 = vld [vmem:[%s2475_s5 + $0x2] ss:$0 sm:$0xff] }
 0x3c6   : > { %v788_v43 = vpop.f32.mrb[6].mxu1 }
 0x3c7   : > { %v796_v44 = vmul.f32 %v795_v40, %v788_v43  ;;  %v1887_v45 = vpop.f32.mrb[7].mxu1 }
 0x3c8   : > { %v1801_v45 = vld [vmem:[#allocation4] ss:$0 sm:$0xff] }
 0x3c9   : > { %v797_v48 = vadd.f32 %v796_v44, %v714_v42 }
 0x3ca   : > { %v871_v49 = vpop.f32.mrb[8].mxu1 }
 0x3cb   : > { %v879_v50 = vmul.f32 %v878_v46, %v871_v49  ;;  %v1892_v51 = vpop.f32.mrb[9].mxu1 }
 0x3cd   : > { %v880_v54 = vadd.f32 %v879_v50, %v797_v48 }
 0x3ce   : > { %v954_v55 = vpop.f32.mrb[10].mxu1 }
 0x3cf   : > { %v962_v56 = vmul.f32 %v961_v52, %v954_v55  ;;  %v1897_v57 = vpop.f32.mrb[11].mxu1 }
 0x3d1   : > { %v963_v61 = vadd.f32 %v962_v56, %v880_v54 }
 0x3d2   : > { %v1036_v63 = vpop.f32.mrb[12].mxu1 }
 0x3d3   : > { %v1044_v1 = vmul.f32 %v1043_v58, %v1036_v63  ;;  %v1902_v2 = vpop.f32.mrb[13].mxu1 }
 0x3d5   : > { %v1045_v5 = vadd.f32 %v1044_v1, %v963_v61 }
 0x3d6   : > { %v1119_v6 = vpop.f32.mrb[14].mxu1 }
 0x3d7   : > { %v1127_v7 = vmul.f32 %v1126_v3, %v1119_v6  ;;  %v1907_v8 = vpop.f32.mrb[15].mxu1 }
 0x3d9   : > { %v1128_v10 = vadd.f32 %v1127_v7, %v1045_v5 }
 0x3da   : > { %v1202_v11 = vpop.f32.mrb[16].mxu1 }
 0x3db   : > { %v1210_v13 = vmul.f32 %v1209_v9, %v1202_v11  ;;  %v1912_v14 = vpop.f32.mrb[17].mxu1 }
 0x3dd   : > { %v1211_v20 = vadd.f32 %v1210_v13, %v1128_v10 }
 0x3de   : > { %v1368_v21 = vpop.f32.mrb[18].mxu1 }
 0x3df   : > { %v1294_v22 = vadd.f32 %v1293_v15, %v1211_v20  ;;  %v1376_v23 = vmul.f32 %v1375_v16, %v1368_v21  ;;  %v1922_v24 = vpop.f32.mrb[19].mxu1 }
 0x3e1   : > { %v1377_v29 = vadd.f32 %v1376_v23, %v1294_v22 }
 0x3e2   : > { %v1534_v30 = vpop.f32.mrb[20].mxu1 }
 0x3e3   : > { %v1460_v18 = vadd.f32 %v1459_v27, %v1377_v29  ;;  %v1542_v19 = vmul.f32 %v1541_v28, %v1534_v30  ;;  %v1932_v31 = vpop.f32.mrb[21].mxu1 }
 0x3e5   : > { %v1543_v25 = vadd.f32 %v1542_v19, %v1460_v18 }
 0x3e7   : > { %v1552_v32 = vsub.f32 %v1543_v25, %v1797_v34 }
 0x3e9   : > { %v1559_v36 = vmul.f32 %v1558_v26, %v1552_v32 }
 0x3eb   : > { %v1564_v37 = vmul.f32 %v1798_v35, %v1559_v36 }
 0x3ed   : > { %v1569_v38 = vadd.f32 %v1799_v33, %v1564_v37 }
 0x3ef   : > { %v1800_v40 = vmul.f32 -1.442695, %v1569_v38 }
 0x3f1   : > { %2017 = vpow2.f32 %v1800_v40 }
 0x3fb   : > { %v2018_v41 = vpop.eup %2017 }
 0x3fc   : > { %v1573_v42 = vadd.f32 1.0, %v2018_v41 }
 0x3fe   : > { %2019 = vrcp.f32 %v1573_v42 }
 0x408   : > { %v2020_v43 = vpop.eup %2019 }
 0x409   : > { %v1576_v44 = vmul.f32 %v2020_v43, %v1569_v38 }
 0x40b   : > { %1950 = vmatmul.mubr.msk.f32.vlgmr.msra.gmra.mrb[6].mxu0 %vm370_vm2, %v1576_v44 }
 0x4de   : > { %v1661_v46 = vpop.f32.mrb[6].mxu0 }
 0x4df   : > { %v1662_v47 = vadd.f32 %v1801_v45, %v1661_v46  ;;  %v1951_v48 = vpop.f32.mrb[7].mxu0 }
 0x4e1   : > { %v1665_v49 = vadd.f32 %v1662_v47, %v2237_v0 }
 0x4e3   : > { %1666 = vst.msk [vmem:[%s326_s15] sm:$0x7f] %vm330_vm0, %v1665_v49 }
 0x4e4 PF: > { %s20_s27 = sadd.s32 1, %s2091_s27  }
 0x4e5   : > { %p17_p5 = scmp.ge.s32.totalorder %s20_s27, 4  }
 0x4e7   :  { %19 = sbr.rel (!%p17_p5) target bundleno = 2 (0x2), region = 91 }
 0x4ee   :  { %1686 = vsyncpa [#allocation3], 1 }
 0x4ef   :  { %1688 = vsyncpa [#allocation3 + $0x1], 1 }
 0x4f0   :  { %1689 = vsyncpa [#allocation5], 1 }

// kernel: _lambda_.26
= control target key start
LH: loop header
LB: loop body
LE: loop exit
PB: predicated region body
PF: predicated region fallthrough
CT: control target
= control target key end

     0   :  { %s990_s18 = smov 0   ;;  %s1099_s0 = inlined_call_operand.vmem [shape: f32[2,4,7,7], index: 0, kind: input, shape index: {}]   ;;  %s1100_s1 = inlined_call_operand.vmem [shape: f32[2,7,64], index: 1, kind: input, shape index: {}]   ;;  %s1101_s2 = inlined_call_operand.vmem [shape: f32[2,7,64], index: 2, kind: input, shape index: {}]   ;;  %s1102_s3 = inlined_call_operand.vmem [shape: f32[64,64], index: 3, kind: input, shape index: {}]   ;;  %s1103_s4 = inlined_call_operand.vmem [shape: f32[1,64], index: 4, kind: input, shape index: {}]   ;;  %s1104_s5 = inlined_call_operand.vmem [shape: f32[2,7,64], index: 5, kind: output, shape index: {}]  }
   0x1 LB: > { %s818_s19 = sadd.s32 4294967295, %s955_s18   ;;  %p822_p0 = scmp.ge.s32.totalorder %s955_s18, 1  ;;  %s955_s18 = sphi %s990_s18, %s15_s18  }
   0x2   : > { %p205_p1 = scmp.lt.s32.totalorder %s955_s18, 3 }
   0x4   : > { %p206_p2 = pnand %p822_p0, %p205_p1 }
   0x5   : > { %p240_p3 = scmp.lt.s32.totalorder (!%p206_p2), %s818_s19, 1  ;;  %vm267_vm0 = vcmask (!%p206_p2), 55296   ;;  %v258_v32 = vlaneseq (!%p206_p2)  ;;  %v957_v34 = vmov (!%p206_p2), 0.0   ;;  %vm304_vm4 = vcmask (!%p206_p2), 1046528   ;;  %v648_v44 = vld [vmem:[%s1102_s3] sm:$0xff] (!%p206_p2)  ;;  %v649_v45 = vld [vmem:[%s1102_s3 + $0x8] sm:$0xff] (!%p206_p2) }
   0x6   : > { %209 = sbr.rel (%p206_p2) target bundleno = 786 (0x312), region = 40  ;;  %865 = vmatprep.subr.mxu0 (!%p206_p2), %v957_v34  ;;  %vm958_vm5 = vmmov (!%p206_p2), 0   ;;  %v650_v46 = vld [vmem:[%s1102_s3 + $0x10] sm:$0xff] (!%p206_p2)  ;;  %v959_v47 = vmov (!%p206_p2), 0.0|0.0   ;;  %v905_v48 = vpack.c.bf16 (!%p206_p2), %v649_v45, %v648_v44  ;;  %v651_v49 = vld [vmem:[%s1102_s3 + $0x18] sm:$0xff] (!%p206_p2)  ;;  %v652_v51 = vld [vmem:[%s1102_s3 + $0x20] sm:$0xff] (!%p206_p2) }
   0x7   : > { %v259_v33 = vand.u32 (!%p206_p2), 127, %v258_v32  ;;  %867 = vmatprep.mubr.msk.f32.mxu0 (!%p206_p2), %vm958_vm5, %v957_v34  ;;  %901 = vmatprep.mubr.msk.f32.mxu1 (!%p206_p2), %vm958_vm5, %v957_v34  ;;  %v908_v50 = vpack.c.bf16 (!%p206_p2), %v651_v49, %v650_v46  ;;  %v653_v52 = vld [vmem:[%s1102_s3 + $0x28] sm:$0xff] (!%p206_p2)  ;;  %v654_v54 = vld [vmem:[%s1102_s3 + $0x30] sm:$0xff] (!%p206_p2)  ;;  %v655_v55 = vld [vmem:[%s1102_s3 + $0x38] sm:$0xff] (!%p206_p2)  ;;  %vm300_vm13 = vcmask (!%p206_p2), 56320   ;;  %vm663_vm14 = vcmask (!%p206_p2), 523264  }
   0x8   : > { %904 = vmatprep.subr.bf16.mxu1 (!%p206_p2), %v959_v47  ;;  %v911_v53 = vpack.c.bf16 (!%p206_p2), %v653_v52, %v652_v51  ;;  %v914_v56 = vpack.c.bf16 (!%p206_p2), %v655_v55, %v654_v54  ;;  %vm739_vm15 = vcmask (!%p206_p2), 522240  }
   0x9   : > { %vm280_vm1 = vcmp.ge.s32.totalorder (!%p206_p2), %v259_v33, 16  ;;  %vm281_vm2 = vcmp.lt.s32.totalorder (!%p206_p2), %v259_v33, 32  ;;  %vm261_vm6 = vcmp.lt.s32.totalorder (!%p206_p2), %v259_v33, 16  ;;  %vm454_vm7 = vcmp.ge.s32.totalorder (!%p206_p2), %v259_v33, 32  ;;  %906 = vmatpush3.bf16.msra.mxu1 (!%p206_p2), %v905_v48 }
   0xa   : > { %vm282_vm3 = vmand (!%p206_p2), %vm280_vm1, %vm281_vm2  ;;  %v828_v38 = vsel (!%p206_p2), %vm261_vm6, 1.0, %v957_v34  ;;  %vm455_vm8 = vcmp.lt.s32.totalorder (!%p206_p2), %v259_v33, 48  ;;  %vm551_vm10 = vcmp.ge.s32.totalorder (!%p206_p2), %v259_v33, 48  ;;  %vm552_vm11 = vcmp.lt.s32.totalorder (!%p206_p2), %v259_v33, 64  ;;  %907 = vmatprep.subr.bf16.mxu1 (!%p206_p2), %v959_v47 }
   0xb   : > { %v829_v36 = vsel (!%p206_p2), %vm282_vm3, 1.0, %v957_v34  ;;  %vm456_vm9 = vmand (!%p206_p2), %vm454_vm7, %vm455_vm8 }
   0xc   : > { %v835_v40 = vsel (!%p206_p2), %vm456_vm9, 1.0, %v957_v34  ;;  %vm553_vm12 = vmand (!%p206_p2), %vm551_vm10, %vm552_vm11 }
   0xd   : > { %s1106_s19 = smov (!%p240_p3, %s818_s19), 1  ;;  %v839_v42 = vsel %vm553_vm12, 1.0, %v957_v34  ;;  %909 = vmatpush3.bf16.msra.mxu1 %v908_v50 }
   0xe   : > { %s847_s20 = sshll.u32 %s1106_s19, 5  ;;  %s1025_s24 = sshll.u32 %s1106_s19, 3  ;;  %910 = vmatprep.subr.bf16.mxu1 %v959_v47 }
   0xf   : > { %s244_s23 = scalar_lea.vmem %s1099_s0, %s847_s20  ;;  %s248_s27 = scalar_lea.vmem %s1100_s1, %s1025_s24 }
  0x10   : > { %v830_v0 = vld [vmem:[%s244_s23 + $0x8] sm:$0x7f]  ;;  %v836_v1 = vld [vmem:[%s244_s23 + $0x10] sm:$0x7f]  ;;  %v265_v2 = vld [vmem:[%s244_s23] sm:$0x7f]  ;;  %s252_s22 = scalar_lea.vmem %s1101_s2, %s1025_s24  ;;  %s256_s28 = scalar_lea.vmem %s1104_s5, %s1025_s24 }
  0x11   : > { %v287_v3 = vmul.f32 0.125, %v830_v0  ;;  %v461_v4 = vmul.f32 0.125, %v836_v1  ;;  %v266_v5 = vmul.f32 0.125, %v265_v2  ;;  %v840_v6 = vld [vmem:[%s244_s23 + $0x18] sm:$0x7f]  ;;  %912 = vmatpush3.bf16.msra.mxu1 %v911_v53 }
  0x12   : > { %v558_v7 = vmul.f32 0.125, %v840_v6  ;;  %v257_v35 = vld [vmem:[%s248_s27] sm:$0x7f]  ;;  %913 = vmatprep.subr.bf16.mxu1 %v959_v47 }
  0x13   : > { %v288_v8 = vsel %vm267_vm0, %v287_v3, -inf  ;;  %v462_v9 = vsel %vm267_vm0, %v461_v4, -inf  ;;  %v268_v10 = vsel %vm267_vm0, %v266_v5, -inf  ;;  %v299_v37 = vmul.f32 %v829_v36, %v257_v35 }
  0x14   : > { %289 = vmax.xlane.f32.xlu0 %v288_v8  ;;  %463 = vmax.xlane.f32.xlu1 %v462_v9  ;;  %v559_v11 = vsel %vm267_vm0, %v558_v7, -inf  ;;  %v279_v39 = vmul.f32 %v828_v38, %v257_v35  ;;  %v473_v41 = vmul.f32 %v835_v40, %v257_v35  ;;  %v570_v43 = vmul.f32 %v839_v42, %v257_v35  ;;  %v737_v9 = vld [vmem:[%s252_s22] sm:$0x7f] }
  0x15   : > { %866 = vmatpush3.msk.msra.mxu0 %vm304_vm4, %v299_v37  ;;  %915 = vmatpush3.bf16.msra.mxu1 %v914_v56 }
  0x16   : > { %870 = vmatprep.subr.mxu0 %v957_v34 }
  0x18   : > { %269 = vmax.xlane.f32.xlu0 %v268_v10  ;;  %560 = vmax.xlane.f32.xlu1 %v559_v11 }
  0xa1   : > { %v290_v12 = vpop.xlane.xlu0 %289  ;;  %v464_v13 = vpop.xlane.xlu1 %463 }
  0xa2   : > { %v291_v14 = vsub.f32 %v287_v3, %v290_v12  ;;  %v465_v15 = vsub.f32 %v461_v4, %v464_v13 }
  0xa4   : > { %v292_v16 = vmul.f32 1.442695, %v291_v14  ;;  %v466_v17 = vmul.f32 1.442695, %v465_v15 }
  0xa5   : > { %v270_v18 = vpop.xlane.xlu0 %269  ;;  %v561_v19 = vpop.xlane.xlu1 %560 }
  0xa6   : > { %933 = vpow2.f32 %v292_v16  ;;  %v271_v20 = vsub.f32 %v266_v5, %v270_v18  ;;  %v562_v21 = vsub.f32 %v558_v7, %v561_v19  ;;  %v843_v7 = vld [vmem:[%s1103_s4] ss:$0 sm:$0xff] }
  0xa7   : > { %935 = vpow2.f32 %v466_v17 }
  0xa8   : > { %v272_v22 = vmul.f32 1.442695, %v271_v20  ;;  %v563_v23 = vmul.f32 1.442695, %v562_v21 }
  0xaa   : > { %937 = vpow2.f32 %v272_v22 }
  0xab   : > { %939 = vpow2.f32 %v563_v23 }
  0xb0   : > { %v1008_v24 = vpop.eup %933 }
  0xb1   : > { %v1010_v25 = vpop.eup %935  ;;  %v294_v26 = vsel %vm267_vm0, %v1008_v24, 0.0 }
  0xb2   : > { %295 = vadd.xlane.f32.xlu0 %v294_v26  ;;  %v468_v27 = vsel %vm267_vm0, %v1010_v25, 0.0 }
  0xb4   : > { %v1016_v28 = vpop.eup %937 }
  0xb5   : > { %v1018_v29 = vpop.eup %939  ;;  %v274_v30 = vsel %vm267_vm0, %v1016_v28, 0.0 }
  0xb6   : > { %469 = vadd.xlane.f32.xlu0 %v468_v27  ;;  %275 = vadd.xlane.f32.xlu1 %v274_v30  ;;  %v565_v31 = vsel %vm267_vm0, %v1018_v29, 0.0 }
  0xba   : > { %566 = vadd.xlane.f32.xlu1 %v565_v31 }
 0x13f   : > { %v296_v57 = vpop.xlane.xlu0 %295 }
 0x140   : > { %941 = vrcp.f32 %v296_v57 }
 0x143   : > { %v276_v58 = vpop.xlane.xlu1 %275  ;;  %v470_v60 = vpop.xlane.xlu0 %469 }
 0x144   : > { %943 = vrcp.f32 %v276_v58 }
 0x145   : > { %945 = vrcp.f32 %v470_v60 }
 0x147   : > { %v567_v0 = vpop.xlane.xlu1 %566 }
 0x148   : > { %947 = vrcp.f32 %v567_v0 }
 0x14a   : > { %v942_v59 = vpop.eup %941 }
 0x14b   : > { %v298_v61 = vmul.f32 %v942_v59, %v1008_v24 }
 0x14d   : > { %868 = vmatmul.mubr.msk.f32.vlgmr.msra.gmra.mrb[0].mxu0 %vm300_vm13, %v298_v61 }
 0x14e   : > { %871 = vmatpush3.msk.msra.mxu0 %vm304_vm4, %v279_v39  ;;  %872 = vmatprep.mubr.msk.f32.mxu0 %vm958_vm5, %v957_v34  ;;  %v944_v62 = vpop.eup %943 }
 0x14f   : > { %875 = vmatprep.subr.mxu0 %v957_v34  ;;  %v278_v63 = vmul.f32 %v944_v62, %v1016_v28  ;;  %v946_v1 = vpop.eup %945 }
 0x150   : > { %v472_v2 = vmul.f32 %v946_v1, %v1010_v25 }
 0x152   : > { %v948_v3 = vpop.eup %947 }
 0x153   : > { %v569_v4 = vmul.f32 %v948_v3, %v1018_v29 }
 0x155   : > { %873 = vmatmul.mubr.msk.f32.vlgmr.msra.gmra.mrb[0].mxu0 %vm300_vm13, %v278_v63 }
 0x156   : > { %876 = vmatpush3.msk.msra.mxu0 %vm304_vm4, %v473_v41  ;;  %877 = vmatprep.mubr.msk.f32.mxu0 %vm958_vm5, %v957_v34 }
 0x157   : > { %880 = vmatprep.subr.mxu0 %v957_v34 }
 0x15d   : > { %878 = vmatmul.mubr.msk.f32.vlgmr.msra.gmra.mrb[0].mxu0 %vm300_vm13, %v472_v2 }
 0x15e   : > { %881 = vmatpush3.msk.msra.mxu0 %vm304_vm4, %v570_v43  ;;  %882 = vmatprep.mubr.msk.f32.mxu0 %vm958_vm5, %v957_v34 }
 0x165   : > { %883 = vmatmul.mubr.msk.f32.vlgmr.msra.gmra.mrb[0].mxu0 %vm300_vm13, %v569_v4 }
 0x238   : > { %v643_v5 = vpop.f32.mrb[0].mxu0 }
 0x239   : > { %v884_v6 = vpop.f32.mrb[1].mxu0  ;;  %902 = vmatmul.mubr.msk.f32.vlgmr.msra.gmra.mrb[0].mxu1 %vm663_vm14, %v643_v5 }
 0x30c   : > { %v733_v8 = vpop.f32.mrb[0].mxu1 }
 0x30d   : > { %v734_v10 = vadd.f32 %v843_v7, %v733_v8  ;;  %v903_v11 = vpop.f32.mrb[1].mxu1 }
 0x30f   : > { %v738_v12 = vadd.f32 %v737_v9, %v734_v10 }
 0x311   : > { %740 = vst.msk [vmem:[%s256_s28] sm:$0x7f] %vm739_vm15, %v738_v12 }
 0x312 PF: > { %s15_s18 = sadd.s32 1, %s955_s18  }
 0x313   : > { %p12_p4 = scmp.ge.s32.totalorder %s15_s18, 4  }
 0x315   :  { %14 = sbr.rel (!%p12_p4) target bundleno = 1 (0x1), region = 79 }

// kernel: _lambda_.28
= control target key start
LH: loop header
LB: loop body
LE: loop exit
PB: predicated region body
PF: predicated region fallthrough
CT: control target
= control target key end

     0   :  { %s779_s24 = smov 0   ;;  %s975_s0 = inlined_call_operand.vmem [shape: f32[2,7,64], index: 0, kind: input, shape index: {}]   ;;  %s976_s1 = inlined_call_operand.vmem [shape: f32[2,64], index: 1, kind: input, shape index: {}]   ;;  %s977_s2 = inlined_call_operand.vmem [shape: f32[64,256], index: 2, kind: input, shape index: {}]   ;;  %s978_s3 = inlined_call_operand.vmem [shape: f32[1,256], index: 3, kind: input, shape index: {}]   ;;  %s979_s4 = inlined_call_operand.vmem [shape: f32[256,64], index: 4, kind: input, shape index: {}]   ;;  %s980_s5 = inlined_call_operand.vmem [shape: f32[1,64], index: 5, kind: input, shape index: {}]   ;;  %s981_s6 = inlined_call_operand.vmem [shape: f32[2,64], index: 6, kind: input, shape index: {}]   ;;  %s982_s7 = inlined_call_operand.vmem [shape: f32[2,7,64], index: 7, kind: output, shape index: {}]  }
   0x1 LB: > { %s609_s25 = sadd.s32 4294967295, %s736_s24   ;;  %p613_p0 = scmp.ge.s32.totalorder %s736_s24, 1  ;;  %s736_s24 = sphi %s779_s24, %s17_s24  }
   0x2   : > { %p236_p1 = scmp.lt.s32.totalorder %s736_s24, 3 }
   0x4   : > { %p237_p2 = pnand %p613_p0, %p236_p1 }
   0x5   : > { %p266_p3 = scmp.lt.s32.totalorder (!%p237_p2), %s609_s25, 1  ;;  %vm277_vm0 = vcmask (!%p237_p2), 522240   ;;  %v303_v7 = vld [vmem:[%s977_s2 + $0x8] sm:$0xff] (!%p237_p2)  ;;  %v305_v8 = vld [vmem:[%s977_s2 + $0x18] sm:$0xff] (!%p237_p2)  ;;  %v302_v10 = vld [vmem:[%s977_s2] sm:$0xff] (!%p237_p2)  ;;  %v738_v20 = vmov (!%p237_p2), 0.0  }
   0x6   : > { %240 = sbr.rel (%p237_p2) target bundleno = 1109 (0x455), region = 48  ;;  %v661_v9 = vpack.c.bf16 (!%p237_p2), %v305_v8, %v303_v7  ;;  %v304_v11 = vld [vmem:[%s977_s2 + $0x10] sm:$0xff] (!%p237_p2)  ;;  %v307_v13 = vld [vmem:[%s977_s2 + $0x28] sm:$0xff] (!%p237_p2)  ;;  %v309_v14 = vld [vmem:[%s977_s2 + $0x38] sm:$0xff] (!%p237_p2)  ;;  %398 = vmatprep.mubr.f32.mxu0 (!%p237_p2), %v738_v20  ;;  %vm330_vm1 = vcmask (!%p237_p2), 523264  }
   0x7   : > { %v663_v12 = vpack.c.bf16 (!%p237_p2), %v304_v11, %v302_v10  ;;  %v306_v15 = vld [vmem:[%s977_s2 + $0x20] sm:$0xff] (!%p237_p2)  ;;  %v665_v16 = vpack.c.bf16 (!%p237_p2), %v309_v14, %v307_v13  ;;  %v308_v17 = vld [vmem:[%s977_s2 + $0x30] sm:$0xff] (!%p237_p2)  ;;  %v311_v18 = vld [vmem:[%s977_s2 + $0x48] sm:$0xff] (!%p237_p2) }
   0x8   : > { %662 = vmatprep.subr.bf16.mxu0 (!%p237_p2), %v661_v9  ;;  %v313_v19 = vld [vmem:[%s977_s2 + $0x58] sm:$0xff] (!%p237_p2)  ;;  %v667_v21 = vpack.c.bf16 (!%p237_p2), %v308_v17, %v306_v15  ;;  %v310_v23 = vld [vmem:[%s977_s2 + $0x40] sm:$0xff] (!%p237_p2)  ;;  %v312_v24 = vld [vmem:[%s977_s2 + $0x50] sm:$0xff] (!%p237_p2) }
   0x9   : > { %664 = vmatpush1.bf16.msra.mxu0 (!%p237_p2), %v663_v12  ;;  %v669_v22 = vpack.c.bf16 (!%p237_p2), %v313_v19, %v311_v18  ;;  %v315_v25 = vld [vmem:[%s977_s2 + $0x68] sm:$0xff] (!%p237_p2)  ;;  %v317_v26 = vld [vmem:[%s977_s2 + $0x78] sm:$0xff] (!%p237_p2)  ;;  %v671_v27 = vpack.c.bf16 (!%p237_p2), %v312_v24, %v310_v23  ;;  %v314_v29 = vld [vmem:[%s977_s2 + $0x60] sm:$0xff] (!%p237_p2) }
   0xa   : > { %666 = vmatprep.subr.bf16.mxu0 (!%p237_p2), %v665_v16  ;;  %v673_v28 = vpack.c.bf16 (!%p237_p2), %v317_v26, %v315_v25  ;;  %v316_v30 = vld [vmem:[%s977_s2 + $0x70] sm:$0xff] (!%p237_p2)  ;;  %v616_v36 = vld [vmem:[%s976_s1] ss:$0 sm:$0xff] (!%p237_p2)  ;;  %v617_v38 = vld [vmem:[%s976_s1 + $0x1] ss:$0 sm:$0xff] (!%p237_p2)  ;;  %v320_v26 = vlaneseq (!%p237_p2) }
   0xb   : > { %v675_v31 = vpack.c.bf16 (!%p237_p2), %v316_v30, %v314_v29  ;;  %v435_v41 = vld [vmem:[%s979_s4 + $0x80] sm:$0xff] (!%p237_p2)  ;;  %v436_v42 = vld [vmem:[%s979_s4 + $0x88] sm:$0xff] (!%p237_p2)  ;;  %v437_v47 = vld [vmem:[%s979_s4 + $0x90] sm:$0xff] (!%p237_p2) }
   0xc   : > { %v677_v43 = vpack.c.bf16 (!%p237_p2), %v436_v42, %v435_v41  ;;  %v419_v44 = vld [vmem:[%s979_s4] sm:$0xff] (!%p237_p2)  ;;  %v420_v45 = vld [vmem:[%s979_s4 + $0x8] sm:$0xff] (!%p237_p2)  ;;  %v438_v48 = vld [vmem:[%s979_s4 + $0x98] sm:$0xff] (!%p237_p2) }
   0xd   : > { %s984_s25 = smov (!%p266_p3, %s609_s25), 1  ;;  %668 = vmatpush1.bf16.msra.mxu0 %v667_v21  ;;  %v679_v46 = vpack.c.bf16 %v420_v45, %v419_v44  ;;  %v681_v49 = vpack.c.bf16 %v438_v48, %v437_v47  ;;  %v421_v50 = vld [vmem:[%s979_s4 + $0x10] sm:$0xff]  ;;  %v422_v51 = vld [vmem:[%s979_s4 + $0x18] sm:$0xff]  ;;  %v439_v53 = vld [vmem:[%s979_s4 + $0xa0] sm:$0xff] }
   0xe   : > { %s614_s26 = sshll.u32 %s984_s25, 3  ;;  %670 = vmatprep.subr.bf16.mxu0 %v669_v22  ;;  %678 = vmatprep.subr.bf16.mxu1 %v677_v43  ;;  %v683_v52 = vpack.c.bf16 %v422_v51, %v421_v50  ;;  %v440_v54 = vld [vmem:[%s979_s4 + $0xa8] sm:$0xff]  ;;  %v423_v56 = vld [vmem:[%s979_s4 + $0x20] sm:$0xff]  ;;  %v441_v59 = vld [vmem:[%s979_s4 + $0xb0] sm:$0xff] }
   0xf   : > { %s269_s29 = scalar_lea.vmem %s975_s0, %s614_s26  ;;  %680 = vmatpush3.bf16.msra.mxu1 %v679_v46  ;;  %v685_v55 = vpack.c.bf16 %v440_v54, %v439_v53  ;;  %v424_v57 = vld [vmem:[%s979_s4 + $0x28] sm:$0xff]  ;;  %v442_v60 = vld [vmem:[%s979_s4 + $0xb8] sm:$0xff]  ;;  %v425_v62 = vld [vmem:[%s979_s4 + $0x30] sm:$0xff]  ;;  %s273_s17 = scalar_lea.vmem %s982_s7, %s614_s26 }
  0x10   : > { %v795_v0 = vld [vmem:[%s269_s29] sm:$0x7f]  ;;  %682 = vmatprep.subr.bf16.mxu1 %v681_v49  ;;  %v687_v58 = vpack.c.bf16 %v424_v57, %v423_v56  ;;  %v689_v61 = vpack.c.bf16 %v442_v60, %v441_v59  ;;  %v426_v63 = vld [vmem:[%s979_s4 + $0x38] sm:$0xff]  ;;  %v445_v8 = vld [vmem:[%s979_s4 + $0xd0] sm:$0xff] }
  0x11   : > { %v278_v1 = vsel %vm277_vm0, %v795_v0, 0.0  ;;  %672 = vmatpush1.bf16.msra.mxu0 %v671_v27  ;;  %v446_v9 = vld [vmem:[%s979_s4 + $0xd8] sm:$0xff]  ;;  %v429_v11 = vld [vmem:[%s979_s4 + $0x50] sm:$0xff]  ;;  %v447_v14 = vld [vmem:[%s979_s4 + $0xe0] sm:$0xff]  ;;  %v321_v27 = vshrl.u32 %v320_v26, 7 }
  0x12   : > { %279 = vadd.xlane.f32.xlu0 %v278_v1  ;;  %674 = vmatprep.subr.bf16.mxu0 %v673_v28  ;;  %v691_v1 = vpack.c.bf16 %v426_v63, %v425_v62  ;;  %v697_v10 = vpack.c.bf16 %v446_v9, %v445_v8  ;;  %v430_v12 = vld [vmem:[%s979_s4 + $0x58] sm:$0xff]  ;;  %v448_v15 = vld [vmem:[%s979_s4 + $0xe8] sm:$0xff]  ;;  %v431_v17 = vld [vmem:[%s979_s4 + $0x60] sm:$0xff] }
  0x13   : > { %684 = vmatpush3.bf16.msra.mxu1 %v683_v52  ;;  %v699_v13 = vpack.c.bf16 %v430_v12, %v429_v11  ;;  %v701_v16 = vpack.c.bf16 %v448_v15, %v447_v14  ;;  %v432_v18 = vld [vmem:[%s979_s4 + $0x68] sm:$0xff]  ;;  %v449_v20 = vld [vmem:[%s979_s4 + $0xf0] sm:$0xff]  ;;  %v450_v21 = vld [vmem:[%s979_s4 + $0xf8] sm:$0xff]  ;;  %v322_v28 = vsub.s32 0, %v321_v27  ;;  %v326_v30 = vsub.s32 1, %v321_v27 }
  0x14   : > { %686 = vmatprep.subr.bf16.mxu1 %v685_v55  ;;  %v703_v19 = vpack.c.bf16 %v432_v18, %v431_v17  ;;  %v705_v22 = vpack.c.bf16 %v450_v21, %v449_v20  ;;  %v433_v23 = vld [vmem:[%s979_s4 + $0x70] sm:$0xff]  ;;  %v434_v24 = vld [vmem:[%s979_s4 + $0x78] sm:$0xff]  ;;  %v318_v29 = vld [vmem:[%s978_s3] sm:$0x3] }
  0x15   : > { %676 = vmatpush1.bf16.msra.mxu0 %v675_v31  ;;  %v707_v25 = vpack.c.bf16 %v434_v24, %v433_v23  ;;  %v323_v31 = vrot.slane %v318_v29, %v322_v28  ;;  %v621_v48 = vld [vmem:[%s980_s5] ss:$0 sm:$0xff] }
  0x17   : > { %688 = vmatpush3.bf16.msra.mxu1 %v687_v58 }
  0x18   : > { %690 = vmatprep.subr.bf16.mxu1 %v689_v61 }
  0x1b   : > { %692 = vmatpush3.bf16.msra.mxu1 %v691_v1 }
  0x9f   : > { %v280_v2 = vpop.xlane.xlu0 %279 }
  0xa0   : > { %v282_v3 = vmul.f32 0.015625, %v280_v2  ;;  %v443_v2 = vld [vmem:[%s979_s4 + $0xc0] sm:$0xff] }
  0xa2   : > { %v283_v4 = vsub.f32 %v795_v0, %v282_v3  ;;  %v444_v3 = vld [vmem:[%s979_s4 + $0xc8] sm:$0xff] }
  0xa4   : > { %v284_v5 = vmul.f32 %v283_v4, %v283_v4 }
  0xa6   : > { %v285_v6 = vsel %vm277_vm0, %v284_v5, 0.0  ;;  %v427_v5 = vld [vmem:[%s979_s4 + $0x40] sm:$0xff] }
  0xa7   : > { %286 = vadd.xlane.f32.xlu0 %v285_v6  ;;  %v428_v6 = vld [vmem:[%s979_s4 + $0x48] sm:$0xff] }
  0xa8   : > { %v695_v7 = vpack.c.bf16 %v428_v6, %v427_v5 }
 0x134   : > { %v287_v32 = vpop.xlane.xlu0 %286 }
 0x135   : > { %v288_v33 = vmul.f32 0.015625, %v287_v32  ;;  %v327_v32 = vrot.slane %v318_v29, %v326_v30 }
 0x137   : > { %v289_v34 = vadd.f32 1e-05, %v288_v33 }
 0x139   : > { %718 = vrsqrt.f32 %v289_v34 }
 0x143   : > { %v719_v35 = vpop.eup %718 }
 0x144   : > { %v291_v37 = vmul.f32 %v719_v35, %v283_v4  ;;  %v693_v4 = vpack.c.bf16 %v444_v3, %v443_v2  ;;  %v623_v2 = vld [vmem:[%s981_s6 + $0x1] ss:$0 sm:$0xff] }
 0x146   : > { %v296_v39 = vmul.f32 %v616_v36, %v291_v37  ;;  %694 = vmatprep.subr.bf16.mxu1 %v693_v4 }
 0x147   : > { %696 = vmatpush3.bf16.msra.mxu1 %v695_v7 }
 0x148   : > { %v301_v40 = vadd.f32 %v617_v38, %v296_v39  ;;  %698 = vmatprep.subr.bf16.mxu1 %v697_v10 }
 0x14a   : > { %618 = vmatmul.mubr.msk.f32.vlgmr.msra.gmra.mrb[0].mxu0 %vm330_vm1, %v301_v40 }
 0x14b   : > { %700 = vmatpush3.bf16.msra.mxu1 %v699_v13 }
 0x14c   : > { %702 = vmatprep.subr.bf16.mxu1 %v701_v16 }
 0x14f   : > { %704 = vmatpush3.bf16.msra.mxu1 %v703_v19 }
 0x150   : > { %706 = vmatprep.subr.bf16.mxu1 %v705_v22 }
 0x153   : > { %708 = vmatpush3.bf16.msra.mxu1 %v707_v25 }
 0x21d   : > { %v400_v33 = vpop.f32.mrb[0].mxu0 }
 0x21e   : > { %v401_v34 = vadd.f32 %v400_v33, %v323_v31  ;;  %v402_v35 = vpop.f32.mrb[1].mxu0 }
 0x21f   : > { %v403_v36 = vadd.f32 %v402_v35, %v327_v32 }
 0x220   : > { %v619_v37 = vmul.f32 -1.442695, %v401_v34 }
 0x221   : > { %v620_v38 = vmul.f32 -1.442695, %v403_v36 }
 0x222   : > { %720 = vpow2.f32 %v619_v37 }
 0x223   : > { %722 = vpow2.f32 %v620_v38 }
 0x22c   : > { %v721_v39 = vpop.eup %720 }
 0x22d   : > { %v723_v40 = vpop.eup %722  ;;  %v411_v41 = vadd.f32 1.0, %v721_v39 }
 0x22e   : > { %v412_v42 = vadd.f32 1.0, %v723_v40 }
 0x22f   : > { %724 = vrcp.f32 %v411_v41 }
 0x230   : > { %726 = vrcp.f32 %v412_v42 }
 0x239   : > { %v725_v43 = vpop.eup %724 }
 0x23a   : > { %v727_v44 = vpop.eup %726  ;;  %v417_v46 = vmul.f32 %v725_v43, %v401_v34 }
 0x23b   : > { %v418_v45 = vmul.f32 %v727_v44, %v403_v36 }
 0x23d   : > { %522 = vmatprep.mubr.f32.mxu1 %v418_v45 }
 0x23e   : > { %523 = vmatmul.mubr.f32.vlgmr.msra.gmra.mrb[0].mxu1 %v417_v46 }
 0x311   : > { %v658_v47 = vpop.f32.mrb[0].mxu1 }
 0x312   : > { %v659_v49 = vpop.f32.mrb[1].mxu1 }
 0x313   : > { %v660_v50 = vadd.f32 %v659_v49, %v658_v47 }
 0x315   : > { %v525_v51 = vadd.f32 %v660_v50, %v621_v48 }
 0x317   : > { %v528_v52 = vmul.f32 0.5, %v525_v51 }
 0x319   : > { %v529_v53 = vadd.f32 %v528_v52, %v795_v0  ;;  %v622_v0 = vld [vmem:[%s981_s6] ss:$0 sm:$0xff] }
 0x31b   : > { %v532_v54 = vsel %vm277_vm0, %v529_v53, 0.0 }
 0x31c   : > { %533 = vadd.xlane.f32.xlu1 %v532_v54 }
 0x3a9   : > { %v534_v55 = vpop.xlane.xlu1 %533 }
 0x3aa   : > { %v535_v56 = vmul.f32 0.015625, %v534_v55 }
 0x3ac   : > { %v536_v57 = vsub.f32 %v529_v53, %v535_v56 }
 0x3ae   : > { %v537_v58 = vmul.f32 %v536_v57, %v536_v57 }
 0x3b0   : > { %v538_v59 = vsel %vm277_vm0, %v537_v58, 0.0 }
 0x3b1   : > { %539 = vadd.xlane.f32.xlu1 %v538_v59 }
 0x43e   : > { %v540_v60 = vpop.xlane.xlu1 %539 }
 0x43f   : > { %v541_v61 = vmul.f32 0.015625, %v540_v60 }
 0x441   : > { %v542_v62 = vadd.f32 1e-05, %v541_v61 }
 0x443   : > { %728 = vrsqrt.f32 %v542_v62 }
 0x44d   : > { %v729_v63 = vpop.eup %728 }
 0x44e   : > { %v544_v1 = vmul.f32 %v729_v63, %v536_v57 }
 0x450   : > { %v549_v3 = vmul.f32 %v622_v0, %v544_v1 }
 0x452   : > { %v554_v4 = vadd.f32 %v623_v2, %v549_v3 }
 0x454   : > { %555 = vst.msk [vmem:[%s273_s17] sm:$0x7f] %vm277_vm0, %v554_v4 }
 0x455 PF: > { %s17_s24 = sadd.s32 1, %s736_s24  }
 0x456   : > { %p14_p4 = scmp.ge.s32.totalorder %s17_s24, 4  }
 0x458   :  { %16 = sbr.rel (!%p14_p4) target bundleno = 1 (0x1), region = 78 }

// kernel: _lambda_.27
= control target key start
LH: loop header
LB: loop body
LE: loop exit
PB: predicated region body
PF: predicated region fallthrough
CT: control target
= control target key end

     0   :  { %s2005_s27 = smov 0   ;;  %s2260_s0 = inlined_call_operand.vmem [shape: f32[2,7,64], index: 0, kind: input, shape index: {}]   ;;  %s2261_s1 = inlined_call_operand.vmem [shape: f32[2,64], index: 1, kind: input, shape index: {}]   ;;  %s2262_s2 = inlined_call_operand.vmem [shape: f32[64,128], index: 2, kind: input, shape index: {}]   ;;  %s2263_s3 = inlined_call_operand.vmem [shape: f32[1,128], index: 3, kind: input, shape index: {}]   ;;  %s2264_s4 = inlined_call_operand.vmem [shape: f32[31,64], index: 4, kind: input, shape index: {}]   ;;  %s2265_s5 = inlined_call_operand.vmem [shape: f32[4,64], index: 5, kind: input, shape index: {}]   ;;  %s2266_s6 = inlined_call_operand.vmem [shape: f32[64,64], index: 6, kind: input, shape index: {}]   ;;  %s2267_s7 = inlined_call_operand.vmem [shape: f32[1,64], index: 7, kind: input, shape index: {}]   ;;  %s2268_s8 = inlined_call_operand.vmem [shape: f32[2,7,64], index: 8, kind: output, shape index: {}]  }
   0x1 LB: > { %s1694_s28 = sadd.s32 4294967295, %s1954_s27   ;;  %p1698_p0 = scmp.ge.s32.totalorder %s1954_s27, 1  ;;  %s1954_s27 = sphi %s2005_s27, %s18_s27  }
   0x2   : > { %p261_p1 = scmp.lt.s32.totalorder %s1954_s27, 3 }
   0x4   : > { %p262_p2 = pnand %p1698_p0, %p261_p1 }
   0x5   : > { %p293_p3 = scmp.lt.s32.totalorder (!%p262_p2), %s1694_s28, 1  ;;  %vm304_vm0 = vcmask (!%p262_p2), 522240   ;;  %v329_v7 = vld [vmem:[%s2262_s2] sm:$0xff] (!%p262_p2)  ;;  %v330_v8 = vld [vmem:[%s2262_s2 + $0x8] sm:$0xff] (!%p262_p2)  ;;  %v331_v10 = vld [vmem:[%s2262_s2 + $0x10] sm:$0xff] (!%p262_p2)  ;;  %v1956_v12 = vmov (!%p262_p2), 0.0|0.0   ;;  %v431_v38 = vlaneseq (!%p262_p2) }
   0x6   : > { %265 = sbr.rel (%p262_p2) target bundleno = 1197 (0x4ad), region = 52  ;;  %v1901_v9 = vpack.c.bf16 (!%p262_p2), %v330_v8, %v329_v7  ;;  %v332_v11 = vld [vmem:[%s2262_s2 + $0x18] sm:$0xff] (!%p262_p2)  ;;  %1900 = vmatprep.subr.bf16.mxu0 (!%p262_p2), %v1956_v12  ;;  %vm1957_vm1 = vmmov (!%p262_p2), 0   ;;  %v1958_v13 = vmov (!%p262_p2), 0.0   ;;  %v333_v15 = vld [vmem:[%s2262_s2 + $0x20] sm:$0xff] (!%p262_p2)  ;;  %v334_v16 = vld [vmem:[%s2262_s2 + $0x28] sm:$0xff] (!%p262_p2) }
   0x7   : > { %1813 = vmatprep.mubr.msk.f32.mxu0 (!%p262_p2), %vm1957_vm1, %v1958_v13  ;;  %v1904_v14 = vpack.c.bf16 (!%p262_p2), %v332_v11, %v331_v10  ;;  %1816 = vmatprep.subr.mxu1 (!%p262_p2), %v1958_v13  ;;  %v1907_v17 = vpack.c.bf16 (!%p262_p2), %v334_v16, %v333_v15  ;;  %v335_v18 = vld [vmem:[%s2262_s2 + $0x30] sm:$0xff] (!%p262_p2)  ;;  %v336_v19 = vld [vmem:[%s2262_s2 + $0x38] sm:$0xff] (!%p262_p2)  ;;  %v1701_v25 = vld [vmem:[%s2261_s1] ss:$0 sm:$0xff] (!%p262_p2)  ;;  %vm344_vm2 = vcmask (!%p262_p2), 523264   ;;  %s1959_s14 = smov (!%p262_p2), 64  }
   0x8   : > { %1902 = vmatpush3.bf16.msra.mxu0 (!%p262_p2), %v1901_v9  ;;  %1818 = vmatprep.mubr.msk.f32.mxu1 (!%p262_p2), %vm1957_vm1, %v1958_v13  ;;  %v1910_v20 = vpack.c.bf16 (!%p262_p2), %v336_v19, %v335_v18  ;;  %v1702_v27 = vld [vmem:[%s2261_s1 + $0x1] ss:$0 sm:$0xff] (!%p262_p2)  ;;  %v1703_v30 = vld [vmem:[%s2263_s3] ss:$0 sm:$0xff] (!%p262_p2)  ;;  %v2073_v39 = vshrl.u32 (!%p262_p2), %v431_v38, 7  ;;  %v2075_v40 = vand.u32 (!%p262_p2), 127, %v431_v38 }
   0x9   : > { %1903 = vmatprep.subr.bf16.mxu0 (!%p262_p2), %v1956_v12  ;;  %vm443_vm4 = vcmask (!%p262_p2), 1046528   ;;  %vm439_vm6 = vcmask (!%p262_p2), 56320   ;;  %v1553_v8 = vld [vmem:[%s2266_s6 + $0x10] sm:$0xff] (!%p262_p2)  ;;  %v1554_v9 = vld [vmem:[%s2266_s6 + $0x18] sm:$0xff] (!%p262_p2)  ;;  %v1555_v11 = vld [vmem:[%s2266_s6 + $0x20] sm:$0xff] (!%p262_p2) }
   0xa   : > { %v435_v41 = vadd.s32 (!%p262_p2), 4294967290, %v2073_v39  ;;  %v1186_v42 = vadd.s32 (!%p262_p2), 3, %v2073_v39  ;;  %v523_v43 = vadd.s32 (!%p262_p2), 4294967291, %v2073_v39  ;;  %v1352_v45 = vadd.s32 (!%p262_p2), 5, %v2073_v39  ;;  %v1557_v15 = vld [vmem:[%s2266_s6 + $0x30] sm:$0xff] (!%p262_p2)  ;;  %v1558_v16 = vld [vmem:[%s2266_s6 + $0x38] sm:$0xff] (!%p262_p2) }
   0xb   : > { %v606_v48 = vadd.s32 (!%p262_p2), 4294967292, %v2073_v39  ;;  %v689_v51 = vadd.s32 (!%p262_p2), 4294967293, %v2073_v39  ;;  %v772_v54 = vadd.s32 (!%p262_p2), 4294967294, %v2073_v39  ;;  %v855_v56 = vadd.s32 (!%p262_p2), 4294967295, %v2073_v39 }
   0xc   : > { %1905 = vmatpush3.bf16.msra.mxu0 (!%p262_p2), %v1904_v14  ;;  %vm436_vm3 = vcmp.eq.s32.totalorder (!%p262_p2), %v2075_v40, %v435_v41  ;;  %vm1187_vm5 = vcmp.eq.s32.totalorder (!%p262_p2), %v2075_v40, %v1186_v42  ;;  %vm524_vm7 = vcmp.eq.s32.totalorder (!%p262_p2), %v2075_v40, %v523_v43  ;;  %vm1353_vm8 = vcmp.eq.s32.totalorder (!%p262_p2), %v2075_v40, %v1352_v45 }
   0xd   : > { %s2270_s28 = smov (!%p293_p3, %s1694_s28), 1  ;;  %1906 = vmatprep.subr.bf16.mxu0 %v1956_v12  ;;  %v1706_v47 = vsel %vm436_vm3, 1.0, %v1958_v13  ;;  %v1733_v49 = vsel %vm1187_vm5, 1.0, %v1958_v13  ;;  %v1709_v50 = vsel %vm524_vm7, 1.0, %v1958_v13  ;;  %vm607_vm9 = vcmp.eq.s32.totalorder %v2075_v40, %v606_v48 }
   0xe   : > { %s1699_s29 = sshll.u32 %s2270_s28, 3  ;;  %v1739_v52 = vsel %vm1353_vm8, 1.0, %v1958_v13  ;;  %v1712_v53 = vsel %vm607_vm9, 1.0, %v1958_v13  ;;  %vm690_vm10 = vcmp.eq.s32.totalorder %v2075_v40, %v689_v51  ;;  %vm773_vm11 = vcmp.eq.s32.totalorder %v2075_v40, %v772_v54 }
   0xf   : > { %s296_s10 = scalar_lea.vmem %s2260_s0, %s1699_s29  ;;  %v1715_v55 = vsel %vm690_vm10, 1.0, %v1958_v13  ;;  %v1718_v57 = vsel %vm773_vm11, 1.0, %v1958_v13  ;;  %vm856_vm12 = vcmp.eq.s32.totalorder %v2075_v40, %v855_v56  ;;  %vm938_vm13 = vcmp.eq.s32.totalorder %v2075_v40, %v2073_v39  ;;  %s300_s9 = scalar_lea.vmem %s2268_s8, %s1699_s29 }
  0x10   : > { %v2021_v0 = vld [vmem:[%s296_s10] sm:$0x7f]  ;;  %1908 = vmatpush3.bf16.msra.mxu0 %v1907_v17  ;;  %v1721_v58 = vsel %vm856_vm12, 1.0, %v1958_v13  ;;  %v1020_v59 = vadd.s32 1, %v2073_v39  ;;  %v1724_v60 = vsel %vm938_vm13, 1.0, %v1958_v13  ;;  %v1103_v61 = vadd.s32 2, %v2073_v39 }
  0x11   : > { %v305_v1 = vsel %vm304_vm0, %v2021_v0, 0.0  ;;  %1909 = vmatprep.subr.bf16.mxu0 %v1956_v12  ;;  %v1269_v63 = vadd.s32 4, %v2073_v39  ;;  %v1916_v10 = vpack.c.bf16 %v1554_v9, %v1553_v8  ;;  %v1922_v17 = vpack.c.bf16 %v1558_v16, %v1557_v15 }
  0x12   : > { %306 = vadd.xlane.f32.xlu0 %v305_v1  ;;  %vm1021_vm14 = vcmp.eq.s32.totalorder %v2075_v40, %v1020_v59  ;;  %vm1104_vm15 = vcmp.eq.s32.totalorder %v2075_v40, %v1103_v61  ;;  %v519_v18 = vsub.s32 1, %v2073_v39  ;;  %v602_v19 = vsub.s32 2, %v2073_v39 }
  0x13   : > { %v1727_v62 = vsel %vm1021_vm14, 1.0, %v1958_v13  ;;  %v1730_v1 = vsel %vm1104_vm15, 1.0, %v1958_v13  ;;  %vm1270_vm3 = vcmp.eq.s32.totalorder %v2075_v40, %v1269_v63  ;;  %v851_v41 = vsub.s32 5, %v2073_v39 }
  0x14   : > { %1911 = vmatpush3.bf16.msra.mxu0 %v1910_v20  ;;  %v429_v20 = vld [vmem:[%s2264_s4 + $0x8] sm:$0xff]  ;;  %v1099_v59 = vsub.s32 0, %v2073_v39 }
  0x15   : > { %1861 = vmatprep.subr.mxu0 %v1958_v13 }
  0x9f   : > { %v307_v2 = vpop.xlane.xlu0 %306 }
  0xa0   : > { %v309_v3 = vmul.f32 0.015625, %v307_v2  ;;  %v1435_v2 = vadd.s32 6, %v2073_v39 }
  0xa2   : > { %v310_v4 = vsub.f32 %v2021_v0, %v309_v3  ;;  %v1736_v3 = vsel %vm1270_vm3, 1.0, %v1958_v13  ;;  %vm1436_vm5 = vcmp.eq.s32.totalorder %v2075_v40, %v1435_v2 }
  0xa4   : > { %v311_v5 = vmul.f32 %v310_v4, %v310_v4 }
  0xa6   : > { %v312_v6 = vsel %vm304_vm0, %v311_v5, 0.0  ;;  %v1551_v5 = vld [vmem:[%s2266_s6] sm:$0xff] }
  0xa7   : > { %313 = vadd.xlane.f32.xlu0 %v312_v6  ;;  %v1552_v6 = vld [vmem:[%s2266_s6 + $0x8] sm:$0xff] }
  0xa8   : > { %v1913_v7 = vpack.c.bf16 %v1552_v6, %v1551_v5 }
 0x134   : > { %v314_v21 = vpop.xlane.xlu0 %313 }
 0x135   : > { %v315_v22 = vmul.f32 0.015625, %v314_v21 }
 0x137   : > { %v316_v23 = vadd.f32 1e-05, %v315_v22  ;;  %v520_v22 = vrot.slane %v429_v20, %v519_v18 }
 0x139   : > { %1936 = vrsqrt.f32 %v316_v23 }
 0x143   : > { %v1937_v24 = vpop.eup %1936 }
 0x144   : > { %v318_v26 = vmul.f32 %v1937_v24, %v310_v4  ;;  %v1742_v4 = vsel %vm1436_vm5, 1.0, %v1958_v13  ;;  %v603_v24 = vrot.slane %v429_v20, %v602_v19 }
 0x146   : > { %v323_v28 = vmul.f32 %v1701_v25, %v318_v26  ;;  %v685_v25 = vsub.s32 3, %v2073_v39 }
 0x148   : > { %v328_v29 = vadd.f32 %v1702_v27, %v323_v28 }
 0x14a   : > { %1814 = vmatmul.mubr.msk.f32.vlgmr.msra.gmra.mrb[0].mxu0 %vm344_vm2, %v328_v29 }
 0x14b   : > { %1863 = vmatprep.mubr.msk.f32.mxu0 %vm1957_vm1, %v1958_v13 }
 0x21d   : > { %v414_v31 = vpop.f32.mrb[0].mxu0 }
 0x21e   : > { %v415_v32 = vadd.f32 %v1703_v30, %v414_v31  ;;  %v1815_v33 = vpop.f32.mrb[1].mxu0  ;;  %v686_v31 = vrot.slane %v429_v20, %v685_v25 }
 0x220   : > { %v1705_v34 = vmul.f32 -1.442695, %v415_v32 }
 0x222   : > { %1938 = vpow2.f32 %v1705_v34 }
 0x22c   : > { %v1939_v35 = vpop.eup %1938 }
 0x22d   : > { %v421_v36 = vadd.f32 1.0, %v1939_v35 }
 0x22f   : > { %1940 = vrcp.f32 %v421_v36 }
 0x239   : > { %v1941_v37 = vpop.eup %1940 }
 0x23a   : > { %425 = vrot.lane.b32.xlu1 %v1941_v37, %s1959_s14 }
 0x2ac   : > { %v426_v44 = vpop.permute.xlu1 %425 }
 0x2ad   : > { %v2083_v46 = vmul.f32 %v426_v44, %v415_v32  ;;  %v768_v32 = vsub.s32 4, %v2073_v39 }
 0x2af   : > { %1817 = vmatpush3.msk.msra.mxu1 %vm443_vm4, %v2083_v46  ;;  %1862 = vmatpush3.msk.msra.mxu0 %vm443_vm4, %v2083_v46  ;;  %v769_v40 = vrot.slane %v429_v20, %v768_v32 }
 0x2b0   : > { %1819 = vmatmul.mubr.msk.f32.vlgmr.msra.gmra.mrb[0].mxu1 %vm439_vm6, %v1706_v47  ;;  %1821 = vmatprep.subr.mxu1 %v1958_v13  ;;  %v934_v47 = vsub.s32 6, %v2073_v39 }
 0x2b1   : > { %1871 = vmatprep.subr.mxu0 %v1958_v13  ;;  %1822 = vmatpush3.msk.msra.mxu1 %vm443_vm4, %v2083_v46 }
 0x2b2   : > { %1864 = vmatmul.mubr.msk.f32.vlgmr.msra.gmra.mrb[2].mxu0 %vm439_vm6, %v1733_v49  ;;  %1823 = vmatprep.mubr.msk.f32.mxu1 %vm1957_vm1, %v1958_v13 }
 0x2b3   : > { %1872 = vmatpush3.msk.msra.mxu0 %vm443_vm4, %v2083_v46  ;;  %1826 = vmatprep.subr.mxu1 %v1958_v13 }
 0x2b4   : > { %1824 = vmatmul.mubr.msk.f32.vlgmr.msra.gmra.mrb[2].mxu1 %vm439_vm6, %v1709_v50  ;;  %1873 = vmatprep.mubr.msk.f32.mxu0 %vm1957_vm1, %v1958_v13 }
 0x2b5   : > { %1827 = vmatpush3.msk.msra.mxu1 %vm443_vm4, %v2083_v46  ;;  %1828 = vmatprep.mubr.msk.f32.mxu1 %vm1957_vm1, %v1958_v13 }
 0x2b6   : > { %1831 = vmatprep.subr.mxu1 %v1958_v13  ;;  %1874 = vmatmul.mubr.msk.f32.vlgmr.msra.gmra.mrb[4].mxu0 %vm439_vm6, %v1739_v52  ;;  %v935_v52 = vrot.slane %v429_v20, %v934_v47 }
 0x2b7   : > { %1912 = vmatprep.subr.bf16.mxu0 %v1956_v12  ;;  %1897 = vmatprep.mubr.msk.f32.mxu0 %vm1957_vm1, %v1958_v13 }
 0x2b8   : > { %1829 = vmatmul.mubr.msk.f32.vlgmr.msra.gmra.mrb[4].mxu1 %vm439_vm6, %v1712_v53  ;;  %1914 = vmatpush3.bf16.msra.mxu0 %v1913_v7  ;;  %v1016_v53 = vsub.s32 7, %v2073_v39 }
 0x2b9   : > { %1832 = vmatpush3.msk.msra.mxu1 %vm443_vm4, %v2083_v46  ;;  %1833 = vmatprep.mubr.msk.f32.mxu1 %vm1957_vm1, %v1958_v13 }
 0x2ba   : > { %1836 = vmatprep.subr.mxu1 %v1958_v13  ;;  %1915 = vmatprep.subr.bf16.mxu0 %v1956_v12 }
 0x2bc   : > { %1834 = vmatmul.mubr.msk.f32.vlgmr.msra.gmra.mrb[6].mxu1 %vm439_vm6, %v1715_v55  ;;  %1917 = vmatpush3.bf16.msra.mxu0 %v1916_v10 }
 0x2bd   : > { %1837 = vmatpush3.msk.msra.mxu1 %vm443_vm4, %v2083_v46  ;;  %1838 = vmatprep.mubr.msk.f32.mxu1 %vm1957_vm1, %v1958_v13 }
 0x2be   : > { %1841 = vmatprep.subr.mxu1 %v1958_v13  ;;  %1918 = vmatprep.subr.bf16.mxu0 %v1956_v12 }
 0x2c0   : > { %1839 = vmatmul.mubr.msk.f32.vlgmr.msra.gmra.mrb[8].mxu1 %vm439_vm6, %v1718_v57 }
 0x2c1   : > { %1842 = vmatpush3.msk.msra.mxu1 %vm443_vm4, %v2083_v46  ;;  %1843 = vmatprep.mubr.msk.f32.mxu1 %vm1957_vm1, %v1958_v13 }
 0x2c2   : > { %1846 = vmatprep.subr.mxu1 %v1958_v13 }
 0x2c4   : > { %1844 = vmatmul.mubr.msk.f32.vlgmr.msra.gmra.mrb[10].mxu1 %vm439_vm6, %v1721_v58  ;;  %v1017_v58 = vrot.slane %v429_v20, %v1016_v53 }
 0x2c5   : > { %1847 = vmatpush3.msk.msra.mxu1 %vm443_vm4, %v2083_v46  ;;  %1848 = vmatprep.mubr.msk.f32.mxu1 %vm1957_vm1, %v1958_v13 }
 0x2c6   : > { %1851 = vmatprep.subr.mxu1 %v1958_v13 }
 0x2c8   : > { %1849 = vmatmul.mubr.msk.f32.vlgmr.msra.gmra.mrb[12].mxu1 %vm439_vm6, %v1724_v60  ;;  %v430_v60 = vld [vmem:[%s2264_s4 + $0x10] sm:$0xff] }
 0x2c9   : > { %1852 = vmatpush3.msk.msra.mxu1 %vm443_vm4, %v2083_v46  ;;  %1853 = vmatprep.mubr.msk.f32.mxu1 %vm1957_vm1, %v1958_v13  ;;  %v1183_v9 = vrot.slane %v430_v60, %v519_v18  ;;  %v1266_v39 = vrot.slane %v430_v60, %v602_v19  ;;  %v1349_v16 = vrot.slane %v430_v60, %v685_v25 }
 0x2ca   : > { %1856 = vmatprep.subr.mxu1 %v1958_v13 }
 0x2cc   : > { %1854 = vmatmul.mubr.msk.f32.vlgmr.msra.gmra.mrb[14].mxu1 %vm439_vm6, %v1727_v62  ;;  %v1521_v62 = vld [vmem:[%s2265_s5 + $0x3] sm:$0x1] }
 0x2cd   : > { %1857 = vmatpush3.msk.msra.mxu1 %vm443_vm4, %v2083_v46  ;;  %1858 = vmatprep.mubr.msk.f32.mxu1 %vm1957_vm1, %v1958_v13 }
 0x2ce   : > { %1866 = vmatprep.subr.mxu1 %v1958_v13 }
 0x2d0   : > { %1859 = vmatmul.mubr.msk.f32.vlgmr.msra.gmra.mrb[16].mxu1 %vm439_vm6, %v1730_v1 }
 0x2d1   : > { %1867 = vmatpush3.msk.msra.mxu1 %vm443_vm4, %v2083_v46  ;;  %1868 = vmatprep.mubr.msk.f32.mxu1 %vm1957_vm1, %v1958_v13 }
 0x2d2   : > { %1876 = vmatprep.subr.mxu1 %v1958_v13 }
 0x2d4   : > { %1869 = vmatmul.mubr.msk.f32.vlgmr.msra.gmra.mrb[18].mxu1 %vm439_vm6, %v1736_v3  ;;  %v1100_v3 = vrot.slane %v430_v60, %v1099_v59 }
 0x2d5   : > { %1877 = vmatpush3.msk.msra.mxu1 %vm443_vm4, %v2083_v46  ;;  %1878 = vmatprep.mubr.msk.f32.mxu1 %vm1957_vm1, %v1958_v13  ;;  %v1556_v13 = vld [vmem:[%s2266_s6 + $0x28] sm:$0xff]  ;;  %v852_v46 = vrot.slane %v429_v20, %v851_v41 }
 0x2d6   : > { %v1919_v14 = vpack.c.bf16 %v1556_v13, %v1555_v11 }
 0x2d8   : > { %1879 = vmatmul.mubr.msk.f32.vlgmr.msra.gmra.mrb[20].mxu1 %vm439_vm6, %v1742_v4  ;;  %1920 = vmatpush3.bf16.msra.mxu0 %v1919_v14  ;;  %v1527_v4 = vadd.f32 1e-05, %v1521_v62 }
 0x2d9   : > { %1921 = vmatprep.subr.bf16.mxu0 %v1956_v12 }
 0x2da   : > { %1942 = vrsqrt.f32 %v1527_v4 }
 0x2dc   : > { %1923 = vmatpush3.bf16.msra.mxu0 %v1922_v17  ;;  %v1432_v17 = vrot.slane %v430_v60, %v768_v32 }
 0x383   : > { %v513_v21 = vpop.f32.mrb[0].mxu1 }
 0x384   : > { %v1820_v23 = vpop.f32.mrb[1].mxu1  ;;  %v521_v29 = vmul.f32 %v520_v22, %v513_v21 }
 0x385   : > { %v1259_v26 = vpop.f32.mrb[2].mxu0 }
 0x386   : > { %v1865_v27 = vpop.f32.mrb[3].mxu0  ;;  %v1267_v15 = vmul.f32 %v1266_v39, %v1259_v26 }
 0x387   : > { %v596_v28 = vpop.f32.mrb[2].mxu1 }
 0x388   : > { %v604_v12 = vmul.f32 %v603_v24, %v596_v28  ;;  %v1825_v30 = vpop.f32.mrb[3].mxu1  ;;  %v1515_v28 = vrot.slane %v430_v60, %v851_v41 }
 0x389   : > { %v1425_v33 = vpop.f32.mrb[4].mxu0 }
 0x38a   : > { %v605_v34 = vadd.f32 %v604_v12, %v521_v29  ;;  %v1875_v35 = vpop.f32.mrb[5].mxu0  ;;  %v1433_v27 = vmul.f32 %v1432_v17, %v1425_v33  ;;  %v1943_v12 = vpop.eup %1942  ;;  %v1747_v33 = vld [vmem:[%s2265_s5 + $0x1] ss:$0 sm:$0xff] }
 0x38b   : > { %v679_v36 = vpop.f32.mrb[4].mxu1  ;;  %v1532_v26 = vrot.slane %v1943_v12, %v1099_v59  ;;  %v1746_v35 = vld [vmem:[%s2265_s5] ss:$0 sm:$0xff] }
 0x38c   : > { %v687_v37 = vmul.f32 %v686_v31, %v679_v36  ;;  %v1830_v38 = vpop.f32.mrb[5].mxu1 }
 0x38e   : > { %v688_v42 = vadd.f32 %v687_v37, %v605_v34  ;;  %v1745_v34 = vld [vmem:[%s2265_s5 + $0x2] ss:$0 sm:$0xff] }
 0x38f   : > { %v762_v43 = vpop.f32.mrb[6].mxu1 }
 0x390   : > { %v770_v44 = vmul.f32 %v769_v40, %v762_v43  ;;  %v1835_v45 = vpop.f32.mrb[7].mxu1 }
 0x391   : > { %v1749_v45 = vld [vmem:[%s2267_s7] ss:$0 sm:$0xff] }
 0x392   : > { %v771_v48 = vadd.f32 %v770_v44, %v688_v42 }
 0x393   : > { %v845_v49 = vpop.f32.mrb[8].mxu1 }
 0x394   : > { %v853_v50 = vmul.f32 %v852_v46, %v845_v49  ;;  %v1840_v51 = vpop.f32.mrb[9].mxu1 }
 0x396   : > { %v854_v54 = vadd.f32 %v853_v50, %v771_v48 }
 0x397   : > { %v928_v55 = vpop.f32.mrb[10].mxu1 }
 0x398   : > { %v936_v56 = vmul.f32 %v935_v52, %v928_v55  ;;  %v1845_v57 = vpop.f32.mrb[11].mxu1 }
 0x39a   : > { %v937_v61 = vadd.f32 %v936_v56, %v854_v54 }
 0x39b   : > { %v1010_v63 = vpop.f32.mrb[12].mxu1 }
 0x39c   : > { %v1018_v1 = vmul.f32 %v1017_v58, %v1010_v63  ;;  %v1850_v2 = vpop.f32.mrb[13].mxu1 }
 0x39e   : > { %v1019_v5 = vadd.f32 %v1018_v1, %v937_v61 }
 0x39f   : > { %v1093_v6 = vpop.f32.mrb[14].mxu1 }
 0x3a0   : > { %v1101_v7 = vmul.f32 %v1100_v3, %v1093_v6  ;;  %v1855_v8 = vpop.f32.mrb[15].mxu1 }
 0x3a2   : > { %v1102_v10 = vadd.f32 %v1101_v7, %v1019_v5 }
 0x3a3   : > { %v1176_v11 = vpop.f32.mrb[16].mxu1 }
 0x3a4   : > { %v1184_v13 = vmul.f32 %v1183_v9, %v1176_v11  ;;  %v1860_v14 = vpop.f32.mrb[17].mxu1 }
 0x3a6   : > { %v1185_v20 = vadd.f32 %v1184_v13, %v1102_v10 }
 0x3a7   : > { %v1342_v21 = vpop.f32.mrb[18].mxu1 }
 0x3a8   : > { %v1268_v22 = vadd.f32 %v1267_v15, %v1185_v20  ;;  %v1350_v23 = vmul.f32 %v1349_v16, %v1342_v21  ;;  %v1870_v24 = vpop.f32.mrb[19].mxu1 }
 0x3aa   : > { %v1351_v29 = vadd.f32 %v1350_v23, %v1268_v22 }
 0x3ab   : > { %v1508_v30 = vpop.f32.mrb[20].mxu1 }
 0x3ac   : > { %v1434_v18 = vadd.f32 %v1433_v27, %v1351_v29  ;;  %v1516_v19 = vmul.f32 %v1515_v28, %v1508_v30  ;;  %v1880_v31 = vpop.f32.mrb[21].mxu1 }
 0x3ae   : > { %v1517_v25 = vadd.f32 %v1516_v19, %v1434_v18 }
 0x3b0   : > { %v1526_v32 = vsub.f32 %v1517_v25, %v1745_v34 }
 0x3b2   : > { %v1533_v36 = vmul.f32 %v1532_v26, %v1526_v32 }
 0x3b4   : > { %v1538_v37 = vmul.f32 %v1746_v35, %v1533_v36 }
 0x3b6   : > { %v1543_v38 = vadd.f32 %v1747_v33, %v1538_v37 }
 0x3b8   : > { %v1748_v40 = vmul.f32 -1.442695, %v1543_v38 }
 0x3ba   : > { %1944 = vpow2.f32 %v1748_v40 }
 0x3c4   : > { %v1945_v41 = vpop.eup %1944 }
 0x3c5   : > { %v1547_v42 = vadd.f32 1.0, %v1945_v41 }
 0x3c7   : > { %1946 = vrcp.f32 %v1547_v42 }
 0x3d1   : > { %v1947_v43 = vpop.eup %1946 }
 0x3d2   : > { %v1550_v44 = vmul.f32 %v1947_v43, %v1543_v38 }
 0x3d4   : > { %1898 = vmatmul.mubr.msk.f32.vlgmr.msra.gmra.mrb[6].mxu0 %vm344_vm2, %v1550_v44 }
 0x4a7   : > { %v1635_v46 = vpop.f32.mrb[6].mxu0 }
 0x4a8   : > { %v1636_v47 = vadd.f32 %v1749_v45, %v1635_v46  ;;  %v1899_v48 = vpop.f32.mrb[7].mxu0 }
 0x4aa   : > { %v1639_v49 = vadd.f32 %v1636_v47, %v2021_v0 }
 0x4ac   : > { %1640 = vst.msk [vmem:[%s300_s9] sm:$0x7f] %vm304_vm0, %v1639_v49 }
 0x4ad PF: > { %s18_s27 = sadd.s32 1, %s1954_s27  }
 0x4ae   : > { %p15_p4 = scmp.ge.s32.totalorder %s18_s27, 4  }
 0x4b0   :  { %17 = sbr.rel (!%p15_p4) target bundleno = 1 (0x1), region = 82 }

// kernel: _lambda_.29
= control target key start
LH: loop header
LB: loop body
LE: loop exit
PB: predicated region body
PF: predicated region fallthrough
CT: control target
= control target key end

     0   :  { %v610_v3 = vmov 0.0|0.0   ;;  %vm611_vm0 = vmmov 0   ;;  %v612_v6 = vmov 0.0   ;;  %vm23_vm1 = vcmask 522240   ;;  %s831_s0 = inlined_call_operand.vmem [shape: f32[2,7,64], index: 0, kind: input, shape index: {}]   ;;  %s832_s1 = inlined_call_operand.vmem [shape: f32[64,64], index: 1, kind: input, shape index: {}]   ;;  %s833_s2 = inlined_call_operand.vmem [shape: f32[1,64], index: 2, kind: input, shape index: {}]   ;;  %s834_s3 = inlined_call_operand.vmem [shape: f32[64,600], index: 3, kind: input, shape index: {}]   ;;  %s835_s4 = inlined_call_operand.vmem [shape: f32[1,600], index: 4, kind: input, shape index: {}]   ;;  %s836_s5 = inlined_call_operand.hbm [shape: f32[2,600], index: 5, kind: output, shape index: {}]  }
   0x1   :  { %v41_v0 = vld [vmem:[%s832_s1] sm:$0xff]  ;;  %v42_v1 = vld [vmem:[%s832_s1 + $0x8] sm:$0xff]  ;;  %v43_v2 = vld [vmem:[%s832_s1 + $0x10] sm:$0xff]  ;;  %525 = vmatprep.subr.bf16.mxu0 %v610_v3  ;;  %503 = vmatprep.mubr.msk.f32.mxu0 %vm611_vm0, %v612_v6 }
   0x2   :  { %v526_v4 = vpack.c.bf16 %v42_v1, %v41_v0  ;;  %v44_v5 = vld [vmem:[%s832_s1 + $0x18] sm:$0xff]  ;;  %v45_v7 = vld [vmem:[%s832_s1 + $0x20] sm:$0xff]  ;;  %268 = vmatprep.mubr.f32.mxu1 %v612_v6  ;;  %v22_v10 = vld [vmem:[%s831_s0 + $0x8] sm:$0x7f] }
   0x3   :  { %v21_v8 = vld [vmem:[%s831_s0] sm:$0x7f]  ;;  %v529_v9 = vpack.c.bf16 %v44_v5, %v43_v2  ;;  %v135_v12 = vld [vmem:[%s834_s3 + $0x8] sm:$0xff]  ;;  %v140_v13 = vld [vmem:[%s834_s3 + $0x30] sm:$0xff]  ;;  %v31_v16 = vsel %vm23_vm1, %v22_v10, 0.0 }
   0x4   :  { %527 = vmatpush3.bf16.msra.mxu0 %v526_v4  ;;  %v24_v11 = vsel %vm23_vm1, %v21_v8, 0.0  ;;  %v46_v14 = vld [vmem:[%s832_s1 + $0x28] sm:$0xff]  ;;  %v537_v17 = vpack.c.bf16 %v140_v13, %v135_v12  ;;  %v134_v18 = vld [vmem:[%s834_s3] sm:$0xff]  ;;  %v32_v20 = vrot.slane %v31_v16, 4  ;;  %v145_v23 = vld [vmem:[%s834_s3 + $0x58] sm:$0xff] }
   0x5   :  { %528 = vmatprep.subr.bf16.mxu0 %v610_v3  ;;  %v25_v15 = vrot.slane %v24_v11, 4  ;;  %v139_v19 = vld [vmem:[%s834_s3 + $0x28] sm:$0xff]  ;;  %v150_v24 = vld [vmem:[%s834_s3 + $0x80] sm:$0xff]  ;;  %v144_v25 = vld [vmem:[%s834_s3 + $0x50] sm:$0xff]  ;;  %v532_v26 = vpack.c.bf16 %v46_v14, %v45_v7 }
   0x6   :  { %v539_v21 = vpack.c.bf16 %v139_v19, %v134_v18  ;;  %538 = vmatprep.subr.bf16.mxu1 %v537_v17  ;;  %v47_v27 = vld [vmem:[%s832_s1 + $0x30] sm:$0xff]  ;;  %v48_v28 = vld [vmem:[%s832_s1 + $0x38] sm:$0xff]  ;;  %v33_v29 = vadd.f32 %v32_v20, %v31_v16  ;;  %v541_v30 = vpack.c.bf16 %v150_v24, %v145_v23  ;;  %v142_v34 = vld [vmem:[%s834_s3 + $0x40] sm:$0xff] }
   0x7   :  { %v26_v22 = vadd.f32 %v25_v15, %v24_v11  ;;  %v149_v31 = vld [vmem:[%s834_s3 + $0x78] sm:$0xff]  ;;  %v155_v36 = vld [vmem:[%s834_s3 + $0xa8] sm:$0xff]  ;;  %v160_v38 = vld [vmem:[%s834_s3 + $0xd0] sm:$0xff]  ;;  %v535_v43 = vpack.c.bf16 %v48_v28, %v47_v27 }
   0x8   :  { %530 = vmatpush3.bf16.msra.mxu0 %v529_v9  ;;  %540 = vmatpush1.bf16.msra.mxu1 %v539_v21  ;;  %v137_v33 = vld [vmem:[%s834_s3 + $0x18] sm:$0xff]  ;;  %v543_v35 = vpack.c.bf16 %v149_v31, %v144_v25  ;;  %v34_v37 = vrot.slane %v33_v29, 2  ;;  %v154_v39 = vld [vmem:[%s834_s3 + $0xa0] sm:$0xff]  ;;  %v159_v40 = vld [vmem:[%s834_s3 + $0xc8] sm:$0xff]  ;;  %v545_v42 = vpack.c.bf16 %v160_v38, %v155_v36 }
   0x9   :  { %531 = vmatprep.subr.bf16.mxu0 %v610_v3  ;;  %v27_v32 = vrot.slane %v26_v22, 2  ;;  %542 = vmatprep.subr.bf16.mxu1 %v541_v30  ;;  %v547_v45 = vpack.c.bf16 %v159_v40, %v154_v39 }
   0xa   :  { %v35_v44 = vadd.f32 %v34_v37, %v33_v29 }
   0xb   :  { %v28_v41 = vadd.f32 %v27_v32, %v26_v22 }
   0xc   :  { %533 = vmatpush3.bf16.msra.mxu0 %v532_v26  ;;  %544 = vmatpush1.bf16.msra.mxu1 %v543_v35 }
   0xd   :  { %10 = vsyncpa [#allocation3], 0  ;;  %534 = vmatprep.subr.bf16.mxu0 %v610_v3  ;;  %v29_v46 = vrot.slane %v28_v41, 1  ;;  %v553_v47 = vpack.c.bf16 %v142_v34, %v137_v33  ;;  %546 = vmatprep.subr.bf16.mxu1 %v545_v42  ;;  %v36_v48 = vrot.slane %v35_v44, 1  ;;  %v136_v50 = vld [vmem:[%s834_s3 + $0x10] sm:$0xff]  ;;  %v141_v51 = vld [vmem:[%s834_s3 + $0x38] sm:$0xff]  ;;  %v176_v35 = vlaneseq }
   0xe   :  { %v147_v53 = vld [vmem:[%s834_s3 + $0x68] sm:$0xff]  ;;  %v152_v54 = vld [vmem:[%s834_s3 + $0x90] sm:$0xff]  ;;  %vm58_vm2 = vcmask 1041409   ;;  %vm60_vm3 = vcmask 523264   ;;  %v555_v57 = vpack.c.bf16 %v141_v51, %v136_v50  ;;  %v146_v59 = vld [vmem:[%s834_s3 + $0x60] sm:$0xff]  ;;  %vm448_vm4 = vcmask 713728  }
   0xf   :  { %v30_v49 = vadd.f32 %v29_v46, %v28_v41  ;;  %v37_v52 = vadd.f32 %v36_v48, %v35_v44  ;;  %v557_v58 = vpack.c.bf16 %v152_v54, %v147_v53  ;;  %v151_v60 = vld [vmem:[%s834_s3 + $0x88] sm:$0xff]  ;;  %v157_v62 = vld [vmem:[%s834_s3 + $0xb8] sm:$0xff]  ;;  %v162_v63 = vld [vmem:[%s834_s3 + $0xe0] sm:$0xff]  ;;  %v177_v36 = vshrl.u32 %v176_v35, 7 }
  0x10   :  { %536 = vmatpush3.bf16.msra.mxu0 %v535_v43  ;;  %548 = vmatpush1.bf16.msra.mxu1 %v547_v45  ;;  %v559_v0 = vpack.c.bf16 %v151_v60, %v146_v59  ;;  %v561_v1 = vpack.c.bf16 %v162_v63, %v157_v62  ;;  %v156_v2 = vld [vmem:[%s834_s3 + $0xb0] sm:$0xff]  ;;  %v161_v4 = vld [vmem:[%s834_s3 + $0xd8] sm:$0xff]  ;;  %v170_v8 = vld [vmem:[%s834_s3 + $0x120] sm:$0xff]  ;;  %v613_v41 = vmov 1983009808  }
  0x11   :  { %v39_v55 = vmul.f32 0.14285715, %v30_v49  ;;  %554 = vmatprep.subr.bf16.mxu0 %v553_v47  ;;  %v40_v56 = vmul.f32 0.14285715, %v37_v52  ;;  %v563_v5 = vpack.c.bf16 %v161_v4, %v156_v2  ;;  %v165_v7 = vld [vmem:[%s834_s3 + $0xf8] sm:$0xff]  ;;  %v164_v10 = vld [vmem:[%s834_s3 + $0xf0] sm:$0xff]  ;;  %v424_v42 = vunpack.c.l.s4 %v613_v41 }
  0x12   :  { %v549_v9 = vpack.c.bf16 %v170_v8, %v165_v7  ;;  %v169_v11 = vld [vmem:[%s834_s3 + $0x118] sm:$0xff]  ;;  %v167_v12 = vld [vmem:[%s834_s3 + $0x108] sm:$0xff]  ;;  %v172_v14 = vld [vmem:[%s834_s3 + $0x130] sm:$0xff]  ;;  %v178_v37 = vsub.s32 0, %v177_v36  ;;  %v186_v38 = vsub.s32 2, %v177_v36  ;;  %v182_v40 = vsub.s32 1, %v177_v36 }
  0x13   :  { %v59_v61 = vsel %vm58_vm2, %v40_v56, %v39_v55  ;;  %v551_v13 = vpack.c.bf16 %v169_v11, %v164_v10  ;;  %v166_v15 = vld [vmem:[%s834_s3 + $0x100] sm:$0xff]  ;;  %v171_v16 = vld [vmem:[%s834_s3 + $0x128] sm:$0xff]  ;;  %v565_v17 = vpack.c.bf16 %v172_v14, %v167_v12  ;;  %v148_v27 = vld [vmem:[%s834_s3 + $0x70] sm:$0xff]  ;;  %v190_v43 = vsub.s32 3, %v177_v36 }
  0x14   :  { %504 = vmatmul.mubr.msk.f32.vlgmr.msra.gmra.mrb[0].mxu0 %vm60_vm3, %v59_v61  ;;  %550 = vmatprep.subr.bf16.mxu1 %v549_v9  ;;  %v567_v18 = vpack.c.bf16 %v171_v16, %v166_v15  ;;  %v464_v19 = vld [vmem:[%s833_s2] ss:$0 sm:$0xff]  ;;  %v143_v21 = vld [vmem:[%s834_s3 + $0x48] sm:$0xff]  ;;  %v153_v28 = vld [vmem:[%s834_s3 + $0x98] sm:$0xff]  ;;  %v425_v47 = vunpack.c.0.s8 %v424_v42  ;;  %v194_v62 = vsub.s32 4, %v177_v36 }
  0x15   :  { %556 = vmatpush1.bf16.msra.mxu0 %v555_v57  ;;  %339 = vmatprep.mubr.f32.mxu0 %v612_v6  ;;  %v138_v20 = vld [vmem:[%s834_s3 + $0x20] sm:$0xff]  ;;  %v573_v29 = vpack.c.bf16 %v153_v28, %v148_v27  ;;  %v163_v31 = vld [vmem:[%s834_s3 + $0xe8] sm:$0xff]  ;;  %v168_v33 = vld [vmem:[%s834_s3 + $0x110] sm:$0xff] }
  0x16   :  { %558 = vmatprep.subr.bf16.mxu0 %v557_v58  ;;  %552 = vmatpush1.bf16.msra.mxu1 %v551_v13  ;;  %v570_v25 = vpack.c.bf16 %v143_v21, %v138_v20  ;;  %v158_v30 = vld [vmem:[%s834_s3 + $0xc0] sm:$0xff]  ;;  %v428_v55 = vsub.s32 %v425_v47, %v177_v36 }
  0x17   :  { %569 = vmatprep.subr.bf16.mxu1 %v610_v3  ;;  %v576_v32 = vpack.c.bf16 %v163_v31, %v158_v30  ;;  %v174_v39 = vld [vmem:[%s835_s4] sm:$0x1f] }
  0x18   :  { %v179_v44 = vrot.slane %v174_v39, %v178_v37  ;;  %v187_v45 = vrot.slane %v174_v39, %v186_v38  ;;  %v183_v46 = vrot.slane %v174_v39, %v182_v40  ;;  %v195_v63 = vrot.slane %v174_v39, %v194_v62 }
  0x19   :  { %560 = vmatpush1.bf16.msra.mxu0 %v559_v0 }
  0x1a   :  { %562 = vmatprep.subr.bf16.mxu0 %v561_v1 }
  0x1d   :  { %564 = vmatpush1.bf16.msra.mxu0 %v563_v5 }
  0x1e   :  { %566 = vmatprep.subr.bf16.mxu0 %v565_v17 }
  0x21   :  { %568 = vmatpush1.bf16.msra.mxu0 %v567_v18 }
  0xe7   :  { %v129_v22 = vpop.f32.mrb[0].mxu0 }
  0xe8   :  { %v130_v23 = vadd.f32 %v464_v19, %v129_v22  ;;  %v505_v24 = vpop.f32.mrb[1].mxu0 }
  0xea   :  { %v133_v26 = vmax.f32 %v130_v23, 0.0 }
  0xec   :  { %466 = vmatmul.mubr.msk.f32.vlgmr.msra.gmra.mrb[0].mxu1 %vm60_vm3, %v133_v26  ;;  %467 = vmatmul.mubr.msk.f32.vlgmr.msra.gmra.mrb[2].mxu0 %vm60_vm3, %v133_v26 }
  0xed   :  { %571 = vmatpush3.bf16.msra.mxu1 %v570_v25  ;;  %522 = vmatprep.mubr.msk.f32.mxu1 %vm611_vm0, %v612_v6  ;;  %v173_v6 = vld [vmem:[%s834_s3 + $0x138] sm:$0xff]  ;;  %s614_s3 = smov [#allocation2]  }
  0xee   :  { %572 = vmatprep.subr.bf16.mxu1 %v610_v3  ;;  %v579_v34 = vpack.c.bf16 %v173_v6, %v168_v33  ;;  %s456_s4 = sshll.u32 %s614_s3, 4  ;;  %s457_s4 = int_to_ptr.vmem [resolvable:$true] %s456_s4 }
  0xef   :  { %s586_s14 = scalar_lea.vmem %s457_s4, 160  ;;  %p591_p1 = scmp.lt.s32.totalorder %s457_s4, %s457_s4 }
  0xf0   :  { %p587_p0 = scmp.ne.s32.totalorder %s457_s4, %s586_s14  ;;  %p592_p2 = scmp.lt.s32.totalorder %s586_s14, %s586_s14 }
  0xf1   :  { %574 = vmatpush3.bf16.msra.mxu1 %v573_v29 }
  0xf2   :  { %575 = vmatprep.subr.bf16.mxu1 %v610_v3  ;;  %p593_p3 = por %p592_p2, %p591_p1 }
  0xf4   :  { %p594_p4 = pnand %p593_p3, %p587_p0 }
  0xf5   :  { %577 = vmatpush3.bf16.msra.mxu1 %v576_v32 }
  0xf6   :  { %578 = vmatprep.subr.bf16.mxu1 %v610_v3  ;;  %v191_v3 = vrot.slane %v174_v39, %v190_v43 }
  0xf9   :  { %580 = vmatpush3.bf16.msra.mxu1 %v579_v34 }
  0xfc   :  { %523 = vmatmul.mubr.msk.f32.vlgmr.msra.gmra.mrb[2].mxu1 %vm60_vm3, %v133_v26 }
 0x1bf   :  { %v270_v48 = vpop.f32.mrb[0].mxu1  ;;  %v341_v49 = vpop.f32.mrb[2].mxu0 }
 0x1c0   :  { %v271_v50 = vadd.f32 %v270_v48, %v179_v44  ;;  %v342_v51 = vadd.f32 %v341_v49, %v187_v45  ;;  %v272_v52 = vpop.f32.mrb[1].mxu1  ;;  %v343_v53 = vpop.f32.mrb[3].mxu0 }
 0x1c1   :  { %v273_v54 = vadd.f32 %v272_v52, %v183_v46  ;;  %v344_v56 = vadd.f32 %v343_v53, %v191_v3 }
 0x1c3   :  { %v421_v57 = vcombine.low %v271_v50, %v273_v54  ;;  %v422_v58 = vcombine.low %v342_v51, %v344_v56 }
 0x1c5   :  { %v429_v59 = vrot.slane %v421_v57, %v428_v55  ;;  %v436_v60 = vrot.slane %v422_v58, %v428_v55 }
 0x1c7   :  { %v437_v61 = vcombine.low %v429_v59, %v436_v60 }
 0x1c9   :  { %447 = vst [vmem:[#allocation2] sm:$0xff] %v437_v61 }
 0x1cf   :  { %v412_v0 = vpop.f32.mrb[2].mxu1 }
 0x1d0   :  { %v413_v1 = vadd.f32 %v412_v0, %v195_v63  ;;  %v524_v2 = vpop.f32.mrb[3].mxu1 }
 0x1d2   :  { %v444_v4 = vrot.slane %v413_v1, %v428_v55 }
 0x1d4   :  { %449 = vst.msk [vmem:[#allocation2 + $0x8] sm:$0x3] %vm448_vm4, %v444_v4 }
 0x1d5   :  { %597 = shalt.err (!%p594_p4)
}
 0x1d6   :  { %s598_s17 = scalar_lea.hbm %s836_s5, 160 }
 0x1d7   :  { %p599_p5 = scmp.ne.s32.totalorder %s836_s5, %s598_s17  ;;  %p602_p6 = scmp.lt.u32.totalorder %s598_s17, %s836_s5 }
 0x1d9   :  { %p604_p7 = pnand %p602_p6, %p599_p5 }
 0x1db   :  { %607 = shalt.err (!%p604_p7)
}
 0x1dc   :  { %459 = dma.vmem_to_hbm [thread:$0]  %s457_s4, 160, %s836_s5, [#allocation3]  }
 0x1dd   :  { %608 = dma.done.wait [#allocation3], 160  }
 0x1de   :  { %609 = vsyncadd [#allocation3], 4294967136 }
 0x1df   :  { %463 = vsyncpa [#allocation3], 1 }

</bundles_post_ra>
